<compile_context>
chip_gen: v6e
topology: v6e:2x2x1
jax: 0.10.0
libtpu: 0.0.40
codegen_flags: <defaults>
</compile_context>

<pallas_src>
import jax
import jax.numpy as jnp
from jax.experimental import pallas as pl
from jax.experimental.pallas import tpu as pltpu


def _bmm_packed_kernel(a_ref, b_ref, o_ref):
    """hb heads of (M,K)@(K,N), with M-rows packed two-per-lane-row.

    a_ref: (hb, M//2, 2K) f32  -- packed row i = [A[2i] | A[2i+1]] (free view)
    b_ref: (hb, K, N)     f32
    o_ref: (hb, M//2, 2N) f32  -- packed row i = [O[2i] | O[2i+1]] (lane-dense)
    """
    hb = a_ref.shape[0]
    k = b_ref.shape[1]
    for h in range(hb):
        # In-kernel f32 -> bf16 cast (hidden under DMA); MXU on native bf16
        # path, f32 accumulation via preferred_element_type.
        b = b_ref[h].astype(jnp.bfloat16)
        even = jnp.dot(a_ref[h, :, :k].astype(jnp.bfloat16), b,
                       preferred_element_type=jnp.float32)
        odd = jnp.dot(a_ref[h, :, k:].astype(jnp.bfloat16), b,
                      preferred_element_type=jnp.float32)
        # (M//2, 2N) with 2N a multiple of 128 -> unmasked vector stores.
        o_ref[h] = jnp.concatenate([even, odd], axis=-1)


def _bmm_plain_kernel(a_ref, b_ref, o_ref):
    """Fallback for shapes that can't be row-packed: straight per-head matmul."""
    for h in range(a_ref.shape[0]):
        o_ref[h] = jnp.dot(a_ref[h].astype(jnp.bfloat16),
                           b_ref[h].astype(jnp.bfloat16),
                           preferred_element_type=jnp.float32)


def _pick_heads_per_step(bh, bytes_per_head, budget=12 * 1024 * 1024):
    """Prefer 2 grid steps (one per TC on v7x, minimal per-step overhead) while
    keeping the double-buffered VMEM footprint under the tightest (v5e) scoped
    default."""
    max_hb = max(1, budget // (2 * bytes_per_head))
    target = bh // 2 if bh % 2 == 0 else bh
    for hb in range(min(target, max_hb), 0, -1):
        if bh % hb == 0:
            return hb
    return 1


@jax.jit
def batched_matmul(a, b):
    """a: [B, H, M, K] f32, b: [B, H, K, N] f32 -> [B, H, M, N] f32."""
    B, H, M, K = a.shape
    Bb, Hb_, Kb, N = b.shape
    assert (B, H, K) == (Bb, Hb_, Kb)

    BH = B * H
    bytes_per_head = 4 * (M * K + K * N + M * N)
    hb = _pick_heads_per_step(BH, bytes_per_head)
    steps = BH // hb

    a3 = a.reshape(BH, M, K)
    b3 = b.reshape(BH, K, N)

    cost = pl.CostEstimate(
        flops=2 * BH * M * K * N,
        transcendentals=0,
        bytes_accessed=4 * BH * (M * K + K * N + M * N),
    )
    cparams = pltpu.CompilerParams(
        dimension_semantics=("parallel",),
        vmem_limit_bytes=32 * 1024 * 1024,
    )

    # Row-packing requires M even with M//2 sublane-aligned, K lane-aligned,
    # and 2N a multiple of 128.
    packed = (M % 2 == 0 and (M // 2) % 8 == 0 and K % 128 == 0 and N % 64 == 0)

    if packed:
        Mp, Kp, Np = M // 2, 2 * K, 2 * N
        a_in = a3.reshape(BH, Mp, Kp)  # free row-major view (byte-identical)
        out3 = pl.pallas_call(
            _bmm_packed_kernel,
            out_shape=jax.ShapeDtypeStruct((BH, Mp, Np), jnp.float32),
            grid_spec=pltpu.PrefetchScalarGridSpec(
                num_scalar_prefetch=0,
                grid=(steps,),
                in_specs=[
                    pl.BlockSpec((hb, Mp, Kp), lambda g: (g, 0, 0)),
                    pl.BlockSpec((hb, K, N), lambda g: (g, 0, 0)),
                ],
                out_specs=pl.BlockSpec((hb, Mp, Np), lambda g: (g, 0, 0)),
            ),
            compiler_params=cparams,
            cost_estimate=cost,
        )(a_in, b3)
        out3 = out3.reshape(BH, M, N)  # free: same bytes, row-major
    else:
        out3 = pl.pallas_call(
            _bmm_plain_kernel,
            out_shape=jax.ShapeDtypeStruct((BH, M, N), jnp.float32),
            grid_spec=pltpu.PrefetchScalarGridSpec(
                num_scalar_prefetch=0,
                grid=(steps,),
                in_specs=[
                    pl.BlockSpec((hb, M, K), lambda g: (g, 0, 0)),
                    pl.BlockSpec((hb, K, N), lambda g: (g, 0, 0)),
                ],
                out_specs=pl.BlockSpec((hb, M, N), lambda g: (g, 0, 0)),
            ),
            compiler_params=cparams,
            cost_estimate=cost,
        )(a3, b3)

    return out3.reshape(B, H, M, N)


class M:
    """JAX/Pallas port of the PyTorch module M: x348 = matmul(x347, x335)."""

    def __call__(self, x347, x335):
        return batched_matmul(x347, x335)


if __name__ == "__main__":
    key = jax.random.PRNGKey(0)
    k1, k2 = jax.random.split(key)

    # Shapes implied by the module's forward (attention probs @ values).
    x335 = jax.random.normal(k1, (1, 12, 384, 64), dtype=jnp.float32)
    x347 = jax.random.normal(k2, (1, 12, 384, 384), dtype=jnp.float32)

    model = M()
    x348 = model(x347, x335)
    x348 = jax.block_until_ready(x348)

    assert x348.shape == (1, 12, 384, 64)

    # Tight check vs. a reference with identical bf16-input quantization and
    # f32 accumulation (only accumulation-order differences remain).
    ref_bf16 = jnp.matmul(
        x347.astype(jnp.bfloat16),
        x335.astype(jnp.bfloat16),
        preferred_element_type=jnp.float32,
    )
    assert jnp.allclose(x348, ref_bf16, atol=1e-2, rtol=1e-2)

    # Loose sanity check vs. the full-precision f32 reference (bf16-input
    # quantization error over K=384 accumulations).
    ref_f32 = jnp.matmul(x347, x335)
    assert jnp.allclose(x348, ref_f32, atol=1.0, rtol=2e-2)

    print("KERNEL_OK")
</pallas_src>

<mosaic_0001>
module attributes {stable_mosaic.version = 11 : i64} {
  func.func @_bmm_packed_kernel(%arg0: i32, %arg1: memref<6x192x768xf32, #tpu.memory_space<vmem>>, %arg2: memref<6x384x64xf32, #tpu.memory_space<vmem>>, %arg3: memref<6x192x128xf32, #tpu.memory_space<vmem>>) attributes {dimension_semantics = [#tpu.dimension_semantics<parallel>], iteration_bounds = array<i64: 2>, scalar_prefetch = 0 : i64, scratch_operands = 0 : i64, tpu.core_type = #tpu.core_type<tc>, window_params = [{transform_indices = @transform_0, window_bounds = array<i64: 6, 192, 768>}, {transform_indices = @transform_1, window_bounds = array<i64: 6, 384, 64>}, {transform_indices = @transform_2, window_bounds = array<i64: 6, 192, 128>}]} {
    %c0 = arith.constant 0 : index
    %c0_0 = arith.constant 0 : index
    %c0_1 = arith.constant 0 : index
    %0 = vector.load %arg2[%c0, %c0_0, %c0_1] : memref<6x384x64xf32, #tpu.memory_space<vmem>>, vector<1x384x64xf32>
    %1 = vector.shape_cast %0 : vector<1x384x64xf32> to vector<384x64xf32>
    %2 = arith.truncf %1 : vector<384x64xf32> to vector<384x64xbf16>
    %c0_2 = arith.constant 0 : index
    %c0_3 = arith.constant 0 : index
    %c0_4 = arith.constant 0 : index
    %3 = vector.load %arg1[%c0_2, %c0_3, %c0_4] : memref<6x192x768xf32, #tpu.memory_space<vmem>>, vector<1x192x384xf32>
    %4 = vector.shape_cast %3 : vector<1x192x384xf32> to vector<192x384xf32>
    %5 = arith.truncf %4 : vector<192x384xf32> to vector<192x384xbf16>
    %cst = arith.constant dense<0.000000e+00> : vector<192x64xf32>
    %6 = tpu.matmul %5, %2, %cst {dimension_numbers = #tpu.dot_dimension_numbers<[1], [0], [0], [1], [0, 0, 1, 1], [], []>} : vector<192x384xbf16>, vector<384x64xbf16>, vector<192x64xf32> -> vector<192x64xf32>
    %c0_5 = arith.constant 0 : index
    %c0_6 = arith.constant 0 : index
    %c384 = arith.constant 384 : index
    %7 = vector.load %arg1[%c0_5, %c0_6, %c384] : memref<6x192x768xf32, #tpu.memory_space<vmem>>, vector<1x192x384xf32>
    %8 = vector.shape_cast %7 : vector<1x192x384xf32> to vector<192x384xf32>
    %9 = arith.truncf %8 : vector<192x384xf32> to vector<192x384xbf16>
    %cst_7 = arith.constant dense<0.000000e+00> : vector<192x64xf32>
    %10 = tpu.matmul %9, %2, %cst_7 {dimension_numbers = #tpu.dot_dimension_numbers<[1], [0], [0], [1], [0, 0, 1, 1], [], []>} : vector<192x384xbf16>, vector<384x64xbf16>, vector<192x64xf32> -> vector<192x64xf32>
    %11 = tpu.concatenate %6, %10 in 1 : vector<192x64xf32>, vector<192x64xf32> -> vector<192x128xf32>
    %c0_8 = arith.constant 0 : index
    %c0_9 = arith.constant 0 : index
    %c0_10 = arith.constant 0 : index
    %12 = vector.load %arg3[%c0_8, %c0_9, %c0_10] : memref<6x192x128xf32, #tpu.memory_space<vmem>>, vector<1x192x128xf32>
    %13 = vector.shape_cast %12 : vector<1x192x128xf32> to vector<192x128xf32>
    %14 = vector.shape_cast %11 : vector<192x128xf32> to vector<1x192x128xf32>
    tpu.vector_store %arg3[%c0_8, %c0_9, %c0_10], %14 {strides = array<i32>} : memref<6x192x128xf32, #tpu.memory_space<vmem>>, vector<1x192x128xf32>,
    %c1 = arith.constant 1 : index
    %c0_11 = arith.constant 0 : index
    %c0_12 = arith.constant 0 : index
    %15 = vector.load %arg2[%c1, %c0_11, %c0_12] : memref<6x384x64xf32, #tpu.memory_space<vmem>>, vector<1x384x64xf32>
    %16 = vector.shape_cast %15 : vector<1x384x64xf32> to vector<384x64xf32>
    %17 = arith.truncf %16 : vector<384x64xf32> to vector<384x64xbf16>
    %c1_13 = arith.constant 1 : index
    %c0_14 = arith.constant 0 : index
    %c0_15 = arith.constant 0 : index
    %18 = vector.load %arg1[%c1_13, %c0_14, %c0_15] : memref<6x192x768xf32, #tpu.memory_space<vmem>>, vector<1x192x384xf32>
    %19 = vector.shape_cast %18 : vector<1x192x384xf32> to vector<192x384xf32>
    %20 = arith.truncf %19 : vector<192x384xf32> to vector<192x384xbf16>
    %cst_16 = arith.constant dense<0.000000e+00> : vector<192x64xf32>
    %21 = tpu.matmul %20, %17, %cst_16 {dimension_numbers = #tpu.dot_dimension_numbers<[1], [0], [0], [1], [0, 0, 1, 1], [], []>} : vector<192x384xbf16>, vector<384x64xbf16>, vector<192x64xf32> -> vector<192x64xf32>
    %c1_17 = arith.constant 1 : index
    %c0_18 = arith.constant 0 : index
    %c384_19 = arith.constant 384 : index
    %22 = vector.load %arg1[%c1_17, %c0_18, %c384_19] : memref<6x192x768xf32, #tpu.memory_space<vmem>>, vector<1x192x384xf32>
    %23 = vector.shape_cast %22 : vector<1x192x384xf32> to vector<192x384xf32>
    %24 = arith.truncf %23 : vector<192x384xf32> to vector<192x384xbf16>
    %cst_20 = arith.constant dense<0.000000e+00> : vector<192x64xf32>
    %25 = tpu.matmul %24, %17, %cst_20 {dimension_numbers = #tpu.dot_dimension_numbers<[1], [0], [0], [1], [0, 0, 1, 1], [], []>} : vector<192x384xbf16>, vector<384x64xbf16>, vector<192x64xf32> -> vector<192x64xf32>
    %26 = tpu.concatenate %21, %25 in 1 : vector<192x64xf32>, vector<192x64xf32> -> vector<192x128xf32>
    %c1_21 = arith.constant 1 : index
    %c0_22 = arith.constant 0 : index
    %c0_23 = arith.constant 0 : index
    %27 = vector.load %arg3[%c1_21, %c0_22, %c0_23] : memref<6x192x128xf32, #tpu.memory_space<vmem>>, vector<1x192x128xf32>
    %28 = vector.shape_cast %27 : vector<1x192x128xf32> to vector<192x128xf32>
    %29 = vector.shape_cast %26 : vector<192x128xf32> to vector<1x192x128xf32>
    tpu.vector_store %arg3[%c1_21, %c0_22, %c0_23], %29 {strides = array<i32>} : memref<6x192x128xf32, #tpu.memory_space<vmem>>, vector<1x192x128xf32>,
    %c2 = arith.constant 2 : index
    %c0_24 = arith.constant 0 : index
    %c0_25 = arith.constant 0 : index
    %30 = vector.load %arg2[%c2, %c0_24, %c0_25] : memref<6x384x64xf32, #tpu.memory_space<vmem>>, vector<1x384x64xf32>
    %31 = vector.shape_cast %30 : vector<1x384x64xf32> to vector<384x64xf32>
    %32 = arith.truncf %31 : vector<384x64xf32> to vector<384x64xbf16>
    %c2_26 = arith.constant 2 : index
    %c0_27 = arith.constant 0 : index
    %c0_28 = arith.constant 0 : index
    %33 = vector.load %arg1[%c2_26, %c0_27, %c0_28] : memref<6x192x768xf32, #tpu.memory_space<vmem>>, vector<1x192x384xf32>
    %34 = vector.shape_cast %33 : vector<1x192x384xf32> to vector<192x384xf32>
    %35 = arith.truncf %34 : vector<192x384xf32> to vector<192x384xbf16>
    %cst_29 = arith.constant dense<0.000000e+00> : vector<192x64xf32>
    %36 = tpu.matmul %35, %32, %cst_29 {dimension_numbers = #tpu.dot_dimension_numbers<[1], [0], [0], [1], [0, 0, 1, 1], [], []>} : vector<192x384xbf16>, vector<384x64xbf16>, vector<192x64xf32> -> vector<192x64xf32>
    %c2_30 = arith.constant 2 : index
    %c0_31 = arith.constant 0 : index
    %c384_32 = arith.constant 384 : index
    %37 = vector.load %arg1[%c2_30, %c0_31, %c384_32] : memref<6x192x768xf32, #tpu.memory_space<vmem>>, vector<1x192x384xf32>
    %38 = vector.shape_cast %37 : vector<1x192x384xf32> to vector<192x384xf32>
    %39 = arith.truncf %38 : vector<192x384xf32> to vector<192x384xbf16>
    %cst_33 = arith.constant dense<0.000000e+00> : vector<192x64xf32>
    %40 = tpu.matmul %39, %32, %cst_33 {dimension_numbers = #tpu.dot_dimension_numbers<[1], [0], [0], [1], [0, 0, 1, 1], [], []>} : vector<192x384xbf16>, vector<384x64xbf16>, vector<192x64xf32> -> vector<192x64xf32>
    %41 = tpu.concatenate %36, %40 in 1 : vector<192x64xf32>, vector<192x64xf32> -> vector<192x128xf32>
    %c2_34 = arith.constant 2 : index
    %c0_35 = arith.constant 0 : index
    %c0_36 = arith.constant 0 : index
    %42 = vector.load %arg3[%c2_34, %c0_35, %c0_36] : memref<6x192x128xf32, #tpu.memory_space<vmem>>, vector<1x192x128xf32>
    %43 = vector.shape_cast %42 : vector<1x192x128xf32> to vector<192x128xf32>
    %44 = vector.shape_cast %41 : vector<192x128xf32> to vector<1x192x128xf32>
    tpu.vector_store %arg3[%c2_34, %c0_35, %c0_36], %44 {strides = array<i32>} : memref<6x192x128xf32, #tpu.memory_space<vmem>>, vector<1x192x128xf32>,
    %c3 = arith.constant 3 : index
    %c0_37 = arith.constant 0 : index
    %c0_38 = arith.constant 0 : index
    %45 = vector.load %arg2[%c3, %c0_37, %c0_38] : memref<6x384x64xf32, #tpu.memory_space<vmem>>, vector<1x384x64xf32>
    %46 = vector.shape_cast %45 : vector<1x384x64xf32> to vector<384x64xf32>
    %47 = arith.truncf %46 : vector<384x64xf32> to vector<384x64xbf16>
    %c3_39 = arith.constant 3 : index
    %c0_40 = arith.constant 0 : index
    %c0_41 = arith.constant 0 : index
    %48 = vector.load %arg1[%c3_39, %c0_40, %c0_41] : memref<6x192x768xf32, #tpu.memory_space<vmem>>, vector<1x192x384xf32>
    %49 = vector.shape_cast %48 : vector<1x192x384xf32> to vector<192x384xf32>
    %50 = arith.truncf %49 : vector<192x384xf32> to vector<192x384xbf16>
    %cst_42 = arith.constant dense<0.000000e+00> : vector<192x64xf32>
    %51 = tpu.matmul %50, %47, %cst_42 {dimension_numbers = #tpu.dot_dimension_numbers<[1], [0], [0], [1], [0, 0, 1, 1], [], []>} : vector<192x384xbf16>, vector<384x64xbf16>, vector<192x64xf32> -> vector<192x64xf32>
    %c3_43 = arith.constant 3 : index
    %c0_44 = arith.constant 0 : index
    %c384_45 = arith.constant 384 : index
    %52 = vector.load %arg1[%c3_43, %c0_44, %c384_45] : memref<6x192x768xf32, #tpu.memory_space<vmem>>, vector<1x192x384xf32>
    %53 = vector.shape_cast %52 : vector<1x192x384xf32> to vector<192x384xf32>
    %54 = arith.truncf %53 : vector<192x384xf32> to vector<192x384xbf16>
    %cst_46 = arith.constant dense<0.000000e+00> : vector<192x64xf32>
    %55 = tpu.matmul %54, %47, %cst_46 {dimension_numbers = #tpu.dot_dimension_numbers<[1], [0], [0], [1], [0, 0, 1, 1], [], []>} : vector<192x384xbf16>, vector<384x64xbf16>, vector<192x64xf32> -> vector<192x64xf32>
    %56 = tpu.concatenate %51, %55 in 1 : vector<192x64xf32>, vector<192x64xf32> -> vector<192x128xf32>
    %c3_47 = arith.constant 3 : index
    %c0_48 = arith.constant 0 : index
    %c0_49 = arith.constant 0 : index
    %57 = vector.load %arg3[%c3_47, %c0_48, %c0_49] : memref<6x192x128xf32, #tpu.memory_space<vmem>>, vector<1x192x128xf32>
    %58 = vector.shape_cast %57 : vector<1x192x128xf32> to vector<192x128xf32>
    %59 = vector.shape_cast %56 : vector<192x128xf32> to vector<1x192x128xf32>
    tpu.vector_store %arg3[%c3_47, %c0_48, %c0_49], %59 {strides = array<i32>} : memref<6x192x128xf32, #tpu.memory_space<vmem>>, vector<1x192x128xf32>,
    %c4 = arith.constant 4 : index
    %c0_50 = arith.constant 0 : index
    %c0_51 = arith.constant 0 : index
    %60 = vector.load %arg2[%c4, %c0_50, %c0_51] : memref<6x384x64xf32, #tpu.memory_space<vmem>>, vector<1x384x64xf32>
    %61 = vector.shape_cast %60 : vector<1x384x64xf32> to vector<384x64xf32>
    %62 = arith.truncf %61 : vector<384x64xf32> to vector<384x64xbf16>
    %c4_52 = arith.constant 4 : index
    %c0_53 = arith.constant 0 : index
    %c0_54 = arith.constant 0 : index
    %63 = vector.load %arg1[%c4_52, %c0_53, %c0_54] : memref<6x192x768xf32, #tpu.memory_space<vmem>>, vector<1x192x384xf32>
    %64 = vector.shape_cast %63 : vector<1x192x384xf32> to vector<192x384xf32>
    %65 = arith.truncf %64 : vector<192x384xf32> to vector<192x384xbf16>
    %cst_55 = arith.constant dense<0.000000e+00> : vector<192x64xf32>
    %66 = tpu.matmul %65, %62, %cst_55 {dimension_numbers = #tpu.dot_dimension_numbers<[1], [0], [0], [1], [0, 0, 1, 1], [], []>} : vector<192x384xbf16>, vector<384x64xbf16>, vector<192x64xf32> -> vector<192x64xf32>
    %c4_56 = arith.constant 4 : index
    %c0_57 = arith.constant 0 : index
    %c384_58 = arith.constant 384 : index
    %67 = vector.load %arg1[%c4_56, %c0_57, %c384_58] : memref<6x192x768xf32, #tpu.memory_space<vmem>>, vector<1x192x384xf32>
    %68 = vector.shape_cast %67 : vector<1x192x384xf32> to vector<192x384xf32>
    %69 = arith.truncf %68 : vector<192x384xf32> to vector<192x384xbf16>
    %cst_59 = arith.constant dense<0.000000e+00> : vector<192x64xf32>
    %70 = tpu.matmul %69, %62, %cst_59 {dimension_numbers = #tpu.dot_dimension_numbers<[1], [0], [0], [1], [0, 0, 1, 1], [], []>} : vector<192x384xbf16>, vector<384x64xbf16>, vector<192x64xf32> -> vector<192x64xf32>
    %71 = tpu.concatenate %66, %70 in 1 : vector<192x64xf32>, vector<192x64xf32> -> vector<192x128xf32>
    %c4_60 = arith.constant 4 : index
    %c0_61 = arith.constant 0 : index
    %c0_62 = arith.constant 0 : index
    %72 = vector.load %arg3[%c4_60, %c0_61, %c0_62] : memref<6x192x128xf32, #tpu.memory_space<vmem>>, vector<1x192x128xf32>
    %73 = vector.shape_cast %72 : vector<1x192x128xf32> to vector<192x128xf32>
    %74 = vector.shape_cast %71 : vector<192x128xf32> to vector<1x192x128xf32>
    tpu.vector_store %arg3[%c4_60, %c0_61, %c0_62], %74 {strides = array<i32>} : memref<6x192x128xf32, #tpu.memory_space<vmem>>, vector<1x192x128xf32>,
    %c5 = arith.constant 5 : index
    %c0_63 = arith.constant 0 : index
    %c0_64 = arith.constant 0 : index
    %75 = vector.load %arg2[%c5, %c0_63, %c0_64] : memref<6x384x64xf32, #tpu.memory_space<vmem>>, vector<1x384x64xf32>
    %76 = vector.shape_cast %75 : vector<1x384x64xf32> to vector<384x64xf32>
    %77 = arith.truncf %76 : vector<384x64xf32> to vector<384x64xbf16>
    %c5_65 = arith.constant 5 : index
    %c0_66 = arith.constant 0 : index
    %c0_67 = arith.constant 0 : index
    %78 = vector.load %arg1[%c5_65, %c0_66, %c0_67] : memref<6x192x768xf32, #tpu.memory_space<vmem>>, vector<1x192x384xf32>
    %79 = vector.shape_cast %78 : vector<1x192x384xf32> to vector<192x384xf32>
    %80 = arith.truncf %79 : vector<192x384xf32> to vector<192x384xbf16>
    %cst_68 = arith.constant dense<0.000000e+00> : vector<192x64xf32>
    %81 = tpu.matmul %80, %77, %cst_68 {dimension_numbers = #tpu.dot_dimension_numbers<[1], [0], [0], [1], [0, 0, 1, 1], [], []>} : vector<192x384xbf16>, vector<384x64xbf16>, vector<192x64xf32> -> vector<192x64xf32>
    %c5_69 = arith.constant 5 : index
    %c0_70 = arith.constant 0 : index
    %c384_71 = arith.constant 384 : index
    %82 = vector.load %arg1[%c5_69, %c0_70, %c384_71] : memref<6x192x768xf32, #tpu.memory_space<vmem>>, vector<1x192x384xf32>
    %83 = vector.shape_cast %82 : vector<1x192x384xf32> to vector<192x384xf32>
    %84 = arith.truncf %83 : vector<192x384xf32> to vector<192x384xbf16>
    %cst_72 = arith.constant dense<0.000000e+00> : vector<192x64xf32>
    %85 = tpu.matmul %84, %77, %cst_72 {dimension_numbers = #tpu.dot_dimension_numbers<[1], [0], [0], [1], [0, 0, 1, 1], [], []>} : vector<192x384xbf16>, vector<384x64xbf16>, vector<192x64xf32> -> vector<192x64xf32>
    %86 = tpu.concatenate %81, %85 in 1 : vector<192x64xf32>, vector<192x64xf32> -> vector<192x128xf32>
    %c5_73 = arith.constant 5 : index
    %c0_74 = arith.constant 0 : index
    %c0_75 = arith.constant 0 : index
    %87 = vector.load %arg3[%c5_73, %c0_74, %c0_75] : memref<6x192x128xf32, #tpu.memory_space<vmem>>, vector<1x192x128xf32>
    %88 = vector.shape_cast %87 : vector<1x192x128xf32> to vector<192x128xf32>
    %89 = vector.shape_cast %86 : vector<192x128xf32> to vector<1x192x128xf32>
    tpu.vector_store %arg3[%c5_73, %c0_74, %c0_75], %89 {strides = array<i32>} : memref<6x192x128xf32, #tpu.memory_space<vmem>>, vector<1x192x128xf32>,
    return
  }
  func.func @transform_0(%arg0: i32) -> (i32, i32, i32) {
    %c0_i32 = arith.constant 0 : i32
    %c0_i32_0 = arith.constant 0 : i32
    %c0_i32_1 = arith.constant 0 : i32
    return %arg0, %c0_i32, %c0_i32_0 : i32, i32, i32
  }
  func.func @transform_1(%arg0: i32) -> (i32, i32, i32) {
    %c0_i32 = arith.constant 0 : i32
    %c0_i32_0 = arith.constant 0 : i32
    %c0_i32_1 = arith.constant 0 : i32
    return %arg0, %c0_i32, %c0_i32_0 : i32, i32, i32
  }
  func.func @transform_2(%arg0: i32) -> (i32, i32, i32) {
    %c0_i32 = arith.constant 0 : i32
    %c0_i32_0 = arith.constant 0 : i32
    %c0_i32_1 = arith.constant 0 : i32
    return %arg0, %c0_i32, %c0_i32_0 : i32, i32, i32
  }
}

</mosaic_0001>

<bundles_post_ra>
// kernel: batched_matmul.1
= control target key start
LH: loop header
LB: loop body
LE: loop exit
PB: predicated region body
PF: predicated region fallthrough
CT: control target
= control target key end

     0   :  { %s8854_s9 = smov 0   ;;  %s12464_s0 = inlined_call_operand.vmem [shape: f32[12,192,768], index: 0, kind: input, shape index: {}]   ;;  %s12465_s1 = inlined_call_operand.vmem [shape: f32[12,384,64], index: 1, kind: input, shape index: {}]   ;;  %s12466_s2 = inlined_call_operand.vmem [shape: f32[12,192,128], index: 2, kind: output, shape index: {}]  }
   0x1 LB: > { %s5952_s10 = sadd.s32 4294967295, %s8836_s9   ;;  %p5956_p0 = scmp.ge.s32.totalorder %s8836_s9, 1  ;;  %s8836_s9 = sphi %s8854_s9, %s12_s9  }
   0x2   : > { %p126_p1 = scmp.lt.s32.totalorder %s8836_s9, 3 }
   0x4   : > { %p127_p2 = pnand %p5956_p0, %p126_p1 }
   0x6   : > { %130 = sbr.rel (%p127_p2) target bundleno = 1234 (0x4d2), region = 28 }
   0xb   : > { %s156_s11 = smul.u32 6, %s5952_s10  ;;  %s8838_s20 = smov 64   ;;  %vm1078_vm0 = vcmask 523264  }
   0xd   : > { %p157_p3 = scmp.lt.s32.totalorder %s156_s11, 11 }
   0xf   : > { %s12734_s11 = smov (!%p157_p3, %s156_s11), 11 }
  0x10   : > { %s8818_s12 = smul.u32 1152, %s12734_s11 }
  0x11   : > { %s8819_s13 = smul.u32 384, %s12734_s11 }
  0x12   : > { %s8869_s16 = scalar_lea.vmem %s12464_s0, %s8818_s12  ;;  %s8820_s21 = smul.u32 192, %s12734_s11 }
  0x13   : > { %s8874_s19 = scalar_lea.vmem %s12465_s1, %s8819_s13  ;;  %v251_v0 = vld [vmem:[%s8869_s16 + $0x8] sm:$0xff]  ;;  %v254_v1 = vld [vmem:[%s8869_s16 + $0x38] sm:$0xff]  ;;  %v252_v49 = vld [vmem:[%s8869_s16 + $0x10] sm:$0xff] }
  0x14   : > { %v208_v2 = vld [vmem:[%s8874_s19 + $0xf0] sm:$0xff]  ;;  %v209_v3 = vld [vmem:[%s8874_s19 + $0xf8] sm:$0xff]  ;;  %v323_v5 = vpack.c.bf16 %v254_v1, %v251_v0  ;;  %v206_v12 = vld [vmem:[%s8874_s19 + $0xe0] sm:$0xff]  ;;  %s10229_s24 = scalar_lea.vmem %s12466_s2, %s8820_s21 }
  0x15   : > { %v224_v4 = vld [vmem:[%s8874_s19 + $0x170] sm:$0xff]  ;;  %v8881_v6 = vpack.c.bf16 %v209_v3, %v208_v2  ;;  %v225_v7 = vld [vmem:[%s8874_s19 + $0x178] sm:$0xff]  ;;  %v207_v13 = vld [vmem:[%s8874_s19 + $0xe8] sm:$0xff] }
  0x16   : > { %v192_v8 = vld [vmem:[%s8874_s19 + $0x70] sm:$0xff]  ;;  %v193_v9 = vld [vmem:[%s8874_s19 + $0x78] sm:$0xff]  ;;  %v8886_v10 = vpack.c.bf16 %v225_v7, %v224_v4  ;;  %v222_v14 = vld [vmem:[%s8874_s19 + $0x160] sm:$0xff]  ;;  %390 = vmatprep.mubr.bf16.mxu0 %v323_v5  ;;  %v8894_v15 = vpack.c.bf16 %v207_v13, %v206_v12 }
  0x17   : > { %v8888_v11 = vpack.c.bf16 %v193_v9, %v192_v8  ;;  %7042 = vmatprep.subr.bf16.mxu0 %v8881_v6  ;;  %v223_v16 = vld [vmem:[%s8874_s19 + $0x168] sm:$0xff]  ;;  %v190_v17 = vld [vmem:[%s8874_s19 + $0x60] sm:$0xff]  ;;  %v204_v21 = vld [vmem:[%s8874_s19 + $0xd0] sm:$0xff] }
  0x18   : > { %v191_v18 = vld [vmem:[%s8874_s19 + $0x68] sm:$0xff]  ;;  %8338 = vmatprep.subr.bf16.mxu1 %v8886_v10  ;;  %v8901_v19 = vpack.c.bf16 %v223_v16, %v222_v14  ;;  %v205_v22 = vld [vmem:[%s8874_s19 + $0xd8] sm:$0xff]  ;;  %v220_v23 = vld [vmem:[%s8874_s19 + $0x150] sm:$0xff] }
  0x19   : > { %7043 = vmatpush3.bf16.msra.mxu0 %v8888_v11  ;;  %v8903_v20 = vpack.c.bf16 %v191_v18, %v190_v17  ;;  %8339 = vmatpush3.bf16.msra.mxu1 %v8886_v10  ;;  %v8910_v24 = vpack.c.bf16 %v205_v22, %v204_v21  ;;  %v221_v25 = vld [vmem:[%s8874_s19 + $0x158] sm:$0xff]  ;;  %v188_v26 = vld [vmem:[%s8874_s19 + $0x50] sm:$0xff]  ;;  %v202_v29 = vld [vmem:[%s8874_s19 + $0xc0] sm:$0xff] }
  0x1a   : > { %7044 = vmatprep.subr.bf16.mxu0 %v8894_v15  ;;  %v189_v27 = vld [vmem:[%s8874_s19 + $0x58] sm:$0xff]  ;;  %8340 = vmatprep.subr.bf16.mxu1 %v8901_v19  ;;  %v8916_v28 = vpack.c.bf16 %v221_v25, %v220_v23  ;;  %v203_v30 = vld [vmem:[%s8874_s19 + $0xc8] sm:$0xff]  ;;  %v218_v31 = vld [vmem:[%s8874_s19 + $0x140] sm:$0xff] }
  0x1b   : > { %v219_v32 = vld [vmem:[%s8874_s19 + $0x148] sm:$0xff]  ;;  %v8923_v33 = vpack.c.bf16 %v189_v27, %v188_v26  ;;  %v8927_v34 = vpack.c.bf16 %v203_v30, %v202_v29  ;;  %v186_v35 = vld [vmem:[%s8874_s19 + $0x40] sm:$0xff]  ;;  %v200_v38 = vld [vmem:[%s8874_s19 + $0xb0] sm:$0xff] }
  0x1c   : > { %v187_v36 = vld [vmem:[%s8874_s19 + $0x48] sm:$0xff]  ;;  %v8932_v37 = vpack.c.bf16 %v219_v32, %v218_v31  ;;  %v201_v39 = vld [vmem:[%s8874_s19 + $0xb8] sm:$0xff]  ;;  %v216_v40 = vld [vmem:[%s8874_s19 + $0x130] sm:$0xff] }
  0x1d   : > { %7045 = vmatpush3.bf16.msra.mxu0 %v8903_v20  ;;  %8341 = vmatpush3.bf16.msra.mxu1 %v8901_v19  ;;  %v217_v41 = vld [vmem:[%s8874_s19 + $0x138] sm:$0xff]  ;;  %v8939_v42 = vpack.c.bf16 %v187_v36, %v186_v35  ;;  %v8943_v43 = vpack.c.bf16 %v201_v39, %v200_v38  ;;  %v184_v44 = vld [vmem:[%s8874_s19 + $0x30] sm:$0xff]  ;;  %v198_v47 = vld [vmem:[%s8874_s19 + $0xa0] sm:$0xff] }
  0x1e   : > { %7046 = vmatprep.subr.bf16.mxu0 %v8910_v24  ;;  %8342 = vmatprep.subr.bf16.mxu1 %v8916_v28  ;;  %v185_v45 = vld [vmem:[%s8874_s19 + $0x38] sm:$0xff]  ;;  %v8948_v46 = vpack.c.bf16 %v217_v41, %v216_v40  ;;  %v199_v48 = vld [vmem:[%s8874_s19 + $0xa8] sm:$0xff]  ;;  %v214_v50 = vld [vmem:[%s8874_s19 + $0x120] sm:$0xff] }
  0x1f   : > { %v215_v51 = vld [vmem:[%s8874_s19 + $0x128] sm:$0xff]  ;;  %v8956_v52 = vpack.c.bf16 %v185_v45, %v184_v44  ;;  %v255_v53 = vld [vmem:[%s8869_s16 + $0x40] sm:$0xff]  ;;  %v8961_v54 = vpack.c.bf16 %v199_v48, %v198_v47  ;;  %v196_v59 = vld [vmem:[%s8874_s19 + $0x90] sm:$0xff] }
  0x20   : > { %v182_v55 = vld [vmem:[%s8874_s19 + $0x20] sm:$0xff]  ;;  %v183_v56 = vld [vmem:[%s8874_s19 + $0x28] sm:$0xff]  ;;  %v324_v57 = vpack.c.bf16 %v255_v53, %v252_v49  ;;  %v8966_v58 = vpack.c.bf16 %v215_v51, %v214_v50  ;;  %v197_v60 = vld [vmem:[%s8874_s19 + $0x98] sm:$0xff] }
  0x21   : > { %7047 = vmatpush3.bf16.msra.mxu0 %v8923_v33  ;;  %8343 = vmatpush3.bf16.msra.mxu1 %v8916_v28  ;;  %v212_v61 = vld [vmem:[%s8874_s19 + $0x110] sm:$0xff]  ;;  %v213_v62 = vld [vmem:[%s8874_s19 + $0x118] sm:$0xff]  ;;  %v8973_v63 = vpack.c.bf16 %v183_v56, %v182_v55  ;;  %v8977_v0 = vpack.c.bf16 %v197_v60, %v196_v59  ;;  %v194_v4 = vld [vmem:[%s8874_s19 + $0x80] sm:$0xff] }
  0x22   : > { %7048 = vmatprep.subr.bf16.mxu0 %v8927_v34  ;;  %8344 = vmatprep.subr.bf16.mxu1 %v8932_v37  ;;  %v180_v1 = vld [vmem:[%s8874_s19 + $0x10] sm:$0xff]  ;;  %v181_v2 = vld [vmem:[%s8874_s19 + $0x18] sm:$0xff]  ;;  %v8982_v3 = vpack.c.bf16 %v213_v62, %v212_v61  ;;  %v195_v5 = vld [vmem:[%s8874_s19 + $0x88] sm:$0xff] }
  0x23   : > { %8354 = vmatprep.mubr.bf16.mxu1 %v324_v57  ;;  %v210_v7 = vld [vmem:[%s8874_s19 + $0x100] sm:$0xff]  ;;  %v211_v8 = vld [vmem:[%s8874_s19 + $0x108] sm:$0xff]  ;;  %v8989_v9 = vpack.c.bf16 %v181_v2, %v180_v1  ;;  %v8993_v12 = vpack.c.bf16 %v195_v5, %v194_v4  ;;  %v253_v21 = vld [vmem:[%s8869_s16 + $0x30] sm:$0xff] }
  0x24   : > { %v178_v13 = vld [vmem:[%s8874_s19] sm:$0xff]  ;;  %v179_v14 = vld [vmem:[%s8874_s19 + $0x8] sm:$0xff]  ;;  %v8998_v16 = vpack.c.bf16 %v211_v8, %v210_v7  ;;  %v258_v22 = vld [vmem:[%s8869_s16 + $0x70] sm:$0xff] }
  0x25   : > { %7049 = vmatpush3.bf16.msra.mxu0 %v8939_v42  ;;  %8345 = vmatpush3.bf16.msra.mxu1 %v8932_v37  ;;  %v9001_v17 = vpack.c.bf16 %v179_v14, %v178_v13  ;;  %v250_v18 = vld [vmem:[%s8869_s16] sm:$0xff]  ;;  %v257_v25 = vld [vmem:[%s8869_s16 + $0x68] sm:$0xff]  ;;  %v260_v26 = vld [vmem:[%s8869_s16 + $0x98] sm:$0xff] }
  0x26   : > { %7050 = vmatprep.subr.bf16.mxu0 %v8943_v43  ;;  %8346 = vmatprep.subr.bf16.mxu1 %v8948_v46  ;;  %v261_v23 = vld [vmem:[%s8869_s16 + $0xa0] sm:$0xff]  ;;  %v322_v27 = vpack.c.bf16 %v253_v21, %v250_v18  ;;  %v264_v29 = vld [vmem:[%s8869_s16 + $0xd0] sm:$0xff]  ;;  %v326_v32 = vpack.c.bf16 %v260_v26, %v257_v25  ;;  %v263_v41 = vld [vmem:[%s8869_s16 + $0xc8] sm:$0xff] }
  0x27   : > { %v267_v30 = vld [vmem:[%s8869_s16 + $0x100] sm:$0xff]  ;;  %v327_v31 = vpack.c.bf16 %v261_v23, %v258_v22  ;;  %v259_v38 = vld [vmem:[%s8869_s16 + $0x90] sm:$0xff]  ;;  %v266_v44 = vld [vmem:[%s8869_s16 + $0xf8] sm:$0xff] }
  0x28   : > { %v330_v35 = vpack.c.bf16 %v267_v30, %v264_v29  ;;  %v256_v36 = vld [vmem:[%s8869_s16 + $0x60] sm:$0xff]  ;;  %v270_v39 = vld [vmem:[%s8869_s16 + $0x130] sm:$0xff]  ;;  %v269_v51 = vld [vmem:[%s8869_s16 + $0x128] sm:$0xff] }
  0x29   : > { %7051 = vmatpush3.bf16.msra.mxu0 %v8956_v52  ;;  %8347 = vmatpush3.bf16.msra.mxu1 %v8948_v46  ;;  %v273_v40 = vld [vmem:[%s8869_s16 + $0x160] sm:$0xff]  ;;  %v325_v47 = vpack.c.bf16 %v259_v38, %v256_v36  ;;  %v265_v49 = vld [vmem:[%s8869_s16 + $0xf0] sm:$0xff]  ;;  %v272_v53 = vld [vmem:[%s8869_s16 + $0x158] sm:$0xff] }
  0x2a   : > { %7052 = vmatprep.subr.bf16.mxu0 %v8961_v54  ;;  %8348 = vmatprep.subr.bf16.mxu1 %v8966_v58  ;;  %v279_v45 = vld [vmem:[%s8869_s16 + $0x1c0] sm:$0xff]  ;;  %v282_v50 = vld [vmem:[%s8869_s16 + $0x1f0] sm:$0xff]  ;;  %v332_v57 = vpack.c.bf16 %v272_v53, %v269_v51  ;;  %v278_v61 = vld [vmem:[%s8869_s16 + $0x1b8] sm:$0xff] }
  0x2b   : > { %v291_v55 = vld [vmem:[%s8869_s16 + $0x280] sm:$0xff]  ;;  %v294_v59 = vld [vmem:[%s8869_s16 + $0x2b0] sm:$0xff]  ;;  %v6007_v5 = vld [vmem:[%s8874_s19 + $0x2f8] sm:$0xff] }
  0x2c   : > { %v297_v60 = vld [vmem:[%s8869_s16 + $0x2e0] sm:$0xff]  ;;  %v306_v7 = vld [vmem:[%s8869_s16 + $0x370] sm:$0xff]  ;;  %v281_v14 = vld [vmem:[%s8869_s16 + $0x1e8] sm:$0xff] }
  0x2d   : > { %7053 = vmatpush3.bf16.msra.mxu0 %v8973_v63  ;;  %8349 = vmatpush3.bf16.msra.mxu1 %v8966_v58  ;;  %v345_v1 = vpack.c.bf16 %v297_v60, %v294_v59  ;;  %v274_v4 = vld [vmem:[%s8869_s16 + $0x180] sm:$0xff]  ;;  %v5990_v8 = vld [vmem:[%s8874_s19 + $0x270] sm:$0xff]  ;;  %v284_v18 = vld [vmem:[%s8869_s16 + $0x218] sm:$0xff] }
  0x2e   : > { %7054 = vmatprep.subr.bf16.mxu0 %v8977_v0  ;;  %8350 = vmatprep.subr.bf16.mxu1 %v8982_v3  ;;  %v309_v13 = vld [vmem:[%s8869_s16 + $0x3a0] sm:$0xff]  ;;  %v287_v30 = vld [vmem:[%s8869_s16 + $0x248] sm:$0xff]  ;;  %v6002_v53 = vld [vmem:[%s8874_s19 + $0x2d0] sm:$0xff] }
  0x2f   : > { %v351_v25 = vpack.c.bf16 %v309_v13, %v306_v7  ;;  %v321_v29 = vld [vmem:[%s8869_s16 + $0x460] sm:$0xff]  ;;  %v632_v59 = vld [vmem:[%s8869_s16 + $0x110] sm:$0xff]  ;;  %v631_v7 = vld [vmem:[%s8869_s16 + $0x108] sm:$0xff] }
  0x30   : > { %v635_v13 = vld [vmem:[%s8869_s16 + $0x140] sm:$0xff] }
  0x31   : > { %7055 = vmatpush3.bf16.msra.mxu0 %v8989_v9  ;;  %8351 = vmatpush3.bf16.msra.mxu1 %v8982_v3 }
  0x32   : > { %7056 = vmatprep.subr.bf16.mxu0 %v8993_v12  ;;  %8352 = vmatprep.subr.bf16.mxu1 %v8998_v16 }
  0x35   : > { %7057 = vmatpush3.bf16.msra.mxu0 %v9001_v17  ;;  %8353 = vmatpush3.bf16.msra.mxu1 %v8998_v16 }
  0x36   : > { %8378 = vmatprep.subr.bf16.mxu0 %v8886_v10  ;;  %7150 = vmatprep.subr.bf16.mxu1 %v8881_v6  ;;  %v276_v6 = vld [vmem:[%s8869_s16 + $0x190] sm:$0xff] }
  0x37   : > { %v336_v48 = vpack.c.bf16 %v279_v45, %v276_v6  ;;  %v293_v6 = vld [vmem:[%s8869_s16 + $0x2a8] sm:$0xff]  ;;  %v296_v45 = vld [vmem:[%s8869_s16 + $0x2d8] sm:$0xff] }
  0x38   : > { %391 = vmatmul.mubr.bf16.vlgmr.msra.gmra.mxu0 %v322_v27  ;;  %8355 = vmatmul.mubr.bf16.vlgmr.msra.gmra.mxu1 %v327_v31  ;;  %v318_v27 = vld [vmem:[%s8869_s16 + $0x430] sm:$0xff]  ;;  %v617_v31 = vld [vmem:[%s8869_s16 + $0x20] sm:$0xff] }
  0x39   : > { %8379 = vmatpush3.bf16.msra.mxu0 %v8886_v10  ;;  %7151 = vmatpush3.bf16.msra.mxu1 %v8888_v11  ;;  %v333_v10 = vpack.c.bf16 %v273_v40, %v270_v39  ;;  %v329_v11 = vpack.c.bf16 %v266_v44, %v263_v41  ;;  %v286_v39 = vld [vmem:[%s8869_s16 + $0x240] sm:$0xff]  ;;  %v289_v40 = vld [vmem:[%s8869_s16 + $0x270] sm:$0xff]  ;;  %v616_v41 = vld [vmem:[%s8869_s16 + $0x18] sm:$0xff] }
  0x3a   : > { %398 = vmatprep.mubr.bf16.mxu0 %v326_v32  ;;  %8358 = vmatprep.mubr.bf16.mxu1 %v330_v35  ;;  %v357_v35 = vpack.c.bf16 %v321_v29, %v318_v27  ;;  %v619_v44 = vld [vmem:[%s8869_s16 + $0x48] sm:$0xff]  ;;  %v5995_v27 = vld [vmem:[%s8874_s19 + $0x298] sm:$0xff]  ;;  %v304_v29 = vld [vmem:[%s8869_s16 + $0x360] sm:$0xff] }
  0x3b   : > { %7152 = vmatprep.subr.bf16.mxu1 %v8894_v15  ;;  %8380 = vmatprep.subr.bf16.mxu0 %v8901_v19  ;;  %v262_v15 = vld [vmem:[%s8869_s16 + $0xc0] sm:$0xff] }
  0x3d   : > { %8381 = vmatpush3.bf16.msra.mxu0 %v8901_v19  ;;  %7153 = vmatpush3.bf16.msra.mxu1 %v8903_v20  ;;  %v285_v19 = vld [vmem:[%s8869_s16 + $0x220] sm:$0xff]  ;;  %v288_v20 = vld [vmem:[%s8869_s16 + $0x250] sm:$0xff] }
  0x3e   : > { %8382 = vmatprep.subr.bf16.mxu0 %v8916_v28  ;;  %7154 = vmatprep.subr.bf16.mxu1 %v8910_v24  ;;  %v328_v24 = vpack.c.bf16 %v265_v49, %v262_v15  ;;  %v339_v56 = vpack.c.bf16 %v285_v19, %v282_v50  ;;  %v6005_v15 = vld [vmem:[%s8874_s19 + $0x2e8] sm:$0xff]  ;;  %v688_v49 = vpack.c.bf16 %v619_v44, %v616_v41 }
  0x3f   : > { %v344_v50 = vpack.c.bf16 %v296_v45, %v293_v6  ;;  %v5993_v41 = vld [vmem:[%s8874_s19 + $0x288] sm:$0xff] }
  0x40   : > { %399 = vmatmul.mubr.bf16.gmra.mxu0 %v325_v47  ;;  %8359 = vmatmul.mubr.bf16.gmra.mxu1 %v333_v10  ;;  %v623_v47 = vld [vmem:[%s8869_s16 + $0x80] sm:$0xff]  ;;  %v626_v10 = vld [vmem:[%s8869_s16 + $0xb0] sm:$0xff] }
  0x41   : > { %406 = vmatprep.mubr.bf16.mxu0 %v329_v11  ;;  %8362 = vmatprep.mubr.bf16.mxu1 %v336_v48  ;;  %v340_v11 = vpack.c.bf16 %v289_v40, %v286_v39  ;;  %v6004_v48 = vld [vmem:[%s8874_s19 + $0x2e0] sm:$0xff]  ;;  %v692_v19 = vpack.c.bf16 %v626_v10, %v623_v47 }
  0x42   : > { %7155 = vmatpush3.bf16.msra.mxu1 %v8923_v33  ;;  %8383 = vmatpush3.bf16.msra.mxu0 %v8916_v28  ;;  %v342_v33 = vpack.c.bf16 %v291_v55, %v288_v20  ;;  %v268_v28 = vld [vmem:[%s8869_s16 + $0x120] sm:$0xff]  ;;  %v9108_v51 = vpack.c.bf16 %v6005_v15, %v6004_v48  ;;  %v6003_v20 = vld [vmem:[%s8874_s19 + $0x2d8] sm:$0xff]  ;;  %v643_v15 = vld [vmem:[%s8869_s16 + $0x1c8] sm:$0xff] }
  0x43   : > { %7156 = vmatprep.subr.bf16.mxu1 %v8927_v34  ;;  %8384 = vmatprep.subr.bf16.mxu0 %v8932_v37  ;;  %v271_v34 = vld [vmem:[%s8869_s16 + $0x150] sm:$0xff]  ;;  %v292_v55 = vld [vmem:[%s8869_s16 + $0x2a0] sm:$0xff]  ;;  %v9122_v60 = vpack.c.bf16 %v6003_v20, %v6002_v53  ;;  %v640_v48 = vld [vmem:[%s8869_s16 + $0x198] sm:$0xff] }
  0x44   : > { %v331_v62 = vpack.c.bf16 %v271_v34, %v268_v28  ;;  %v302_v28 = vld [vmem:[%s8869_s16 + $0x338] sm:$0xff]  ;;  %v629_v34 = vld [vmem:[%s8869_s16 + $0xe0] sm:$0xff]  ;;  %v650_v53 = vld [vmem:[%s8869_s16 + $0x230] sm:$0xff] }
  0x45   : > { %v5992_v40 = vld [vmem:[%s8874_s19 + $0x280] sm:$0xff] }
  0x46   : > { %7157 = vmatpush3.bf16.msra.mxu1 %v8939_v42  ;;  %8385 = vmatpush3.bf16.msra.mxu0 %v8932_v37  ;;  %v275_v42 = vld [vmem:[%s8869_s16 + $0x188] sm:$0xff]  ;;  %v303_v37 = vld [vmem:[%s8869_s16 + $0x340] sm:$0xff]  ;;  %v9168_v47 = vpack.c.bf16 %v5993_v41, %v5992_v40  ;;  %v5970_v41 = vld [vmem:[%s8874_s19 + $0x1d0] sm:$0xff] }
  0x47   : > { %7158 = vmatprep.subr.bf16.mxu1 %v8943_v43  ;;  %8386 = vmatprep.subr.bf16.mxu0 %v8948_v46  ;;  %v300_v43 = vld [vmem:[%s8869_s16 + $0x310] sm:$0xff]  ;;  %v335_v2 = vpack.c.bf16 %v278_v61, %v275_v42  ;;  %v6000_v61 = vld [vmem:[%s8874_s19 + $0x2c0] sm:$0xff] }
  0x48   : > { %407 = vmatmul.mubr.bf16.gmra.mxu0 %v328_v24  ;;  %8363 = vmatmul.mubr.bf16.gmra.mxu1 %v339_v56  ;;  %v295_v24 = vld [vmem:[%s8869_s16 + $0x2d0] sm:$0xff]  ;;  %v622_v56 = vld [vmem:[%s8869_s16 + $0x78] sm:$0xff]  ;;  %v310_v10 = vld [vmem:[%s8869_s16 + $0x3c0] sm:$0xff] }
  0x49   : > { %414 = vmatprep.mubr.bf16.mxu0 %v332_v57  ;;  %8366 = vmatprep.mubr.bf16.mxu1 %v342_v33  ;;  %v625_v57 = vld [vmem:[%s8869_s16 + $0xa8] sm:$0xff]  ;;  %v343_v42 = vpack.c.bf16 %v295_v24, %v292_v55  ;;  %v700_v55 = vpack.c.bf16 %v643_v15, %v640_v48  ;;  %v5984_v15 = vld [vmem:[%s8874_s19 + $0x240] sm:$0xff] }
  0x4a   : > { %7159 = vmatpush3.bf16.msra.mxu1 %v8956_v52  ;;  %8387 = vmatpush3.bf16.msra.mxu0 %v8948_v46  ;;  %v348_v52 = vpack.c.bf16 %v303_v37, %v300_v43  ;;  %v277_v46 = vld [vmem:[%s8869_s16 + $0x1b0] sm:$0xff]  ;;  %v299_v33 = vld [vmem:[%s8869_s16 + $0x308] sm:$0xff]  ;;  %v691_v37 = vpack.c.bf16 %v625_v57, %v622_v56  ;;  %v316_v57 = vld [vmem:[%s8869_s16 + $0x420] sm:$0xff] }
  0x4b   : > { %7160 = vmatprep.subr.bf16.mxu1 %v8961_v54  ;;  %8388 = vmatprep.subr.bf16.mxu0 %v8966_v58  ;;  %v6006_v54 = vld [vmem:[%s8874_s19 + $0x2f0] sm:$0xff]  ;;  %v334_v22 = vpack.c.bf16 %v277_v46, %v274_v4  ;;  %v6001_v43 = vld [vmem:[%s8874_s19 + $0x2c8] sm:$0xff]  ;;  %v5999_v4 = vld [vmem:[%s8874_s19 + $0x2b8] sm:$0xff] }
  0x4c   : > { %v9080_v21 = vpack.c.bf16 %v6007_v5, %v6006_v54  ;;  %v298_v46 = vld [vmem:[%s8869_s16 + $0x300] sm:$0xff]  ;;  %v301_v54 = vld [vmem:[%s8869_s16 + $0x330] sm:$0xff]  ;;  %v628_v5 = vld [vmem:[%s8869_s16 + $0xd8] sm:$0xff] }
  0x4e   : > { %7161 = vmatpush3.bf16.msra.mxu1 %v8973_v63  ;;  %8389 = vmatpush3.bf16.msra.mxu0 %v8966_v58  ;;  %v5991_v63 = vld [vmem:[%s8874_s19 + $0x278] sm:$0xff]  ;;  %v312_v58 = vld [vmem:[%s8869_s16 + $0x3d0] sm:$0xff] }
  0x4f   : > { %7162 = vmatprep.subr.bf16.mxu1 %v8977_v0  ;;  %8390 = vmatprep.subr.bf16.mxu0 %v8982_v3  ;;  %v315_v0 = vld [vmem:[%s8869_s16 + $0x400] sm:$0xff]  ;;  %v9084_v23 = vpack.c.bf16 %v5991_v63, %v5990_v8  ;;  %v305_v8 = vld [vmem:[%s8869_s16 + $0x368] sm:$0xff]  ;;  %v308_v63 = vld [vmem:[%s8869_s16 + $0x398] sm:$0xff] }
  0x50   : > { %415 = vmatmul.mubr.bf16.gmra.mxu0 %v331_v62  ;;  %8367 = vmatmul.mubr.bf16.gmra.mxu1 %v345_v1  ;;  %v354_v26 = vpack.c.bf16 %v315_v0, %v312_v58  ;;  %v347_v62 = vpack.c.bf16 %v302_v28, %v299_v33  ;;  %v695_v1 = vpack.c.bf16 %v632_v59, %v629_v34  ;;  %v5996_v0 = vld [vmem:[%s8874_s19 + $0x2a0] sm:$0xff]  ;;  %v319_v33 = vld [vmem:[%s8869_s16 + $0x450] sm:$0xff]  ;;  %v646_v28 = vld [vmem:[%s8869_s16 + $0x1f8] sm:$0xff] }
  0x51   : > { %422 = vmatprep.mubr.bf16.mxu0 %v335_v2  ;;  %8370 = vmatprep.mubr.bf16.mxu1 %v348_v52  ;;  %v9128_v2 = vpack.c.bf16 %v6001_v43, %v6000_v61  ;;  %v5998_v52 = vld [vmem:[%s8874_s19 + $0x2b0] sm:$0xff]  ;;  %v346_v58 = vpack.c.bf16 %v301_v54, %v298_v46  ;;  %v649_v34 = vld [vmem:[%s8869_s16 + $0x228] sm:$0xff]  ;;  %v653_v61 = vld [vmem:[%s8869_s16 + $0x260] sm:$0xff] }
  0x52   : > { %7163 = vmatpush3.bf16.msra.mxu1 %v8989_v9  ;;  %8391 = vmatpush3.bf16.msra.mxu0 %v8982_v3  ;;  %v338_v9 = vpack.c.bf16 %v284_v18, %v281_v14  ;;  %v280_v3 = vld [vmem:[%s8869_s16 + $0x1e0] sm:$0xff]  ;;  %v638_v14 = vld [vmem:[%s8869_s16 + $0x170] sm:$0xff]  ;;  %v9142_v18 = vpack.c.bf16 %v5999_v4, %v5998_v52  ;;  %v618_v59 = vld [vmem:[%s8869_s16 + $0x28] sm:$0xff] }
  0x53   : > { %7164 = vmatprep.subr.bf16.mxu1 %v8993_v12  ;;  %8392 = vmatprep.subr.bf16.mxu0 %v8998_v16  ;;  %v283_v12 = vld [vmem:[%s8869_s16 + $0x210] sm:$0xff]  ;;  %v652_v52 = vld [vmem:[%s8869_s16 + $0x258] sm:$0xff]  ;;  %v655_v4 = vld [vmem:[%s8869_s16 + $0x288] sm:$0xff] }
  0x54   : > { %v337_v32 = vpack.c.bf16 %v283_v12, %v280_v3  ;;  %v5994_v12 = vld [vmem:[%s8874_s19 + $0x290] sm:$0xff]  ;;  %v624_v46 = vld [vmem:[%s8869_s16 + $0x88] sm:$0xff]  ;;  %v627_v54 = vld [vmem:[%s8869_s16 + $0xb8] sm:$0xff] }
  0x55   : > { %v656_v43 = vld [vmem:[%s8869_s16 + $0x290] sm:$0xff] }
  0x56   : > { %7165 = vmatpush3.bf16.msra.mxu1 %v9001_v17  ;;  %8393 = vmatpush3.bf16.msra.mxu0 %v8998_v16  ;;  %v290_v17 = vld [vmem:[%s8869_s16 + $0x278] sm:$0xff]  ;;  %v620_v16 = vld [vmem:[%s8869_s16 + $0x50] sm:$0xff] }
  0x57   : > { %8418 = vmatprep.subr.bf16.mxu1 %v9080_v21  ;;  %7258 = vmatprep.subr.bf16.mxu0 %v9084_v23  ;;  %v341_v36 = vpack.c.bf16 %v290_v17, %v287_v30  ;;  %v689_v38 = vpack.c.bf16 %v620_v16, %v617_v31  ;;  %v307_v30 = vld [vmem:[%s8869_s16 + $0x390] sm:$0xff]  ;;  %v634_v17 = vld [vmem:[%s8869_s16 + $0x138] sm:$0xff]  ;;  %v637_v31 = vld [vmem:[%s8869_s16 + $0x168] sm:$0xff] }
  0x58   : > { %423 = vmatmul.mubr.bf16.gmra.mxu0 %v334_v22  ;;  %8371 = vmatmul.mubr.bf16.gmra.mxu1 %v351_v25  ;;  %v5997_v22 = vld [vmem:[%s8874_s19 + $0x2a8] sm:$0xff]  ;;  %v694_v25 = vpack.c.bf16 %v631_v7, %v628_v5  ;;  %v349_v39 = vpack.c.bf16 %v307_v30, %v304_v29  ;;  %v697_v44 = vpack.c.bf16 %v637_v31, %v634_v17  ;;  %v5974_v5 = vld [vmem:[%s8874_s19 + $0x1f0] sm:$0xff]  ;;  %v5975_v7 = vld [vmem:[%s8874_s19 + $0x1f8] sm:$0xff] }
  0x59   : > { %430 = vmatprep.mubr.bf16.mxu0 %v338_v9  ;;  %8374 = vmatprep.mubr.bf16.mxu1 %v354_v26  ;;  %v350_v9 = vpack.c.bf16 %v308_v63, %v305_v8  ;;  %v698_v26 = vpack.c.bf16 %v638_v14, %v635_v13  ;;  %v9148_v3 = vpack.c.bf16 %v5997_v22, %v5996_v0  ;;  %v311_v16 = vld [vmem:[%s8869_s16 + $0x3c8] sm:$0xff]  ;;  %v5988_v8 = vld [vmem:[%s8874_s19 + $0x260] sm:$0xff]  ;;  %v662_v14 = vld [vmem:[%s8869_s16 + $0x2f0] sm:$0xff] }
  0x5a   : > { %v5989_v63 = vld [vmem:[%s8874_s19 + $0x268] sm:$0xff]  ;;  %v659_v13 = vld [vmem:[%s8869_s16 + $0x2c0] sm:$0xff]  ;;  %v633_v22 = vld [vmem:[%s8869_s16 + $0x118] sm:$0xff] }
  0x5b   : > { %v630_v0 = vld [vmem:[%s8869_s16 + $0xe8] sm:$0xff]  ;;  %v5986_v17 = vld [vmem:[%s8874_s19 + $0x250] sm:$0xff]  ;;  %v5987_v31 = vld [vmem:[%s8874_s19 + $0x258] sm:$0xff] }
  0x5c   : > { %v5973_v29 = vld [vmem:[%s8874_s19 + $0x1e8] sm:$0xff]  ;;  %v696_v30 = vpack.c.bf16 %v633_v22, %v630_v0  ;;  %v9218_v40 = vpack.c.bf16 %v5987_v31, %v5986_v17  ;;  %v670_v22 = vld [vmem:[%s8869_s16 + $0x378] sm:$0xff]  ;;  %v677_v17 = vld [vmem:[%s8869_s16 + $0x3e0] sm:$0xff] }
  0x5d   : > { %v5965_v0 = vld [vmem:[%s8874_s19 + $0x1a8] sm:$0xff] }
  0x5e   : > { %v666_v31 = vld [vmem:[%s8869_s16 + $0x328] sm:$0xff] }
  0x60   : > { %431 = vmatmul.mubr.bf16.gmra.mxu0 %v337_v32  ;;  %8375 = vmatmul.mubr.bf16.gmra.mxu1 %v357_v35  ;;  %v314_v32 = vld [vmem:[%s8869_s16 + $0x3f8] sm:$0xff]  ;;  %v641_v35 = vld [vmem:[%s8869_s16 + $0x1a0] sm:$0xff] }
  0x61   : > { %438 = vmatprep.mubr.bf16.mxu0 %v341_v36  ;;  %756 = vmatprep.mubr.bf16.mxu1 %v689_v38  ;;  %v644_v36 = vld [vmem:[%s8869_s16 + $0x1d0] sm:$0xff]  ;;  %v9162_v38 = vpack.c.bf16 %v5995_v27, %v5994_v12  ;;  %v353_v6 = vpack.c.bf16 %v314_v32, %v311_v16  ;;  %v710_v12 = vpack.c.bf16 %v662_v14, %v659_v13  ;;  %v5972_v27 = vld [vmem:[%s8874_s19 + $0x1e0] sm:$0xff]  ;;  %v658_v16 = vld [vmem:[%s8869_s16 + $0x2b8] sm:$0xff] }
  0x62   : > { %v701_v45 = vpack.c.bf16 %v644_v36, %v641_v35  ;;  %v9212_v32 = vpack.c.bf16 %v5973_v29, %v5972_v27  ;;  %v661_v35 = vld [vmem:[%s8869_s16 + $0x2e8] sm:$0xff] }
  0x63   : > { %v636_v36 = vld [vmem:[%s8869_s16 + $0x148] sm:$0xff] }
  0x64   : > { %v673_v27 = vld [vmem:[%s8869_s16 + $0x3a8] sm:$0xff] }
  0x65   : > { %v660_v29 = vld [vmem:[%s8869_s16 + $0x2c8] sm:$0xff] }
  0x68   : > { %439 = vmatmul.mubr.bf16.gmra.mxu0 %v340_v11  ;;  %757 = vmatmul.mubr.bf16.vlgmr.msra.gmra.mxu1 %v688_v49  ;;  %v313_v11 = vld [vmem:[%s8869_s16 + $0x3f0] sm:$0xff]  ;;  %v317_v49 = vld [vmem:[%s8869_s16 + $0x428] sm:$0xff] }
  0x69   : > { %446 = vmatprep.mubr.bf16.mxu0 %v344_v50  ;;  %8419 = vmatpush3.bf16.msra.mxu1 %v9080_v21  ;;  %v320_v50 = vld [vmem:[%s8869_s16 + $0x458] sm:$0xff]  ;;  %v352_v20 = vpack.c.bf16 %v313_v11, %v310_v10  ;;  %v642_v10 = vld [vmem:[%s8869_s16 + $0x1a8] sm:$0xff] }
  0x6a   : > { %764 = vmatprep.mubr.bf16.mxu1 %v692_v19  ;;  %8420 = vmatprep.subr.bf16.mxu1 %v9108_v51  ;;  %v647_v19 = vld [vmem:[%s8869_s16 + $0x200] sm:$0xff]  ;;  %v356_v24 = vpack.c.bf16 %v320_v50, %v317_v49  ;;  %v645_v11 = vld [vmem:[%s8869_s16 + $0x1d8] sm:$0xff]  ;;  %v5985_v49 = vld [vmem:[%s8874_s19 + $0x248] sm:$0xff]  ;;  %v709_v50 = vpack.c.bf16 %v661_v35, %v658_v16 }
  0x6b   : > { %v704_v56 = vpack.c.bf16 %v650_v53, %v647_v19  ;;  %v669_v16 = vld [vmem:[%s8869_s16 + $0x358] sm:$0xff] }
  0x6d   : > { %8421 = vmatpush3.bf16.msra.mxu1 %v9108_v51 }
  0x6e   : > { %8422 = vmatprep.subr.bf16.mxu1 %v9122_v60 }
  0x70   : > { %447 = vmatmul.mubr.bf16.gmra.mxu0 %v343_v42  ;;  %765 = vmatmul.mubr.bf16.gmra.mxu1 %v691_v37  ;;  %v621_v42 = vld [vmem:[%s8869_s16 + $0x58] sm:$0xff]  ;;  %v703_v37 = vpack.c.bf16 %v649_v34, %v646_v28  ;;  %v667_v34 = vld [vmem:[%s8869_s16 + $0x348] sm:$0xff] }
  0x71   : > { %454 = vmatprep.mubr.bf16.mxu0 %v347_v62  ;;  %772 = vmatprep.mubr.bf16.mxu1 %v695_v1  ;;  %v690_v62 = vpack.c.bf16 %v621_v42, %v618_v59  ;;  %v707_v1 = vpack.c.bf16 %v656_v43, %v653_v61  ;;  %v664_v28 = vld [vmem:[%s8869_s16 + $0x318] sm:$0xff]  ;;  %v648_v59 = vld [vmem:[%s8869_s16 + $0x208] sm:$0xff]  ;;  %v671_v43 = vld [vmem:[%s8869_s16 + $0x380] sm:$0xff] }
  0x72   : > { %8423 = vmatpush3.bf16.msra.mxu1 %v9122_v60  ;;  %v651_v42 = vld [vmem:[%s8869_s16 + $0x238] sm:$0xff] }
  0x73   : > { %8424 = vmatprep.subr.bf16.mxu1 %v9128_v2 }
  0x76   : > { %8425 = vmatpush3.bf16.msra.mxu1 %v9128_v2 }
  0x77   : > { %8426 = vmatprep.subr.bf16.mxu1 %v9142_v18 }
  0x78   : > { %455 = vmatmul.mubr.bf16.gmra.mxu0 %v346_v58  ;;  %773 = vmatmul.mubr.bf16.gmra.mxu1 %v694_v25  ;;  %v693_v58 = vpack.c.bf16 %v627_v54, %v624_v46  ;;  %v706_v25 = vpack.c.bf16 %v655_v4, %v652_v52  ;;  %v5966_v52 = vld [vmem:[%s8874_s19 + $0x1b0] sm:$0xff]  ;;  %v5967_v4 = vld [vmem:[%s8874_s19 + $0x1b8] sm:$0xff]  ;;  %v705_v46 = vpack.c.bf16 %v651_v42, %v648_v59  ;;  %v5980_v54 = vld [vmem:[%s8874_s19 + $0x220] sm:$0xff] }
  0x79   : > { %462 = vmatprep.mubr.bf16.mxu0 %v350_v9  ;;  %780 = vmatprep.mubr.bf16.mxu1 %v698_v26  ;;  %v9202_v9 = vpack.c.bf16 %v5975_v7, %v5974_v5  ;;  %v9204_v26 = vpack.c.bf16 %v5989_v63, %v5988_v8  ;;  %v5981_v5 = vld [vmem:[%s8874_s19 + $0x228] sm:$0xff]  ;;  %v712_v7 = vpack.c.bf16 %v667_v34, %v664_v28  ;;  %v681_v34 = vld [vmem:[%s8869_s16 + $0x418] sm:$0xff]  ;;  %v683_v42 = vld [vmem:[%s8869_s16 + $0x440] sm:$0xff] }
  0x7a   : > { %8427 = vmatpush3.bf16.msra.mxu1 %v9142_v18  ;;  %v9258_v13 = vpack.c.bf16 %v5967_v4, %v5966_v52  ;;  %v9260_v14 = vpack.c.bf16 %v5981_v5, %v5980_v54  ;;  %v678_v28 = vld [vmem:[%s8869_s16 + $0x3e8] sm:$0xff]  ;;  %v682_v4 = vld [vmem:[%s8869_s16 + $0x438] sm:$0xff] }
  0x7b   : > { %8428 = vmatprep.subr.bf16.mxu1 %v9148_v3  ;;  %v687_v54 = vld [vmem:[%s8869_s16 + $0x478] sm:$0xff]  ;;  %v685_v5 = vld [vmem:[%s8869_s16 + $0x468] sm:$0xff] }
  0x7e   : > { %8429 = vmatpush3.bf16.msra.mxu1 %v9148_v3 }
  0x7f   : > { %8430 = vmatprep.subr.bf16.mxu1 %v9162_v38 }
  0x80   : > { %463 = vmatmul.mubr.bf16.gmra.mxu0 %v349_v39  ;;  %781 = vmatmul.mubr.bf16.gmra.mxu1 %v697_v44  ;;  %v639_v39 = vld [vmem:[%s8869_s16 + $0x178] sm:$0xff] }
  0x81   : > { %470 = vmatprep.mubr.bf16.mxu0 %v353_v6  ;;  %788 = vmatprep.mubr.bf16.mxu1 %v701_v45  ;;  %v5971_v44 = vld [vmem:[%s8874_s19 + $0x1d8] sm:$0xff]  ;;  %v665_v6 = vld [vmem:[%s8869_s16 + $0x320] sm:$0xff]  ;;  %v668_v45 = vld [vmem:[%s8869_s16 + $0x350] sm:$0xff]  ;;  %v699_v48 = vpack.c.bf16 %v639_v39, %v636_v36 }
  0x82   : > { %8431 = vmatpush3.bf16.msra.mxu1 %v9162_v38  ;;  %v9229_v19 = vpack.c.bf16 %v5971_v44, %v5970_v41  ;;  %v713_v53 = vpack.c.bf16 %v668_v45, %v665_v6  ;;  %v680_v36 = vld [vmem:[%s8869_s16 + $0x410] sm:$0xff]  ;;  %v5963_v44 = vld [vmem:[%s8874_s19 + $0x198] sm:$0xff]  ;;  %v5976_v45 = vld [vmem:[%s8874_s19 + $0x200] sm:$0xff] }
  0x83   : > { %8432 = vmatprep.subr.bf16.mxu1 %v9168_v47  ;;  %v5962_v41 = vld [vmem:[%s8874_s19 + $0x190] sm:$0xff] }
  0x86   : > { %8433 = vmatpush3.bf16.msra.mxu1 %v9168_v47 }
  0x87   : > { %7366 = vmatprep.subr.bf16.mxu1 %v9084_v23  ;;  %v355_v23 = vpack.c.bf16 %v319_v33, %v316_v57  ;;  %v5982_v57 = vld [vmem:[%s8874_s19 + $0x230] sm:$0xff]  ;;  %v5983_v33 = vld [vmem:[%s8874_s19 + $0x238] sm:$0xff] }
  0x88   : > { %471 = vmatmul.mubr.bf16.gmra.mxu0 %v352_v20  ;;  %789 = vmatmul.mubr.bf16.gmra.mxu1 %v700_v55  ;;  %v702_v20 = vpack.c.bf16 %v645_v11, %v642_v10  ;;  %v5968_v55 = vld [vmem:[%s8874_s19 + $0x1c0] sm:$0xff]  ;;  %v5977_v10 = vld [vmem:[%s8874_s19 + $0x208] sm:$0xff]  ;;  %v715_v11 = vpack.c.bf16 %v673_v27, %v670_v22  ;;  %v721_v22 = vpack.c.bf16 %v685_v5, %v682_v4  ;;  %v6052_v4 = vld [vmem:[%s8869_s16 + $0x730] sm:$0xff] }
  0x89   : > { %478 = vmatprep.mubr.bf16.mxu0 %v356_v24  ;;  %796 = vmatprep.mubr.bf16.mxu1 %v704_v56  ;;  %v5969_v24 = vld [vmem:[%s8874_s19 + $0x1c8] sm:$0xff]  ;;  %v9234_v56 = vpack.c.bf16 %v5985_v49, %v5984_v15  ;;  %v719_v15 = vpack.c.bf16 %v680_v36, %v677_v17  ;;  %v9285_v49 = vpack.c.bf16 %v5963_v44, %v5962_v41  ;;  %v6008_v27 = vld [vmem:[%s8869_s16 + $0x480] sm:$0xff]  ;;  %v6022_v41 = vld [vmem:[%s8869_s16 + $0x550] sm:$0xff] }
  0x8a   : > { %v9243_v61 = vpack.c.bf16 %v5969_v24, %v5968_v55  ;;  %v676_v55 = vld [vmem:[%s8869_s16 + $0x3d8] sm:$0xff]  ;;  %v672_v24 = vld [vmem:[%s8869_s16 + $0x388] sm:$0xff]  ;;  %v6019_v17 = vld [vmem:[%s8869_s16 + $0x520] sm:$0xff] }
  0x8b   : > { %v6025_v44 = vld [vmem:[%s8869_s16 + $0x580] sm:$0xff] }
  0x90   : > { %479 = vmatmul.mubr.bf16.gmra.mxu0 %v355_v23  ;;  %797 = vmatmul.mubr.bf16.gmra.mxu1 %v703_v37  ;;  %v654_v23 = vld [vmem:[%s8869_s16 + $0x268] sm:$0xff]  ;;  %v657_v37 = vld [vmem:[%s8869_s16 + $0x298] sm:$0xff] }
  0x91   : > { %8394 = vmatprep.mubr.bf16.mxu0 %v690_v62  ;;  %804 = vmatprep.mubr.bf16.mxu1 %v707_v1  ;;  %v9248_v62 = vpack.c.bf16 %v5983_v33, %v5982_v57  ;;  %v674_v1 = vld [vmem:[%s8869_s16 + $0x3b0] sm:$0xff]  ;;  %v708_v8 = vpack.c.bf16 %v657_v37, %v654_v23  ;;  %v675_v57 = vld [vmem:[%s8869_s16 + $0x3b8] sm:$0xff]  ;;  %v679_v33 = vld [vmem:[%s8869_s16 + $0x408] sm:$0xff] }
  0x92   : > { %v716_v63 = vpack.c.bf16 %v674_v1, %v671_v43  ;;  %v686_v43 = vld [vmem:[%s8869_s16 + $0x470] sm:$0xff]  ;;  %v717_v23 = vpack.c.bf16 %v675_v57, %v672_v24  ;;  %v718_v37 = vpack.c.bf16 %v679_v33, %v676_v55  ;;  %v720_v1 = vpack.c.bf16 %v681_v34, %v678_v28  ;;  %v6024_v55 = vld [vmem:[%s8869_s16 + $0x578] sm:$0xff]  ;;  %v6037_v57 = vld [vmem:[%s8869_s16 + $0x640] sm:$0xff] }
  0x93   : > { %v722_v52 = vpack.c.bf16 %v686_v43, %v683_v42  ;;  %v6034_v24 = vld [vmem:[%s8869_s16 + $0x610] sm:$0xff]  ;;  %v6027_v43 = vld [vmem:[%s8869_s16 + $0x5a8] sm:$0xff] }
  0x94   : > { %v1287_v28 = vpack.c.bf16 %v6037_v57, %v6034_v24  ;;  %v6023_v34 = vld [vmem:[%s8869_s16 + $0x570] sm:$0xff]  ;;  %v6051_v24 = vld [vmem:[%s8869_s16 + $0x728] sm:$0xff]  ;;  %v6054_v57 = vld [vmem:[%s8869_s16 + $0x758] sm:$0xff] }
  0x95   : > { %v6040_v42 = vld [vmem:[%s8869_s16 + $0x670] sm:$0xff] }
  0x98   : > { %8395 = vmatmul.mubr.bf16.vlgmr.msra.gmra.mxu0 %v693_v58  ;;  %805 = vmatmul.mubr.bf16.gmra.mxu1 %v706_v25  ;;  %v5964_v58 = vld [vmem:[%s8874_s19 + $0x1a0] sm:$0xff]  ;;  %v5978_v25 = vld [vmem:[%s8874_s19 + $0x210] sm:$0xff] }
  0x99   : > { %7259 = vmatpush3.bf16.msra.mxu0 %v9202_v9  ;;  %812 = vmatprep.mubr.bf16.mxu1 %v710_v12  ;;  %v5979_v12 = vld [vmem:[%s8874_s19 + $0x218] sm:$0xff]  ;;  %v9274_v35 = vpack.c.bf16 %v5965_v0, %v5964_v58  ;;  %v6013_v58 = vld [vmem:[%s8869_s16 + $0x4c0] sm:$0xff] }
  0x9a   : > { %7260 = vmatprep.subr.bf16.mxu0 %v9204_v26  ;;  %8398 = vmatprep.mubr.bf16.mxu0 %v696_v30  ;;  %v663_v30 = vld [vmem:[%s8869_s16 + $0x2f8] sm:$0xff]  ;;  %v9278_v39 = vpack.c.bf16 %v5979_v12, %v5978_v25 }
  0x9b   : > { %v711_v6 = vpack.c.bf16 %v663_v30, %v660_v29  ;;  %v6011_v29 = vld [vmem:[%s8869_s16 + $0x4b0] sm:$0xff] }
  0x9c   : > { %v6016_v30 = vld [vmem:[%s8869_s16 + $0x4f0] sm:$0xff]  ;;  %v1273_v36 = vpack.c.bf16 %v6011_v29, %v6008_v27  ;;  %v6042_v27 = vld [vmem:[%s8869_s16 + $0x698] sm:$0xff] }
  0x9d   : > { %7261 = vmatpush3.bf16.msra.mxu0 %v9212_v32 }
  0x9e   : > { %7262 = vmatprep.subr.bf16.mxu0 %v9218_v40 }
  0xa0   : > { %8399 = vmatmul.mubr.bf16.gmra.mxu0 %v699_v48  ;;  %813 = vmatmul.mubr.bf16.gmra.mxu1 %v709_v50  ;;  %v714_v48 = vpack.c.bf16 %v669_v16, %v666_v31  ;;  %v9288_v50 = vpack.c.bf16 %v5977_v10, %v5976_v45  ;;  %v6015_v31 = vld [vmem:[%s8869_s16 + $0x4e8] sm:$0xff]  ;;  %v6018_v16 = vld [vmem:[%s8869_s16 + $0x518] sm:$0xff]  ;;  %v1281_v10 = vpack.c.bf16 %v6025_v44, %v6022_v41  ;;  %v6079_v41 = vld [vmem:[%s8869_s16 + $0x8e0] sm:$0xff] }
  0xa1   : > { %7263 = vmatpush3.bf16.msra.mxu0 %v9229_v19  ;;  %820 = vmatprep.mubr.bf16.mxu1 %v713_v53  ;;  %v5960_v53 = vld [vmem:[%s8874_s19 + $0x180] sm:$0xff]  ;;  %v1277_v45 = vpack.c.bf16 %v6018_v16, %v6015_v31  ;;  %v6045_v44 = vld [vmem:[%s8869_s16 + $0x6c8] sm:$0xff] }
  0xa2   : > { %8402 = vmatprep.mubr.bf16.mxu0 %v702_v20  ;;  %7264 = vmatprep.subr.bf16.mxu0 %v9234_v56  ;;  %v5961_v20 = vld [vmem:[%s8874_s19 + $0x188] sm:$0xff] }
  0xa3   : > { %v9299_v59 = vpack.c.bf16 %v5961_v20, %v5960_v53  ;;  %v6031_v53 = vld [vmem:[%s8869_s16 + $0x5e0] sm:$0xff]  ;;  %v6021_v20 = vld [vmem:[%s8869_s16 + $0x548] sm:$0xff] }
  0xa5   : > { %7265 = vmatpush3.bf16.msra.mxu0 %v9243_v61 }
  0xa6   : > { %7266 = vmatprep.subr.bf16.mxu0 %v9248_v62 }
  0xa8   : > { %8403 = vmatmul.mubr.bf16.gmra.mxu0 %v705_v46  ;;  %821 = vmatmul.mubr.bf16.gmra.mxu1 %v712_v7  ;;  %v684_v46 = vld [vmem:[%s8869_s16 + $0x448] sm:$0xff] }
  0xa9   : > { %8406 = vmatprep.mubr.bf16.mxu0 %v708_v8  ;;  %828 = vmatprep.mubr.bf16.mxu1 %v716_v63  ;;  %v6009_v7 = vld [vmem:[%s8869_s16 + $0x488] sm:$0xff]  ;;  %v6012_v8 = vld [vmem:[%s8869_s16 + $0x4b8] sm:$0xff]  ;;  %v6010_v63 = vld [vmem:[%s8869_s16 + $0x490] sm:$0xff]  ;;  %v723_v0 = vpack.c.bf16 %v687_v54, %v684_v46 }
  0xaa   : > { %7267 = vmatpush3.bf16.msra.mxu0 %v9258_v13  ;;  %v1274_v25 = vpack.c.bf16 %v6012_v8, %v6009_v7  ;;  %v1275_v12 = vpack.c.bf16 %v6013_v58, %v6010_v63  ;;  %v6055_v46 = vld [vmem:[%s8869_s16 + $0x760] sm:$0xff]  ;;  %v6036_v54 = vld [vmem:[%s8869_s16 + $0x638] sm:$0xff] }
  0xab   : > { %7268 = vmatprep.subr.bf16.mxu0 %v9260_v14  ;;  %v1296_v7 = vpack.c.bf16 %v6055_v46, %v6052_v4  ;;  %v6032_v63 = vld [vmem:[%s8869_s16 + $0x600] sm:$0xff]  ;;  %v6223_v58 = vld [vmem:[%s8874_s19 + $0x478] sm:$0xff]  ;;  %v6057_v4 = vld [vmem:[%s8869_s16 + $0x788] sm:$0xff] }
  0xac   : > { %v6060_v46 = vld [vmem:[%s8869_s16 + $0x7b8] sm:$0xff] }
  0xae   : > { %7269 = vmatpush3.bf16.msra.mxu0 %v9274_v35 }
  0xaf   : > { %7270 = vmatprep.subr.bf16.mxu0 %v9278_v39 }
  0xb0   : > { %8407 = vmatmul.mubr.bf16.gmra.mxu0 %v711_v6  ;;  %829 = vmatmul.mubr.bf16.gmra.mxu1 %v715_v11  ;;  %v1278_v6 = vpack.c.bf16 %v6019_v17, %v6016_v30  ;;  %v6014_v11 = vld [vmem:[%s8869_s16 + $0x4e0] sm:$0xff] }
  0xb1   : > { %8410 = vmatprep.mubr.bf16.mxu0 %v714_v48  ;;  %836 = vmatprep.mubr.bf16.mxu1 %v719_v15  ;;  %v6017_v48 = vld [vmem:[%s8869_s16 + $0x510] sm:$0xff] }
  0xb2   : > { %7271 = vmatpush3.bf16.msra.mxu0 %v9285_v49  ;;  %v6028_v15 = vld [vmem:[%s8869_s16 + $0x5b0] sm:$0xff]  ;;  %v1276_v33 = vpack.c.bf16 %v6017_v48, %v6014_v11 }
  0xb3   : > { %7272 = vmatprep.subr.bf16.mxu0 %v9288_v50 }
  0xb6   : > { %7273 = vmatpush3.bf16.msra.mxu0 %v9299_v59 }
  0xb7   : > { %8458 = vmatprep.subr.bf16.mxu0 %v9080_v21 }
  0xb8   : > { %8411 = vmatmul.mubr.bf16.gmra.mxu0 %v717_v23  ;;  %837 = vmatmul.mubr.bf16.gmra.mxu1 %v718_v37  ;;  %v6030_v23 = vld [vmem:[%s8869_s16 + $0x5d8] sm:$0xff]  ;;  %v6049_v37 = vld [vmem:[%s8869_s16 + $0x700] sm:$0xff] }
  0xb9   : > { %8414 = vmatprep.mubr.bf16.mxu0 %v720_v1  ;;  %844 = vmatprep.mubr.bf16.mxu1 %v722_v52  ;;  %v1283_v52 = vpack.c.bf16 %v6030_v23, %v6027_v43 }
  0xc0   : > { %8415 = vmatmul.mubr.bf16.gmra.mxu0 %v723_v0  ;;  %845 = vmatmul.mubr.bf16.gmra.mxu1 %v721_v22  ;;  %v6064_v0 = vld [vmem:[%s8869_s16 + $0x7f0] sm:$0xff] }
  0xc1   : > { %1341 = vmatprep.mubr.bf16.mxu0 %v1274_v25  ;;  %8434 = vmatprep.mubr.bf16.mxu1 %v1275_v12  ;;  %v6206_v22 = vld [vmem:[%s8874_s19 + $0x3f0] sm:$0xff]  ;;  %v6067_v25 = vld [vmem:[%s8869_s16 + $0x820] sm:$0xff]  ;;  %v6039_v12 = vld [vmem:[%s8869_s16 + $0x668] sm:$0xff] }
  0xc2   : > { %v1302_v31 = vpack.c.bf16 %v6067_v25, %v6064_v0  ;;  %v1298_v0 = vpack.c.bf16 %v6060_v46, %v6057_v4  ;;  %v6072_v4 = vld [vmem:[%s8869_s16 + $0x878] sm:$0xff] }
  0xc8   : > { %1342 = vmatmul.mubr.bf16.vlgmr.msra.gmra.mxu0 %v1273_v36  ;;  %8435 = vmatmul.mubr.bf16.vlgmr.msra.gmra.mxu1 %v1278_v6  ;;  %v6076_v36 = vld [vmem:[%s8869_s16 + $0x8b0] sm:$0xff]  ;;  %v6081_v6 = vld [vmem:[%s8869_s16 + $0x4a0] sm:$0xff] }
  0xc9   : > { %8459 = vmatpush3.bf16.msra.mxu0 %v9080_v21  ;;  %7367 = vmatpush3.bf16.msra.mxu1 %v9202_v9  ;;  %v1284_v21 = vpack.c.bf16 %v6031_v53, %v6028_v15  ;;  %v1280_v9 = vpack.c.bf16 %v6024_v55, %v6021_v20  ;;  %v6044_v15 = vld [vmem:[%s8869_s16 + $0x6c0] sm:$0xff]  ;;  %v6047_v53 = vld [vmem:[%s8869_s16 + $0x6f0] sm:$0xff]  ;;  %v6080_v20 = vld [vmem:[%s8869_s16 + $0x498] sm:$0xff] }
  0xca   : > { %1349 = vmatprep.mubr.bf16.mxu0 %v1277_v45  ;;  %8438 = vmatprep.mubr.bf16.mxu1 %v1281_v10  ;;  %v1308_v10 = vpack.c.bf16 %v6079_v41, %v6076_v36  ;;  %v6083_v55 = vld [vmem:[%s8869_s16 + $0x4c8] sm:$0xff] }
  0xcb   : > { %7368 = vmatprep.subr.bf16.mxu1 %v9204_v26  ;;  %8460 = vmatprep.subr.bf16.mxu0 %v9108_v51  ;;  %v6020_v26 = vld [vmem:[%s8869_s16 + $0x540] sm:$0xff]  ;;  %v6095_v41 = vld [vmem:[%s8869_s16 + $0x588] sm:$0xff] }
  0xcd   : > { %8461 = vmatpush3.bf16.msra.mxu0 %v9108_v51  ;;  %7369 = vmatpush3.bf16.msra.mxu1 %v9212_v32  ;;  %v6043_v51 = vld [vmem:[%s8869_s16 + $0x6a0] sm:$0xff]  ;;  %v6046_v32 = vld [vmem:[%s8869_s16 + $0x6d0] sm:$0xff] }
  0xce   : > { %8462 = vmatprep.subr.bf16.mxu0 %v9122_v60  ;;  %7370 = vmatprep.subr.bf16.mxu1 %v9218_v40  ;;  %v1279_v40 = vpack.c.bf16 %v6023_v34, %v6020_v26  ;;  %v1290_v1 = vpack.c.bf16 %v6043_v51, %v6040_v42  ;;  %v6221_v26 = vld [vmem:[%s8874_s19 + $0x468] sm:$0xff]  ;;  %v1639_v34 = vpack.c.bf16 %v6083_v55, %v6080_v20 }
  0xcf   : > { %v1295_v42 = vpack.c.bf16 %v6054_v57, %v6051_v24  ;;  %v6213_v20 = vld [vmem:[%s8874_s19 + $0x428] sm:$0xff] }
  0xd0   : > { %1350 = vmatmul.mubr.bf16.gmra.mxu0 %v1276_v33  ;;  %8439 = vmatmul.mubr.bf16.gmra.mxu1 %v1284_v21  ;;  %v6087_v33 = vld [vmem:[%s8869_s16 + $0x500] sm:$0xff]  ;;  %v6090_v21 = vld [vmem:[%s8869_s16 + $0x530] sm:$0xff] }
  0xd1   : > { %1357 = vmatprep.mubr.bf16.mxu0 %v1280_v9  ;;  %8442 = vmatprep.mubr.bf16.mxu1 %v1287_v28  ;;  %v1291_v9 = vpack.c.bf16 %v6047_v53, %v6044_v15  ;;  %v6220_v28 = vld [vmem:[%s8874_s19 + $0x460] sm:$0xff]  ;;  %v1643_v51 = vpack.c.bf16 %v6090_v21, %v6087_v33 }
  0xd2   : > { %7371 = vmatpush3.bf16.msra.mxu1 %v9229_v19  ;;  %8463 = vmatpush3.bf16.msra.mxu0 %v9122_v60  ;;  %v1293_v19 = vpack.c.bf16 %v6049_v37, %v6046_v32  ;;  %v6026_v60 = vld [vmem:[%s8869_s16 + $0x5a0] sm:$0xff]  ;;  %v9412_v43 = vpack.c.bf16 %v6221_v26, %v6220_v28  ;;  %v6218_v32 = vld [vmem:[%s8874_s19 + $0x450] sm:$0xff]  ;;  %v6219_v37 = vld [vmem:[%s8874_s19 + $0x458] sm:$0xff] }
  0xd3   : > { %7372 = vmatprep.subr.bf16.mxu1 %v9234_v56  ;;  %8464 = vmatprep.subr.bf16.mxu0 %v9128_v2  ;;  %v6029_v56 = vld [vmem:[%s8869_s16 + $0x5d0] sm:$0xff]  ;;  %v6212_v53 = vld [vmem:[%s8874_s19 + $0x420] sm:$0xff] }
  0xd4   : > { %v1282_v5 = vpack.c.bf16 %v6029_v56, %v6026_v60  ;;  %v6089_v56 = vld [vmem:[%s8869_s16 + $0x528] sm:$0xff] }
  0xd6   : > { %7373 = vmatpush3.bf16.msra.mxu1 %v9243_v61  ;;  %8465 = vmatpush3.bf16.msra.mxu0 %v9128_v2  ;;  %v6033_v61 = vld [vmem:[%s8869_s16 + $0x608] sm:$0xff]  ;;  %v6061_v2 = vld [vmem:[%s8869_s16 + $0x7c0] sm:$0xff] }
  0xd7   : > { %7374 = vmatprep.subr.bf16.mxu1 %v9248_v62  ;;  %8466 = vmatprep.subr.bf16.mxu0 %v9142_v18  ;;  %v6058_v62 = vld [vmem:[%s8869_s16 + $0x790] sm:$0xff]  ;;  %v1286_v8 = vpack.c.bf16 %v6036_v54, %v6033_v61 }
  0xd8   : > { %1358 = vmatmul.mubr.bf16.gmra.mxu0 %v1279_v40  ;;  %8443 = vmatmul.mubr.bf16.gmra.mxu1 %v1290_v1  ;;  %v6050_v1 = vld [vmem:[%s8869_s16 + $0x720] sm:$0xff] }
  0xd9   : > { %1365 = vmatprep.mubr.bf16.mxu0 %v1283_v52  ;;  %8446 = vmatprep.mubr.bf16.mxu1 %v1293_v19  ;;  %v6053_v52 = vld [vmem:[%s8869_s16 + $0x750] sm:$0xff]  ;;  %v6086_v19 = vld [vmem:[%s8869_s16 + $0x4f8] sm:$0xff] }
  0xda   : > { %7375 = vmatpush3.bf16.msra.mxu1 %v9258_v13  ;;  %8467 = vmatpush3.bf16.msra.mxu0 %v9142_v18  ;;  %v1299_v13 = vpack.c.bf16 %v6061_v2, %v6058_v62  ;;  %v6035_v18 = vld [vmem:[%s8869_s16 + $0x630] sm:$0xff]  ;;  %v6093_v62 = vld [vmem:[%s8869_s16 + $0x560] sm:$0xff] }
  0xdb   : > { %7376 = vmatprep.subr.bf16.mxu1 %v9260_v14  ;;  %8468 = vmatprep.subr.bf16.mxu0 %v9148_v3  ;;  %v6222_v14 = vld [vmem:[%s8874_s19 + $0x470] sm:$0xff]  ;;  %v1285_v30 = vpack.c.bf16 %v6035_v18, %v6032_v63  ;;  %v6217_v63 = vld [vmem:[%s8874_s19 + $0x448] sm:$0xff] }
  0xdc   : > { %v9384_v29 = vpack.c.bf16 %v6223_v58, %v6222_v14  ;;  %v6096_v2 = vld [vmem:[%s8869_s16 + $0x590] sm:$0xff]  ;;  %v1642_v58 = vpack.c.bf16 %v6089_v56, %v6086_v19  ;;  %v6069_v56 = vld [vmem:[%s8869_s16 + $0x848] sm:$0xff] }
  0xde   : > { %7377 = vmatpush3.bf16.msra.mxu1 %v9274_v35  ;;  %8469 = vmatpush3.bf16.msra.mxu0 %v9148_v3  ;;  %v6207_v35 = vld [vmem:[%s8874_s19 + $0x3f8] sm:$0xff]  ;;  %v6070_v3 = vld [vmem:[%s8869_s16 + $0x850] sm:$0xff] }
  0xdf   : > { %7378 = vmatprep.subr.bf16.mxu1 %v9278_v39  ;;  %8470 = vmatprep.subr.bf16.mxu0 %v9162_v38  ;;  %v6073_v39 = vld [vmem:[%s8869_s16 + $0x880] sm:$0xff]  ;;  %v9388_v17 = vpack.c.bf16 %v6207_v35, %v6206_v22  ;;  %v1646_v35 = vpack.c.bf16 %v6096_v2, %v6093_v62  ;;  %v6108_v62 = vld [vmem:[%s8869_s16 + $0x650] sm:$0xff] }
  0xe0   : > { %1366 = vmatmul.mubr.bf16.gmra.mxu0 %v1282_v5  ;;  %8447 = vmatmul.mubr.bf16.gmra.mxu1 %v1296_v7  ;;  %v1305_v16 = vpack.c.bf16 %v6073_v39, %v6070_v3  ;;  %v9426_v5 = vpack.c.bf16 %v6219_v37, %v6218_v32  ;;  %v6214_v39 = vld [vmem:[%s8874_s19 + $0x430] sm:$0xff] }
  0xe1   : > { %1373 = vmatprep.mubr.bf16.mxu0 %v1286_v8  ;;  %8450 = vmatprep.mubr.bf16.mxu1 %v1299_v13  ;;  %v1294_v8 = vpack.c.bf16 %v6053_v52, %v6050_v1  ;;  %v6216_v13 = vld [vmem:[%s8874_s19 + $0x440] sm:$0xff]  ;;  %v6065_v1 = vld [vmem:[%s8869_s16 + $0x810] sm:$0xff]  ;;  %v6098_v52 = vld [vmem:[%s8869_s16 + $0x5b8] sm:$0xff] }
  0xe2   : > { %7379 = vmatpush3.bf16.msra.mxu1 %v9285_v49  ;;  %8471 = vmatpush3.bf16.msra.mxu0 %v9162_v38  ;;  %v1289_v49 = vpack.c.bf16 %v6042_v27, %v6039_v12  ;;  %v6038_v38 = vld [vmem:[%s8869_s16 + $0x660] sm:$0xff]  ;;  %v9434_v27 = vpack.c.bf16 %v6217_v63, %v6216_v13  ;;  %v6209_v63 = vld [vmem:[%s8874_s19 + $0x408] sm:$0xff] }
  0xe3   : > { %7380 = vmatprep.subr.bf16.mxu1 %v9288_v50  ;;  %8472 = vmatprep.subr.bf16.mxu0 %v9168_v47  ;;  %v6041_v50 = vld [vmem:[%s8869_s16 + $0x690] sm:$0xff]  ;;  %v6208_v13 = vld [vmem:[%s8874_s19 + $0x400] sm:$0xff] }
  0xe4   : > { %v1288_v45 = vpack.c.bf16 %v6041_v50, %v6038_v38  ;;  %v6059_v38 = vld [vmem:[%s8869_s16 + $0x7b0] sm:$0xff]  ;;  %v6092_v50 = vld [vmem:[%s8869_s16 + $0x558] sm:$0xff] }
  0xe5   : > { %v1645_v57 = vpack.c.bf16 %v6095_v41, %v6092_v50  ;;  %v6068_v50 = vld [vmem:[%s8869_s16 + $0x840] sm:$0xff]  ;;  %v6104_v41 = vld [vmem:[%s8869_s16 + $0x618] sm:$0xff] }
  0xe6   : > { %7381 = vmatpush3.bf16.msra.mxu1 %v9299_v59  ;;  %8473 = vmatpush3.bf16.msra.mxu0 %v9168_v47  ;;  %v6048_v59 = vld [vmem:[%s8869_s16 + $0x6f8] sm:$0xff]  ;;  %v6084_v47 = vld [vmem:[%s8869_s16 + $0x4d0] sm:$0xff] }
  0xe7   : > { %8498 = vmatprep.subr.bf16.mxu1 %v9384_v29  ;;  %7474 = vmatprep.subr.bf16.mxu0 %v9388_v17  ;;  %v1292_v11 = vpack.c.bf16 %v6048_v59, %v6045_v44  ;;  %v1640_v48 = vpack.c.bf16 %v6084_v47, %v6081_v6  ;;  %v6063_v44 = vld [vmem:[%s8869_s16 + $0x7e8] sm:$0xff]  ;;  %v6066_v59 = vld [vmem:[%s8869_s16 + $0x818] sm:$0xff] }
  0xe8   : > { %1374 = vmatmul.mubr.bf16.gmra.mxu0 %v1285_v30  ;;  %8451 = vmatmul.mubr.bf16.gmra.mxu1 %v1302_v31  ;;  %v6215_v30 = vld [vmem:[%s8874_s19 + $0x438] sm:$0xff]  ;;  %v1301_v33 = vpack.c.bf16 %v6066_v59, %v6063_v44  ;;  %v6107_v59 = vld [vmem:[%s8869_s16 + $0x648] sm:$0xff] }
  0xe9   : > { %1381 = vmatprep.mubr.bf16.mxu0 %v1289_v49  ;;  %8454 = vmatprep.mubr.bf16.mxu1 %v1305_v16  ;;  %v6056_v16 = vld [vmem:[%s8869_s16 + $0x780] sm:$0xff] }
  0xea   : > { %v1297_v15 = vpack.c.bf16 %v6059_v38, %v6056_v16 }
  0xf0   : > { %1382 = vmatmul.mubr.bf16.gmra.mxu0 %v1288_v45  ;;  %8455 = vmatmul.mubr.bf16.gmra.mxu1 %v1308_v10  ;;  %v6099_v45 = vld [vmem:[%s8869_s16 + $0x5c0] sm:$0xff]  ;;  %v6102_v10 = vld [vmem:[%s8869_s16 + $0x5f0] sm:$0xff] }
  0xf1   : > { %1389 = vmatprep.mubr.bf16.mxu0 %v1292_v11  ;;  %1707 = vmatprep.mubr.bf16.mxu1 %v1640_v48  ;;  %v9452_v11 = vpack.c.bf16 %v6215_v30, %v6214_v39  ;;  %v9494_v39 = vpack.c.bf16 %v6209_v63, %v6208_v13 }
  0xf3   : > { %12505 = vst [vmem:[#allocation8_spill] sm:$0xff] %v9494_v39 }
  0xf8   : > { %v7058_v23 = vpop.f32.mrf.mxu0  ;;  %1390 = vmatmul.mubr.bf16.gmra.mxu0 %v1291_v9  ;;  %v8356_v40 = vpop.f32.mrf.mxu1  ;;  %1708 = vmatmul.mubr.bf16.vlgmr.msra.gmra.mxu1 %v1639_v34  ;;  %v1649_v9 = vpack.c.bf16 %v6102_v10, %v6099_v45  ;;  %v9462_v34 = vpack.c.bf16 %v6213_v20, %v6212_v53 }
  0xf9   : > { %1397 = vmatprep.mubr.bf16.mxu0 %v1295_v42  ;;  %8499 = vmatpush3.bf16.msra.mxu1 %v9384_v29 }
  0xfa   : > { %v7059_v60 = vpop.f32.mrf.mxu0  ;;  %1715 = vmatprep.mubr.bf16.mxu1 %v1643_v51  ;;  %v521_v54 = vpop.f32.mrf.mxu1  ;;  %8500 = vmatprep.subr.bf16.mxu1 %v9412_v43  ;;  %v6210_v51 = vld [vmem:[%s8874_s19 + $0x410] sm:$0xff] }
  0xfb   : > { %v7060_v61 = vadd.f32 %v7059_v60, %v7058_v23  ;;  %v6211_v23 = vld [vmem:[%s8874_s19 + $0x418] sm:$0xff]  ;;  %v6101_v60 = vld [vmem:[%s8869_s16 + $0x5e8] sm:$0xff] }
  0xfc   : > { %v7061_v7 = vpop.f32.mrf.mxu0  ;;  %v8357_v14 = vpop.f32.mrf.mxu1  ;;  %v9482_v2 = vpack.c.bf16 %v6211_v23, %v6210_v51 }
  0xfd   : > { %v9430_v18 = vadd.f32 %v7060_v61, %v521_v54  ;;  %8501 = vmatpush3.bf16.msra.mxu1 %v9412_v43  ;;  %v6105_v54 = vld [vmem:[%s8869_s16 + $0x620] sm:$0xff] }
  0xfe   : > { %v7062_v22 = vpop.f32.mrf.mxu0  ;;  %v524_v12 = vpop.f32.mrf.mxu1  ;;  %8502 = vmatprep.subr.bf16.mxu1 %v9426_v5  ;;  %12503 = vst [vmem:[#allocation6_spill] sm:$0xff] %v9482_v2 }
  0xff   : > { %12499 = vst [vmem:[#allocation2_spill] sm:$0xff] %v9430_v18  ;;  %v7063_v25 = vadd.f32 %v7062_v22, %v7061_v7  ;;  %v1304_v22 = vpack.c.bf16 %v6072_v4, %v6069_v56  ;;  %v6113_v56 = vld [vmem:[%s8869_s16 + $0x6a8] sm:$0xff] }
 0x100   : > { %v7064_v3 = vpop.f32.mrf.mxu0  ;;  %1398 = vmatmul.mubr.bf16.gmra.mxu0 %v1294_v8  ;;  %v9440_v49 = vpop.f32.mrf.mxu1  ;;  %1716 = vmatmul.mubr.bf16.gmra.mxu1 %v1642_v58  ;;  %v6082_v4 = vld [vmem:[%s8869_s16 + $0x4a8] sm:$0xff] }
 0x101   : > { %v9438_v31 = vadd.f32 %v7063_v25, %v524_v12  ;;  %1405 = vmatprep.mubr.bf16.mxu0 %v1298_v0  ;;  %1723 = vmatprep.mubr.bf16.mxu1 %v1646_v35  ;;  %v1648_v0 = vpack.c.bf16 %v6101_v60, %v6098_v52  ;;  %v1652_v25 = vpack.c.bf16 %v6108_v62, %v6105_v54  ;;  %v6077_v52 = vld [vmem:[%s8869_s16 + $0x8d0] sm:$0xff]  ;;  %v6117_v62 = vld [vmem:[%s8869_s16 + $0x6e0] sm:$0xff] }
 0x102   : > { %v7065_v36 = vpop.f32.mrf.mxu0  ;;  %8503 = vmatpush3.bf16.msra.mxu1 %v9426_v5  ;;  %v537_v47 = vpop.f32.mrf.mxu1 }
 0x103   : > { %12500 = vst [vmem:[#allocation3_spill] sm:$0xff] %v9438_v31  ;;  %v7066_v6 = vadd.f32 %v7065_v36, %v7064_v3  ;;  %8504 = vmatprep.subr.bf16.mxu1 %v9434_v27  ;;  %v6071_v36 = vld [vmem:[%s8869_s16 + $0x870] sm:$0xff] }
 0x104   : > { %v7067_v48 = vpop.f32.mrf.mxu0  ;;  %v9458_v24 = vpop.f32.mrf.mxu1  ;;  %v1303_v20 = vpack.c.bf16 %v6071_v36, %v6068_v50  ;;  %v6116_v36 = vld [vmem:[%s8869_s16 + $0x6d8] sm:$0xff] }
 0x105   : > { %v9456_v55 = vadd.f32 %v8356_v40, %v7066_v6  ;;  %v6062_v40 = vld [vmem:[%s8869_s16 + $0x7e0] sm:$0xff]  ;;  %v6075_v6 = vld [vmem:[%s8869_s16 + $0x8a8] sm:$0xff] }
 0x106   : > { %v7068_v21 = vpop.f32.mrf.mxu0  ;;  %8505 = vmatpush3.bf16.msra.mxu1 %v9434_v27  ;;  %v540_v26 = vpop.f32.mrf.mxu1  ;;  %v1300_v8 = vpack.c.bf16 %v6065_v1, %v6062_v40  ;;  %v6074_v1 = vld [vmem:[%s8869_s16 + $0x8a0] sm:$0xff] }
 0x107   : > { %12501 = vst [vmem:[#allocation4_spill] sm:$0xff] %v9456_v55  ;;  %v7069_v28 = vadd.f32 %v7068_v21, %v7067_v48  ;;  %8506 = vmatprep.subr.bf16.mxu1 %v9452_v11  ;;  %v6111_v48 = vld [vmem:[%s8869_s16 + $0x680] sm:$0xff]  ;;  %v1651_v21 = vpack.c.bf16 %v6107_v59, %v6104_v41  ;;  %v6088_v59 = vld [vmem:[%s8869_s16 + $0x508] sm:$0xff] }
 0x108   : > { %v7070_v42 = vpop.f32.mrf.mxu0  ;;  %1406 = vmatmul.mubr.bf16.gmra.mxu0 %v1297_v15  ;;  %v9468_v37 = vpop.f32.mrf.mxu1  ;;  %1724 = vmatmul.mubr.bf16.gmra.mxu1 %v1645_v57  ;;  %v6114_v15 = vld [vmem:[%s8869_s16 + $0x6b0] sm:$0xff] }
 0x109   : > { %v9466_v32 = vadd.f32 %v8357_v14, %v7069_v28  ;;  %1413 = vmatprep.mubr.bf16.mxu0 %v1301_v33  ;;  %1731 = vmatprep.mubr.bf16.mxu1 %v1649_v9 }
 0x10a   : > { %v7071_v19 = vpop.f32.mrf.mxu0  ;;  %8507 = vmatpush3.bf16.msra.mxu1 %v9452_v11  ;;  %v9477_v61 = vpop.f32.mrf.mxu1 }
 0x10b   : > { %12502 = vst [vmem:[#allocation5_spill] sm:$0xff] %v9466_v32  ;;  %v7072_v46 = vadd.f32 %v7071_v19, %v7070_v42  ;;  %8508 = vmatprep.subr.bf16.mxu1 %v9462_v34  ;;  %v6110_v19 = vld [vmem:[%s8869_s16 + $0x678] sm:$0xff] }
 0x10c   : > { %v7073_v7 = vpop.f32.mrf.mxu0  ;;  %v9488_v58 = vpop.f32.mrf.mxu1 }
 0x10d   : > { %v9486_v14 = vadd.f32 %v7072_v46, %v537_v47  ;;  %v6078_v47 = vld [vmem:[%s8869_s16 + $0x8d8] sm:$0xff] }
 0x10e   : > { %v7074_v35 = vpop.f32.mrf.mxu0  ;;  %8509 = vmatpush3.bf16.msra.mxu1 %v9462_v34  ;;  %v9491_v3 = vpop.f32.mrf.mxu1  ;;  %v1307_v9 = vpack.c.bf16 %v6078_v47, %v6075_v6  ;;  %v6085_v46 = vld [vmem:[%s8869_s16 + $0x4d8] sm:$0xff] }
 0x10f   : > { %12504 = vst [vmem:[#allocation7_spill] sm:$0xff] %v9486_v14  ;;  %v7075_v12 = vadd.f32 %v7074_v35, %v7073_v7  ;;  %8510 = vmatprep.subr.bf16.mxu1 %v9482_v2  ;;  %v6120_v7 = vld [vmem:[%s8869_s16 + $0x710] sm:$0xff]  ;;  %v6091_v6 = vld [vmem:[%s8869_s16 + $0x538] sm:$0xff]  ;;  %v6192_v14 = vld [vmem:[%s8874_s19 + $0x380] sm:$0xff] }
 0x110   : > { %v7076_v30 = vpop.f32.mrf.mxu0  ;;  %1414 = vmatmul.mubr.bf16.gmra.mxu0 %v1300_v8  ;;  %v9498_v38 = vpop.f32.mrf.mxu1  ;;  %1732 = vmatmul.mubr.bf16.gmra.mxu1 %v1648_v0  ;;  %v1306_v8 = vpack.c.bf16 %v6077_v52, %v6074_v1  ;;  %v1654_v0 = vpack.c.bf16 %v6113_v56, %v6110_v19 }
 0x111   : > { %v9496_v16 = vadd.f32 %v7075_v12, %v540_v26  ;;  %1421 = vmatprep.mubr.bf16.mxu0 %v1304_v22  ;;  %1739 = vmatprep.mubr.bf16.mxu1 %v1652_v25  ;;  %v1655_v26 = vpack.c.bf16 %v6114_v15, %v6111_v48  ;;  %v1641_v22 = vpack.c.bf16 %v6085_v46, %v6082_v4  ;;  %v6191_v48 = vld [vmem:[%s8874_s19 + $0x378] sm:$0xff]  ;;  %v6123_v15 = vld [vmem:[%s8869_s16 + $0x740] sm:$0xff] }
 0x112   : > { %v7077_v44 = vpop.f32.mrf.mxu0  ;;  %8511 = vmatpush3.bf16.msra.mxu1 %v9482_v2  ;;  %v9507_v10 = vpop.f32.mrf.mxu1  ;;  %v1658_v25 = vpack.c.bf16 %v6120_v7, %v6117_v62  ;;  %v6189_v62 = vld [vmem:[%s8874_s19 + $0x368] sm:$0xff] }
 0x113   : > { %12506 = vst [vmem:[#allocation9_spill] sm:$0xff] %v9496_v16  ;;  %v7078_v45 = vadd.f32 %v7077_v44, %v7076_v30  ;;  %8512 = vmatprep.subr.bf16.mxu1 %v9494_v39  ;;  %v6119_v44 = vld [vmem:[%s8869_s16 + $0x708] sm:$0xff] }
 0x114   : > { %v7079_v53 = vpop.f32.mrf.mxu0  ;;  %v9515_v33 = vpop.f32.mrf.mxu1  ;;  %v1657_v19 = vpack.c.bf16 %v6119_v44, %v6116_v36  ;;  %v6125_v36 = vld [vmem:[%s8869_s16 + $0x768] sm:$0xff] }
 0x115   : > { %v9513_v57 = vadd.f32 %v9440_v49, %v7078_v45  ;;  %v6190_v45 = vld [vmem:[%s8874_s19 + $0x370] sm:$0xff]  ;;  %v6100_v44 = vld [vmem:[%s8869_s16 + $0x5c8] sm:$0xff] }
 0x116   : > { %v7080_v28 = vpop.f32.mrf.mxu0  ;;  %8513 = vmatpush3.bf16.msra.mxu1 %v9494_v39  ;;  %v9518_v51 = vpop.f32.mrf.mxu1 }
 0x117   : > { %12507 = vst [vmem:[#allocation10_spill] sm:$0xff] %v9513_v57  ;;  %v7081_v42 = vadd.f32 %v7080_v28, %v7079_v53  ;;  %7582 = vmatprep.subr.bf16.mxu1 %v9388_v17 }
 0x118   : > { %v7082_v49 = vpop.f32.mrf.mxu0  ;;  %1422 = vmatmul.mubr.bf16.gmra.mxu0 %v1303_v20  ;;  %v9524_v40 = vpop.f32.mrf.mxu1  ;;  %1740 = vmatmul.mubr.bf16.gmra.mxu1 %v1651_v21  ;;  %v6205_v21 = vld [vmem:[%s8874_s19 + $0x3e8] sm:$0xff] }
 0x119   : > { %v9522_v23 = vadd.f32 %v9458_v24, %v7081_v42  ;;  %1429 = vmatprep.mubr.bf16.mxu0 %v1307_v9  ;;  %1747 = vmatprep.mubr.bf16.mxu1 %v1655_v26  ;;  %v6126_v9 = vld [vmem:[%s8869_s16 + $0x770] sm:$0xff]  ;;  %v1644_v26 = vpack.c.bf16 %v6091_v6, %v6088_v59  ;;  %v6094_v42 = vld [vmem:[%s8869_s16 + $0x568] sm:$0xff]  ;;  %v6103_v59 = vld [vmem:[%s8869_s16 + $0x5f8] sm:$0xff] }
 0x11a   : > { %v7083_v60 = vpop.f32.mrf.mxu0  ;;  %v9532_v54 = vpop.f32.mrf.mxu1  ;;  %v1661_v46 = vpack.c.bf16 %v6126_v9, %v6123_v15  ;;  %v6109_v9 = vld [vmem:[%s8869_s16 + $0x658] sm:$0xff] }
 0x11b   : > { %12508 = vst [vmem:[#allocation11_spill] sm:$0xff] %v9522_v23  ;;  %v7084_v17 = vadd.f32 %v7083_v60, %v7082_v49  ;;  %v6097_v49 = vld [vmem:[%s8869_s16 + $0x598] sm:$0xff]  ;;  %v9567_v60 = vpack.c.bf16 %v6191_v48, %v6190_v45  ;;  %v6129_v48 = vld [vmem:[%s8869_s16 + $0x7a0] sm:$0xff]  ;;  %v6193_v23 = vld [vmem:[%s8874_s19 + $0x388] sm:$0xff] }
 0x11c   : > { %v7085_v24 = vpop.f32.mrf.mxu0  ;;  %v9539_v63 = vpop.f32.mrf.mxu1  ;;  %v6187_v45 = vld [vmem:[%s8874_s19 + $0x358] sm:$0xff] }
 0x11d   : > { %v9537_v13 = vadd.f32 %v7084_v17, %v9477_v61  ;;  %v6188_v17 = vld [vmem:[%s8874_s19 + $0x360] sm:$0xff] }
 0x11e   : > { %v7086_v35 = vpop.f32.mrf.mxu0  ;;  %v9541_v30 = vpop.f32.mrf.mxu1 }
 0x11f   : > { %12509 = vst [vmem:[#allocation12_spill] sm:$0xff] %v9537_v13  ;;  %v7087_v12 = vadd.f32 %v7086_v35, %v7085_v24  ;;  %v6122_v35 = vld [vmem:[%s8869_s16 + $0x738] sm:$0xff] }
 0x120   : > { %v7088_v50 = vpop.f32.mrf.mxu0  ;;  %1430 = vmatmul.mubr.bf16.gmra.mxu0 %v1306_v8  ;;  %v9547_v41 = vpop.f32.mrf.mxu1  ;;  %1748 = vmatmul.mubr.bf16.gmra.mxu1 %v1654_v0  ;;  %v6202_v8 = vld [vmem:[%s8874_s19 + $0x3d0] sm:$0xff]  ;;  %v6203_v0 = vld [vmem:[%s8874_s19 + $0x3d8] sm:$0xff] }
 0x121   : > { %v9545_v61 = vadd.f32 %v7087_v12, %v9491_v3  ;;  %8474 = vmatprep.mubr.bf16.mxu0 %v1641_v22  ;;  %1755 = vmatprep.mubr.bf16.mxu1 %v1658_v25  ;;  %v6204_v3 = vld [vmem:[%s8874_s19 + $0x3e0] sm:$0xff] }
 0x122   : > { %v7089_v47 = vpop.f32.mrf.mxu0  ;;  %v9555_v20 = vpop.f32.mrf.mxu1  ;;  %v9569_v4 = vpack.c.bf16 %v6205_v21, %v6204_v3  ;;  %v6132_v3 = vld [vmem:[%s8869_s16 + $0x7d0] sm:$0xff]  ;;  %v6106_v21 = vld [vmem:[%s8869_s16 + $0x628] sm:$0xff] }
 0x123   : > { %12510 = vst [vmem:[#allocation13_spill] sm:$0xff] %v9545_v61  ;;  %v7090_v53 = vadd.f32 %v7089_v47, %v7088_v50  ;;  %v9584_v50 = vpack.c.bf16 %v6189_v62, %v6188_v17  ;;  %v6186_v47 = vld [vmem:[%s8874_s19 + $0x350] sm:$0xff] }
 0x124   : > { %v7091_v28 = vpop.f32.mrf.mxu0  ;;  %v9565_v52 = vpop.f32.mrf.mxu1  ;;  %v9608_v17 = vpack.c.bf16 %v6187_v45, %v6186_v47 }
 0x125   : > { %v9563_v1 = vadd.f32 %v9468_v37, %v7090_v53  ;;  %v1647_v37 = vpack.c.bf16 %v6097_v49, %v6094_v42  ;;  %v6200_v42 = vld [vmem:[%s8874_s19 + $0x3c0] sm:$0xff]  ;;  %v6201_v49 = vld [vmem:[%s8874_s19 + $0x3c8] sm:$0xff] }
 0x126   : > { %v7092_v56 = vpop.f32.mrf.mxu0  ;;  %v9573_v24 = vpop.f32.mrf.mxu1 }
 0x127   : > { %12511 = vst [vmem:[#allocation14_spill] sm:$0xff] %v9563_v1  ;;  %v7093_v7 = vadd.f32 %v7092_v56, %v7091_v28  ;;  %v6179_v1 = vld [vmem:[%s8874_s19 + $0x318] sm:$0xff] }
 0x128   : > { %v7094_v22 = vpop.f32.mrf.mxu0  ;;  %8475 = vmatmul.mubr.bf16.vlgmr.msra.gmra.mxu0 %v1644_v26  ;;  %v9581_v12 = vpop.f32.mrf.mxu1  ;;  %1756 = vmatmul.mubr.bf16.gmra.mxu1 %v1657_v19  ;;  %v1650_v26 = vpack.c.bf16 %v6103_v59, %v6100_v44  ;;  %v9615_v44 = vpack.c.bf16 %v6201_v49, %v6200_v42  ;;  %v6198_v59 = vld [vmem:[%s8874_s19 + $0x3b0] sm:$0xff] }
 0x129   : > { %v9579_v25 = vadd.f32 %v9488_v58, %v7093_v7  ;;  %7475 = vmatpush3.bf16.msra.mxu0 %v9567_v60  ;;  %1763 = vmatprep.mubr.bf16.mxu1 %v1661_v46  ;;  %v9590_v58 = vpack.c.bf16 %v6203_v0, %v6202_v8  ;;  %v1660_v46 = vpack.c.bf16 %v6125_v36, %v6122_v35  ;;  %v6184_v8 = vld [vmem:[%s8874_s19 + $0x340] sm:$0xff]  ;;  %v6185_v0 = vld [vmem:[%s8874_s19 + $0x348] sm:$0xff]  ;;  %v6199_v35 = vld [vmem:[%s8874_s19 + $0x3b8] sm:$0xff] }
 0x12a   : > { %v7095_v6 = vpop.f32.mrf.mxu0  ;;  %7476 = vmatprep.subr.bf16.mxu0 %v9569_v4  ;;  %v9595_v53 = vpop.f32.mrf.mxu1  ;;  %8478 = vmatprep.mubr.bf16.mxu0 %v1647_v37  ;;  %v1664_v7 = vpack.c.bf16 %v6132_v3, %v6129_v48  ;;  %v1653_v37 = vpack.c.bf16 %v6109_v9, %v6106_v21  ;;  %v6131_v48 = vld [vmem:[%s8869_s16 + $0x7c8] sm:$0xff]  ;;  %v6115_v3 = vld [vmem:[%s8869_s16 + $0x6b8] sm:$0xff]  ;;  %v9629_v21 = vpack.c.bf16 %v6185_v0, %v6184_v8 }
 0x12b   : > { %12512 = vst [vmem:[#allocation15_spill] sm:$0xff] %v9579_v25  ;;  %v7096_v15 = vadd.f32 %v7095_v6, %v7094_v22  ;;  %v6128_v6 = vld [vmem:[%s8869_s16 + $0x798] sm:$0xff]  ;;  %v9634_v42 = vpack.c.bf16 %v6199_v35, %v6198_v59  ;;  %v6178_v25 = vld [vmem:[%s8874_s19 + $0x310] sm:$0xff] }
 0x12c   : > { %v7097_v28 = vpop.f32.mrf.mxu0  ;;  %v9605_v56 = vpop.f32.mrf.mxu1  ;;  %v1663_v35 = vpack.c.bf16 %v6131_v48, %v6128_v6  ;;  %v6181_v6 = vld [vmem:[%s8874_s19 + $0x328] sm:$0xff] }
 0x12d   : > { %v9603_v19 = vadd.f32 %v7096_v15, %v9507_v10  ;;  %7477 = vmatpush3.bf16.msra.mxu0 %v9584_v50  ;;  %v6112_v15 = vld [vmem:[%s8869_s16 + $0x688] sm:$0xff] }
 0x12e   : > { %v7098_v62 = vpop.f32.mrf.mxu0  ;;  %7478 = vmatprep.subr.bf16.mxu0 %v9590_v58  ;;  %v9613_v22 = vpop.f32.mrf.mxu1  ;;  %v1656_v0 = vpack.c.bf16 %v6115_v3, %v6112_v15 }
 0x12f   : > { %12513 = vst [vmem:[#allocation16_spill] sm:$0xff] %v9603_v19  ;;  %v7099_v10 = vadd.f32 %v7098_v62, %v7097_v28  ;;  %v6118_v28 = vld [vmem:[%s8869_s16 + $0x6e8] sm:$0xff]  ;;  %v6138_v62 = vld [vmem:[%s8869_s16 + $0x830] sm:$0xff]  ;;  %v6196_v19 = vld [vmem:[%s8874_s19 + $0x3a0] sm:$0xff] }
 0x130   : > { %v7100_v36 = vpop.f32.mrf.mxu0  ;;  %8479 = vmatmul.mubr.bf16.gmra.mxu0 %v1650_v26  ;;  %v9623_v45 = vpop.f32.mrf.mxu1  ;;  %1764 = vmatmul.mubr.bf16.gmra.mxu1 %v1660_v46  ;;  %v6121_v26 = vld [vmem:[%s8869_s16 + $0x718] sm:$0xff] }
 0x131   : > { %v9621_v47 = vadd.f32 %v7099_v10, %v9518_v51  ;;  %7479 = vmatpush3.bf16.msra.mxu0 %v9608_v17  ;;  %1771 = vmatprep.mubr.bf16.mxu1 %v1664_v7  ;;  %v6135_v51 = vld [vmem:[%s8869_s16 + $0x800] sm:$0xff]  ;;  %v6182_v10 = vld [vmem:[%s8874_s19 + $0x330] sm:$0xff]  ;;  %v6197_v7 = vld [vmem:[%s8874_s19 + $0x3a8] sm:$0xff] }
 0x132   : > { %v7101_v9 = vpop.f32.mrf.mxu0  ;;  %8482 = vmatprep.mubr.bf16.mxu0 %v1653_v37  ;;  %v9636_v46 = vpop.f32.mrf.mxu1  ;;  %7480 = vmatprep.subr.bf16.mxu0 %v9615_v44  ;;  %v1667_v61 = vpack.c.bf16 %v6138_v62, %v6135_v51  ;;  %v6134_v51 = vld [vmem:[%s8869_s16 + $0x7f8] sm:$0xff] }
 0x133   : > { %12514 = vst [vmem:[#allocation17_spill] sm:$0xff] %v9621_v47  ;;  %v7102_v49 = vadd.f32 %v7101_v9, %v7100_v36  ;;  %v6183_v47 = vld [vmem:[%s8874_s19 + $0x338] sm:$0xff]  ;;  %v1659_v36 = vpack.c.bf16 %v6121_v26, %v6118_v28  ;;  %v6194_v28 = vld [vmem:[%s8874_s19 + $0x390] sm:$0xff] }
 0x134   : > { %v7103_v8 = vpop.f32.mrf.mxu0  ;;  %v9647_v59 = vpop.f32.mrf.mxu1  ;;  %v9651_v15 = vpack.c.bf16 %v6183_v47, %v6182_v10  ;;  %v6195_v26 = vld [vmem:[%s8874_s19 + $0x398] sm:$0xff]  ;;  %v6124_v10 = vld [vmem:[%s8869_s16 + $0x748] sm:$0xff] }
 0x135   : > { %v9645_v37 = vadd.f32 %v9498_v38, %v7102_v49  ;;  %7481 = vmatpush3.bf16.msra.mxu0 %v9629_v21  ;;  %v9655_v49 = vpack.c.bf16 %v6197_v7, %v6196_v19  ;;  %v6137_v19 = vld [vmem:[%s8869_s16 + $0x828] sm:$0xff] }
 0x136   : > { %v7104_v9 = vpop.f32.mrf.mxu0  ;;  %7482 = vmatprep.subr.bf16.mxu0 %v9634_v42  ;;  %v9653_v38 = vpop.f32.mrf.mxu1 }
 0x137   : > { %12515 = vst [vmem:[#allocation18_spill] sm:$0xff] %v9645_v37  ;;  %v7105_v3 = vadd.f32 %v7104_v9, %v7103_v8  ;;  %v6180_v37 = vld [vmem:[%s8874_s19 + $0x320] sm:$0xff]  ;;  %v6127_v8 = vld [vmem:[%s8869_s16 + $0x778] sm:$0xff]  ;;  %v6130_v9 = vld [vmem:[%s8869_s16 + $0x7a8] sm:$0xff] }
 0x138   : > { %v7106_v48 = vpop.f32.mrf.mxu0  ;;  %8483 = vmatmul.mubr.bf16.gmra.mxu0 %v1656_v0  ;;  %v9665_v62 = vpop.f32.mrf.mxu1  ;;  %1772 = vmatmul.mubr.bf16.gmra.mxu1 %v1663_v35  ;;  %v6141_v0 = vld [vmem:[%s8869_s16 + $0x860] sm:$0xff]  ;;  %v6144_v35 = vld [vmem:[%s8869_s16 + $0x890] sm:$0xff] }
 0x139   : > { %v9663_v47 = vadd.f32 %v9515_v33, %v7105_v3  ;;  %8486 = vmatprep.mubr.bf16.mxu0 %v1659_v36  ;;  %1779 = vmatprep.mubr.bf16.mxu1 %v1667_v61  ;;  %v6133_v33 = vld [vmem:[%s8869_s16 + $0x7d8] sm:$0xff]  ;;  %v9674_v3 = vpack.c.bf16 %v6181_v6, %v6180_v37  ;;  %v9680_v36 = vpack.c.bf16 %v6195_v26, %v6194_v28 }
 0x13a   : > { %v7107_v7 = vpop.f32.mrf.mxu0  ;;  %7483 = vmatpush3.bf16.msra.mxu0 %v9651_v15  ;;  %v9676_v13 = vpop.f32.mrf.mxu1  ;;  %v1662_v61 = vpack.c.bf16 %v6127_v8, %v6124_v10  ;;  %v1666_v6 = vpack.c.bf16 %v6137_v19, %v6134_v51  ;;  %v1670_v31 = vpack.c.bf16 %v6144_v35, %v6141_v0  ;;  %v9692_v28 = vpack.c.bf16 %v6179_v1, %v6178_v25  ;;  %v6176_v51 = vld [vmem:[%s8874_s19 + $0x300] sm:$0xff]  ;;  %v6136_v25 = vld [vmem:[%s8869_s16 + $0x808] sm:$0xff]  ;;  %v6139_v0 = vld [vmem:[%s8869_s16 + $0x838] sm:$0xff] }
 0x13b   : > { %12516 = vst [vmem:[#allocation19_spill] sm:$0xff] %v9663_v47  ;;  %v7108_v47 = vadd.f32 %v7107_v7, %v7106_v48  ;;  %7484 = vmatprep.subr.bf16.mxu0 %v9655_v49  ;;  %v1665_v48 = vpack.c.bf16 %v6133_v33, %v6130_v9  ;;  %v6142_v9 = vld [vmem:[%s8869_s16 + $0x868] sm:$0xff]  ;;  %v6145_v33 = vld [vmem:[%s8869_s16 + $0x898] sm:$0xff] }
 0x13c   : > { %v7109_v16 = vpop.f32.mrf.mxu0  ;;  %v9689_v37 = vpop.f32.mrf.mxu1 }
 0x13d   : > { %v9687_v57 = vadd.f32 %v7108_v47, %v9532_v54  ;;  %v9697_v54 = vpack.c.bf16 %v6193_v23, %v6192_v14  ;;  %v6177_v47 = vld [vmem:[%s8874_s19 + $0x308] sm:$0xff] }
 0x13e   : > { %v7110_v7 = vpop.f32.mrf.mxu0  ;;  %7485 = vmatpush3.bf16.msra.mxu0 %v9674_v3  ;;  %v9694_v10 = vpop.f32.mrf.mxu1  ;;  %v6143_v23 = vld [vmem:[%s8869_s16 + $0x888] sm:$0xff]  ;;  %v9713_v35 = vpack.c.bf16 %v6177_v47, %v6176_v51  ;;  %v1671_v51 = vpack.c.bf16 %v6145_v33, %v6142_v9  ;;  %v6151_v9 = vld [vmem:[%s8869_s16 + $0x8f8] sm:$0xff] }
 0x13f   : > { %12517 = vst [vmem:[#allocation20_spill] sm:$0xff] %v9687_v57  ;;  %v7111_v26 = vadd.f32 %v7110_v7, %v7109_v16  ;;  %7486 = vmatprep.subr.bf16.mxu0 %v9680_v36  ;;  %v6140_v16 = vld [vmem:[%s8869_s16 + $0x858] sm:$0xff]  ;;  %v6147_v7 = vld [vmem:[%s8869_s16 + $0x8c0] sm:$0xff] }
 0x140   : > { %v7112_v19 = vpop.f32.mrf.mxu0  ;;  %8487 = vmatmul.mubr.bf16.gmra.mxu0 %v1662_v61  ;;  %v9704_v1 = vpop.f32.mrf.mxu1  ;;  %1780 = vmatmul.mubr.bf16.gmra.mxu1 %v1666_v6  ;;  %v1669_v57 = vpack.c.bf16 %v6143_v23, %v6140_v16  ;;  %v6148_v23 = vld [vmem:[%s8869_s16 + $0x8c8] sm:$0xff] }
 0x141   : > { %v9702_v8 = vadd.f32 %v7111_v26, %v9541_v30  ;;  %8490 = vmatprep.mubr.bf16.mxu0 %v1665_v48  ;;  %1787 = vmatprep.mubr.bf16.mxu1 %v1670_v31  ;;  %v6150_v26 = vld [vmem:[%s8869_s16 + $0x8f0] sm:$0xff]  ;;  %v1668_v48 = vpack.c.bf16 %v6139_v0, %v6136_v25  ;;  %v6146_v0 = vld [vmem:[%s8869_s16 + $0x8b8] sm:$0xff] }
 0x142   : > { %v7113_v14 = vpop.f32.mrf.mxu0  ;;  %7487 = vmatpush3.bf16.msra.mxu0 %v9692_v28  ;;  %v9715_v61 = vpop.f32.mrf.mxu1 }
 0x143   : > { %12518 = vst [vmem:[#allocation21_spill] sm:$0xff] %v9702_v8  ;;  %v7114_v30 = vadd.f32 %v7113_v14, %v7112_v19  ;;  %7488 = vmatprep.subr.bf16.mxu0 %v9697_v54  ;;  %v1673_v19 = vpack.c.bf16 %v6150_v26, %v6147_v7  ;;  %v6225_v7 = vld [vmem:[%s8869_s16 + $0x908] sm:$0xff]  ;;  %v6228_v26 = vld [vmem:[%s8869_s16 + $0x938] sm:$0xff] }
 0x144   : > { %v7115_v6 = vpop.f32.mrf.mxu0  ;;  %v9723_v31 = vpop.f32.mrf.mxu1 }
 0x145   : > { %v9721_v8 = vadd.f32 %v9524_v40, %v7114_v30  ;;  %v6149_v30 = vld [vmem:[%s8869_s16 + $0x8e8] sm:$0xff] }
 0x146   : > { %v7116_v47 = vpop.f32.mrf.mxu0  ;;  %7489 = vmatpush3.bf16.msra.mxu0 %v9713_v35  ;;  %v9726_v32 = vpop.f32.mrf.mxu1 }
 0x147   : > { %12519 = vst [vmem:[#allocation22_spill] sm:$0xff] %v9721_v8  ;;  %v7117_v14 = vadd.f32 %v7116_v47, %v7115_v6  ;;  %8538 = vmatprep.subr.bf16.mxu0 %v9384_v29  ;;  %v6229_v8 = vld [vmem:[%s8869_s16 + $0x940] sm:$0xff] }
 0x148   : > { %v7118_v40 = vpop.f32.mrf.mxu0  ;;  %8491 = vmatmul.mubr.bf16.gmra.mxu0 %v1668_v48  ;;  %v9732_v25 = vpop.f32.mrf.mxu1  ;;  %1788 = vmatmul.mubr.bf16.gmra.mxu1 %v1669_v57  ;;  %v6226_v48 = vld [vmem:[%s8869_s16 + $0x910] sm:$0xff] }
 0x149   : > { %v9730_v16 = vadd.f32 %v9539_v63, %v7117_v14  ;;  %8494 = vmatprep.mubr.bf16.mxu0 %v1671_v51  ;;  %1795 = vmatprep.mubr.bf16.mxu1 %v1673_v19  ;;  %v1674_v63 = vpack.c.bf16 %v6151_v9, %v6148_v23  ;;  %v1672_v14 = vpack.c.bf16 %v6149_v30, %v6146_v0  ;;  %v6224_v0 = vld [vmem:[%s8869_s16 + $0x900] sm:$0xff]  ;;  %v6227_v9 = vld [vmem:[%s8869_s16 + $0x930] sm:$0xff] }
 0x14a   : > { %v7119_v33 = vpop.f32.mrf.mxu0  ;;  %v9740_v47 = vpop.f32.mrf.mxu1  ;;  %v2225_v19 = vpack.c.bf16 %v6228_v26, %v6225_v7  ;;  %v2226_v55 = vpack.c.bf16 %v6229_v8, %v6226_v48  ;;  %v6235_v8 = vld [vmem:[%s8869_s16 + $0x9a0] sm:$0xff]  ;;  %v6231_v26 = vld [vmem:[%s8869_s16 + $0x968] sm:$0xff] }
 0x14b   : > { %12520 = vst [vmem:[#allocation23_spill] sm:$0xff] %v9730_v16  ;;  %v7120_v6 = vadd.f32 %v7119_v33, %v7118_v40 }
 0x14c   : > { %v7121_v18 = vpop.f32.mrf.mxu0  ;;  %v9747_v51 = vpop.f32.mrf.mxu1 }
 0x14d   : > { %v9745_v57 = vadd.f32 %v7120_v6, %v9555_v20  ;;  %v6234_v6 = vld [vmem:[%s8869_s16 + $0x998] sm:$0xff] }
 0x14e   : > { %v7122_v16 = vpop.f32.mrf.mxu0  ;;  %v9749_v33 = vpop.f32.mrf.mxu1 }
 0x14f   : > { %12521 = vst [vmem:[#allocation24_spill] sm:$0xff] %v9745_v57  ;;  %v7123_v40 = vadd.f32 %v7122_v16, %v7121_v18  ;;  %v6232_v18 = vld [vmem:[%s8869_s16 + $0x970] sm:$0xff]  ;;  %v2228_v57 = vpack.c.bf16 %v6234_v6, %v6231_v26 }
 0x150   : > { %v7124_v39 = vpop.f32.mrf.mxu0  ;;  %8495 = vmatmul.mubr.bf16.gmra.mxu0 %v1674_v63  ;;  %v9754_v20 = vpop.f32.mrf.mxu1  ;;  %1796 = vmatmul.mubr.bf16.gmra.mxu1 %v1672_v14  ;;  %v6238_v63 = vld [vmem:[%s8869_s16 + $0x9d0] sm:$0xff] }
 0x151   : > { %v9752_v23 = vadd.f32 %v7123_v40, %v9573_v24  ;;  %2292 = vmatprep.mubr.bf16.mxu0 %v2225_v19  ;;  %8514 = vmatprep.mubr.bf16.mxu1 %v2226_v55  ;;  %v2224_v24 = vpack.c.bf16 %v6227_v9, %v6224_v0  ;;  %v6241_v40 = vld [vmem:[%s8869_s16 + $0xa00] sm:$0xff]  ;;  %v2229_v19 = vpack.c.bf16 %v6235_v8, %v6232_v18  ;;  %v6244_v6 = vld [vmem:[%s8869_s16 + $0xa30] sm:$0xff] }
 0x152   : > { %v7125_v30 = vpop.f32.mrf.mxu0  ;;  %v9760_v7 = vpop.f32.mrf.mxu1  ;;  %v2232_v0 = vpack.c.bf16 %v6241_v40, %v6238_v63  ;;  %v6250_v63 = vld [vmem:[%s8869_s16 + $0xa90] sm:$0xff]  ;;  %v6253_v40 = vld [vmem:[%s8869_s16 + $0xac0] sm:$0xff] }
 0x153   : > { %12522 = vst [vmem:[#allocation25_spill] sm:$0xff] %v9752_v23  ;;  %v7126_v16 = vadd.f32 %v7125_v30, %v7124_v39  ;;  %v7174_v39 = vadd.f32 %v9636_v46, %v9623_v45  ;;  %v6230_v45 = vld [vmem:[%s8869_s16 + $0x960] sm:$0xff]  ;;  %v6233_v46 = vld [vmem:[%s8869_s16 + $0x990] sm:$0xff] }
 0x154   : > { %v7127_v48 = vpop.f32.mrf.mxu0  ;;  %v9769_v14 = vpop.f32.mrf.mxu1 }
 0x155   : > { %v9767_v23 = vadd.f32 %v9547_v41, %v7126_v16  ;;  %v7168_v41 = vadd.f32 %v9595_v53, %v9581_v12  ;;  %v6247_v12 = vld [vmem:[%s8869_s16 + $0xa60] sm:$0xff]  ;;  %v6237_v53 = vld [vmem:[%s8869_s16 + $0x9c8] sm:$0xff] }
 0x156   : > { %v7128_v55 = vpop.f32.mrf.mxu0  ;;  %v9773_v2 = vpop.f32.mrf.mxu1 }
 0x157   : > { %v7129_v30 = vadd.f32 %v7128_v55, %v7127_v48  ;;  %v2227_v55 = vpack.c.bf16 %v6233_v46, %v6230_v45  ;;  %v6256_v45 = vld [vmem:[%s8869_s16 + $0xaf0] sm:$0xff]  ;;  %v6243_v46 = vld [vmem:[%s8869_s16 + $0xa28] sm:$0xff] }
 0x158   : > { %v8396_v9 = vpop.f32.mrf.mxu0  ;;  %2293 = vmatmul.mubr.bf16.vlgmr.msra.gmra.mxu0 %v2224_v24  ;;  %v9780_v8 = vpop.f32.mrf.mxu1  ;;  %8515 = vmatmul.mubr.bf16.vlgmr.msra.gmra.mxu1 %v2229_v19 }
 0x159   : > { %v9778_v18 = vadd.f32 %v9565_v52, %v7129_v30  ;;  %v896_v16 = vadd.f32 %v8396_v9, %v7174_v39  ;;  %8539 = vmatpush3.bf16.msra.mxu0 %v9384_v29  ;;  %7583 = vmatpush3.bf16.msra.mxu1 %v9567_v60  ;;  %v7177_v52 = vadd.f32 %v9653_v38, %v9647_v59  ;;  %v6240_v29 = vld [vmem:[%s8869_s16 + $0x9f8] sm:$0xff]  ;;  %v6236_v9 = vld [vmem:[%s8869_s16 + $0x9c0] sm:$0xff] }
 0x15a   : > { %v887_v26 = vpop.f32.mrf.mxu0  ;;  %2300 = vmatprep.mubr.bf16.mxu0 %v2228_v57  ;;  %v9791_v48 = vpop.f32.mrf.mxu1  ;;  %8518 = vmatprep.mubr.bf16.mxu1 %v2232_v0  ;;  %v7171_v60 = vadd.f32 %v9613_v22, %v9605_v56  ;;  %v2235_v57 = vpack.c.bf16 %v6247_v12, %v6244_v6  ;;  %v2231_v30 = vpack.c.bf16 %v6240_v29, %v6237_v53  ;;  %v6246_v6 = vld [vmem:[%s8869_s16 + $0xa58] sm:$0xff]  ;;  %v6262_v12 = vld [vmem:[%s8869_s16 + $0xb50] sm:$0xff]  ;;  %v6265_v53 = vld [vmem:[%s8869_s16 + $0xb80] sm:$0xff] }
 0x15b   : > { %v888_v24 = vadd.f32 %v7168_v41, %v887_v26  ;;  %1010 = vrot.lane.b32.xlu1 %v896_v16, %s8838_s20  ;;  %7584 = vmatprep.subr.bf16.mxu1 %v9569_v4  ;;  %v2238_v4 = vpack.c.bf16 %v6253_v40, %v6250_v63  ;;  %v7186_v22 = vadd.f32 %v9715_v61, %v9704_v1  ;;  %v6239_v41 = vld [vmem:[%s8869_s16 + $0x9f0] sm:$0xff] }
 0x15c   : > { %v8397_v19 = vpop.f32.mrf.mxu0  ;;  %8540 = vmatprep.subr.bf16.mxu0 %v9412_v43  ;;  %v9801_v59 = vpop.f32.mrf.mxu1  ;;  %v7189_v26 = vadd.f32 %v9726_v32, %v9723_v31  ;;  %v7180_v29 = vadd.f32 %v9676_v13, %v9665_v62  ;;  %v2234_v40 = vpack.c.bf16 %v6246_v6, %v6243_v46  ;;  %v7198_v62 = vadd.f32 %v9760_v7, %v9754_v20  ;;  %v6248_v46 = vld [vmem:[%s8869_s16 + $0xa80] sm:$0xff]  ;;  %v6439_v6 = vld [vmem:[%s8874_s19 + $0x5f8] sm:$0xff] }
 0x15d   : > { %v899_v38 = vadd.f32 %v8397_v19, %v7177_v52  ;;  %1006 = vrot.lane.b32.xlu0 %v888_v24, %s8838_s20  ;;  %8541 = vmatpush3.bf16.msra.mxu0 %v9412_v43  ;;  %v2230_v24 = vpack.c.bf16 %v6239_v41, %v6236_v9  ;;  %v7183_v19 = vadd.f32 %v9694_v10, %v9689_v37  ;;  %v6242_v37 = vld [vmem:[%s8869_s16 + $0xa20] sm:$0xff]  ;;  %v6245_v10 = vld [vmem:[%s8869_s16 + $0xa50] sm:$0xff] }
 0x15e   : > { %v890_v39 = vpop.f32.mrf.mxu0  ;;  %7585 = vmatpush3.bf16.msra.mxu1 %v9584_v50  ;;  %8542 = vmatprep.subr.bf16.mxu0 %v9426_v5  ;;  %v9807_v0 = vpop.f32.mrf.mxu1  ;;  %v7201_v20 = vadd.f32 %v9773_v2, %v9769_v14  ;;  %v2233_v9 = vpack.c.bf16 %v6245_v10, %v6242_v37  ;;  %v7192_v41 = vadd.f32 %v9740_v47, %v9732_v25 }
 0x15f   : > { %v891_v56 = vadd.f32 %v7171_v60, %v890_v39  ;;  %1012 = vrot.lane.b32.xlu1 %v899_v38, %s8838_s20  ;;  %7586 = vmatprep.subr.bf16.mxu1 %v9590_v58  ;;  %v6259_v58 = vld [vmem:[%s8869_s16 + $0xb20] sm:$0xff] }
 0x160   : > { %v8400_v43 = vpop.f32.mrf.mxu0  ;;  %2301 = vmatmul.mubr.bf16.gmra.mxu0 %v2227_v55  ;;  %v9813_v50 = vpop.f32.mrf.mxu1  ;;  %8519 = vmatmul.mubr.bf16.gmra.mxu1 %v2235_v57  ;;  %v6268_v57 = vld [vmem:[%s8869_s16 + $0xbb0] sm:$0xff]  ;;  %v6271_v39 = vld [vmem:[%s8869_s16 + $0xbe0] sm:$0xff] }
 0x161   : > { %1008 = vrot.lane.b32.xlu0 %v891_v56, %s8838_s20  ;;  %2308 = vmatprep.mubr.bf16.mxu0 %v2231_v30  ;;  %v912_v1 = vadd.f32 %v8400_v43, %v7186_v22  ;;  %v6274_v56 = vld [vmem:[%s8869_s16 + $0xc10] sm:$0xff]  ;;  %v6277_v43 = vld [vmem:[%s8869_s16 + $0xc40] sm:$0xff] }
 0x162   : > { %v903_v16 = vpop.f32.mrf.mxu0  ;;  %8522 = vmatprep.mubr.bf16.mxu1 %v2238_v4  ;;  %v9823_v61 = vpop.f32.mrf.mxu1  ;;  %7587 = vmatpush3.bf16.msra.mxu1 %v9608_v17  ;;  %v2241_v17 = vpack.c.bf16 %v6259_v58, %v6256_v45  ;;  %v6252_v4 = vld [vmem:[%s8869_s16 + $0xab8] sm:$0xff]  ;;  %v2250_v58 = vpack.c.bf16 %v6277_v43, %v6274_v56  ;;  %v6297_v56 = vld [vmem:[%s8869_s16 + $0x920] sm:$0xff]  ;;  %v6300_v43 = vld [vmem:[%s8869_s16 + $0x950] sm:$0xff] }
 0x163   : > { %8543 = vmatpush3.bf16.msra.mxu0 %v9426_v5  ;;  %7588 = vmatprep.subr.bf16.mxu1 %v9615_v44  ;;  %v2244_v5 = vpack.c.bf16 %v6265_v53, %v6262_v12  ;;  %v904_v44 = vadd.f32 %v7180_v29, %v903_v16  ;;  %v2247_v16 = vpack.c.bf16 %v6271_v39, %v6268_v57  ;;  %v6280_v53 = vld [vmem:[%s8869_s16 + $0xc70] sm:$0xff]  ;;  %v6258_v29 = vld [vmem:[%s8869_s16 + $0xb18] sm:$0xff]  ;;  %v6295_v57 = vld [vmem:[%s8869_s16 + $0xd60] sm:$0xff] }
 0x164   : > { %v8401_v52 = vpop.f32.mrf.mxu0  ;;  %8544 = vmatprep.subr.bf16.mxu0 %v9434_v27  ;;  %v9834_v32 = vpop.f32.mrf.mxu1  ;;  %v6261_v39 = vld [vmem:[%s8869_s16 + $0xb48] sm:$0xff] }
 0x165   : > { %v915_v31 = vadd.f32 %v8401_v52, %v7189_v26  ;;  %1018 = vrot.lane.b32.xlu0 %v912_v1, %s8838_s20  ;;  %v7210_v26 = vadd.f32 %v9823_v61, %v9813_v50  ;;  %v6438_v1 = vld [vmem:[%s8874_s19 + $0x5f0] sm:$0xff]  ;;  %v6283_v52 = vld [vmem:[%s8869_s16 + $0xca0] sm:$0xff] }
 0x166   : > { %v906_v63 = vpop.f32.mrf.mxu0  ;;  %v9839_v55 = vpop.f32.mrf.mxu1  ;;  %7589 = vmatpush3.bf16.msra.mxu1 %v9629_v21 }
 0x167   : > { %1020 = vrot.lane.b32.xlu1 %v915_v31, %s8838_s20  ;;  %7590 = vmatprep.subr.bf16.mxu1 %v9634_v42  ;;  %v907_v60 = vadd.f32 %v7183_v19, %v906_v63  ;;  %v6249_v42 = vld [vmem:[%s8869_s16 + $0xa88] sm:$0xff]  ;;  %v7213_v50 = vadd.f32 %v9839_v55, %v9834_v32  ;;  %v6286_v31 = vld [vmem:[%s8869_s16 + $0xcd0] sm:$0xff]  ;;  %v7204_v32 = vadd.f32 %v9791_v48, %v9780_v8 }
 0x168   : > { %v8404_v13 = vpop.f32.mrf.mxu0  ;;  %2309 = vmatmul.mubr.bf16.gmra.mxu0 %v2230_v24  ;;  %v9846_v38 = vpop.f32.mrf.mxu1  ;;  %8523 = vmatmul.mubr.bf16.gmra.mxu1 %v2241_v17  ;;  %v2237_v45 = vpack.c.bf16 %v6252_v4, %v6249_v42  ;;  %v6289_v17 = vld [vmem:[%s8869_s16 + $0xd00] sm:$0xff]  ;;  %v2253_v55 = vpack.c.bf16 %v6283_v52, %v6280_v53  ;;  %v6264_v4 = vld [vmem:[%s8869_s16 + $0xb78] sm:$0xff]  ;;  %v6299_v52 = vld [vmem:[%s8869_s16 + $0x948] sm:$0xff] }
 0x169   : > { %1014 = vrot.lane.b32.xlu0 %v904_v44, %s8838_s20  ;;  %2316 = vmatprep.mubr.bf16.mxu0 %v2234_v40  ;;  %v928_v7 = vadd.f32 %v8404_v13, %v7198_v62  ;;  %v2256_v62 = vpack.c.bf16 %v6289_v17, %v6286_v31  ;;  %v6296_v53 = vld [vmem:[%s8869_s16 + $0x918] sm:$0xff] }
 0x16a   : > { %v919_v21 = vpop.f32.mrf.mxu0  ;;  %8526 = vmatprep.mubr.bf16.mxu1 %v2244_v5  ;;  %v9856_v30 = vpop.f32.mrf.mxu1  ;;  %7591 = vmatpush3.bf16.msra.mxu1 %v9651_v15  ;;  %v9897_v5 = vpack.c.bf16 %v6439_v6, %v6438_v1  ;;  %v6270_v17 = vld [vmem:[%s8869_s16 + $0xbd8] sm:$0xff] }
 0x16b   : > { %1016 = vrot.lane.b32.xlu1 %v907_v60, %s8838_s20  ;;  %7592 = vmatprep.subr.bf16.mxu1 %v9655_v49  ;;  %v920_v49 = vadd.f32 %v7192_v41, %v919_v21  ;;  %v12523_v41 = vld [vmem:[#allocation6_spill] sm:$0xff] }
 0x16c   : > { %v8405_v22 = vpop.f32.mrf.mxu0  ;;  %8545 = vmatpush3.bf16.msra.mxu0 %v9434_v27  ;;  %v9867_v2 = vpop.f32.mrf.mxu1  ;;  %v7195_v27 = vadd.f32 %v9749_v33, %v9747_v51 }
 0x16d   : > { %v931_v14 = vadd.f32 %v8405_v22, %v7201_v20  ;;  %1026 = vrot.lane.b32.xlu0 %v928_v7, %s8838_s20  ;;  %8546 = vmatprep.subr.bf16.mxu0 %v9452_v11 }
 0x16e   : > { %v922_v15 = vpop.f32.mrf.mxu0  ;;  %v9873_v25 = vpop.f32.mrf.mxu1  ;;  %7593 = vmatpush3.bf16.msra.mxu1 %v9674_v3  ;;  %v6251_v3 = vld [vmem:[%s8869_s16 + $0xab0] sm:$0xff] }
 0x16f   : > { %1028 = vrot.lane.b32.xlu1 %v931_v14, %s8838_s20  ;;  %7594 = vmatprep.subr.bf16.mxu1 %v9680_v36  ;;  %v923_v51 = vadd.f32 %v7195_v27, %v922_v15  ;;  %v6255_v36 = vld [vmem:[%s8869_s16 + $0xae8] sm:$0xff]  ;;  %v2236_v40 = vpack.c.bf16 %v6251_v3, %v6248_v46  ;;  %v7216_v14 = vadd.f32 %v9856_v30, %v9846_v38  ;;  %v6423_v27 = vld [vmem:[%s8874_s19 + $0x578] sm:$0xff]  ;;  %v12524_v30 = vld [vmem:[#allocation8_spill] sm:$0xff] }
 0x170   : > { %v8408_v47 = vpop.f32.mrf.mxu0  ;;  %2317 = vmatmul.mubr.bf16.gmra.mxu0 %v2233_v9  ;;  %v7220_v33 = vpop.f32.mrf.mxu1  ;;  %8527 = vmatmul.mubr.bf16.gmra.mxu1 %v2247_v16  ;;  %v2591_v46 = vpack.c.bf16 %v6300_v43, %v6297_v56 }
 0x171   : > { %1022 = vrot.lane.b32.xlu0 %v920_v49, %s8838_s20  ;;  %2324 = vmatprep.mubr.bf16.mxu0 %v2237_v45  ;;  %v944_v61 = vadd.f32 %v8408_v47, %v7210_v26  ;;  %v2243_v47 = vpack.c.bf16 %v6264_v4, %v6261_v39  ;;  %v6302_v39 = vld [vmem:[%s8869_s16 + $0x978] sm:$0xff] }
 0x172   : > { %v935_v12 = vpop.f32.mrf.mxu0  ;;  %8530 = vmatprep.mubr.bf16.mxu1 %v2250_v58  ;;  %v7221_v24 = vpop.f32.mrf.mxu1  ;;  %7595 = vmatpush3.bf16.msra.mxu1 %v9692_v28  ;;  %v2240_v28 = vpack.c.bf16 %v6258_v29, %v6255_v36  ;;  %v6422_v58 = vld [vmem:[%s8874_s19 + $0x570] sm:$0xff]  ;;  %v6276_v4 = vld [vmem:[%s8869_s16 + $0xc38] sm:$0xff] }
 0x173   : > { %1024 = vrot.lane.b32.xlu1 %v923_v51, %s8838_s20  ;;  %7596 = vmatprep.subr.bf16.mxu1 %v9697_v54  ;;  %v936_v54 = vadd.f32 %v7204_v32, %v935_v12  ;;  %v7222_v48 = vadd.f32 %v7221_v24, %v7220_v33  ;;  %v9930_v33 = vpack.c.bf16 %v6423_v27, %v6422_v58  ;;  %v6433_v58 = vld [vmem:[%s8874_s19 + $0x5c8] sm:$0xff] }
 0x174   : > { %v8409_v63 = vpop.f32.mrf.mxu0  ;;  %8547 = vmatpush3.bf16.msra.mxu0 %v9452_v11  ;;  %v7223_v19 = vpop.f32.mrf.mxu1  ;;  %v7207_v11 = vadd.f32 %v9807_v0, %v9801_v59  ;;  %v6254_v59 = vld [vmem:[%s8869_s16 + $0xae0] sm:$0xff]  ;;  %v6257_v0 = vld [vmem:[%s8869_s16 + $0xb10] sm:$0xff] }
 0x175   : > { %v947_v44 = vadd.f32 %v8409_v63, %v7213_v50  ;;  %1034 = vrot.lane.b32.xlu0 %v944_v61, %s8838_s20  ;;  %8548 = vmatprep.subr.bf16.mxu0 %v9462_v34  ;;  %v2239_v9 = vpack.c.bf16 %v6257_v0, %v6254_v59  ;;  %v6267_v61 = vld [vmem:[%s8869_s16 + $0xba8] sm:$0xff]  ;;  %v6303_v63 = vld [vmem:[%s8869_s16 + $0x980] sm:$0xff]  ;;  %v6434_v59 = vld [vmem:[%s8874_s19 + $0x5d0] sm:$0xff] }
 0x176   : > { %v938_v13 = vpop.f32.mrf.mxu0  ;;  %v7224_v60 = vpop.f32.mrf.mxu1  ;;  %7597 = vmatpush3.bf16.msra.mxu1 %v9713_v35  ;;  %v6292_v35 = vld [vmem:[%s8869_s16 + $0xd30] sm:$0xff]  ;;  %v6435_v0 = vld [vmem:[%s8874_s19 + $0x5d8] sm:$0xff] }
 0x177   : > { %1036 = vrot.lane.b32.xlu1 %v947_v44, %s8838_s20  ;;  %8578 = vmatprep.subr.bf16.mxu1 %v9897_v5  ;;  %v939_v37 = vadd.f32 %v7207_v11, %v938_v13  ;;  %v7225_v42 = vadd.f32 %v7224_v60, %v7223_v19  ;;  %v2259_v45 = vpack.c.bf16 %v6295_v57, %v6292_v35  ;;  %v6437_v13 = vld [vmem:[%s8874_s19 + $0x5e8] sm:$0xff]  ;;  %v6266_v35 = vld [vmem:[%s8869_s16 + $0xba0] sm:$0xff]  ;;  %v6269_v57 = vld [vmem:[%s8869_s16 + $0xbd0] sm:$0xff] }
 0x178   : > { %v8412_v8 = vpop.f32.mrf.mxu0  ;;  %2325 = vmatmul.mubr.bf16.gmra.mxu0 %v2236_v40  ;;  %v7226_v10 = vpop.f32.mrf.mxu1  ;;  %8531 = vmatmul.mubr.bf16.gmra.mxu1 %v2253_v55  ;;  %v6306_v40 = vld [vmem:[%s8869_s16 + $0x9b0] sm:$0xff]  ;;  %v2590_v44 = vpack.c.bf16 %v6299_v52, %v6296_v53  ;;  %v6436_v55 = vld [vmem:[%s8874_s19 + $0x5e0] sm:$0xff]  ;;  %v6308_v52 = vld [vmem:[%s8869_s16 + $0x9d8] sm:$0xff] }
 0x179   : > { %1030 = vrot.lane.b32.xlu0 %v936_v54, %s8838_s20  ;;  %2332 = vmatprep.mubr.bf16.mxu0 %v2240_v28  ;;  %v960_v20 = vadd.f32 %v8412_v8, %v7222_v48  ;;  %v2246_v54 = vpack.c.bf16 %v6270_v17, %v6267_v61  ;;  %v2594_v60 = vpack.c.bf16 %v6306_v40, %v6303_v63  ;;  %v6275_v53 = vld [vmem:[%s8869_s16 + $0xc30] sm:$0xff]  ;;  %v6279_v61 = vld [vmem:[%s8869_s16 + $0xc68] sm:$0xff]  ;;  %v6315_v17 = vld [vmem:[%s8869_s16 + $0xa40] sm:$0xff] }
 0x17a   : > { %v951_v21 = vpop.f32.mrf.mxu0  ;;  %8534 = vmatprep.mubr.bf16.mxu1 %v2256_v62  ;;  %v7227_v7 = vpop.f32.mrf.mxu1  ;;  %8549 = vmatpush3.bf16.msra.mxu0 %v9462_v34  ;;  %v7219_v34 = vadd.f32 %v9873_v25, %v9867_v2  ;;  %v6260_v2 = vld [vmem:[%s8869_s16 + $0xb40] sm:$0xff]  ;;  %v6263_v25 = vld [vmem:[%s8869_s16 + $0xb70] sm:$0xff] }
 0x17b   : > { %1032 = vrot.lane.b32.xlu1 %v939_v37, %s8838_s20  ;;  %8550 = vmatprep.subr.bf16.mxu0 %v12523_v41  ;;  %v952_v26 = vadd.f32 %v7216_v14, %v951_v21  ;;  %v7228_v3 = vadd.f32 %v7227_v7, %v7226_v10  ;;  %v2242_v31 = vpack.c.bf16 %v6263_v25, %v6260_v2  ;;  %v6273_v7 = vld [vmem:[%s8869_s16 + $0xc08] sm:$0xff]  ;;  %v6318_v63 = vld [vmem:[%s8869_s16 + $0xa70] sm:$0xff] }
 0x17c   : > { %v8413_v22 = vpop.f32.mrf.mxu0  ;;  %v7229_v16 = vpop.f32.mrf.mxu1  ;;  %v9947_v10 = vpack.c.bf16 %v6437_v13, %v6436_v55  ;;  %v9964_v14 = vpack.c.bf16 %v6435_v0, %v6434_v59  ;;  %v6429_v55 = vld [vmem:[%s8874_s19 + $0x5a8] sm:$0xff]  ;;  %v6426_v0 = vld [vmem:[%s8874_s19 + $0x590] sm:$0xff] }
 0x17d   : > { %v963_v15 = vadd.f32 %v8413_v22, %v7225_v42  ;;  %1042 = vrot.lane.b32.xlu0 %v960_v20, %s8838_s20  ;;  %v6305_v20 = vld [vmem:[%s8869_s16 + $0x9a8] sm:$0xff] }
 0x17e   : > { %v954_v49 = vpop.f32.mrf.mxu0  ;;  %v7230_v51 = vpop.f32.mrf.mxu1  ;;  %8551 = vmatpush3.bf16.msra.mxu0 %v12523_v41  ;;  %v6312_v41 = vld [vmem:[%s8869_s16 + $0xa10] sm:$0xff] }
 0x17f   : > { %1044 = vrot.lane.b32.xlu1 %v963_v15, %s8838_s20  ;;  %8552 = vmatprep.subr.bf16.mxu0 %v12524_v30  ;;  %v955_v1 = vadd.f32 %v7219_v34, %v954_v49  ;;  %v7231_v32 = vadd.f32 %v7230_v51, %v7229_v16  ;;  %v2245_v15 = vpack.c.bf16 %v6269_v57, %v6266_v35 }
 0x180   : > { %v8416_v38 = vpop.f32.mrf.mxu0  ;;  %2333 = vmatmul.mubr.bf16.gmra.mxu0 %v2239_v9  ;;  %v7232_v6 = vpop.f32.mrf.mxu1  ;;  %8535 = vmatmul.mubr.bf16.gmra.mxu1 %v2259_v45  ;;  %v6309_v9 = vld [vmem:[%s8869_s16 + $0x9e0] sm:$0xff] }
 0x181   : > { %1038 = vrot.lane.b32.xlu0 %v952_v26, %s8838_s20  ;;  %2340 = vmatprep.mubr.bf16.mxu0 %v2243_v47  ;;  %v6432_v45 = vld [vmem:[%s8874_s19 + $0x5c0] sm:$0xff]  ;;  %v2593_v47 = vpack.c.bf16 %v6305_v20, %v6302_v39  ;;  %v2597_v26 = vpack.c.bf16 %v6312_v41, %v6309_v9  ;;  %v6314_v20 = vld [vmem:[%s8869_s16 + $0xa38] sm:$0xff] }
 0x182   : > { %v967_v12 = vpop.f32.mrf.mxu0  ;;  %2658 = vmatprep.mubr.bf16.mxu1 %v2591_v46  ;;  %v7233_v36 = vpop.f32.mrf.mxu1  ;;  %8553 = vmatpush3.bf16.msra.mxu0 %v12524_v30  ;;  %v2249_v46 = vpack.c.bf16 %v6276_v4, %v6273_v7  ;;  %v9974_v30 = vpack.c.bf16 %v6433_v58, %v6432_v45  ;;  %v6278_v39 = vld [vmem:[%s8869_s16 + $0xc60] sm:$0xff]  ;;  %v6317_v4 = vld [vmem:[%s8869_s16 + $0xa68] sm:$0xff] }
 0x183   : > { %v968_v50 = vadd.f32 %v7228_v3, %v967_v12  ;;  %1040 = vrot.lane.b32.xlu1 %v955_v1, %s8838_s20  ;;  %v7234_v24 = vadd.f32 %v7233_v36, %v7232_v6  ;;  %7690 = vmatprep.subr.bf16.mxu0 %v9930_v33  ;;  %v6430_v1 = vld [vmem:[%s8874_s19 + $0x5b0] sm:$0xff]  ;;  %v6431_v6 = vld [vmem:[%s8874_s19 + $0x5b8] sm:$0xff]  ;;  %v6272_v12 = vld [vmem:[%s8869_s16 + $0xc00] sm:$0xff] }
 0x184   : > { %v8417_v29 = vpop.f32.mrf.mxu0  ;;  %v7235_v19 = vpop.f32.mrf.mxu1  ;;  %v9992_v40 = vpack.c.bf16 %v6431_v6, %v6430_v1  ;;  %v6321_v41 = vld [vmem:[%s8869_s16 + $0xaa0] sm:$0xff] }
 0x185   : > { %1046 = vrot.lane.b32.xlu0 %v968_v50, %s8838_s20  ;;  %v976_v8 = vadd.f32 %v8416_v38, %v7234_v24  ;;  %v6311_v50 = vld [vmem:[%s8869_s16 + $0xa08] sm:$0xff]  ;;  %v6282_v24 = vld [vmem:[%s8869_s16 + $0xc98] sm:$0xff] }
 0x186   : > { %v970_v28 = vpop.f32.mrf.mxu0  ;;  %v7236_v62 = vpop.f32.mrf.mxu1 }
 0x187   : > { %v971_v11 = vadd.f32 %v7231_v32, %v970_v28  ;;  %v7237_v48 = vadd.f32 %v7236_v62, %v7235_v19  ;;  %v2248_v19 = vpack.c.bf16 %v6275_v53, %v6272_v12  ;;  %v2596_v62 = vpack.c.bf16 %v6311_v50, %v6308_v52  ;;  %v6284_v50 = vld [vmem:[%s8869_s16 + $0xcc0] sm:$0xff] }
 0x188   : > { %v7274_v37 = vpop.f32.mrf.mxu0  ;;  %2341 = vmatmul.mubr.bf16.gmra.mxu0 %v2242_v31  ;;  %v9951_v21 = vpop.f32.mrf.mxu1  ;;  %2659 = vmatmul.mubr.bf16.vlgmr.msra.gmra.mxu1 %v2590_v44  ;;  %v6428_v44 = vld [vmem:[%s8874_s19 + $0x5a0] sm:$0xff] }
 0x189   : > { %1048 = vrot.lane.b32.xlu1 %v971_v11, %s8838_s20  ;;  %1050 = vrot.lane.b32.xlu0 %v976_v8, %s8838_s20  ;;  %v979_v56 = vadd.f32 %v8417_v29, %v7237_v48  ;;  %v2252_v11 = vpack.c.bf16 %v6282_v24, %v6279_v61  ;;  %v6287_v61 = vld [vmem:[%s8869_s16 + $0xcf0] sm:$0xff]  ;;  %v6320_v24 = vld [vmem:[%s8869_s16 + $0xa98] sm:$0xff] }
 0x18a   : > { %v7275_v42 = vpop.f32.mrf.mxu0  ;;  %8579 = vmatpush3.bf16.msra.mxu1 %v9897_v5  ;;  %v1472_v22 = vpop.f32.mrf.mxu1  ;;  %2348 = vmatprep.mubr.bf16.mxu0 %v2246_v54 }
 0x18b   : > { %v7276_v43 = vadd.f32 %v7275_v42, %v7274_v37  ;;  %2666 = vmatprep.mubr.bf16.mxu1 %v2594_v60  ;;  %8580 = vmatprep.subr.bf16.mxu1 %v9947_v10  ;;  %v2600_v60 = vpack.c.bf16 %v6318_v63, %v6315_v17  ;;  %v10003_v37 = vpack.c.bf16 %v6429_v55, %v6428_v44  ;;  %v6281_v42 = vld [vmem:[%s8869_s16 + $0xc90] sm:$0xff]  ;;  %v6291_v17 = vld [vmem:[%s8869_s16 + $0xd28] sm:$0xff]  ;;  %v6294_v63 = vld [vmem:[%s8869_s16 + $0xd58] sm:$0xff] }
 0x18c   : > { %v7277_v16 = vpop.f32.mrf.mxu0  ;;  %v8437_v49 = vpop.f32.mrf.mxu1  ;;  %v2251_v58 = vpack.c.bf16 %v6281_v42, %v6278_v39  ;;  %v6327_v44 = vld [vmem:[%s8869_s16 + $0xb00] sm:$0xff]  ;;  %v6330_v55 = vld [vmem:[%s8869_s16 + $0xb30] sm:$0xff] }
 0x18d   : > { %v9969_v27 = vadd.f32 %v7276_v43, %v1472_v22  ;;  %1052 = vrot.lane.b32.xlu1 %v979_v56, %s8838_s20  ;;  %12528 = vst [vmem:[#allocation27_spill] sm:$0xff] %v10003_v37  ;;  %v6285_v56 = vld [vmem:[%s8869_s16 + $0xcc8] sm:$0xff]  ;;  %v6288_v43 = vld [vmem:[%s8869_s16 + $0xcf8] sm:$0xff] }
 0x18e   : > { %v7278_v34 = vpop.f32.mrf.mxu0  ;;  %8581 = vmatpush3.bf16.msra.mxu1 %v9947_v10  ;;  %v1475_v38 = vpop.f32.mrf.mxu1 }
 0x18f   : > { %12525 = vst [vmem:[#allocation6_spill] sm:$0xff] %v9969_v27  ;;  %v7279_v51 = vadd.f32 %v7278_v34, %v7277_v16  ;;  %8582 = vmatprep.subr.bf16.mxu1 %v9964_v14  ;;  %v6324_v16 = vld [vmem:[%s8869_s16 + $0xad0] sm:$0xff] }
 0x190   : > { %v7280_v3 = vpop.f32.mrf.mxu0  ;;  %2349 = vmatmul.mubr.bf16.gmra.mxu0 %v2245_v15  ;;  %v9980_v25 = vpop.f32.mrf.mxu1  ;;  %2667 = vmatmul.mubr.bf16.gmra.mxu1 %v2593_v47  ;;  %v6425_v47 = vld [vmem:[%s8874_s19 + $0x588] sm:$0xff] }
 0x191   : > { %v9978_v2 = vadd.f32 %v7279_v51, %v1475_v38  ;;  %2356 = vmatprep.mubr.bf16.mxu0 %v2249_v46  ;;  %2674 = vmatprep.mubr.bf16.mxu1 %v2597_v26  ;;  %v2599_v26 = vpack.c.bf16 %v6317_v4, %v6314_v20  ;;  %v2255_v51 = vpack.c.bf16 %v6288_v43, %v6285_v56  ;;  %v6293_v4 = vld [vmem:[%s8869_s16 + $0xd50] sm:$0xff]  ;;  %v6326_v56 = vld [vmem:[%s8869_s16 + $0xaf8] sm:$0xff] }
 0x192   : > { %v7281_v36 = vpop.f32.mrf.mxu0  ;;  %8583 = vmatpush3.bf16.msra.mxu1 %v9964_v14  ;;  %v1488_v31 = vpop.f32.mrf.mxu1 }
 0x193   : > { %12526 = vst [vmem:[#allocation8_spill] sm:$0xff] %v9978_v2  ;;  %v7282_v29 = vadd.f32 %v7281_v36, %v7280_v3  ;;  %8584 = vmatprep.subr.bf16.mxu1 %v9974_v30  ;;  %v2603_v3 = vpack.c.bf16 %v6324_v16, %v6321_v41  ;;  %v6298_v41 = vld [vmem:[%s8869_s16 + $0x928] sm:$0xff]  ;;  %v6301_v16 = vld [vmem:[%s8869_s16 + $0x958] sm:$0xff]  ;;  %v12546_v2 = vld [vmem:[#allocation4_spill] sm:$0xff] }
 0x194   : > { %v7283_v32 = vpop.f32.mrf.mxu0  ;;  %v9999_v28 = vpop.f32.mrf.mxu1 }
 0x195   : > { %v9997_v13 = vadd.f32 %v9951_v21, %v7282_v29  ;;  %v6427_v21 = vld [vmem:[%s8874_s19 + $0x598] sm:$0xff] }
 0x196   : > { %v7284_v54 = vpop.f32.mrf.mxu0  ;;  %8585 = vmatpush3.bf16.msra.mxu1 %v9974_v30  ;;  %v1491_v48 = vpop.f32.mrf.mxu1  ;;  %v10023_v15 = vpack.c.bf16 %v6427_v21, %v6426_v0  ;;  %v2606_v0 = vpack.c.bf16 %v6330_v55, %v6327_v44  ;;  %v6406_v55 = vld [vmem:[%s8874_s19 + $0x4f0] sm:$0xff] }
 0x197   : > { %12527 = vst [vmem:[#allocation26_spill] sm:$0xff] %v9997_v13  ;;  %v7285_v8 = vadd.f32 %v7284_v54, %v7283_v32  ;;  %8586 = vmatprep.subr.bf16.mxu1 %v9992_v40 }
 0x198   : > { %v7286_v59 = vpop.f32.mrf.mxu0  ;;  %2357 = vmatmul.mubr.bf16.gmra.mxu0 %v2248_v19  ;;  %v10009_v57 = vpop.f32.mrf.mxu1  ;;  %2675 = vmatmul.mubr.bf16.gmra.mxu1 %v2596_v62  ;;  %12530 = vst [vmem:[#allocation29_spill] sm:$0xff] %v10023_v15 }
 0x199   : > { %v10007_v35 = vadd.f32 %v8437_v49, %v7285_v8  ;;  %2364 = vmatprep.mubr.bf16.mxu0 %v2252_v11  ;;  %2682 = vmatprep.mubr.bf16.mxu1 %v2600_v60  ;;  %v6424_v49 = vld [vmem:[%s8874_s19 + $0x580] sm:$0xff]  ;;  %v2254_v11 = vpack.c.bf16 %v6287_v61, %v6284_v50 }
 0x19a   : > { %v7287_v7 = vpop.f32.mrf.mxu0  ;;  %8587 = vmatpush3.bf16.msra.mxu1 %v9992_v40  ;;  %v10018_v9 = vpop.f32.mrf.mxu1  ;;  %v10035_v12 = vpack.c.bf16 %v6425_v47, %v6424_v49  ;;  %v6336_v49 = vld [vmem:[%s8869_s16 + $0xb90] sm:$0xff] }
 0x19b   : > { %12529 = vst [vmem:[#allocation28_spill] sm:$0xff] %v10007_v35  ;;  %v7288_v22 = vadd.f32 %v7287_v7, %v7286_v59  ;;  %8588 = vmatprep.subr.bf16.mxu1 %v10003_v37  ;;  %v6290_v7 = vld [vmem:[%s8869_s16 + $0xd20] sm:$0xff] }
 0x19c   : > { %v7289_v45 = vpop.f32.mrf.mxu0  ;;  %v10029_v34 = vpop.f32.mrf.mxu1  ;;  %12532 = vst [vmem:[#allocation31_spill] sm:$0xff] %v10035_v12  ;;  %v2257_v47 = vpack.c.bf16 %v6293_v4, %v6290_v7  ;;  %v6310_v7 = vld [vmem:[%s8869_s16 + $0x9e8] sm:$0xff]  ;;  %v6313_v4 = vld [vmem:[%s8869_s16 + $0xa18] sm:$0xff] }
 0x19d   : > { %v10027_v46 = vadd.f32 %v7288_v22, %v1488_v31  ;;  %v6323_v31 = vld [vmem:[%s8869_s16 + $0xac8] sm:$0xff] }
 0x19e   : > { %v7290_v38 = vpop.f32.mrf.mxu0  ;;  %8589 = vmatpush3.bf16.msra.mxu1 %v10003_v37  ;;  %v10032_v6 = vpop.f32.mrf.mxu1  ;;  %v2602_v8 = vpack.c.bf16 %v6323_v31, %v6320_v24  ;;  %v6329_v22 = vld [vmem:[%s8869_s16 + $0xb28] sm:$0xff] }
 0x19f   : > { %12531 = vst [vmem:[#allocation30_spill] sm:$0xff] %v10027_v46  ;;  %v7291_v1 = vadd.f32 %v7290_v38, %v7289_v45  ;;  %8590 = vmatprep.subr.bf16.mxu1 %v10023_v15  ;;  %v2605_v38 = vpack.c.bf16 %v6329_v22, %v6326_v56 }
 0x1a0   : > { %v7292_v53 = vpop.f32.mrf.mxu0  ;;  %2365 = vmatmul.mubr.bf16.gmra.mxu0 %v2251_v58  ;;  %v10039_v36 = vpop.f32.mrf.mxu1  ;;  %2683 = vmatmul.mubr.bf16.gmra.mxu1 %v2599_v26  ;;  %v6333_v58 = vld [vmem:[%s8869_s16 + $0xb60] sm:$0xff] }
 0x1a1   : > { %v10037_v52 = vadd.f32 %v7291_v1, %v1491_v48  ;;  %2372 = vmatprep.mubr.bf16.mxu0 %v2255_v51  ;;  %2690 = vmatprep.mubr.bf16.mxu1 %v2603_v3  ;;  %v2258_v48 = vpack.c.bf16 %v6294_v63, %v6291_v17  ;;  %v2592_v3 = vpack.c.bf16 %v6301_v16, %v6298_v41  ;;  %v6335_v17 = vld [vmem:[%s8869_s16 + $0xb88] sm:$0xff] }
 0x1a2   : > { %v7293_v29 = vpop.f32.mrf.mxu0  ;;  %8591 = vmatpush3.bf16.msra.mxu1 %v10023_v15  ;;  %v10048_v19 = vpop.f32.mrf.mxu1  ;;  %v6304_v63 = vld [vmem:[%s8869_s16 + $0x988] sm:$0xff] }
 0x1a3   : > { %12533 = vst [vmem:[#allocation32_spill] sm:$0xff] %v10037_v52  ;;  %v7294_v32 = vadd.f32 %v7293_v29, %v7292_v53  ;;  %8592 = vmatprep.subr.bf16.mxu1 %v10035_v12  ;;  %v2609_v53 = vpack.c.bf16 %v6336_v49, %v6333_v58  ;;  %v6332_v29 = vld [vmem:[%s8869_s16 + $0xb58] sm:$0xff]  ;;  %v6404_v49 = vld [vmem:[%s8874_s19 + $0x4e0] sm:$0xff]  ;;  %v6394_v52 = vld [vmem:[%s8874_s19 + $0x490] sm:$0xff] }
 0x1a4   : > { %v7295_v62 = vpop.f32.mrf.mxu0  ;;  %v10056_v60 = vpop.f32.mrf.mxu1  ;;  %v2608_v22 = vpack.c.bf16 %v6335_v17, %v6332_v29 }
 0x1a5   : > { %v10054_v54 = vadd.f32 %v9980_v25, %v7294_v32  ;;  %v6307_v32 = vld [vmem:[%s8869_s16 + $0x9b8] sm:$0xff] }
 0x1a6   : > { %v7296_v59 = vpop.f32.mrf.mxu0  ;;  %8593 = vmatpush3.bf16.msra.mxu1 %v10035_v12  ;;  %v10059_v39 = vpop.f32.mrf.mxu1 }
 0x1a7   : > { %12534 = vst [vmem:[#allocation33_spill] sm:$0xff] %v10054_v54  ;;  %v7297_v21 = vadd.f32 %v7296_v59, %v7295_v62  ;;  %7798 = vmatprep.subr.bf16.mxu1 %v9930_v33  ;;  %v6407_v62 = vld [vmem:[%s8874_s19 + $0x4f8] sm:$0xff]  ;;  %v6421_v59 = vld [vmem:[%s8874_s19 + $0x568] sm:$0xff] }
 0x1a8   : > { %v7298_v25 = vpop.f32.mrf.mxu0  ;;  %2373 = vmatmul.mubr.bf16.gmra.mxu0 %v2254_v11  ;;  %v10065_v20 = vpop.f32.mrf.mxu1  ;;  %2691 = vmatmul.mubr.bf16.gmra.mxu1 %v2602_v8  ;;  %v6339_v11 = vld [vmem:[%s8869_s16 + $0xbc0] sm:$0xff]  ;;  %v10108_v41 = vpack.c.bf16 %v6407_v62, %v6406_v55  ;;  %v6402_v62 = vld [vmem:[%s8874_s19 + $0x4d0] sm:$0xff] }
 0x1a9   : > { %v10063_v42 = vadd.f32 %v9999_v28, %v7297_v21  ;;  %2380 = vmatprep.mubr.bf16.mxu0 %v2258_v48  ;;  %2698 = vmatprep.mubr.bf16.mxu1 %v2606_v0  ;;  %v6342_v0 = vld [vmem:[%s8869_s16 + $0xbf0] sm:$0xff] }
 0x1aa   : > { %v7299_v43 = vpop.f32.mrf.mxu0  ;;  %v10073_v45 = vpop.f32.mrf.mxu1  ;;  %v2612_v58 = vpack.c.bf16 %v6342_v0, %v6339_v11  ;;  %v6403_v11 = vld [vmem:[%s8874_s19 + $0x4d8] sm:$0xff]  ;;  %v6348_v0 = vld [vmem:[%s8869_s16 + $0xc50] sm:$0xff] }
 0x1ab   : > { %12535 = vst [vmem:[#allocation34_spill] sm:$0xff] %v10063_v42  ;;  %v7300_v33 = vadd.f32 %v7299_v43, %v7298_v25  ;;  %v2595_v25 = vpack.c.bf16 %v6307_v32, %v6304_v63  ;;  %v6341_v63 = vld [vmem:[%s8869_s16 + $0xbe8] sm:$0xff] }
 0x1ac   : > { %v7301_v28 = vpop.f32.mrf.mxu0  ;;  %v10080_v51 = vpop.f32.mrf.mxu1  ;;  %v6316_v32 = vld [vmem:[%s8869_s16 + $0xa48] sm:$0xff] }
 0x1ad   : > { %v10078_v26 = vadd.f32 %v7300_v33, %v10018_v9 }
 0x1ae   : > { %v7302_v1 = vpop.f32.mrf.mxu0  ;;  %v10082_v61 = vpop.f32.mrf.mxu1 }
 0x1af   : > { %12536 = vst [vmem:[#allocation35_spill] sm:$0xff] %v10078_v26  ;;  %v7303_v50 = vadd.f32 %v7302_v1, %v7301_v28  ;;  %v6405_v28 = vld [vmem:[%s8874_s19 + $0x4e8] sm:$0xff]  ;;  %v6419_v1 = vld [vmem:[%s8874_s19 + $0x558] sm:$0xff]  ;;  %v6412_v26 = vld [vmem:[%s8874_s19 + $0x520] sm:$0xff] }
 0x1b0   : > { %v7304_v24 = vpop.f32.mrf.mxu0  ;;  %2381 = vmatmul.mubr.bf16.gmra.mxu0 %v2257_v47  ;;  %v10088_v31 = vpop.f32.mrf.mxu1  ;;  %2699 = vmatmul.mubr.bf16.gmra.mxu1 %v2605_v38  ;;  %v10125_v17 = vpack.c.bf16 %v6405_v28, %v6404_v49 }
 0x1b1   : > { %v10086_v9 = vadd.f32 %v7303_v50, %v10032_v6  ;;  %8554 = vmatprep.mubr.bf16.mxu0 %v2592_v3  ;;  %2706 = vmatprep.mubr.bf16.mxu1 %v2609_v53  ;;  %v6420_v6 = vld [vmem:[%s8874_s19 + $0x560] sm:$0xff]  ;;  %v6418_v3 = vld [vmem:[%s8874_s19 + $0x550] sm:$0xff]  ;;  %v6338_v50 = vld [vmem:[%s8869_s16 + $0xbb8] sm:$0xff] }
 0x1b2   : > { %v7305_v44 = vpop.f32.mrf.mxu0  ;;  %v10096_v48 = vpop.f32.mrf.mxu1  ;;  %v10110_v33 = vpack.c.bf16 %v6421_v59, %v6420_v6  ;;  %v2611_v28 = vpack.c.bf16 %v6341_v63, %v6338_v50  ;;  %v6415_v50 = vld [vmem:[%s8874_s19 + $0x538] sm:$0xff] }
 0x1b3   : > { %12537 = vst [vmem:[#allocation36_spill] sm:$0xff] %v10086_v9  ;;  %v7306_v8 = vadd.f32 %v7305_v44, %v7304_v24  ;;  %v6319_v44 = vld [vmem:[%s8869_s16 + $0xa78] sm:$0xff] }
 0x1b4   : > { %v7307_v21 = vpop.f32.mrf.mxu0  ;;  %v10106_v43 = vpop.f32.mrf.mxu1  ;;  %v6399_v9 = vld [vmem:[%s8874_s19 + $0x4b8] sm:$0xff] }
 0x1b5   : > { %v10104_v56 = vadd.f32 %v10009_v57, %v7306_v8  ;;  %v2598_v57 = vpack.c.bf16 %v6313_v4, %v6310_v7  ;;  %v6345_v8 = vld [vmem:[%s8869_s16 + $0xc20] sm:$0xff]  ;;  %v2601_v4 = vpack.c.bf16 %v6319_v44, %v6316_v32  ;;  %v6401_v32 = vld [vmem:[%s8874_s19 + $0x4c8] sm:$0xff] }
 0x1b6   : > { %v7308_v16 = vpop.f32.mrf.mxu0  ;;  %v10114_v38 = vpop.f32.mrf.mxu1 }
 0x1b7   : > { %12538 = vst [vmem:[#allocation37_spill] sm:$0xff] %v10104_v56  ;;  %v7309_v47 = vadd.f32 %v7308_v16, %v7307_v21  ;;  %v6322_v21 = vld [vmem:[%s8869_s16 + $0xaa8] sm:$0xff] }
 0x1b8   : > { %v7310_v53 = vpop.f32.mrf.mxu0  ;;  %8555 = vmatmul.mubr.bf16.vlgmr.msra.gmra.mxu0 %v2595_v25  ;;  %v10122_v29 = vpop.f32.mrf.mxu1  ;;  %2707 = vmatmul.mubr.bf16.gmra.mxu1 %v2608_v22  ;;  %v6325_v25 = vld [vmem:[%s8869_s16 + $0xad8] sm:$0xff]  ;;  %v6416_v22 = vld [vmem:[%s8874_s19 + $0x540] sm:$0xff]  ;;  %v6417_v16 = vld [vmem:[%s8874_s19 + $0x548] sm:$0xff] }
 0x1b9   : > { %v10120_v24 = vadd.f32 %v10029_v34, %v7309_v47  ;;  %7691 = vmatpush3.bf16.msra.mxu0 %v10108_v41  ;;  %2714 = vmatprep.mubr.bf16.mxu1 %v2612_v58  ;;  %v10131_v34 = vpack.c.bf16 %v6419_v1, %v6418_v3  ;;  %v10149_v47 = vpack.c.bf16 %v6403_v11, %v6402_v62  ;;  %v6344_v62 = vld [vmem:[%s8869_s16 + $0xc18] sm:$0xff] }
 0x1ba   : > { %v7311_v55 = vpop.f32.mrf.mxu0  ;;  %7692 = vmatprep.subr.bf16.mxu0 %v10110_v33  ;;  %v10136_v59 = vpop.f32.mrf.mxu1  ;;  %8558 = vmatprep.mubr.bf16.mxu0 %v2598_v57  ;;  %v2615_v3 = vpack.c.bf16 %v6348_v0, %v6345_v8  ;;  %v2604_v1 = vpack.c.bf16 %v6325_v25, %v6322_v21  ;;  %v6347_v0 = vld [vmem:[%s8869_s16 + $0xc48] sm:$0xff]  ;;  %v6331_v25 = vld [vmem:[%s8869_s16 + $0xb38] sm:$0xff] }
 0x1bb   : > { %12539 = vst [vmem:[#allocation38_spill] sm:$0xff] %v10120_v24  ;;  %v7312_v6 = vadd.f32 %v7311_v55, %v7310_v53  ;;  %v6400_v53 = vld [vmem:[%s8874_s19 + $0x4c0] sm:$0xff]  ;;  %v10156_v55 = vpack.c.bf16 %v6417_v16, %v6416_v22  ;;  %v6328_v21 = vld [vmem:[%s8869_s16 + $0xb08] sm:$0xff]  ;;  %v6337_v16 = vld [vmem:[%s8869_s16 + $0xb98] sm:$0xff] }
 0x1bc   : > { %v7313_v7 = vpop.f32.mrf.mxu0  ;;  %v10146_v49 = vpop.f32.mrf.mxu1 }
 0x1bd   : > { %v10144_v58 = vadd.f32 %v7312_v6, %v10048_v19  ;;  %7693 = vmatpush3.bf16.msra.mxu0 %v10125_v17  ;;  %v6414_v6 = vld [vmem:[%s8874_s19 + $0x530] sm:$0xff] }
 0x1be   : > { %v7314_v57 = vpop.f32.mrf.mxu0  ;;  %7694 = vmatprep.subr.bf16.mxu0 %v10131_v34  ;;  %v10154_v44 = vpop.f32.mrf.mxu1 }
 0x1bf   : > { %12540 = vst [vmem:[#allocation39_spill] sm:$0xff] %v10144_v58  ;;  %v7315_v19 = vadd.f32 %v7314_v57, %v7313_v7  ;;  %v10170_v7 = vpack.c.bf16 %v6401_v32, %v6400_v53  ;;  %v10175_v57 = vpack.c.bf16 %v6415_v50, %v6414_v6  ;;  %v6398_v58 = vld [vmem:[%s8874_s19 + $0x4b0] sm:$0xff]  ;;  %v2607_v32 = vpack.c.bf16 %v6331_v25, %v6328_v21 }
 0x1c0   : > { %v7316_v63 = vpop.f32.mrf.mxu0  ;;  %8559 = vmatmul.mubr.bf16.gmra.mxu0 %v2601_v4  ;;  %v10164_v8 = vpop.f32.mrf.mxu1  ;;  %2715 = vmatmul.mubr.bf16.gmra.mxu1 %v2611_v28  ;;  %v6334_v4 = vld [vmem:[%s8869_s16 + $0xb68] sm:$0xff]  ;;  %v2614_v50 = vpack.c.bf16 %v6347_v0, %v6344_v62  ;;  %v10192_v21 = vpack.c.bf16 %v6399_v9, %v6398_v58  ;;  %v6396_v62 = vld [vmem:[%s8874_s19 + $0x4a0] sm:$0xff]  ;;  %v6411_v9 = vld [vmem:[%s8874_s19 + $0x518] sm:$0xff] }
 0x1c1   : > { %v10162_v11 = vadd.f32 %v7315_v19, %v10059_v39  ;;  %7695 = vmatpush3.bf16.msra.mxu0 %v10149_v47  ;;  %2722 = vmatprep.mubr.bf16.mxu1 %v2615_v3  ;;  %v6351_v39 = vld [vmem:[%s8869_s16 + $0xc80] sm:$0xff]  ;;  %v6413_v3 = vld [vmem:[%s8874_s19 + $0x528] sm:$0xff] }
 0x1c2   : > { %v7317_v22 = vpop.f32.mrf.mxu0  ;;  %8562 = vmatprep.mubr.bf16.mxu0 %v2604_v1  ;;  %v10177_v19 = vpop.f32.mrf.mxu1  ;;  %7696 = vmatprep.subr.bf16.mxu0 %v10156_v55  ;;  %v6397_v0 = vld [vmem:[%s8874_s19 + $0x4a8] sm:$0xff] }
 0x1c3   : > { %12541 = vst [vmem:[#allocation40_spill] sm:$0xff] %v10162_v11  ;;  %v7318_v28 = vadd.f32 %v7317_v22, %v7316_v63  ;;  %v6354_v11 = vld [vmem:[%s8869_s16 + $0xcb0] sm:$0xff]  ;;  %v2610_v63 = vpack.c.bf16 %v6337_v16, %v6334_v4  ;;  %v6340_v16 = vld [vmem:[%s8869_s16 + $0xbc8] sm:$0xff] }
 0x1c4   : > { %v7319_v53 = vpop.f32.mrf.mxu0  ;;  %v10188_v6 = vpop.f32.mrf.mxu1  ;;  %v2618_v24 = vpack.c.bf16 %v6354_v11, %v6351_v39  ;;  %v6350_v11 = vld [vmem:[%s8869_s16 + $0xc78] sm:$0xff]  ;;  %v6410_v39 = vld [vmem:[%s8874_s19 + $0x510] sm:$0xff] }
 0x1c5   : > { %v10186_v1 = vadd.f32 %v10039_v36, %v7318_v28  ;;  %7697 = vmatpush3.bf16.msra.mxu0 %v10170_v7  ;;  %v10196_v28 = vpack.c.bf16 %v6413_v3, %v6412_v26  ;;  %v6353_v26 = vld [vmem:[%s8869_s16 + $0xca8] sm:$0xff]  ;;  %v6357_v3 = vld [vmem:[%s8869_s16 + $0xce0] sm:$0xff]  ;;  %v10222_v56 = vpack.c.bf16 %v6411_v9, %v6410_v39 }
 0x1c6   : > { %v7320_v22 = vpop.f32.mrf.mxu0  ;;  %7698 = vmatprep.subr.bf16.mxu0 %v10175_v57  ;;  %v10194_v36 = vpop.f32.mrf.mxu1  ;;  %v2617_v9 = vpack.c.bf16 %v6353_v26, %v6350_v11  ;;  %v6393_v26 = vld [vmem:[%s8874_s19 + $0x488] sm:$0xff] }
 0x1c7   : > { %12542 = vst [vmem:[#allocation41_spill] sm:$0xff] %v10186_v1  ;;  %v7321_v25 = vadd.f32 %v7320_v22, %v7319_v53  ;;  %v6343_v53 = vld [vmem:[%s8869_s16 + $0xbf8] sm:$0xff]  ;;  %v6346_v22 = vld [vmem:[%s8869_s16 + $0xc28] sm:$0xff]  ;;  %12544 = vst [vmem:[#allocation43_spill] sm:$0xff] %v10222_v56 }
 0x1c8   : > { %v7322_v1 = vpop.f32.mrf.mxu0  ;;  %8563 = vmatmul.mubr.bf16.gmra.mxu0 %v2607_v32  ;;  %v10207_v4 = vpop.f32.mrf.mxu1  ;;  %2723 = vmatmul.mubr.bf16.gmra.mxu1 %v2614_v50 }
 0x1c9   : > { %v10205_v58 = vadd.f32 %v10056_v60, %v7321_v25  ;;  %8566 = vmatprep.mubr.bf16.mxu0 %v2610_v63  ;;  %2730 = vmatprep.mubr.bf16.mxu1 %v2618_v24  ;;  %v6349_v60 = vld [vmem:[%s8869_s16 + $0xc58] sm:$0xff]  ;;  %v10216_v25 = vpack.c.bf16 %v6397_v0, %v6396_v62  ;;  %v6360_v63 = vld [vmem:[%s8869_s16 + $0xd10] sm:$0xff]  ;;  %v2613_v62 = vpack.c.bf16 %v6343_v53, %v6340_v16  ;;  %v6408_v0 = vld [vmem:[%s8874_s19 + $0x500] sm:$0xff] }
 0x1ca   : > { %v7323_v32 = vpop.f32.mrf.mxu0  ;;  %7699 = vmatpush3.bf16.msra.mxu0 %v10192_v21  ;;  %v10218_v50 = vpop.f32.mrf.mxu1  ;;  %v6395_v24 = vld [vmem:[%s8874_s19 + $0x498] sm:$0xff]  ;;  %v2616_v54 = vpack.c.bf16 %v6349_v60, %v6346_v22  ;;  %v2621_v13 = vpack.c.bf16 %v6360_v63, %v6357_v3  ;;  %v12549_v22 = vld [vmem:[#allocation2_spill] sm:$0xff]  ;;  %v6352_v63 = vld [vmem:[%s8869_s16 + $0xc88] sm:$0xff] }
 0x1cb   : > { %12543 = vst [vmem:[#allocation42_spill] sm:$0xff] %v10205_v58  ;;  %v7324_v58 = vadd.f32 %v7323_v32, %v7322_v1  ;;  %7700 = vmatprep.subr.bf16.mxu0 %v10196_v28  ;;  %v6409_v1 = vld [vmem:[%s8874_s19 + $0x508] sm:$0xff]  ;;  %v10241_v16 = vpack.c.bf16 %v6395_v24, %v6394_v52  ;;  %v6356_v60 = vld [vmem:[%s8869_s16 + $0xcd8] sm:$0xff] }
 0x1cc   : > { %v7325_v46 = vpop.f32.mrf.mxu0  ;;  %v10236_v42 = vpop.f32.mrf.mxu1  ;;  %v10247_v11 = vpack.c.bf16 %v6409_v1, %v6408_v0  ;;  %v6355_v24 = vld [vmem:[%s8869_s16 + $0xcb8] sm:$0xff] }
 0x1cd   : > { %v10234_v32 = vadd.f32 %v7324_v58, %v10073_v45  ;;  %v1011_v39 = vpop.permute.xlu1 %1010  ;;  %12547 = vst [vmem:[#allocation4_spill] sm:$0xff] %v10241_v16  ;;  %v12551_v0 = vld [vmem:[#allocation5_spill] sm:$0xff] }
 0x1ce   : > { %v1081_v27 = vsel %vm1078_vm0, %v12546_v2, %v1011_v39  ;;  %v7326_v35 = vpop.f32.mrf.mxu0  ;;  %7701 = vmatpush3.bf16.msra.mxu0 %v10216_v25  ;;  %v10244_v58 = vpop.f32.mrf.mxu1  ;;  %12548 = vst [vmem:[#allocation45_spill] sm:$0xff] %v10247_v11  ;;  %v6392_v2 = vld [vmem:[%s8874_s19 + $0x480] sm:$0xff]  ;;  %v6359_v39 = vld [vmem:[%s8869_s16 + $0xd08] sm:$0xff] }
 0x1cf   : > { %12545 = vst [vmem:[#allocation44_spill] sm:$0xff] %v10234_v32  ;;  %1105 = vst [vmem:[%s10229_s24 + $0x10] sm:$0xff] %v1081_v27  ;;  %v7327_v45 = vadd.f32 %v7326_v35, %v7325_v46  ;;  %v1007_v53 = vpop.permute.xlu0 %1006  ;;  %7702 = vmatprep.subr.bf16.mxu0 %v10222_v56  ;;  %v2619_v32 = vpack.c.bf16 %v6355_v24, %v6352_v63 }
 0x1d0   : > { %v1079_v3 = vsel %vm1078_vm0, %v12549_v22, %v1007_v53  ;;  %v7328_v52 = vpop.f32.mrf.mxu0  ;;  %8567 = vmatmul.mubr.bf16.gmra.mxu0 %v2613_v62  ;;  %v10257_v35 = vpop.f32.mrf.mxu1  ;;  %2731 = vmatmul.mubr.bf16.gmra.mxu1 %v2617_v9  ;;  %v10268_v53 = vpack.c.bf16 %v6393_v26, %v6392_v2  ;;  %v2620_v26 = vpack.c.bf16 %v6359_v39, %v6356_v60 }
 0x1d1   : > { %v10254_v27 = vadd.f32 %v7327_v45, %v10082_v61  ;;  %1103 = vst [vmem:[%s10229_s24] sm:$0xff] %v1079_v3  ;;  %v1013_v46 = vpop.permute.xlu1 %1012  ;;  %8570 = vmatprep.mubr.bf16.mxu0 %v2616_v54  ;;  %2738 = vmatprep.mubr.bf16.mxu1 %v2621_v13  ;;  %v6358_v61 = vld [vmem:[%s8869_s16 + $0xce8] sm:$0xff]  ;;  %v6361_v45 = vld [vmem:[%s8869_s16 + $0xd18] sm:$0xff]  ;;  %v6363_v3 = vld [vmem:[%s8869_s16 + $0xd40] sm:$0xff] }
 0x1d2   : > { %v1082_v1 = vsel %vm1078_vm0, %v12551_v0, %v1013_v46  ;;  %v7329_v62 = vpop.f32.mrf.mxu0  ;;  %7703 = vmatpush3.bf16.msra.mxu0 %v10241_v16  ;;  %12552 = vst [vmem:[#allocation5_spill] sm:$0xff] %v10268_v53  ;;  %v10271_v9 = vpop.f32.mrf.mxu1  ;;  %v12553_v46 = vld [vmem:[#allocation3_spill] sm:$0xff] }
 0x1d3   : > { %12550 = vst [vmem:[#allocation2_spill] sm:$0xff] %v10254_v27  ;;  %1106 = vst [vmem:[%s10229_s24 + $0x18] sm:$0xff] %v1082_v1  ;;  %v7330_v54 = vadd.f32 %v7329_v62, %v7328_v52  ;;  %v1009_v22 = vpop.permute.xlu0 %1008  ;;  %v6366_v27 = vld [vmem:[%s8869_s16 + $0xd70] sm:$0xff]  ;;  %7704 = vmatprep.subr.bf16.mxu0 %v10247_v11  ;;  %v2622_v52 = vpack.c.bf16 %v6361_v45, %v6358_v61  ;;  %v6362_v45 = vld [vmem:[%s8869_s16 + $0xd38] sm:$0xff] }
 0x1d4   : > { %v1080_v13 = vsel %vm1078_vm0, %v12553_v46, %v1009_v22  ;;  %v7331_v0 = vpop.f32.mrf.mxu0  ;;  %v10282_v2 = vpop.f32.mrf.mxu1  ;;  %v2624_v62 = vpack.c.bf16 %v6366_v27, %v6363_v3  ;;  %v6367_v3 = vld [vmem:[%s8869_s16 + $0xd78] sm:$0xff]  ;;  %v12557_v46 = vld [vmem:[#allocation11_spill] sm:$0xff] }
 0x1d5   : > { %v10279_v12 = vadd.f32 %v10065_v20, %v7330_v54  ;;  %1104 = vst [vmem:[%s10229_s24 + $0x8] sm:$0xff] %v1080_v13  ;;  %v12555_v20 = vld [vmem:[#allocation10_spill] sm:$0xff]  ;;  %v6364_v54 = vld [vmem:[%s8869_s16 + $0xd48] sm:$0xff] }
 0x1d6   : > { %v7332_v1 = vpop.f32.mrf.mxu0  ;;  %7705 = vmatpush3.bf16.msra.mxu0 %v10268_v53  ;;  %v10285_v22 = vpop.f32.mrf.mxu1  ;;  %v2625_v53 = vpack.c.bf16 %v6367_v3, %v6364_v54 }
 0x1d7   : > { %12554 = vst [vmem:[#allocation3_spill] sm:$0xff] %v10279_v12  ;;  %v7333_v15 = vadd.f32 %v7332_v1, %v7331_v0  ;;  %v1019_v63 = vpop.permute.xlu0 %1018  ;;  %8618 = vmatprep.subr.bf16.mxu0 %v9897_v5  ;;  %v6365_v0 = vld [vmem:[%s8869_s16 + $0xd68] sm:$0xff] }
 0x1d8   : > { %v1085_v24 = vsel %vm1078_vm0, %v12555_v20, %v1019_v63  ;;  %v7334_v60 = vpop.f32.mrf.mxu0  ;;  %8571 = vmatmul.mubr.bf16.gmra.mxu0 %v2619_v32  ;;  %v10294_v39 = vpop.f32.mrf.mxu1  ;;  %2739 = vmatmul.mubr.bf16.gmra.mxu1 %v2620_v26  ;;  %v6442_v20 = vld [vmem:[%s8869_s16 + $0xd90] sm:$0xff] }
 0x1d9   : > { %v10291_v27 = vadd.f32 %v10080_v51, %v7333_v15  ;;  %1109 = vst [vmem:[%s10229_s24 + $0x30] sm:$0xff] %v1085_v24  ;;  %v1021_v61 = vpop.permute.xlu1 %1020  ;;  %8574 = vmatprep.mubr.bf16.mxu0 %v2622_v52  ;;  %2746 = vmatprep.mubr.bf16.mxu1 %v2624_v62  ;;  %v6441_v15 = vld [vmem:[%s8869_s16 + $0xd88] sm:$0xff]  ;;  %v6444_v51 = vld [vmem:[%s8869_s16 + $0xdb8] sm:$0xff]  ;;  %v6445_v52 = vld [vmem:[%s8869_s16 + $0xdc0] sm:$0xff] }
 0x1da   : > { %v1086_v13 = vsel %vm1078_vm0, %v12557_v46, %v1021_v61  ;;  %v7335_v32 = vpop.f32.mrf.mxu0  ;;  %v10305_v63 = vpop.f32.mrf.mxu1  ;;  %v12558_v24 = vld [vmem:[#allocation7_spill] sm:$0xff]  ;;  %v3177_v16 = vpack.c.bf16 %v6445_v52, %v6442_v20 }
 0x1db   : > { %12556 = vst [vmem:[#allocation10_spill] sm:$0xff] %v10291_v27  ;;  %1110 = vst [vmem:[%s10229_s24 + $0x38] sm:$0xff] %v1086_v13  ;;  %v7336_v1 = vadd.f32 %v7335_v32, %v7334_v60  ;;  %v1015_v26 = vpop.permute.xlu0 %1014  ;;  %v2623_v60 = vpack.c.bf16 %v6365_v0, %v6362_v45  ;;  %v3176_v13 = vpack.c.bf16 %v6444_v51, %v6441_v15  ;;  %v12560_v32 = vld [vmem:[#allocation9_spill] sm:$0xff]  ;;  %v12563_v51 = vld [vmem:[#allocation15_spill] sm:$0xff] }
 0x1dc   : > { %v1083_v27 = vsel %vm1078_vm0, %v12558_v24, %v1015_v26  ;;  %v7337_v12 = vpop.f32.mrf.mxu0  ;;  %v10315_v62 = vpop.f32.mrf.mxu1 }
 0x1dd   : > { %v10312_v61 = vadd.f32 %v7336_v1, %v10096_v48  ;;  %1107 = vst [vmem:[%s10229_s24 + $0x20] sm:$0xff] %v1083_v27  ;;  %v1017_v46 = vpop.permute.xlu1 %1016  ;;  %v12561_v27 = vld [vmem:[#allocation14_spill] sm:$0xff] }
 0x1de   : > { %v1084_v37 = vsel %vm1078_vm0, %v12560_v32, %v1017_v46  ;;  %v7338_v11 = vpop.f32.mrf.mxu0  ;;  %v10320_v54 = vpop.f32.mrf.mxu1  ;;  %v12564_v32 = vld [vmem:[#allocation12_spill] sm:$0xff] }
 0x1df   : > { %12559 = vst [vmem:[#allocation11_spill] sm:$0xff] %v10312_v61  ;;  %1108 = vst [vmem:[%s10229_s24 + $0x28] sm:$0xff] %v1084_v37  ;;  %v7339_v26 = vadd.f32 %v7338_v11, %v7337_v12  ;;  %v1027_v48 = vpop.permute.xlu0 %1026  ;;  %v6440_v12 = vld [vmem:[%s8869_s16 + $0xd80] sm:$0xff]  ;;  %v6443_v11 = vld [vmem:[%s8869_s16 + $0xdb0] sm:$0xff] }
 0x1e0   : > { %v1089_v3 = vsel %vm1078_vm0, %v12561_v27, %v1027_v48  ;;  %v7340_v45 = vpop.f32.mrf.mxu0  ;;  %8575 = vmatmul.mubr.bf16.gmra.mxu0 %v2625_v53  ;;  %v10328_v15 = vpop.f32.mrf.mxu1  ;;  %2747 = vmatmul.mubr.bf16.gmra.mxu1 %v2623_v60  ;;  %v6451_v53 = vld [vmem:[%s8869_s16 + $0xe20] sm:$0xff]  ;;  %v6447_v60 = vld [vmem:[%s8869_s16 + $0xde8] sm:$0xff]  ;;  %v3175_v27 = vpack.c.bf16 %v6443_v11, %v6440_v12 }
 0x1e1   : > { %v10325_v0 = vadd.f32 %v7339_v26, %v10114_v38  ;;  %1113 = vst [vmem:[%s10229_s24 + $0x50] sm:$0xff] %v1089_v3  ;;  %v1029_v37 = vpop.permute.xlu1 %1028  ;;  %3243 = vmatprep.mubr.bf16.mxu0 %v3176_v13  ;;  %8594 = vmatprep.mubr.bf16.mxu1 %v3177_v16  ;;  %v6448_v38 = vld [vmem:[%s8869_s16 + $0xdf0] sm:$0xff]  ;;  %v6450_v13 = vld [vmem:[%s8869_s16 + $0xe18] sm:$0xff] }
 0x1e2   : > { %v1090_v1 = vsel %vm1078_vm0, %v12563_v51, %v1029_v37  ;;  %v7341_v20 = vpop.f32.mrf.mxu0  ;;  %v10337_v24 = vpop.f32.mrf.mxu1  ;;  %v6454_v3 = vld [vmem:[%s8869_s16 + $0xe50] sm:$0xff]  ;;  %v6457_v37 = vld [vmem:[%s8869_s16 + $0xe80] sm:$0xff]  ;;  %v3179_v56 = vpack.c.bf16 %v6450_v13, %v6447_v60 }
 0x1e3   : > { %12562 = vst [vmem:[#allocation7_spill] sm:$0xff] %v10325_v0  ;;  %1114 = vst [vmem:[%s10229_s24 + $0x58] sm:$0xff] %v1090_v1  ;;  %v7342_v52 = vadd.f32 %v7341_v20, %v7340_v45  ;;  %v1023_v46 = vpop.permute.xlu0 %1022  ;;  %v3180_v1 = vpack.c.bf16 %v6451_v53, %v6448_v38  ;;  %v12565_v20 = vld [vmem:[#allocation13_spill] sm:$0xff]  ;;  %v6449_v13 = vld [vmem:[%s8869_s16 + $0xe10] sm:$0xff] }
 0x1e4   : > { %v1087_v26 = vsel %vm1078_vm0, %v12564_v32, %v1023_v46  ;;  %v7343_v48 = vpop.f32.mrf.mxu0  ;;  %v10349_v16 = vpop.f32.mrf.mxu1  ;;  %v7390_v46 = vadd.f32 %v10177_v19, %v10164_v8  ;;  %v12566_v32 = vld [vmem:[#allocation18_spill] sm:$0xff] }
 0x1e5   : > { %v10346_v51 = vadd.f32 %v10088_v31, %v7342_v52  ;;  %1111 = vst [vmem:[%s10229_s24 + $0x40] sm:$0xff] %v1087_v26  ;;  %v1025_v45 = vpop.permute.xlu1 %1024  ;;  %v3183_v52 = vpack.c.bf16 %v6457_v37, %v6454_v3  ;;  %v6460_v26 = vld [vmem:[%s8869_s16 + $0xeb0] sm:$0xff]  ;;  %v6463_v3 = vld [vmem:[%s8869_s16 + $0xee0] sm:$0xff]  ;;  %v6453_v37 = vld [vmem:[%s8869_s16 + $0xe48] sm:$0xff] }
 0x1e6   : > { %v1088_v0 = vsel %vm1078_vm0, %v12565_v20, %v1025_v45  ;;  %v7344_v61 = vpop.f32.mrf.mxu0  ;;  %v10356_v31 = vpop.f32.mrf.mxu1  ;;  %v6456_v45 = vld [vmem:[%s8869_s16 + $0xe78] sm:$0xff] }
 0x1e7   : > { %1112 = vst [vmem:[%s10229_s24 + $0x48] sm:$0xff] %v1088_v0  ;;  %v7345_v12 = vadd.f32 %v7344_v61, %v7343_v48  ;;  %v1035_v11 = vpop.permute.xlu0 %1034  ;;  %v6446_v0 = vld [vmem:[%s8869_s16 + $0xde0] sm:$0xff]  ;;  %v12567_v48 = vld [vmem:[#allocation19_spill] sm:$0xff] }
 0x1e8   : > { %v1093_v38 = vsel %vm1078_vm0, %v12566_v32, %v1035_v11  ;;  %v8476_v53 = vpop.f32.mrf.mxu0  ;;  %3244 = vmatmul.mubr.bf16.vlgmr.msra.gmra.mxu0 %v3175_v27  ;;  %v10364_v8 = vpop.f32.mrf.mxu1  ;;  %8595 = vmatmul.mubr.bf16.vlgmr.msra.gmra.mxu1 %v3180_v1  ;;  %v7393_v1 = vadd.f32 %v10194_v36, %v10188_v6 }
 0x1e9   : > { %v10361_v60 = vadd.f32 %v10106_v43, %v7345_v12  ;;  %1117 = vst [vmem:[%s10229_s24 + $0x70] sm:$0xff] %v1093_v38  ;;  %v1847_v19 = vadd.f32 %v8476_v53, %v7390_v46  ;;  %8619 = vmatpush3.bf16.msra.mxu0 %v9897_v5  ;;  %v1037_v61 = vpop.permute.xlu1 %1036  ;;  %7799 = vmatpush3.bf16.msra.mxu1 %v10108_v41  ;;  %v6466_v12 = vld [vmem:[%s8869_s16 + $0xf10] sm:$0xff]  ;;  %v6469_v41 = vld [vmem:[%s8869_s16 + $0xf40] sm:$0xff] }
 0x1ea   : > { %v1094_v27 = vsel %vm1078_vm0, %v12567_v48, %v1037_v61  ;;  %v1838_v43 = vpop.f32.mrf.mxu0  ;;  %3251 = vmatprep.mubr.bf16.mxu0 %v3179_v56  ;;  %v7384_v5 = vadd.f32 %v10136_v59, %v10122_v29  ;;  %v10381_v20 = vpop.f32.mrf.mxu1  ;;  %8598 = vmatprep.mubr.bf16.mxu1 %v3183_v52  ;;  %v12568_v56 = vld [vmem:[#allocation16_spill] sm:$0xff]  ;;  %v3178_v38 = vpack.c.bf16 %v6449_v13, %v6446_v0 }
 0x1eb   : > { %1118 = vst [vmem:[%s10229_s24 + $0x78] sm:$0xff] %v1094_v27  ;;  %1961 = vrot.lane.b32.xlu0 %v1847_v19, %s8838_s20  ;;  %v1031_v46 = vpop.permute.xlu0 %1030  ;;  %7800 = vmatprep.subr.bf16.mxu1 %v10110_v33  ;;  %v3186_v53 = vpack.c.bf16 %v6463_v3, %v6460_v26  ;;  %v3182_v52 = vpack.c.bf16 %v6456_v45, %v6453_v37  ;;  %v12569_v19 = vld [vmem:[#allocation17_spill] sm:$0xff]  ;;  %v12570_v26 = vld [vmem:[#allocation22_spill] sm:$0xff]  ;;  %v6455_v37 = vld [vmem:[%s8869_s16 + $0xe70] sm:$0xff] }
 0x1ec   : > { %v1091_v11 = vsel %vm1078_vm0, %v12568_v56, %v1031_v46  ;;  %v8477_v32 = vpop.f32.mrf.mxu0  ;;  %8620 = vmatprep.subr.bf16.mxu0 %v9947_v10  ;;  %v1839_v29 = vadd.f32 %v7384_v5, %v1838_v43  ;;  %v10391_v59 = vpop.f32.mrf.mxu1  ;;  %v3189_v33 = vpack.c.bf16 %v6469_v41, %v6466_v12  ;;  %v7387_v0 = vadd.f32 %v10154_v44, %v10146_v49  ;;  %v6452_v3 = vld [vmem:[%s8869_s16 + $0xe40] sm:$0xff]  ;;  %v6472_v45 = vld [vmem:[%s8869_s16 + $0xf70] sm:$0xff]  ;;  %v12571_v5 = vld [vmem:[#allocation23_spill] sm:$0xff] }
 0x1ed   : > { %1115 = vst [vmem:[%s10229_s24 + $0x60] sm:$0xff] %v1091_v11  ;;  %v1850_v6 = vadd.f32 %v8477_v32, %v7393_v1  ;;  %v1033_v36 = vpop.permute.xlu1 %1032  ;;  %8621 = vmatpush3.bf16.msra.mxu0 %v9947_v10  ;;  %7801 = vmatpush3.bf16.msra.mxu1 %v10125_v17  ;;  %v7402_v13 = vadd.f32 %v10271_v9, %v10257_v35  ;;  %v6475_v46 = vld [vmem:[%s8869_s16 + $0xfa0] sm:$0xff]  ;;  %v6459_v12 = vld [vmem:[%s8869_s16 + $0xea8] sm:$0xff]  ;;  %v6462_v41 = vld [vmem:[%s8869_s16 + $0xed8] sm:$0xff] }
 0x1ee   : > { %v1092_v61 = vsel %vm1078_vm0, %v12569_v19, %v1033_v36  ;;  %v1841_v48 = vpop.f32.mrf.mxu0  ;;  %8622 = vmatprep.subr.bf16.mxu0 %v9964_v14  ;;  %v10403_v10 = vpop.f32.mrf.mxu1  ;;  %7802 = vmatprep.subr.bf16.mxu1 %v10131_v34  ;;  %v7396_v56 = vadd.f32 %v10218_v50, %v10207_v4  ;;  %v7405_v11 = vadd.f32 %v10285_v22, %v10282_v2 }
 0x1ef   : > { %1116 = vst [vmem:[%s10229_s24 + $0x68] sm:$0xff] %v1092_v61  ;;  %1963 = vrot.lane.b32.xlu1 %v1850_v6, %s8838_s20  ;;  %1957 = vrot.lane.b32.xlu0 %v1839_v29, %s8838_s20  ;;  %v1043_v17 = vpop.permute.xlu0 %1042  ;;  %v1842_v49 = vadd.f32 %v7387_v0, %v1841_v48  ;;  %v6478_v29 = vld [vmem:[%s8869_s16 + $0xfd0] sm:$0xff]  ;;  %v3192_v19 = vpack.c.bf16 %v6475_v46, %v6472_v45  ;;  %v12573_v48 = vld [vmem:[#allocation21_spill] sm:$0xff] }
 0x1f0   : > { %v1097_v27 = vsel %vm1078_vm0, %v12570_v26, %v1043_v17  ;;  %v8480_v43 = vpop.f32.mrf.mxu0  ;;  %3252 = vmatmul.mubr.bf16.gmra.mxu0 %v3178_v38  ;;  %v10411_v44 = vpop.f32.mrf.mxu1  ;;  %8599 = vmatmul.mubr.bf16.gmra.mxu1 %v3186_v53  ;;  %v12572_v6 = vld [vmem:[#allocation20_spill] sm:$0xff]  ;;  %v3185_v61 = vpack.c.bf16 %v6462_v41, %v6459_v12  ;;  %v6468_v45 = vld [vmem:[%s8869_s16 + $0xf38] sm:$0xff]  ;;  %v6493_v12 = vld [vmem:[%s8869_s16 + $0x10c0] sm:$0xff] }
 0x1f1   : > { %1121 = vst [vmem:[%s10229_s24 + $0x90] sm:$0xff] %v1097_v27  ;;  %v1863_v35 = vadd.f32 %v8480_v43, %v7402_v13  ;;  %v1045_v9 = vpop.permute.xlu1 %1044  ;;  %3259 = vmatprep.mubr.bf16.mxu0 %v3182_v52  ;;  %8602 = vmatprep.mubr.bf16.mxu1 %v3189_v33  ;;  %v3181_v52 = vpack.c.bf16 %v6455_v37, %v6452_v3  ;;  %v12574_v27 = vld [vmem:[#allocation24_spill] sm:$0xff]  ;;  %v6465_v37 = vld [vmem:[%s8869_s16 + $0xf08] sm:$0xff] }
 0x1f2   : > { %v1098_v1 = vsel %vm1078_vm0, %v12571_v5, %v1045_v9  ;;  %v1854_v34 = vpop.f32.mrf.mxu0  ;;  %7803 = vmatpush3.bf16.msra.mxu1 %v10149_v47  ;;  %v10427_v32 = vpop.f32.mrf.mxu1  ;;  %v6481_v47 = vld [vmem:[%s8869_s16 + $0x1000] sm:$0xff]  ;;  %8623 = vmatpush3.bf16.msra.mxu0 %v9964_v14  ;;  %v7399_v14 = vadd.f32 %v10244_v58, %v10236_v42  ;;  %v7414_v13 = vadd.f32 %v10337_v24, %v10328_v15  ;;  %v6490_v46 = vld [vmem:[%s8869_s16 + $0x1090] sm:$0xff] }
 0x1f3   : > { %1122 = vst [vmem:[%s10229_s24 + $0x98] sm:$0xff] %v1098_v1  ;;  %1959 = vrot.lane.b32.xlu1 %v1842_v49, %s8838_s20  ;;  %1969 = vrot.lane.b32.xlu0 %v1863_v35, %s8838_s20  ;;  %v1039_v38 = vpop.permute.xlu0 %1038  ;;  %v1855_v4 = vadd.f32 %v7396_v56, %v1854_v34  ;;  %v6458_v42 = vld [vmem:[%s8869_s16 + $0xea0] sm:$0xff]  ;;  %v7417_v5 = vadd.f32 %v10356_v31, %v10349_v16 }
 0x1f4   : > { %v1095_v36 = vsel %vm1078_vm0, %v12572_v6, %v1039_v38  ;;  %v8481_v53 = vpop.f32.mrf.mxu0  ;;  %7804 = vmatprep.subr.bf16.mxu1 %v10156_v55  ;;  %v10438_v50 = vpop.f32.mrf.mxu1  ;;  %8624 = vmatprep.subr.bf16.mxu0 %v9974_v30  ;;  %v3195_v55 = vpack.c.bf16 %v6481_v47, %v6478_v29  ;;  %v6461_v49 = vld [vmem:[%s8869_s16 + $0xed0] sm:$0xff]  ;;  %v6487_v9 = vld [vmem:[%s8869_s16 + $0x1060] sm:$0xff]  ;;  %v3188_v47 = vpack.c.bf16 %v6468_v45, %v6465_v37  ;;  %v12580_v37 = vld [vmem:[#allocation5_spill] sm:$0xff] }
 0x1f5   : > { %1119 = vst [vmem:[%s10229_s24 + $0x80] sm:$0xff] %v1095_v36  ;;  %v1866_v2 = vadd.f32 %v8481_v53, %v7405_v11  ;;  %v1041_v22 = vpop.permute.xlu1 %1040  ;;  %v6484_v35 = vld [vmem:[%s8869_s16 + $0x1030] sm:$0xff]  ;;  %v3201_v36 = vpack.c.bf16 %v6493_v12, %v6490_v46  ;;  %v7423_v45 = vadd.f32 %v10403_v10, %v10391_v59  ;;  %v6470_v59 = vld [vmem:[%s8869_s16 + $0xf60] sm:$0xff] }
 0x1f6   : > { %v1096_v33 = vsel %vm1078_vm0, %v12573_v48, %v1041_v22  ;;  %v1857_v0 = vpop.f32.mrf.mxu0  ;;  %7805 = vmatpush3.bf16.msra.mxu1 %v10170_v7  ;;  %v10449_v17 = vpop.f32.mrf.mxu1  ;;  %8625 = vmatpush3.bf16.msra.mxu0 %v9974_v30  ;;  %v7411_v30 = vadd.f32 %v10320_v54, %v10315_v62  ;;  %v6464_v62 = vld [vmem:[%s8869_s16 + $0xf00] sm:$0xff]  ;;  %v6467_v54 = vld [vmem:[%s8869_s16 + $0xf30] sm:$0xff] }
 0x1f7   : > { %1120 = vst [vmem:[%s10229_s24 + $0x88] sm:$0xff] %v1096_v33  ;;  %1971 = vrot.lane.b32.xlu1 %v1866_v2, %s8838_s20  ;;  %1965 = vrot.lane.b32.xlu0 %v1855_v4, %s8838_s20  ;;  %v1047_v26 = vpop.permute.xlu0 %1046  ;;  %v1858_v58 = vadd.f32 %v7399_v14, %v1857_v0  ;;  %v6496_v22 = vld [vmem:[%s8869_s16 + $0x10f0] sm:$0xff]  ;;  %v7420_v14 = vadd.f32 %v10381_v20, %v10364_v8 }
 0x1f8   : > { %v1099_v7 = vsel %vm1078_vm0, %v12574_v27, %v1047_v26  ;;  %v8484_v43 = vpop.f32.mrf.mxu0  ;;  %3260 = vmatmul.mubr.bf16.gmra.mxu0 %v3181_v52  ;;  %7806 = vmatprep.subr.bf16.mxu1 %v10175_v57  ;;  %v10458_v15 = vpop.f32.mrf.mxu1  ;;  %v7408_v57 = vadd.f32 %v10305_v63, %v10294_v39  ;;  %v3184_v39 = vpack.c.bf16 %v6461_v49, %v6458_v42  ;;  %v6499_v48 = vld [vmem:[%s8869_s16 + $0x1120] sm:$0xff]  ;;  %v6471_v33 = vld [vmem:[%s8869_s16 + $0xf68] sm:$0xff]  ;;  %v6474_v0 = vld [vmem:[%s8869_s16 + $0xf98] sm:$0xff] }
 0x1f9   : > { %1123 = vst [vmem:[%s10229_s24 + $0xa0] sm:$0xff] %v1099_v7  ;;  %v1879_v24 = vadd.f32 %v8484_v43, %v7414_v13  ;;  %8603 = vmatmul.mubr.bf16.gmra.mxu1 %v3192_v19  ;;  %3267 = vmatprep.mubr.bf16.mxu0 %v3185_v61  ;;  %v3198_v63 = vpack.c.bf16 %v6487_v9, %v6484_v35  ;;  %v6654_v19 = vld [vmem:[%s8874_s19 + $0x770] sm:$0xff]  ;;  %v6505_v7 = vld [vmem:[%s8869_s16 + $0x1180] sm:$0xff] }
 0x1fa   : > { %v1870_v3 = vpop.f32.mrf.mxu0  ;;  %8606 = vmatprep.mubr.bf16.mxu1 %v3195_v55  ;;  %7807 = vmatpush3.bf16.msra.mxu1 %v10192_v21  ;;  %v10470_v1 = vpop.f32.mrf.mxu1  ;;  %v12575_v21 = vld [vmem:[#allocation25_spill] sm:$0xff]  ;;  %v12577_v55 = vld [vmem:[#allocation4_spill] sm:$0xff]  ;;  %v7429_v13 = vadd.f32 %v10449_v17, %v10438_v50  ;;  %v3187_v42 = vpack.c.bf16 %v6467_v54, %v6464_v62  ;;  %v3204_v35 = vpack.c.bf16 %v6499_v48, %v6496_v22  ;;  %v12579_v17 = vld [vmem:[#allocation27_spill] sm:$0xff] }
 0x1fb   : > { %1967 = vrot.lane.b32.xlu1 %v1858_v58, %s8838_s20  ;;  %v1049_v34 = vpop.permute.xlu1 %1048  ;;  %1977 = vrot.lane.b32.xlu0 %v1879_v24, %s8838_s20  ;;  %v1051_v56 = vpop.permute.xlu0 %1050  ;;  %v1871_v16 = vadd.f32 %v7408_v57, %v1870_v3  ;;  %v6502_v27 = vld [vmem:[%s8869_s16 + $0x1150] sm:$0xff]  ;;  %v12578_v58 = vld [vmem:[#allocation45_spill] sm:$0xff]  ;;  %v3191_v50 = vpack.c.bf16 %v6474_v0, %v6471_v33 }
 0x1fc   : > { %v1100_v41 = vsel %vm1078_vm0, %v12575_v21, %v1049_v34  ;;  %v8485_v11 = vpop.f32.mrf.mxu0  ;;  %7808 = vmatprep.subr.bf16.mxu1 %v10196_v28  ;;  %v1101_v31 = vsel %vm1078_vm0, %v9767_v23, %v1051_v56  ;;  %v10483_v38 = vpop.f32.mrf.mxu1  ;;  %8626 = vmatprep.subr.bf16.mxu0 %v9992_v40  ;;  %v7426_v23 = vadd.f32 %v10427_v32, %v10411_v44  ;;  %v12576_v44 = vld [vmem:[#allocation43_spill] sm:$0xff]  ;;  %v6473_v10 = vld [vmem:[%s8869_s16 + $0xf90] sm:$0xff]  ;;  %v6511_v56 = vld [vmem:[%s8869_s16 + $0x11e0] sm:$0xff] }
 0x1fd   : > { %1124 = vst [vmem:[%s10229_s24 + $0xa8] sm:$0xff] %v1100_v41  ;;  %v1882_v29 = vadd.f32 %v8485_v11, %v7417_v5  ;;  %1125 = vst [vmem:[%s10229_s24 + $0xb0] sm:$0xff] %v1101_v31  ;;  %8627 = vmatpush3.bf16.msra.mxu0 %v9992_v40  ;;  %v3207_v3 = vpack.c.bf16 %v6505_v7, %v6502_v27  ;;  %v6508_v21 = vld [vmem:[%s8869_s16 + $0x11b0] sm:$0xff]  ;;  %v6477_v11 = vld [vmem:[%s8869_s16 + $0xfc8] sm:$0xff] }
 0x1fe   : > { %v1873_v6 = vpop.f32.mrf.mxu0  ;;  %7809 = vmatpush3.bf16.msra.mxu1 %v10216_v25  ;;  %v10492_v28 = vpop.f32.mrf.mxu1  ;;  %8628 = vmatprep.subr.bf16.mxu0 %v12579_v17  ;;  %v3210_v54 = vpack.c.bf16 %v6511_v56, %v6508_v21  ;;  %v6512_v0 = vld [vmem:[%s8869_s16 + $0xd98] sm:$0xff]  ;;  %v6482_v21 = vld [vmem:[%s8869_s16 + $0x1020] sm:$0xff] }
 0x1ff   : > { %1979 = vrot.lane.b32.xlu1 %v1882_v29, %s8838_s20  ;;  %v1053_v53 = vpop.permute.xlu1 %1052  ;;  %1973 = vrot.lane.b32.xlu0 %v1871_v16, %s8838_s20  ;;  %v1874_v32 = vadd.f32 %v7411_v30, %v1873_v6  ;;  %v6513_v29 = vld [vmem:[%s8869_s16 + $0xda0] sm:$0xff]  ;;  %v12581_v30 = vld [vmem:[#allocation29_spill] sm:$0xff] }
 0x200   : > { %v1102_v52 = vsel %vm1078_vm0, %v9778_v18, %v1053_v53  ;;  %v8488_v25 = vpop.f32.mrf.mxu0  ;;  %3268 = vmatmul.mubr.bf16.gmra.mxu0 %v3184_v39  ;;  %7810 = vmatprep.subr.bf16.mxu1 %v12576_v44  ;;  %v7436_v4 = vpop.f32.mrf.mxu1  ;;  %v6655_v18 = vld [vmem:[%s8874_s19 + $0x778] sm:$0xff] }
 0x201   : > { %1126 = vst [vmem:[%s10229_s24 + $0xb8] sm:$0xff] %v1102_v52  ;;  %v1895_v2 = vadd.f32 %v8488_v25, %v7426_v23  ;;  %8607 = vmatmul.mubr.bf16.gmra.mxu1 %v3198_v63  ;;  %3275 = vmatprep.mubr.bf16.mxu0 %v3188_v47  ;;  %v10519_v24 = vpack.c.bf16 %v6655_v18, %v6654_v19  ;;  %v6480_v39 = vld [vmem:[%s8869_s16 + $0xff8] sm:$0xff]  ;;  %v6516_v47 = vld [vmem:[%s8869_s16 + $0xdd0] sm:$0xff]  ;;  %v12582_v19 = vld [vmem:[#allocation31_spill] sm:$0xff] }
 0x202   : > { %v1886_v61 = vpop.f32.mrf.mxu0  ;;  %8610 = vmatprep.mubr.bf16.mxu1 %v3201_v36  ;;  %7811 = vmatpush3.bf16.msra.mxu1 %v12577_v55  ;;  %v7437_v26 = vpop.f32.mrf.mxu1  ;;  %v7432_v63 = vadd.f32 %v10470_v1, %v10458_v15  ;;  %v3190_v36 = vpack.c.bf16 %v6473_v10, %v6470_v59  ;;  %v6638_v23 = vld [vmem:[%s8874_s19 + $0x6f0] sm:$0xff]  ;;  %v6639_v53 = vld [vmem:[%s8874_s19 + $0x6f8] sm:$0xff]  ;;  %v3194_v44 = vpack.c.bf16 %v6480_v39, %v6477_v11  ;;  %v6515_v55 = vld [vmem:[%s8869_s16 + $0xdc8] sm:$0xff] }
 0x203   : > { %1975 = vrot.lane.b32.xlu1 %v1874_v32, %s8838_s20  ;;  %1985 = vrot.lane.b32.xlu0 %v1895_v2, %s8838_s20  ;;  %v1887_v49 = vadd.f32 %v7420_v14, %v1886_v61  ;;  %v7438_v40 = vadd.f32 %v7437_v26, %v7436_v4  ;;  %v3542_v1 = vpack.c.bf16 %v6516_v47, %v6513_v29  ;;  %v6483_v26 = vld [vmem:[%s8869_s16 + $0x1028] sm:$0xff]  ;;  %v6651_v59 = vld [vmem:[%s8874_s19 + $0x758] sm:$0xff] }
 0x204   : > { %v8489_v43 = vpop.f32.mrf.mxu0  ;;  %7812 = vmatprep.subr.bf16.mxu1 %v12578_v58  ;;  %v7439_v8 = vpop.f32.mrf.mxu1  ;;  %8629 = vmatpush3.bf16.msra.mxu0 %v12579_v17  ;;  %v7435_v32 = vadd.f32 %v10492_v28, %v10483_v38  ;;  %v10549_v2 = vpack.c.bf16 %v6639_v53, %v6638_v23  ;;  %v6476_v38 = vld [vmem:[%s8869_s16 + $0xfc0] sm:$0xff]  ;;  %v6479_v28 = vld [vmem:[%s8869_s16 + $0xff0] sm:$0xff]  ;;  %v6653_v17 = vld [vmem:[%s8874_s19 + $0x768] sm:$0xff] }
 0x205   : > { %v1898_v20 = vadd.f32 %v8489_v43, %v7429_v13  ;;  %8630 = vmatprep.subr.bf16.mxu0 %v12581_v30  ;;  %v3193_v43 = vpack.c.bf16 %v6479_v28, %v6476_v38  ;;  %v6519_v58 = vld [vmem:[%s8869_s16 + $0xe00] sm:$0xff]  ;;  %v6518_v56 = vld [vmem:[%s8869_s16 + $0xdf8] sm:$0xff]  ;;  %v6521_v39 = vld [vmem:[%s8869_s16 + $0xe28] sm:$0xff] }
 0x206   : > { %v1889_v9 = vpop.f32.mrf.mxu0  ;;  %7813 = vmatpush3.bf16.msra.mxu1 %v12580_v37  ;;  %v7440_v57 = vpop.f32.mrf.mxu1 }
 0x207   : > { %1987 = vrot.lane.b32.xlu1 %v1898_v20, %s8838_s20  ;;  %1981 = vrot.lane.b32.xlu0 %v1887_v49, %s8838_s20  ;;  %v1890_v34 = vadd.f32 %v7423_v45, %v1889_v9  ;;  %v7441_v16 = vadd.f32 %v7440_v57, %v7439_v8  ;;  %v6522_v49 = vld [vmem:[%s8869_s16 + $0xe30] sm:$0xff] }
 0x208   : > { %v8492_v5 = vpop.f32.mrf.mxu0  ;;  %3276 = vmatmul.mubr.bf16.gmra.mxu0 %v3187_v42  ;;  %8658 = vmatprep.subr.bf16.mxu1 %v10519_v24  ;;  %v7442_v46 = vpop.f32.mrf.mxu1  ;;  %v6486_v42 = vld [vmem:[%s8869_s16 + $0x1058] sm:$0xff] }
 0x209   : > { %v1911_v12 = vadd.f32 %v8492_v5, %v7438_v40  ;;  %8611 = vmatmul.mubr.bf16.gmra.mxu1 %v3204_v35  ;;  %3283 = vmatprep.mubr.bf16.mxu0 %v3191_v50  ;;  %v3541_v35 = vpack.c.bf16 %v6515_v55, %v6512_v0  ;;  %v6652_v50 = vld [vmem:[%s8874_s19 + $0x760] sm:$0xff]  ;;  %v3197_v45 = vpack.c.bf16 %v6486_v42, %v6483_v26  ;;  %v6491_v0 = vld [vmem:[%s8869_s16 + $0x10b0] sm:$0xff]  ;;  %v6524_v55 = vld [vmem:[%s8869_s16 + $0xe58] sm:$0xff] }
 0x20a   : > { %v1902_v41 = vpop.f32.mrf.mxu0  ;;  %8614 = vmatprep.mubr.bf16.mxu1 %v3207_v3  ;;  %v7443_v31 = vpop.f32.mrf.mxu1  ;;  %8631 = vmatpush3.bf16.msra.mxu0 %v12581_v30  ;;  %v3545_v40 = vpack.c.bf16 %v6522_v49, %v6519_v58  ;;  %v6495_v26 = vld [vmem:[%s8869_s16 + $0x10e8] sm:$0xff]  ;;  %v6531_v42 = vld [vmem:[%s8869_s16 + $0xec0] sm:$0xff]  ;;  %v6534_v58 = vld [vmem:[%s8869_s16 + $0xef0] sm:$0xff] }
 0x20b   : > { %1983 = vrot.lane.b32.xlu1 %v1890_v34, %s8838_s20  ;;  %1993 = vrot.lane.b32.xlu0 %v1911_v12, %s8838_s20  ;;  %v1903_v52 = vadd.f32 %v7432_v63, %v1902_v41  ;;  %v7444_v18 = vadd.f32 %v7443_v31, %v7442_v46  ;;  %v10566_v46 = vpack.c.bf16 %v6653_v17, %v6652_v50  ;;  %v6650_v12 = vld [vmem:[%s8874_s19 + $0x750] sm:$0xff]  ;;  %v6489_v63 = vld [vmem:[%s8869_s16 + $0x1088] sm:$0xff] }
 0x20c   : > { %v8493_v6 = vpop.f32.mrf.mxu0  ;;  %v7445_v25 = vpop.f32.mrf.mxu1  ;;  %8632 = vmatprep.subr.bf16.mxu0 %v12582_v19  ;;  %v6485_v41 = vld [vmem:[%s8869_s16 + $0x1050] sm:$0xff]  ;;  %v10583_v30 = vpack.c.bf16 %v6651_v59, %v6650_v12  ;;  %v6645_v50 = vld [vmem:[%s8874_s19 + $0x728] sm:$0xff] }
 0x20d   : > { %v1914_v62 = vadd.f32 %v8493_v6, %v7441_v16  ;;  %v6492_v16 = vld [vmem:[%s8869_s16 + $0x10b8] sm:$0xff]  ;;  %v6525_v6 = vld [vmem:[%s8869_s16 + $0xe60] sm:$0xff]  ;;  %v3196_v53 = vpack.c.bf16 %v6485_v41, %v6482_v21  ;;  %v6642_v59 = vld [vmem:[%s8874_s19 + $0x710] sm:$0xff] }
 0x20e   : > { %v1905_v15 = vpop.f32.mrf.mxu0  ;;  %v7446_v4 = vpop.f32.mrf.mxu1  ;;  %8633 = vmatpush3.bf16.msra.mxu0 %v12582_v19 }
 0x20f   : > { %1995 = vrot.lane.b32.xlu1 %v1914_v62, %s8838_s20  ;;  %1989 = vrot.lane.b32.xlu0 %v1903_v52, %s8838_s20  ;;  %v1906_v61 = vadd.f32 %v7435_v32, %v1905_v15  ;;  %v7447_v8 = vadd.f32 %v7446_v4, %v7445_v25  ;;  %v6648_v52 = vld [vmem:[%s8874_s19 + $0x740] sm:$0xff]  ;;  %v6649_v25 = vld [vmem:[%s8874_s19 + $0x748] sm:$0xff]  ;;  %v3200_v15 = vpack.c.bf16 %v6492_v16, %v6489_v63 }
 0x210   : > { %v8496_v22 = vpop.f32.mrf.mxu0  ;;  %3284 = vmatmul.mubr.bf16.gmra.mxu0 %v3190_v36  ;;  %v7448_v48 = vpop.f32.mrf.mxu1  ;;  %7906 = vmatprep.subr.bf16.mxu0 %v10549_v2  ;;  %v6528_v36 = vld [vmem:[%s8869_s16 + $0xe90] sm:$0xff]  ;;  %v10593_v19 = vpack.c.bf16 %v6649_v25, %v6648_v52  ;;  %v6533_v16 = vld [vmem:[%s8869_s16 + $0xee8] sm:$0xff] }
 0x211   : > { %8615 = vmatmul.mubr.bf16.gmra.mxu1 %v3210_v54  ;;  %3291 = vmatprep.mubr.bf16.mxu0 %v3194_v44  ;;  %v3544_v44 = vpack.c.bf16 %v6521_v39, %v6518_v56  ;;  %v3548_v32 = vpack.c.bf16 %v6528_v36, %v6525_v6  ;;  %v6494_v56 = vld [vmem:[%s8869_s16 + $0x10e0] sm:$0xff]  ;;  %v6530_v39 = vld [vmem:[%s8869_s16 + $0xeb8] sm:$0xff] }
 0x212   : > { %v1918_v33 = vpop.f32.mrf.mxu0  ;;  %3609 = vmatprep.mubr.bf16.mxu1 %v3542_v1  ;;  %v7449_v14 = vpop.f32.mrf.mxu1  ;;  %v6537_v36 = vld [vmem:[%s8869_s16 + $0xf20] sm:$0xff] }
 0x213   : > { %v1919_v13 = vadd.f32 %v7444_v18, %v1918_v33  ;;  %1991 = vrot.lane.b32.xlu1 %v1906_v61, %s8838_s20  ;;  %v7450_v27 = vadd.f32 %v7449_v14, %v7448_v48  ;;  %v6646_v61 = vld [vmem:[%s8874_s19 + $0x730] sm:$0xff]  ;;  %v6647_v48 = vld [vmem:[%s8874_s19 + $0x738] sm:$0xff]  ;;  %v6488_v33 = vld [vmem:[%s8869_s16 + $0x1080] sm:$0xff] }
 0x214   : > { %v8497_v7 = vpop.f32.mrf.mxu0  ;;  %v7451_v20 = vpop.f32.mrf.mxu1  ;;  %v10611_v49 = vpack.c.bf16 %v6647_v48, %v6646_v61 }
 0x215   : > { %1997 = vrot.lane.b32.xlu0 %v1919_v13, %s8838_s20  ;;  %v1927_v57 = vadd.f32 %v8496_v22, %v7450_v27  ;;  %v6527_v13 = vld [vmem:[%s8869_s16 + $0xe88] sm:$0xff]  ;;  %v6498_v27 = vld [vmem:[%s8869_s16 + $0x1118] sm:$0xff] }
 0x216   : > { %v1921_v9 = vpop.f32.mrf.mxu0  ;;  %v7452_v3 = vpop.f32.mrf.mxu1 }
 0x217   : > { %v1922_v37 = vadd.f32 %v7447_v8, %v1921_v9  ;;  %v7453_v5 = vadd.f32 %v7452_v3, %v7451_v20  ;;  %v3199_v20 = vpack.c.bf16 %v6491_v0, %v6488_v33  ;;  %v3547_v3 = vpack.c.bf16 %v6527_v13, %v6524_v55  ;;  %v6500_v13 = vld [vmem:[%s8869_s16 + $0x1140] sm:$0xff] }
 0x218   : > { %v7490_v34 = vpop.f32.mrf.mxu0  ;;  %3292 = vmatmul.mubr.bf16.gmra.mxu0 %v3193_v43  ;;  %v10570_v10 = vpop.f32.mrf.mxu1 }
 0x219   : > { %3610 = vmatmul.mubr.bf16.vlgmr.msra.gmra.mxu1 %v3541_v35  ;;  %1999 = vrot.lane.b32.xlu1 %v1922_v37, %s8838_s20  ;;  %v1930_v31 = vadd.f32 %v8497_v7, %v7453_v5  ;;  %v6644_v35 = vld [vmem:[%s8874_s19 + $0x720] sm:$0xff]  ;;  %v3203_v37 = vpack.c.bf16 %v6498_v27, %v6495_v26  ;;  %v6503_v26 = vld [vmem:[%s8869_s16 + $0x1170] sm:$0xff]  ;;  %v6536_v27 = vld [vmem:[%s8869_s16 + $0xf18] sm:$0xff] }
 0x21a   : > { %2001 = vrot.lane.b32.xlu0 %v1927_v57, %s8838_s20  ;;  %v7491_v11 = vpop.f32.mrf.mxu0  ;;  %8659 = vmatpush3.bf16.msra.mxu1 %v10519_v24  ;;  %v2423_v47 = vpop.f32.mrf.mxu1 }
 0x21b   : > { %v7492_v29 = vadd.f32 %v7491_v11, %v7490_v34  ;;  %3299 = vmatprep.mubr.bf16.mxu0 %v3197_v45  ;;  %3617 = vmatprep.mubr.bf16.mxu1 %v3545_v40  ;;  %v3551_v40 = vpack.c.bf16 %v6534_v58, %v6531_v42  ;;  %v10622_v34 = vpack.c.bf16 %v6645_v50, %v6644_v35  ;;  %v6497_v11 = vld [vmem:[%s8869_s16 + $0x1110] sm:$0xff]  ;;  %v6507_v42 = vld [vmem:[%s8869_s16 + $0x11a8] sm:$0xff]  ;;  %v6510_v58 = vld [vmem:[%s8869_s16 + $0x11d8] sm:$0xff] }
 0x21c   : > { %v7493_v23 = vpop.f32.mrf.mxu0  ;;  %8660 = vmatprep.subr.bf16.mxu1 %v10566_v46  ;;  %v8517_v54 = vpop.f32.mrf.mxu1  ;;  %v3202_v25 = vpack.c.bf16 %v6497_v11, %v6494_v56  ;;  %v6543_v35 = vld [vmem:[%s8869_s16 + $0xf80] sm:$0xff]  ;;  %v6546_v50 = vld [vmem:[%s8869_s16 + $0xfb0] sm:$0xff] }
 0x21d   : > { %v10588_v62 = vadd.f32 %v7492_v29, %v2423_v47  ;;  %2003 = vrot.lane.b32.xlu1 %v1930_v31, %s8838_s20  ;;  %12586 = vst [vmem:[#allocation12_spill] sm:$0xff] %v10622_v34  ;;  %v6501_v31 = vld [vmem:[%s8869_s16 + $0x1148] sm:$0xff]  ;;  %v6504_v29 = vld [vmem:[%s8869_s16 + $0x1178] sm:$0xff] }
 0x21e   : > { %v7494_v1 = vpop.f32.mrf.mxu0  ;;  %8661 = vmatpush3.bf16.msra.mxu1 %v10566_v46  ;;  %v2426_v22 = vpop.f32.mrf.mxu1 }
 0x21f   : > { %12583 = vst [vmem:[#allocation9_spill] sm:$0xff] %v10588_v62  ;;  %v7495_v4 = vadd.f32 %v7494_v1, %v7493_v23  ;;  %8662 = vmatprep.subr.bf16.mxu1 %v10583_v30  ;;  %v6540_v23 = vld [vmem:[%s8869_s16 + $0xf50] sm:$0xff] }
 0x220   : > { %v7496_v18 = vpop.f32.mrf.mxu0  ;;  %3300 = vmatmul.mubr.bf16.gmra.mxu0 %v3196_v53  ;;  %v10599_v28 = vpop.f32.mrf.mxu1 }
 0x221   : > { %v10597_v38 = vadd.f32 %v7495_v4, %v2426_v22  ;;  %3618 = vmatmul.mubr.bf16.gmra.mxu1 %v3544_v44  ;;  %3307 = vmatprep.mubr.bf16.mxu0 %v3200_v15  ;;  %v6641_v44 = vld [vmem:[%s8874_s19 + $0x708] sm:$0xff]  ;;  %v3206_v4 = vpack.c.bf16 %v6504_v29, %v6501_v31  ;;  %v6542_v31 = vld [vmem:[%s8869_s16 + $0xf78] sm:$0xff] }
 0x222   : > { %v7497_v14 = vpop.f32.mrf.mxu0  ;;  %3625 = vmatprep.mubr.bf16.mxu1 %v3548_v32  ;;  %8663 = vmatpush3.bf16.msra.mxu1 %v10583_v30  ;;  %v2439_v43 = vpop.f32.mrf.mxu1  ;;  %v3550_v32 = vpack.c.bf16 %v6533_v16, %v6530_v39  ;;  %v6509_v16 = vld [vmem:[%s8869_s16 + $0x11d0] sm:$0xff] }
 0x223   : > { %12584 = vst [vmem:[#allocation14_spill] sm:$0xff] %v10597_v38  ;;  %v7498_v7 = vadd.f32 %v7497_v14, %v7496_v18  ;;  %8664 = vmatprep.subr.bf16.mxu1 %v10593_v19  ;;  %v3554_v18 = vpack.c.bf16 %v6540_v23, %v6537_v36  ;;  %v6514_v36 = vld [vmem:[%s8869_s16 + $0xda8] sm:$0xff]  ;;  %v6517_v23 = vld [vmem:[%s8869_s16 + $0xdd8] sm:$0xff] }
 0x224   : > { %v7499_v8 = vpop.f32.mrf.mxu0  ;;  %v10618_v9 = vpop.f32.mrf.mxu1  ;;  %v6625_v38 = vld [vmem:[%s8874_s19 + $0x688] sm:$0xff] }
 0x225   : > { %v10616_v17 = vadd.f32 %v10570_v10, %v7498_v7  ;;  %v6643_v10 = vld [vmem:[%s8874_s19 + $0x718] sm:$0xff] }
 0x226   : > { %v7500_v45 = vpop.f32.mrf.mxu0  ;;  %8665 = vmatpush3.bf16.msra.mxu1 %v10593_v19  ;;  %v2442_v5 = vpop.f32.mrf.mxu1  ;;  %v10642_v53 = vpack.c.bf16 %v6643_v10, %v6642_v59  ;;  %v3557_v59 = vpack.c.bf16 %v6546_v50, %v6543_v35  ;;  %v6622_v50 = vld [vmem:[%s8874_s19 + $0x670] sm:$0xff] }
 0x227   : > { %12585 = vst [vmem:[#allocation15_spill] sm:$0xff] %v10616_v17  ;;  %v7501_v57 = vadd.f32 %v7500_v45, %v7499_v8  ;;  %8666 = vmatprep.subr.bf16.mxu1 %v10611_v49 }
 0x228   : > { %v7502_v12 = vpop.f32.mrf.mxu0  ;;  %3308 = vmatmul.mubr.bf16.gmra.mxu0 %v3199_v20  ;;  %v10628_v41 = vpop.f32.mrf.mxu1  ;;  %12588 = vst [vmem:[#allocation18_spill] sm:$0xff] %v10642_v53 }
 0x229   : > { %v10626_v21 = vadd.f32 %v8517_v54, %v7501_v57  ;;  %3626 = vmatmul.mubr.bf16.gmra.mxu1 %v3547_v3  ;;  %3315 = vmatprep.mubr.bf16.mxu0 %v3203_v37  ;;  %v6640_v54 = vld [vmem:[%s8874_s19 + $0x700] sm:$0xff]  ;;  %v3205_v37 = vpack.c.bf16 %v6503_v26, %v6500_v13 }
 0x22a   : > { %v7503_v63 = vpop.f32.mrf.mxu0  ;;  %3633 = vmatprep.mubr.bf16.mxu1 %v3551_v40  ;;  %8667 = vmatpush3.bf16.msra.mxu1 %v10611_v49  ;;  %v10637_v6 = vpop.f32.mrf.mxu1  ;;  %v10654_v33 = vpack.c.bf16 %v6641_v44, %v6640_v54  ;;  %v6552_v54 = vld [vmem:[%s8869_s16 + $0x1010] sm:$0xff] }
 0x22b   : > { %12587 = vst [vmem:[#allocation13_spill] sm:$0xff] %v10626_v21  ;;  %v7504_v47 = vadd.f32 %v7503_v63, %v7502_v12  ;;  %8668 = vmatprep.subr.bf16.mxu1 %v10622_v34  ;;  %v6506_v63 = vld [vmem:[%s8869_s16 + $0x11a0] sm:$0xff] }
 0x22c   : > { %v7505_v52 = vpop.f32.mrf.mxu0  ;;  %v10648_v1 = vpop.f32.mrf.mxu1  ;;  %12590 = vst [vmem:[#allocation16_spill] sm:$0xff] %v10654_v33  ;;  %v3208_v44 = vpack.c.bf16 %v6509_v16, %v6506_v63  ;;  %v6526_v63 = vld [vmem:[%s8869_s16 + $0xe68] sm:$0xff]  ;;  %v6529_v16 = vld [vmem:[%s8869_s16 + $0xe98] sm:$0xff]  ;;  %v12603_v21 = vld [vmem:[#allocation26_spill] sm:$0xff] }
 0x22d   : > { %v10646_v15 = vadd.f32 %v7504_v47, %v2439_v43  ;;  %v6539_v43 = vld [vmem:[%s8869_s16 + $0xf48] sm:$0xff] }
 0x22e   : > { %v7506_v22 = vpop.f32.mrf.mxu0  ;;  %8669 = vmatpush3.bf16.msra.mxu1 %v10622_v34  ;;  %v10651_v48 = vpop.f32.mrf.mxu1  ;;  %v3553_v57 = vpack.c.bf16 %v6539_v43, %v6536_v27  ;;  %v6545_v47 = vld [vmem:[%s8869_s16 + $0xfa8] sm:$0xff] }
 0x22f   : > { %12589 = vst [vmem:[#allocation19_spill] sm:$0xff] %v10646_v15  ;;  %v7507_v61 = vadd.f32 %v7506_v22, %v7505_v52  ;;  %8670 = vmatprep.subr.bf16.mxu1 %v10642_v53  ;;  %v3556_v22 = vpack.c.bf16 %v6545_v47, %v6542_v31  ;;  %v6611_v15 = vld [vmem:[%s8874_s19 + $0x618] sm:$0xff] }
 0x230   : > { %v7508_v0 = vpop.f32.mrf.mxu0  ;;  %3316 = vmatmul.mubr.bf16.gmra.mxu0 %v3202_v25  ;;  %v10658_v14 = vpop.f32.mrf.mxu1  ;;  %v6549_v25 = vld [vmem:[%s8869_s16 + $0xfe0] sm:$0xff] }
 0x231   : > { %v10656_v55 = vadd.f32 %v7507_v61, %v2442_v5  ;;  %3634 = vmatmul.mubr.bf16.gmra.mxu1 %v3550_v32  ;;  %3323 = vmatprep.mubr.bf16.mxu0 %v3206_v4  ;;  %v3209_v5 = vpack.c.bf16 %v6510_v58, %v6507_v42  ;;  %v6551_v42 = vld [vmem:[%s8869_s16 + $0x1008] sm:$0xff] }
 0x232   : > { %v7509_v7 = vpop.f32.mrf.mxu0  ;;  %3641 = vmatprep.mubr.bf16.mxu1 %v3554_v18  ;;  %8671 = vmatpush3.bf16.msra.mxu1 %v10642_v53  ;;  %v10667_v20 = vpop.f32.mrf.mxu1  ;;  %v3543_v18 = vpack.c.bf16 %v6517_v23, %v6514_v36  ;;  %v6520_v58 = vld [vmem:[%s8869_s16 + $0xe08] sm:$0xff] }
 0x233   : > { %12591 = vst [vmem:[#allocation17_spill] sm:$0xff] %v10656_v55  ;;  %v7510_v8 = vadd.f32 %v7509_v7, %v7508_v0  ;;  %8672 = vmatprep.subr.bf16.mxu1 %v10654_v33  ;;  %v3560_v0 = vpack.c.bf16 %v6552_v54, %v6549_v25  ;;  %v6548_v7 = vld [vmem:[%s8869_s16 + $0xfd8] sm:$0xff]  ;;  %v6620_v54 = vld [vmem:[%s8874_s19 + $0x660] sm:$0xff]  ;;  %v6610_v55 = vld [vmem:[%s8874_s19 + $0x610] sm:$0xff] }
 0x234   : > { %v7511_v3 = vpop.f32.mrf.mxu0  ;;  %v10675_v40 = vpop.f32.mrf.mxu1  ;;  %v3559_v47 = vpack.c.bf16 %v6551_v42, %v6548_v7 }
 0x235   : > { %v10673_v45 = vadd.f32 %v10599_v28, %v7510_v8  ;;  %v6523_v8 = vld [vmem:[%s8869_s16 + $0xe38] sm:$0xff] }
 0x236   : > { %v7512_v12 = vpop.f32.mrf.mxu0  ;;  %8673 = vmatpush3.bf16.msra.mxu1 %v10654_v33  ;;  %v10678_v56 = vpop.f32.mrf.mxu1 }
 0x237   : > { %12592 = vst [vmem:[#allocation22_spill] sm:$0xff] %v10673_v45  ;;  %v7513_v10 = vadd.f32 %v7512_v12, %v7511_v3  ;;  %8014 = vmatprep.subr.bf16.mxu1 %v10549_v2  ;;  %v6623_v3 = vld [vmem:[%s8874_s19 + $0x678] sm:$0xff]  ;;  %v6637_v12 = vld [vmem:[%s8874_s19 + $0x6e8] sm:$0xff]  ;;  %v6624_v45 = vld [vmem:[%s8874_s19 + $0x680] sm:$0xff] }
 0x238   : > { %v7514_v28 = vpop.f32.mrf.mxu0  ;;  %3324 = vmatmul.mubr.bf16.gmra.mxu0 %v3205_v37  ;;  %v10684_v39 = vpop.f32.mrf.mxu1  ;;  %v6555_v37 = vld [vmem:[%s8869_s16 + $0x1040] sm:$0xff]  ;;  %v10727_v36 = vpack.c.bf16 %v6623_v3, %v6622_v50  ;;  %v6618_v3 = vld [vmem:[%s8874_s19 + $0x650] sm:$0xff] }
 0x239   : > { %v10682_v11 = vadd.f32 %v10618_v9, %v7513_v10  ;;  %3642 = vmatmul.mubr.bf16.gmra.mxu1 %v3553_v57  ;;  %3331 = vmatprep.mubr.bf16.mxu0 %v3209_v5 }
 0x23a   : > { %v7515_v29 = vpop.f32.mrf.mxu0  ;;  %3649 = vmatprep.mubr.bf16.mxu1 %v3557_v59  ;;  %v10692_v52 = vpop.f32.mrf.mxu1  ;;  %v6558_v59 = vld [vmem:[%s8869_s16 + $0x1070] sm:$0xff] }
 0x23b   : > { %12593 = vst [vmem:[#allocation23_spill] sm:$0xff] %v10682_v11  ;;  %v7516_v2 = vadd.f32 %v7515_v29, %v7514_v28  ;;  %v3546_v28 = vpack.c.bf16 %v6523_v8, %v6520_v58  ;;  %v3563_v25 = vpack.c.bf16 %v6558_v59, %v6555_v37  ;;  %v6557_v58 = vld [vmem:[%s8869_s16 + $0x1068] sm:$0xff]  ;;  %v6619_v37 = vld [vmem:[%s8874_s19 + $0x658] sm:$0xff]  ;;  %v6564_v59 = vld [vmem:[%s8869_s16 + $0x10d0] sm:$0xff] }
 0x23c   : > { %v7517_v9 = vpop.f32.mrf.mxu0  ;;  %v10699_v4 = vpop.f32.mrf.mxu1  ;;  %v6532_v8 = vld [vmem:[%s8869_s16 + $0xec8] sm:$0xff] }
 0x23d   : > { %v10697_v32 = vadd.f32 %v7516_v2, %v10637_v6 }
 0x23e   : > { %v7518_v61 = vpop.f32.mrf.mxu0  ;;  %v10701_v26 = vpop.f32.mrf.mxu1 }
 0x23f   : > { %12594 = vst [vmem:[#allocation20_spill] sm:$0xff] %v10697_v32  ;;  %v7519_v13 = vadd.f32 %v7518_v61, %v7517_v9  ;;  %v6621_v9 = vld [vmem:[%s8874_s19 + $0x668] sm:$0xff]  ;;  %v6635_v61 = vld [vmem:[%s8874_s19 + $0x6d8] sm:$0xff]  ;;  %v6628_v32 = vld [vmem:[%s8874_s19 + $0x6a0] sm:$0xff] }
 0x240   : > { %v7520_v27 = vpop.f32.mrf.mxu0  ;;  %3332 = vmatmul.mubr.bf16.gmra.mxu0 %v3208_v44  ;;  %v10707_v43 = vpop.f32.mrf.mxu1  ;;  %v10744_v42 = vpack.c.bf16 %v6621_v9, %v6620_v54 }
 0x241   : > { %v10705_v6 = vadd.f32 %v7519_v13, %v10651_v48  ;;  %3650 = vmatmul.mubr.bf16.gmra.mxu1 %v3556_v22  ;;  %8634 = vmatprep.mubr.bf16.mxu0 %v3543_v18  ;;  %v6636_v48 = vld [vmem:[%s8874_s19 + $0x6e0] sm:$0xff]  ;;  %v6634_v18 = vld [vmem:[%s8874_s19 + $0x6d0] sm:$0xff]  ;;  %v6554_v13 = vld [vmem:[%s8869_s16 + $0x1038] sm:$0xff] }
 0x242   : > { %v7521_v35 = vpop.f32.mrf.mxu0  ;;  %3657 = vmatprep.mubr.bf16.mxu1 %v3560_v0  ;;  %v10715_v5 = vpop.f32.mrf.mxu1  ;;  %v10729_v2 = vpack.c.bf16 %v6637_v12, %v6636_v48  ;;  %v3562_v9 = vpack.c.bf16 %v6557_v58, %v6554_v13  ;;  %v6631_v13 = vld [vmem:[%s8874_s19 + $0x6b8] sm:$0xff] }
 0x243   : > { %12595 = vst [vmem:[#allocation21_spill] sm:$0xff] %v10705_v6  ;;  %v7522_v57 = vadd.f32 %v7521_v35, %v7520_v27  ;;  %v6535_v35 = vld [vmem:[%s8869_s16 + $0xef8] sm:$0xff] }
 0x244   : > { %v7523_v10 = vpop.f32.mrf.mxu0  ;;  %v10725_v29 = vpop.f32.mrf.mxu1  ;;  %v6615_v6 = vld [vmem:[%s8874_s19 + $0x638] sm:$0xff] }
 0x245   : > { %v10723_v31 = vadd.f32 %v10628_v41, %v7522_v57  ;;  %v3549_v41 = vpack.c.bf16 %v6529_v16, %v6526_v63  ;;  %v6561_v57 = vld [vmem:[%s8869_s16 + $0x10a0] sm:$0xff]  ;;  %v3552_v16 = vpack.c.bf16 %v6535_v35, %v6532_v8  ;;  %v6617_v8 = vld [vmem:[%s8874_s19 + $0x648] sm:$0xff] }
 0x246   : > { %v7524_v23 = vpop.f32.mrf.mxu0  ;;  %v10733_v22 = vpop.f32.mrf.mxu1 }
 0x247   : > { %12596 = vst [vmem:[#allocation24_spill] sm:$0xff] %v10723_v31  ;;  %v7525_v44 = vadd.f32 %v7524_v23, %v7523_v10  ;;  %v6538_v10 = vld [vmem:[%s8869_s16 + $0xf28] sm:$0xff] }
 0x248   : > { %v7526_v0 = vpop.f32.mrf.mxu0  ;;  %8635 = vmatmul.mubr.bf16.vlgmr.msra.gmra.mxu0 %v3546_v28  ;;  %v10741_v7 = vpop.f32.mrf.mxu1  ;;  %v6541_v28 = vld [vmem:[%s8869_s16 + $0xf58] sm:$0xff]  ;;  %v6633_v23 = vld [vmem:[%s8874_s19 + $0x6c8] sm:$0xff] }
 0x249   : > { %v10739_v27 = vadd.f32 %v10648_v1, %v7525_v44  ;;  %3658 = vmatmul.mubr.bf16.gmra.mxu1 %v3559_v47  ;;  %7907 = vmatpush3.bf16.msra.mxu0 %v10727_v36  ;;  %v10750_v1 = vpack.c.bf16 %v6635_v61, %v6634_v18  ;;  %v6632_v47 = vld [vmem:[%s8874_s19 + $0x6c0] sm:$0xff]  ;;  %v10768_v44 = vpack.c.bf16 %v6619_v37, %v6618_v3  ;;  %v6560_v3 = vld [vmem:[%s8869_s16 + $0x1098] sm:$0xff] }
 0x24a   : > { %v7527_v50 = vpop.f32.mrf.mxu0  ;;  %7908 = vmatprep.subr.bf16.mxu0 %v10729_v2  ;;  %3665 = vmatprep.mubr.bf16.mxu1 %v3563_v25  ;;  %v10755_v12 = vpop.f32.mrf.mxu1  ;;  %v3566_v18 = vpack.c.bf16 %v6564_v59, %v6561_v57  ;;  %v3555_v61 = vpack.c.bf16 %v6541_v28, %v6538_v10  ;;  %v6563_v59 = vld [vmem:[%s8869_s16 + $0x10c8] sm:$0xff]  ;;  %v6547_v28 = vld [vmem:[%s8869_s16 + $0xfb8] sm:$0xff] }
 0x24b   : > { %12597 = vst [vmem:[#allocation25_spill] sm:$0xff] %v10739_v27  ;;  %v7528_v48 = vadd.f32 %v7527_v50, %v7526_v0  ;;  %8638 = vmatprep.mubr.bf16.mxu0 %v3549_v41  ;;  %v6616_v0 = vld [vmem:[%s8874_s19 + $0x640] sm:$0xff]  ;;  %v10775_v50 = vpack.c.bf16 %v6633_v23, %v6632_v47  ;;  %v6544_v10 = vld [vmem:[%s8869_s16 + $0xf88] sm:$0xff]  ;;  %v6553_v23 = vld [vmem:[%s8869_s16 + $0x1018] sm:$0xff] }
 0x24c   : > { %v7529_v63 = vpop.f32.mrf.mxu0  ;;  %v10765_v54 = vpop.f32.mrf.mxu1 }
 0x24d   : > { %v10763_v25 = vadd.f32 %v7528_v48, %v10667_v20  ;;  %7909 = vmatpush3.bf16.msra.mxu0 %v10744_v42  ;;  %v6630_v48 = vld [vmem:[%s8874_s19 + $0x6b0] sm:$0xff] }
 0x24e   : > { %v7530_v41 = vpop.f32.mrf.mxu0  ;;  %7910 = vmatprep.subr.bf16.mxu0 %v10750_v1  ;;  %v10773_v35 = vpop.f32.mrf.mxu1 }
 0x24f   : > { %12598 = vst [vmem:[#allocation43_spill] sm:$0xff] %v10763_v25  ;;  %v7531_v20 = vadd.f32 %v7530_v41, %v7529_v63  ;;  %v10789_v63 = vpack.c.bf16 %v6617_v8, %v6616_v0  ;;  %v10794_v41 = vpack.c.bf16 %v6631_v13, %v6630_v48  ;;  %v6614_v25 = vld [vmem:[%s8874_s19 + $0x630] sm:$0xff]  ;;  %v3558_v8 = vpack.c.bf16 %v6547_v28, %v6544_v10 }
 0x250   : > { %v7532_v58 = vpop.f32.mrf.mxu0  ;;  %8639 = vmatmul.mubr.bf16.gmra.mxu0 %v3552_v16  ;;  %v10783_v57 = vpop.f32.mrf.mxu1  ;;  %v6550_v16 = vld [vmem:[%s8869_s16 + $0xfe8] sm:$0xff]  ;;  %v3565_v13 = vpack.c.bf16 %v6563_v59, %v6560_v3  ;;  %v10811_v10 = vpack.c.bf16 %v6615_v6, %v6614_v25 }
 0x251   : > { %v10781_v37 = vadd.f32 %v7531_v20, %v10678_v56  ;;  %3666 = vmatmul.mubr.bf16.gmra.mxu1 %v3562_v9  ;;  %7911 = vmatpush3.bf16.msra.mxu0 %v10768_v44  ;;  %v6567_v56 = vld [vmem:[%s8869_s16 + $0x1100] sm:$0xff]  ;;  %v6613_v3 = vld [vmem:[%s8874_s19 + $0x628] sm:$0xff] }
 0x252   : > { %v7533_v47 = vpop.f32.mrf.mxu0  ;;  %3673 = vmatprep.mubr.bf16.mxu1 %v3566_v18  ;;  %8642 = vmatprep.mubr.bf16.mxu0 %v3555_v61  ;;  %v10796_v20 = vpop.f32.mrf.mxu1  ;;  %v6629_v18 = vld [vmem:[%s8874_s19 + $0x6a8] sm:$0xff] }
 0x253   : > { %12599 = vst [vmem:[#allocation4_spill] sm:$0xff] %v10781_v37  ;;  %v7534_v9 = vadd.f32 %v7533_v47, %v7532_v58  ;;  %7912 = vmatprep.subr.bf16.mxu0 %v10775_v50  ;;  %v6570_v37 = vld [vmem:[%s8869_s16 + $0x1130] sm:$0xff]  ;;  %v3561_v58 = vpack.c.bf16 %v6553_v23, %v6550_v16  ;;  %v6627_v16 = vld [vmem:[%s8874_s19 + $0x698] sm:$0xff]  ;;  %v6556_v23 = vld [vmem:[%s8869_s16 + $0x1048] sm:$0xff] }
 0x254   : > { %v7535_v0 = vpop.f32.mrf.mxu0  ;;  %v10807_v48 = vpop.f32.mrf.mxu1  ;;  %v3569_v27 = vpack.c.bf16 %v6570_v37, %v6567_v56  ;;  %v6566_v37 = vld [vmem:[%s8869_s16 + $0x10f8] sm:$0xff]  ;;  %v6626_v56 = vld [vmem:[%s8874_s19 + $0x690] sm:$0xff] }
 0x255   : > { %v10805_v61 = vadd.f32 %v10658_v14, %v7534_v9  ;;  %7913 = vmatpush3.bf16.msra.mxu0 %v10789_v63  ;;  %v10815_v9 = vpack.c.bf16 %v6629_v18, %v6628_v32  ;;  %v6569_v32 = vld [vmem:[%s8869_s16 + $0x1128] sm:$0xff] }
 0x256   : > { %v7536_v47 = vpop.f32.mrf.mxu0  ;;  %7914 = vmatprep.subr.bf16.mxu0 %v10794_v41  ;;  %v10813_v14 = vpop.f32.mrf.mxu1 }
 0x257   : > { %12600 = vst [vmem:[#allocation45_spill] sm:$0xff] %v10805_v61  ;;  %v7537_v28 = vadd.f32 %v7536_v47, %v7535_v0  ;;  %v6612_v61 = vld [vmem:[%s8874_s19 + $0x620] sm:$0xff]  ;;  %v6559_v0 = vld [vmem:[%s8869_s16 + $0x1078] sm:$0xff]  ;;  %v6562_v47 = vld [vmem:[%s8869_s16 + $0x10a8] sm:$0xff] }
 0x258   : > { %v7538_v59 = vpop.f32.mrf.mxu0  ;;  %8643 = vmatmul.mubr.bf16.gmra.mxu0 %v3558_v8  ;;  %v10825_v25 = vpop.f32.mrf.mxu1  ;;  %v6573_v8 = vld [vmem:[%s8869_s16 + $0x1160] sm:$0xff]  ;;  %v3564_v11 = vpack.c.bf16 %v6559_v0, %v6556_v23  ;;  %v10854_v23 = vpack.c.bf16 %v6611_v15, %v6610_v55 }
 0x259   : > { %v10823_v6 = vadd.f32 %v10675_v40, %v7537_v28  ;;  %3674 = vmatmul.mubr.bf16.gmra.mxu1 %v3565_v13  ;;  %8646 = vmatprep.mubr.bf16.mxu0 %v3561_v58  ;;  %v6565_v40 = vld [vmem:[%s8869_s16 + $0x10d8] sm:$0xff]  ;;  %v10834_v28 = vpack.c.bf16 %v6613_v3, %v6612_v61  ;;  %v6576_v13 = vld [vmem:[%s8869_s16 + $0x1190] sm:$0xff]  ;;  %v10840_v58 = vpack.c.bf16 %v6627_v16, %v6626_v56 }
 0x25a   : > { %v7539_v18 = vpop.f32.mrf.mxu0  ;;  %3681 = vmatprep.mubr.bf16.mxu1 %v3569_v27  ;;  %7915 = vmatpush3.bf16.msra.mxu0 %v10811_v10  ;;  %v10836_v31 = vpop.f32.mrf.mxu1  ;;  %v3572_v17 = vpack.c.bf16 %v6576_v13, %v6573_v8  ;;  %12604 = vst [vmem:[#allocation29_spill] sm:$0xff] %v10854_v23 }
 0x25b   : > { %12601 = vst [vmem:[#allocation27_spill] sm:$0xff] %v10823_v6  ;;  %v7540_v6 = vadd.f32 %v7539_v18, %v7538_v59  ;;  %7916 = vmatprep.subr.bf16.mxu0 %v10815_v9  ;;  %v3568_v59 = vpack.c.bf16 %v6569_v32, %v6566_v37  ;;  %v3567_v18 = vpack.c.bf16 %v6565_v40, %v6562_v47  ;;  %v6608_v32 = vld [vmem:[%s8874_s19 + $0x600] sm:$0xff]  ;;  %v6572_v47 = vld [vmem:[%s8869_s16 + $0x1158] sm:$0xff]  ;;  %v12607_v40 = vld [vmem:[#allocation28_spill] sm:$0xff] }
 0x25c   : > { %v7541_v27 = vpop.f32.mrf.mxu0  ;;  %v10849_v61 = vpop.f32.mrf.mxu1  ;;  %v10860_v37 = vpack.c.bf16 %v6625_v38, %v6624_v45  ;;  %v6568_v38 = vld [vmem:[%s8869_s16 + $0x1108] sm:$0xff]  ;;  %v6571_v45 = vld [vmem:[%s8869_s16 + $0x1138] sm:$0xff] }
 0x25d   : > { %v10847_v62 = vadd.f32 %v7540_v6, %v10692_v52  ;;  %v1962_v3 = vpop.permute.xlu0 %1961 }
 0x25e   : > { %v2031_v56 = vsel %vm1078_vm0, %v12603_v21, %v1962_v3  ;;  %v7542_v16 = vpop.f32.mrf.mxu0  ;;  %7917 = vmatpush3.bf16.msra.mxu0 %v10834_v28  ;;  %v10857_v6 = vpop.f32.mrf.mxu1  ;;  %12605 = vst [vmem:[#allocation31_spill] sm:$0xff] %v10860_v37  ;;  %v6609_v21 = vld [vmem:[%s8874_s19 + $0x608] sm:$0xff] }
 0x25f   : > { %12602 = vst [vmem:[#allocation5_spill] sm:$0xff] %v10847_v62  ;;  %6154 = vst [vmem:[%s10229_s24 + $0xd0] sm:$0xff] %v2031_v56  ;;  %v7543_v52 = vadd.f32 %v7542_v16, %v7541_v27  ;;  %7918 = vmatprep.subr.bf16.mxu0 %v10840_v58  ;;  %v6574_v3 = vld [vmem:[%s8869_s16 + $0x1168] sm:$0xff]  ;;  %v6577_v56 = vld [vmem:[%s8869_s16 + $0x1198] sm:$0xff] }
 0x260   : > { %v7544_v0 = vpop.f32.mrf.mxu0  ;;  %8647 = vmatmul.mubr.bf16.gmra.mxu0 %v3564_v11  ;;  %v10867_v55 = vpop.f32.mrf.mxu1  ;;  %v6579_v62 = vld [vmem:[%s8869_s16 + $0x11c0] sm:$0xff] }
 0x261   : > { %v10865_v15 = vadd.f32 %v7543_v52, %v10701_v26  ;;  %3682 = vmatmul.mubr.bf16.gmra.mxu1 %v3568_v59  ;;  %v1964_v8 = vpop.permute.xlu1 %1963  ;;  %8650 = vmatprep.mubr.bf16.mxu0 %v3567_v18  ;;  %v1958_v11 = vpop.permute.xlu0 %1957  ;;  %v6575_v26 = vld [vmem:[%s8869_s16 + $0x1188] sm:$0xff]  ;;  %v10878_v59 = vpack.c.bf16 %v6609_v21, %v6608_v32  ;;  %v12609_v18 = vld [vmem:[#allocation6_spill] sm:$0xff] }
 0x262   : > { %v2032_v13 = vsel %vm1078_vm0, %v12607_v40, %v1964_v8  ;;  %v7545_v27 = vpop.f32.mrf.mxu0  ;;  %3689 = vmatprep.mubr.bf16.mxu1 %v3572_v17  ;;  %7919 = vmatpush3.bf16.msra.mxu0 %v10854_v23  ;;  %v2029_v16 = vsel %vm1078_vm0, %v12609_v18, %v1958_v11  ;;  %v6582_v8 = vld [vmem:[%s8869_s16 + $0x11f0] sm:$0xff]  ;;  %v3570_v40 = vpack.c.bf16 %v6571_v45, %v6568_v38  ;;  %v12612_v38 = vld [vmem:[#allocation33_spill] sm:$0xff] }
 0x263   : > { %12606 = vst [vmem:[#allocation26_spill] sm:$0xff] %v10865_v15  ;;  %12608 = vst [vmem:[#allocation28_spill] sm:$0xff] %v10878_v59  ;;  %v7546_v52 = vadd.f32 %v7545_v27, %v7544_v0  ;;  %v10883_v15 = vpop.f32.mrf.mxu1  ;;  %7920 = vmatprep.subr.bf16.mxu0 %v10860_v37  ;;  %v3573_v11 = vpack.c.bf16 %v6577_v56, %v6574_v3  ;;  %v12611_v0 = vld [vmem:[#allocation8_spill] sm:$0xff]  ;;  %v3575_v34 = vpack.c.bf16 %v6582_v8, %v6579_v62  ;;  %v6580_v56 = vld [vmem:[%s8869_s16 + $0x11c8] sm:$0xff] }
 0x264   : > { %6155 = vst [vmem:[%s10229_s24 + $0xd8] sm:$0xff] %v2032_v13  ;;  %6152 = vst [vmem:[%s10229_s24 + $0xc0] sm:$0xff] %v2029_v16  ;;  %v7547_v17 = vpop.f32.mrf.mxu0  ;;  %v3571_v13 = vpack.c.bf16 %v6575_v26, %v6572_v47  ;;  %v12614_v8 = vld [vmem:[#allocation34_spill] sm:$0xff]  ;;  %v12617_v37 = vld [vmem:[#allocation32_spill] sm:$0xff] }
 0x265   : > { %v10890_v33 = vadd.f32 %v10684_v39, %v7546_v52  ;;  %v10892_v32 = vpop.f32.mrf.mxu1  ;;  %v1960_v21 = vpop.permute.xlu1 %1959  ;;  %v6583_v52 = vld [vmem:[%s8869_s16 + $0x11f8] sm:$0xff] }
 0x266   : > { %v2030_v27 = vsel %vm1078_vm0, %v12611_v0, %v1960_v21  ;;  %v1970_v18 = vpop.permute.xlu0 %1969  ;;  %v7548_v53 = vpop.f32.mrf.mxu0  ;;  %7921 = vmatpush3.bf16.msra.mxu0 %v10878_v59  ;;  %v6581_v0 = vld [vmem:[%s8869_s16 + $0x11e8] sm:$0xff] }
 0x267   : > { %12610 = vst [vmem:[#allocation6_spill] sm:$0xff] %v10890_v33  ;;  %6153 = vst [vmem:[%s10229_s24 + $0xc8] sm:$0xff] %v2030_v27  ;;  %v2035_v39 = vsel %vm1078_vm0, %v12612_v38, %v1970_v18  ;;  %v7549_v45 = vadd.f32 %v7548_v53, %v7547_v17  ;;  %v10900_v16 = vpop.f32.mrf.mxu1  ;;  %8698 = vmatprep.subr.bf16.mxu0 %v10519_v24  ;;  %v6578_v53 = vld [vmem:[%s8869_s16 + $0x11b8] sm:$0xff]  ;;  %v12615_v18 = vld [vmem:[#allocation30_spill] sm:$0xff] }
 0x268   : > { %6158 = vst [vmem:[%s10229_s24 + $0xf0] sm:$0xff] %v2035_v39  ;;  %v7550_v47 = vpop.f32.mrf.mxu0  ;;  %8651 = vmatmul.mubr.bf16.gmra.mxu0 %v3570_v40  ;;  %v6660_v27 = vld [vmem:[%s8869_s16 + $0x1238] sm:$0xff]  ;;  %v6658_v39 = vld [vmem:[%s8869_s16 + $0x1210] sm:$0xff] }
 0x269   : > { %v10905_v62 = vadd.f32 %v10699_v4, %v7549_v45  ;;  %v10907_v26 = vpop.f32.mrf.mxu1  ;;  %3690 = vmatmul.mubr.bf16.gmra.mxu1 %v3571_v13  ;;  %v1972_v3 = vpop.permute.xlu1 %1971  ;;  %8654 = vmatprep.mubr.bf16.mxu0 %v3573_v11  ;;  %v6657_v4 = vld [vmem:[%s8869_s16 + $0x1208] sm:$0xff]  ;;  %v6661_v45 = vld [vmem:[%s8869_s16 + $0x1240] sm:$0xff] }
 0x26a   : > { %v2036_v17 = vsel %vm1078_vm0, %v12614_v8, %v1972_v3  ;;  %v1966_v21 = vpop.permute.xlu0 %1965  ;;  %v7551_v40 = vpop.f32.mrf.mxu0  ;;  %3697 = vmatprep.mubr.bf16.mxu1 %v3575_v34  ;;  %v3576_v3 = vpack.c.bf16 %v6583_v52, %v6580_v56  ;;  %v4127_v59 = vpack.c.bf16 %v6660_v27, %v6657_v4  ;;  %v6659_v4 = vld [vmem:[%s8869_s16 + $0x1230] sm:$0xff]  ;;  %v12620_v27 = vld [vmem:[#allocation38_spill] sm:$0xff] }
 0x26b   : > { %12613 = vst [vmem:[#allocation8_spill] sm:$0xff] %v10905_v62  ;;  %6159 = vst [vmem:[%s10229_s24 + $0xf8] sm:$0xff] %v2036_v17  ;;  %v2033_v13 = vsel %vm1078_vm0, %v12615_v18, %v1966_v21  ;;  %v7552_v38 = vadd.f32 %v7551_v40, %v7550_v47  ;;  %v10920_v11 = vpop.f32.mrf.mxu1  ;;  %v3574_v17 = vpack.c.bf16 %v6581_v0, %v6578_v53 }
 0x26c   : > { %6156 = vst [vmem:[%s10229_s24 + $0xe0] sm:$0xff] %v2033_v13  ;;  %v7553_v62 = vpop.f32.mrf.mxu0  ;;  %v4128_v18 = vpack.c.bf16 %v6661_v45, %v6658_v39  ;;  %v12618_v13 = vld [vmem:[#allocation37_spill] sm:$0xff] }
 0x26d   : > { %v10926_v8 = vadd.f32 %v7552_v38, %v10715_v5  ;;  %v10928_v34 = vpop.f32.mrf.mxu1  ;;  %v1968_v33 = vpop.permute.xlu1 %1967 }
 0x26e   : > { %v2034_v47 = vsel %vm1078_vm0, %v12617_v37, %v1968_v33  ;;  %v1978_v21 = vpop.permute.xlu0 %1977  ;;  %v7554_v40 = vpop.f32.mrf.mxu0 }
 0x26f   : > { %12616 = vst [vmem:[#allocation33_spill] sm:$0xff] %v10926_v8  ;;  %6157 = vst [vmem:[%s10229_s24 + $0xe8] sm:$0xff] %v2034_v47  ;;  %v2039_v56 = vsel %vm1078_vm0, %v12618_v13, %v1978_v21  ;;  %v7555_v52 = vadd.f32 %v7554_v40, %v7553_v62  ;;  %v10935_v5 = vpop.f32.mrf.mxu1  ;;  %v6656_v62 = vld [vmem:[%s8869_s16 + $0x1200] sm:$0xff]  ;;  %v12621_v47 = vld [vmem:[#allocation35_spill] sm:$0xff] }
 0x270   : > { %6162 = vst [vmem:[%s10229_s24 + $0x110] sm:$0xff] %v2039_v56  ;;  %v7556_v53 = vpop.f32.mrf.mxu0  ;;  %8655 = vmatmul.mubr.bf16.gmra.mxu0 %v3576_v3  ;;  %v6667_v3 = vld [vmem:[%s8869_s16 + $0x12a0] sm:$0xff]  ;;  %v6666_v13 = vld [vmem:[%s8869_s16 + $0x1298] sm:$0xff] }
 0x271   : > { %v10939_v33 = vadd.f32 %v7555_v52, %v10733_v22  ;;  %v10941_v37 = vpop.f32.mrf.mxu1  ;;  %3698 = vmatmul.mubr.bf16.gmra.mxu1 %v3574_v17  ;;  %v1980_v0 = vpop.permute.xlu1 %1979  ;;  %4194 = vmatprep.mubr.bf16.mxu0 %v4127_v59  ;;  %v6664_v22 = vld [vmem:[%s8869_s16 + $0x1270] sm:$0xff]  ;;  %v6663_v59 = vld [vmem:[%s8869_s16 + $0x1268] sm:$0xff]  ;;  %v4126_v52 = vpack.c.bf16 %v6659_v4, %v6656_v62  ;;  %v7606_v62 = vadd.f32 %v10796_v20, %v10783_v57  ;;  %v12623_v4 = vld [vmem:[#allocation41_spill] sm:$0xff] }
 0x272   : > { %v2040_v38 = vsel %vm1078_vm0, %v12620_v27, %v1980_v0  ;;  %v1974_v39 = vpop.permute.xlu0 %1973  ;;  %v7557_v45 = vpop.f32.mrf.mxu0  ;;  %8674 = vmatprep.mubr.bf16.mxu1 %v4128_v18  ;;  %v6670_v0 = vld [vmem:[%s8869_s16 + $0x12d0] sm:$0xff]  ;;  %v6673_v27 = vld [vmem:[%s8869_s16 + $0x1300] sm:$0xff]  ;;  %v4131_v8 = vpack.c.bf16 %v6667_v3, %v6664_v22  ;;  %v4130_v23 = vpack.c.bf16 %v6666_v13, %v6663_v59 }
 0x273   : > { %12619 = vst [vmem:[#allocation34_spill] sm:$0xff] %v10939_v33  ;;  %6163 = vst [vmem:[%s10229_s24 + $0x118] sm:$0xff] %v2040_v38  ;;  %v2037_v17 = vsel %vm1078_vm0, %v12621_v47, %v1974_v39  ;;  %v7558_v21 = vadd.f32 %v7557_v45, %v7556_v53  ;;  %v10952_v40 = vpop.f32.mrf.mxu1  ;;  %v12622_v39 = vld [vmem:[#allocation36_spill] sm:$0xff]  ;;  %v4134_v22 = vpack.c.bf16 %v6673_v27, %v6670_v0  ;;  %v12624_v27 = vld [vmem:[#allocation42_spill] sm:$0xff] }
 0x274   : > { %6160 = vst [vmem:[%s10229_s24 + $0x100] sm:$0xff] %v2037_v17  ;;  %v7559_v56 = vpop.f32.mrf.mxu0  ;;  %v6676_v0 = vld [vmem:[%s8869_s16 + $0x1330] sm:$0xff] }
 0x275   : > { %v10960_v18 = vadd.f32 %v10707_v43, %v7558_v21  ;;  %v10962_v33 = vpop.f32.mrf.mxu1  ;;  %v1976_v38 = vpop.permute.xlu1 %1975 }
 0x276   : > { %v2038_v53 = vsel %vm1078_vm0, %v12622_v39, %v1976_v38  ;;  %v1986_v45 = vpop.permute.xlu0 %1985  ;;  %v7560_v47 = vpop.f32.mrf.mxu0  ;;  %v6665_v38 = vld [vmem:[%s8869_s16 + $0x1290] sm:$0xff] }
 0x277   : > { %6161 = vst [vmem:[%s10229_s24 + $0x108] sm:$0xff] %v2038_v53  ;;  %v2043_v43 = vsel %vm1078_vm0, %v12623_v4, %v1986_v45  ;;  %v7561_v17 = vadd.f32 %v7560_v47, %v7559_v56  ;;  %v10971_v21 = vpop.f32.mrf.mxu1  ;;  %v6662_v56 = vld [vmem:[%s8869_s16 + $0x1260] sm:$0xff]  ;;  %v6672_v45 = vld [vmem:[%s8869_s16 + $0x12f8] sm:$0xff]  ;;  %v7609_v47 = vadd.f32 %v10813_v14, %v10807_v48 }
 0x278   : > { %6166 = vst [vmem:[%s10229_s24 + $0x130] sm:$0xff] %v2043_v43  ;;  %v8556_v3 = vpop.f32.mrf.mxu0  ;;  %4195 = vmatmul.mubr.bf16.vlgmr.msra.gmra.mxu0 %v4126_v52  ;;  %v6679_v53 = vld [vmem:[%s8869_s16 + $0x1360] sm:$0xff] }
 0x279   : > { %v10975_v59 = vadd.f32 %v10725_v29, %v7561_v17  ;;  %v10977_v57 = vpop.f32.mrf.mxu1  ;;  %v2798_v20 = vadd.f32 %v8556_v3, %v7606_v62  ;;  %8675 = vmatmul.mubr.bf16.vlgmr.msra.gmra.mxu1 %v4131_v8  ;;  %8699 = vmatpush3.bf16.msra.mxu0 %v10519_v24  ;;  %v1988_v13 = vpop.permute.xlu1 %1987  ;;  %v6669_v8 = vld [vmem:[%s8869_s16 + $0x12c8] sm:$0xff]  ;;  %v7600_v24 = vadd.f32 %v10755_v12, %v10741_v7 }
 0x27a   : > { %v2044_v52 = vsel %vm1078_vm0, %v12624_v27, %v1988_v13  ;;  %v1982_v39 = vpop.permute.xlu0 %1981  ;;  %v2789_v29 = vpop.f32.mrf.mxu0  ;;  %8015 = vmatpush3.bf16.msra.mxu1 %v10727_v36  ;;  %4202 = vmatprep.mubr.bf16.mxu0 %v4130_v23  ;;  %v12625_v62 = vld [vmem:[#allocation39_spill] sm:$0xff]  ;;  %v6682_v36 = vld [vmem:[%s8869_s16 + $0x1390] sm:$0xff]  ;;  %v6685_v23 = vld [vmem:[%s8869_s16 + $0x13c0] sm:$0xff]  ;;  %v4129_v3 = vpack.c.bf16 %v6665_v38, %v6662_v56  ;;  %v4137_v13 = vpack.c.bf16 %v6679_v53, %v6676_v0 }
 0x27b   : > { %6167 = vst [vmem:[%s10229_s24 + $0x138] sm:$0xff] %v2044_v52  ;;  %v2041_v4 = vsel %vm1078_vm0, %v12625_v62, %v1982_v39  ;;  %v10996_v43 = vpop.f32.mrf.mxu1  ;;  %2912 = vrot.lane.b32.xlu0 %v2798_v20, %s8838_s20  ;;  %8678 = vmatprep.mubr.bf16.mxu1 %v4134_v22  ;;  %v2790_v7 = vadd.f32 %v7600_v24, %v2789_v29  ;;  %v12626_v20 = vld [vmem:[#allocation40_spill] sm:$0xff]  ;;  %v6668_v53 = vld [vmem:[%s8869_s16 + $0x12c0] sm:$0xff] }
 0x27c   : > { %6164 = vst [vmem:[%s10229_s24 + $0x120] sm:$0xff] %v2041_v4  ;;  %v8557_v17 = vpop.f32.mrf.mxu0  ;;  %8016 = vmatprep.subr.bf16.mxu1 %v10729_v2  ;;  %8700 = vmatprep.subr.bf16.mxu0 %v10566_v46  ;;  %v4133_v22 = vpack.c.bf16 %v6672_v45, %v6669_v8  ;;  %v4140_v2 = vpack.c.bf16 %v6685_v23, %v6682_v36  ;;  %v6671_v8 = vld [vmem:[%s8869_s16 + $0x12f0] sm:$0xff]  ;;  %v12628_v24 = vld [vmem:[#allocation10_spill] sm:$0xff]  ;;  %v6675_v36 = vld [vmem:[%s8869_s16 + $0x1328] sm:$0xff] }
 0x27d   : > { %v11004_v12 = vpop.f32.mrf.mxu1  ;;  %v2801_v48 = vadd.f32 %v8557_v17, %v7609_v47  ;;  %v1984_v14 = vpop.permute.xlu1 %1983  ;;  %8701 = vmatpush3.bf16.msra.mxu0 %v10566_v46  ;;  %v7603_v38 = vadd.f32 %v10773_v35, %v10765_v54  ;;  %v7618_v0 = vadd.f32 %v10883_v15, %v10867_v55  ;;  %v12627_v46 = vld [vmem:[#allocation3_spill] sm:$0xff]  ;;  %v6688_v45 = vld [vmem:[%s8869_s16 + $0x13f0] sm:$0xff]  ;;  %v6691_v4 = vld [vmem:[%s8869_s16 + $0x1420] sm:$0xff]  ;;  %v7612_v17 = vadd.f32 %v10836_v31, %v10825_v25 }
 0x27e   : > { %v2042_v27 = vsel %vm1078_vm0, %v12626_v20, %v1984_v14  ;;  %v1994_v52 = vpop.permute.xlu0 %1993  ;;  %v2792_v56 = vpop.f32.mrf.mxu0  ;;  %8017 = vmatpush3.bf16.msra.mxu1 %v10744_v42  ;;  %8702 = vmatprep.subr.bf16.mxu0 %v10583_v30  ;;  %v6678_v23 = vld [vmem:[%s8869_s16 + $0x1358] sm:$0xff]  ;;  %v4132_v20 = vpack.c.bf16 %v6671_v8, %v6668_v53  ;;  %v6703_v53 = vld [vmem:[%s8869_s16 + $0x14e0] sm:$0xff] }
 0x27f   : > { %6165 = vst [vmem:[%s10229_s24 + $0x128] sm:$0xff] %v2042_v27  ;;  %v2047_v39 = vsel %vm1078_vm0, %v12627_v46, %v1994_v52  ;;  %v11018_v29 = vpop.f32.mrf.mxu1  ;;  %2914 = vrot.lane.b32.xlu1 %v2801_v48, %s8838_s20  ;;  %2908 = vrot.lane.b32.xlu0 %v2790_v7, %s8838_s20  ;;  %v2793_v54 = vadd.f32 %v7603_v38, %v2792_v56  ;;  %v12629_v7 = vld [vmem:[#allocation44_spill] sm:$0xff]  ;;  %v12630_v56 = vld [vmem:[#allocation2_spill] sm:$0xff] }
 0x280   : > { %6170 = vst [vmem:[%s10229_s24 + $0x150] sm:$0xff] %v2047_v39  ;;  %v8560_v42 = vpop.f32.mrf.mxu0  ;;  %4203 = vmatmul.mubr.bf16.gmra.mxu0 %v4129_v3  ;;  %8018 = vmatprep.subr.bf16.mxu1 %v10750_v1  ;;  %v7621_v3 = vadd.f32 %v10900_v16, %v10892_v32  ;;  %v4143_v27 = vpack.c.bf16 %v6691_v4, %v6688_v45  ;;  %v6681_v45 = vld [vmem:[%s8869_s16 + $0x1388] sm:$0xff]  ;;  %v6706_v4 = vld [vmem:[%s8869_s16 + $0x1510] sm:$0xff] }
 0x281   : > { %v11024_v35 = vpop.f32.mrf.mxu1  ;;  %v2814_v15 = vadd.f32 %v8560_v42, %v7618_v0  ;;  %8679 = vmatmul.mubr.bf16.gmra.mxu1 %v4137_v13  ;;  %v1996_v55 = vpop.permute.xlu1 %1995  ;;  %4210 = vmatprep.mubr.bf16.mxu0 %v4133_v22  ;;  %v6697_v13 = vld [vmem:[%s8869_s16 + $0x1480] sm:$0xff]  ;;  %v4136_v52 = vpack.c.bf16 %v6678_v23, %v6675_v36  ;;  %v7630_v0 = vadd.f32 %v10952_v40, %v10941_v37  ;;  %v12631_v42 = vld [vmem:[#allocation11_spill] sm:$0xff] }
 0x282   : > { %v2048_v47 = vsel %vm1078_vm0, %v12628_v24, %v1996_v55  ;;  %v1990_v62 = vpop.permute.xlu0 %1989  ;;  %v2805_v1 = vpop.f32.mrf.mxu0  ;;  %8682 = vmatprep.mubr.bf16.mxu1 %v4140_v2  ;;  %8019 = vmatpush3.bf16.msra.mxu1 %v10768_v44  ;;  %v6694_v44 = vld [vmem:[%s8869_s16 + $0x1450] sm:$0xff]  ;;  %v6684_v24 = vld [vmem:[%s8869_s16 + $0x13b8] sm:$0xff]  ;;  %v6709_v36 = vld [vmem:[%s8869_s16 + $0x1540] sm:$0xff] }
 0x283   : > { %6171 = vst [vmem:[%s10229_s24 + $0x158] sm:$0xff] %v2048_v47  ;;  %v2045_v48 = vsel %vm1078_vm0, %v12629_v7, %v1990_v62  ;;  %v11042_v14 = vpop.f32.mrf.mxu1  ;;  %2910 = vrot.lane.b32.xlu1 %v2793_v54, %s8838_s20  ;;  %2920 = vrot.lane.b32.xlu0 %v2814_v15, %s8838_s20  ;;  %v2806_v31 = vadd.f32 %v7612_v17, %v2805_v1  ;;  %v6677_v15 = vld [vmem:[%s8869_s16 + $0x1350] sm:$0xff] }
 0x284   : > { %6168 = vst [vmem:[%s10229_s24 + $0x140] sm:$0xff] %v2045_v48  ;;  %v8561_v22 = vpop.f32.mrf.mxu0  ;;  %8020 = vmatprep.subr.bf16.mxu1 %v10775_v50  ;;  %8703 = vmatpush3.bf16.msra.mxu0 %v10583_v30  ;;  %v4146_v50 = vpack.c.bf16 %v6697_v13, %v6694_v44  ;;  %v7615_v30 = vadd.f32 %v10857_v6, %v10849_v61  ;;  %v6674_v61 = vld [vmem:[%s8869_s16 + $0x1320] sm:$0xff]  ;;  %v6700_v55 = vld [vmem:[%s8869_s16 + $0x14b0] sm:$0xff] }
 0x285   : > { %v11051_v25 = vpop.f32.mrf.mxu1  ;;  %v2817_v32 = vadd.f32 %v8561_v22, %v7621_v3  ;;  %v1992_v16 = vpop.permute.xlu1 %1991  ;;  %8704 = vmatprep.subr.bf16.mxu0 %v10593_v19  ;;  %v7633_v47 = vadd.f32 %v10971_v21, %v10962_v33  ;;  %v4139_v44 = vpack.c.bf16 %v6684_v24, %v6681_v45  ;;  %v4152_v22 = vpack.c.bf16 %v6709_v36, %v6706_v4  ;;  %v6724_v36 = vld [vmem:[%s8869_s16 + $0x1630] sm:$0xff] }
 0x286   : > { %v2046_v2 = vsel %vm1078_vm0, %v12630_v56, %v1992_v16  ;;  %v2808_v38 = vpop.f32.mrf.mxu0  ;;  %8021 = vmatpush3.bf16.msra.mxu1 %v10789_v63  ;;  %v6712_v16 = vld [vmem:[%s8869_s16 + $0x1570] sm:$0xff]  ;;  %v6715_v56 = vld [vmem:[%s8869_s16 + $0x15a0] sm:$0xff]  ;;  %v7639_v45 = vadd.f32 %v11018_v29, %v11004_v12 }
 0x287   : > { %6169 = vst [vmem:[%s10229_s24 + $0x148] sm:$0xff] %v2046_v2  ;;  %v11062_v46 = vpop.f32.mrf.mxu1  ;;  %2922 = vrot.lane.b32.xlu1 %v2817_v32, %s8838_s20  ;;  %2916 = vrot.lane.b32.xlu0 %v2806_v31, %s8838_s20  ;;  %v1998_v39 = vpop.permute.xlu0 %1997  ;;  %v2809_v6 = vadd.f32 %v7615_v30, %v2808_v38  ;;  %v6687_v2 = vld [vmem:[%s8869_s16 + $0x13e8] sm:$0xff] }
 0x288   : > { %v2049_v63 = vsel %vm1078_vm0, %v12631_v42, %v1998_v39  ;;  %v8564_v54 = vpop.f32.mrf.mxu0  ;;  %4211 = vmatmul.mubr.bf16.gmra.mxu0 %v4132_v20  ;;  %8022 = vmatprep.subr.bf16.mxu1 %v10794_v41  ;;  %v7624_v41 = vadd.f32 %v10920_v11, %v10907_v26  ;;  %v4135_v26 = vpack.c.bf16 %v6677_v15, %v6674_v61  ;;  %v6690_v38 = vld [vmem:[%s8869_s16 + $0x1418] sm:$0xff]  ;;  %v6718_v39 = vld [vmem:[%s8869_s16 + $0x15d0] sm:$0xff]  ;;  %v6721_v42 = vld [vmem:[%s8869_s16 + $0x1600] sm:$0xff] }
 0x289   : > { %6172 = vst [vmem:[%s10229_s24 + $0x160] sm:$0xff] %v2049_v63  ;;  %v11071_v37 = vpop.f32.mrf.mxu1  ;;  %v2830_v40 = vadd.f32 %v8564_v54, %v7630_v0  ;;  %8683 = vmatmul.mubr.bf16.gmra.mxu1 %v4143_v27  ;;  %4218 = vmatprep.mubr.bf16.mxu0 %v4136_v52  ;;  %v4149_v11 = vpack.c.bf16 %v6703_v53, %v6700_v55  ;;  %v6870_v27 = vld [vmem:[%s8874_s19 + $0x8f0] sm:$0xff]  ;;  %v12634_v61 = vld [vmem:[#allocation31_spill] sm:$0xff]  ;;  %v6686_v12 = vld [vmem:[%s8869_s16 + $0x13e0] sm:$0xff] }
 0x28a   : > { %v2821_v8 = vpop.f32.mrf.mxu0  ;;  %8686 = vmatprep.mubr.bf16.mxu1 %v4146_v50  ;;  %8023 = vmatpush3.bf16.msra.mxu1 %v10811_v10  ;;  %v12632_v10 = vld [vmem:[#allocation7_spill] sm:$0xff]  ;;  %v12633_v50 = vld [vmem:[#allocation29_spill] sm:$0xff]  ;;  %v7645_v30 = vadd.f32 %v11062_v46, %v11051_v25  ;;  %v4155_v15 = vpack.c.bf16 %v6715_v56, %v6712_v16  ;;  %v4142_v25 = vpack.c.bf16 %v6690_v38, %v6687_v2  ;;  %v12635_v46 = vld [vmem:[#allocation12_spill] sm:$0xff] }
 0x28b   : > { %v11083_v62 = vpop.f32.mrf.mxu1  ;;  %2918 = vrot.lane.b32.xlu1 %v2809_v6, %s8838_s20  ;;  %v2000_v1 = vpop.permute.xlu1 %1999  ;;  %2928 = vrot.lane.b32.xlu0 %v2830_v40, %s8838_s20  ;;  %v2822_v33 = vadd.f32 %v7624_v41, %v2821_v8  ;;  %v4158_v53 = vpack.c.bf16 %v6721_v42, %v6718_v39  ;;  %v12636_v8 = vld [vmem:[#allocation28_spill] sm:$0xff]  ;;  %v6728_v38 = vld [vmem:[%s8869_s16 + $0x1218] sm:$0xff] }
 0x28c   : > { %v2050_v23 = vsel %vm1078_vm0, %v12632_v10, %v2000_v1  ;;  %v2002_v17 = vpop.permute.xlu0 %2001  ;;  %v8565_v3 = vpop.f32.mrf.mxu0  ;;  %8024 = vmatprep.subr.bf16.mxu1 %v10815_v9  ;;  %8705 = vmatpush3.bf16.msra.mxu0 %v10593_v19  ;;  %v7627_v19 = vadd.f32 %v10935_v5, %v10928_v34  ;;  %v6680_v34 = vld [vmem:[%s8869_s16 + $0x1380] sm:$0xff]  ;;  %v6683_v5 = vld [vmem:[%s8869_s16 + $0x13b0] sm:$0xff] }
 0x28d   : > { %6173 = vst [vmem:[%s10229_s24 + $0x168] sm:$0xff] %v2050_v23  ;;  %v2051_v21 = vsel %vm1078_vm0, %v10346_v51, %v2002_v17  ;;  %v11096_v7 = vpop.f32.mrf.mxu1  ;;  %v2833_v48 = vadd.f32 %v8565_v3, %v7633_v47  ;;  %8706 = vmatprep.subr.bf16.mxu0 %v10611_v49  ;;  %v7642_v51 = vadd.f32 %v11042_v14, %v11024_v35  ;;  %v6689_v29 = vld [vmem:[%s8869_s16 + $0x1410] sm:$0xff]  ;;  %v6727_v23 = vld [vmem:[%s8869_s16 + $0x1660] sm:$0xff]  ;;  %v6693_v17 = vld [vmem:[%s8869_s16 + $0x1448] sm:$0xff] }
 0x28e   : > { %6174 = vst [vmem:[%s10229_s24 + $0x170] sm:$0xff] %v2051_v21  ;;  %v2824_v13 = vpop.f32.mrf.mxu0  ;;  %8025 = vmatpush3.bf16.msra.mxu1 %v10834_v28  ;;  %v4138_v54 = vpack.c.bf16 %v6683_v5, %v6680_v34  ;;  %v6696_v3 = vld [vmem:[%s8869_s16 + $0x1478] sm:$0xff]  ;;  %v6729_v21 = vld [vmem:[%s8869_s16 + $0x1220] sm:$0xff]  ;;  %v4161_v34 = vpack.c.bf16 %v6727_v23, %v6724_v36 }
 0x28f   : > { %v11105_v9 = vpop.f32.mrf.mxu1  ;;  %2930 = vrot.lane.b32.xlu1 %v2833_v48, %s8838_s20  ;;  %v2004_v20 = vpop.permute.xlu1 %2003  ;;  %2924 = vrot.lane.b32.xlu0 %v2822_v33, %s8838_s20  ;;  %v2825_v35 = vadd.f32 %v7627_v19, %v2824_v13  ;;  %v6732_v48 = vld [vmem:[%s8869_s16 + $0x1250] sm:$0xff]  ;;  %v4141_v13 = vpack.c.bf16 %v6689_v29, %v6686_v12  ;;  %v4145_v5 = vpack.c.bf16 %v6696_v3, %v6693_v17  ;;  %v6867_v12 = vld [vmem:[%s8874_s19 + $0x8d8] sm:$0xff] }
 0x290   : > { %v2052_v31 = vsel %vm1078_vm0, %v10361_v60, %v2004_v20  ;;  %v8568_v28 = vpop.f32.mrf.mxu0  ;;  %4219 = vmatmul.mubr.bf16.gmra.mxu0 %v4135_v26  ;;  %8026 = vmatprep.subr.bf16.mxu1 %v10840_v58  ;;  %v6871_v60 = vld [vmem:[%s8874_s19 + $0x8f8] sm:$0xff]  ;;  %v7636_v58 = vadd.f32 %v10996_v43, %v10977_v57  ;;  %v7648_v26 = vadd.f32 %v11083_v62, %v11071_v37  ;;  %v6854_v19 = vld [vmem:[%s8874_s19 + $0x870] sm:$0xff]  ;;  %v6698_v36 = vld [vmem:[%s8869_s16 + $0x14a0] sm:$0xff] }
 0x291   : > { %6175 = vst [vmem:[%s10229_s24 + $0x178] sm:$0xff] %v2052_v31  ;;  %v7652_v14 = vpop.f32.mrf.mxu1  ;;  %v2846_v32 = vadd.f32 %v8568_v28, %v7642_v51  ;;  %8687 = vmatmul.mubr.bf16.gmra.mxu1 %v4149_v11  ;;  %4226 = vmatprep.mubr.bf16.mxu0 %v4139_v44  ;;  %v11132_v6 = vpack.c.bf16 %v6871_v60, %v6870_v27  ;;  %v6855_v51 = vld [vmem:[%s8874_s19 + $0x878] sm:$0xff]  ;;  %v12638_v27 = vld [vmem:[#allocation16_spill] sm:$0xff]  ;;  %v6737_v3 = vld [vmem:[%s8869_s16 + $0x12a8] sm:$0xff] }
 0x292   : > { %v2837_v52 = vpop.f32.mrf.mxu0  ;;  %8690 = vmatprep.mubr.bf16.mxu1 %v4152_v22  ;;  %8027 = vmatpush3.bf16.msra.mxu1 %v12633_v50  ;;  %v12637_v22 = vld [vmem:[#allocation18_spill] sm:$0xff]  ;;  %v4493_v62 = vpack.c.bf16 %v6732_v48, %v6729_v21  ;;  %v6731_v50 = vld [vmem:[%s8869_s16 + $0x1248] sm:$0xff]  ;;  %v6734_v23 = vld [vmem:[%s8869_s16 + $0x1278] sm:$0xff] }
 0x293   : > { %v7653_v0 = vpop.f32.mrf.mxu1  ;;  %2926 = vrot.lane.b32.xlu1 %v2825_v35, %s8838_s20  ;;  %2936 = vrot.lane.b32.xlu0 %v2846_v32, %s8838_s20  ;;  %v2838_v40 = vadd.f32 %v7636_v58, %v2837_v52  ;;  %v7651_v35 = vadd.f32 %v11105_v9, %v11096_v7  ;;  %v11162_v32 = vpack.c.bf16 %v6855_v51, %v6854_v19  ;;  %v6692_v7 = vld [vmem:[%s8869_s16 + $0x1440] sm:$0xff]  ;;  %v6695_v9 = vld [vmem:[%s8869_s16 + $0x1470] sm:$0xff] }
 0x294   : > { %v8569_v63 = vpop.f32.mrf.mxu0  ;;  %8028 = vmatprep.subr.bf16.mxu1 %v12634_v61  ;;  %8707 = vmatpush3.bf16.msra.mxu0 %v10611_v49  ;;  %v7654_v49 = vadd.f32 %v7653_v0, %v7652_v14  ;;  %v6699_v0 = vld [vmem:[%s8869_s16 + $0x14a8] sm:$0xff]  ;;  %v6735_v61 = vld [vmem:[%s8869_s16 + $0x1280] sm:$0xff] }
 0x295   : > { %v7655_v57 = vpop.f32.mrf.mxu1  ;;  %v2849_v43 = vadd.f32 %v8569_v63, %v7645_v30  ;;  %8708 = vmatprep.subr.bf16.mxu0 %v12635_v46  ;;  %v4144_v63 = vpack.c.bf16 %v6695_v9, %v6692_v7 }
 0x296   : > { %v2840_v55 = vpop.f32.mrf.mxu0  ;;  %8029 = vmatpush3.bf16.msra.mxu1 %v12636_v8 }
 0x297   : > { %v7656_v24 = vpop.f32.mrf.mxu1  ;;  %2938 = vrot.lane.b32.xlu1 %v2849_v43, %s8838_s20  ;;  %2932 = vrot.lane.b32.xlu0 %v2838_v40, %s8838_s20  ;;  %v2841_v47 = vadd.f32 %v7639_v45, %v2840_v55  ;;  %v6738_v40 = vld [vmem:[%s8869_s16 + $0x12b0] sm:$0xff] }
 0x298   : > { %v8572_v41 = vpop.f32.mrf.mxu0  ;;  %4227 = vmatmul.mubr.bf16.gmra.mxu0 %v4138_v54  ;;  %8738 = vmatprep.subr.bf16.mxu1 %v11132_v6  ;;  %v7657_v11 = vadd.f32 %v7656_v24, %v7655_v57  ;;  %v6702_v54 = vld [vmem:[%s8869_s16 + $0x14d8] sm:$0xff] }
 0x299   : > { %v7658_v1 = vpop.f32.mrf.mxu1  ;;  %v2862_v4 = vadd.f32 %v8572_v41, %v7654_v49  ;;  %8691 = vmatmul.mubr.bf16.gmra.mxu1 %v4155_v15  ;;  %4234 = vmatprep.mubr.bf16.mxu0 %v4142_v25  ;;  %v4492_v15 = vpack.c.bf16 %v6731_v50, %v6728_v38  ;;  %v6868_v25 = vld [vmem:[%s8874_s19 + $0x8e0] sm:$0xff]  ;;  %v4148_v45 = vpack.c.bf16 %v6702_v54, %v6699_v0  ;;  %v6707_v38 = vld [vmem:[%s8869_s16 + $0x1530] sm:$0xff]  ;;  %v6740_v50 = vld [vmem:[%s8869_s16 + $0x12d8] sm:$0xff] }
 0x29a   : > { %v2853_v10 = vpop.f32.mrf.mxu0  ;;  %8694 = vmatprep.mubr.bf16.mxu1 %v4158_v53  ;;  %8709 = vmatpush3.bf16.msra.mxu0 %v12635_v46  ;;  %v6869_v46 = vld [vmem:[%s8874_s19 + $0x8e8] sm:$0xff]  ;;  %v4496_v49 = vpack.c.bf16 %v6738_v40, %v6735_v61  ;;  %v6747_v54 = vld [vmem:[%s8869_s16 + $0x1340] sm:$0xff]  ;;  %v6750_v61 = vld [vmem:[%s8869_s16 + $0x1370] sm:$0xff] }
 0x29b   : > { %v7659_v33 = vpop.f32.mrf.mxu1  ;;  %2934 = vrot.lane.b32.xlu1 %v2841_v47, %s8838_s20  ;;  %2944 = vrot.lane.b32.xlu0 %v2862_v4, %s8838_s20  ;;  %v2854_v20 = vadd.f32 %v7648_v26, %v2853_v10  ;;  %v6866_v4 = vld [vmem:[%s8874_s19 + $0x8d0] sm:$0xff]  ;;  %v6705_v26 = vld [vmem:[%s8869_s16 + $0x1508] sm:$0xff] }
 0x29c   : > { %v8573_v44 = vpop.f32.mrf.mxu0  ;;  %8710 = vmatprep.subr.bf16.mxu0 %v12637_v22  ;;  %v7660_v60 = vadd.f32 %v7659_v33, %v7658_v1  ;;  %v11179_v1 = vpack.c.bf16 %v6869_v46, %v6868_v25  ;;  %v6701_v10 = vld [vmem:[%s8869_s16 + $0x14d0] sm:$0xff]  ;;  %v6711_v0 = vld [vmem:[%s8869_s16 + $0x1568] sm:$0xff] }
 0x29d   : > { %v7661_v31 = vpop.f32.mrf.mxu1  ;;  %v2865_v28 = vadd.f32 %v8573_v44, %v7657_v11  ;;  %v6708_v11 = vld [vmem:[%s8869_s16 + $0x1538] sm:$0xff]  ;;  %v6741_v44 = vld [vmem:[%s8869_s16 + $0x12e0] sm:$0xff]  ;;  %v4147_v51 = vpack.c.bf16 %v6701_v10, %v6698_v36  ;;  %v6861_v25 = vld [vmem:[%s8874_s19 + $0x8a8] sm:$0xff] }
 0x29e   : > { %v2856_v37 = vpop.f32.mrf.mxu0  ;;  %8711 = vmatpush3.bf16.msra.mxu0 %v12637_v22  ;;  %v11196_v22 = vpack.c.bf16 %v6867_v12, %v6866_v4  ;;  %v6858_v12 = vld [vmem:[%s8874_s19 + $0x890] sm:$0xff] }
 0x29f   : > { %v7662_v14 = vpop.f32.mrf.mxu1  ;;  %2946 = vrot.lane.b32.xlu1 %v2865_v28, %s8838_s20  ;;  %2940 = vrot.lane.b32.xlu0 %v2854_v20, %s8838_s20  ;;  %v2857_v52 = vadd.f32 %v7651_v35, %v2856_v37  ;;  %v6864_v20 = vld [vmem:[%s8874_s19 + $0x8c0] sm:$0xff]  ;;  %v4151_v37 = vpack.c.bf16 %v6708_v11, %v6705_v26  ;;  %v6749_v11 = vld [vmem:[%s8869_s16 + $0x1368] sm:$0xff] }
 0x2a0   : > { %v8576_v16 = vpop.f32.mrf.mxu0  ;;  %4235 = vmatmul.mubr.bf16.gmra.mxu0 %v4141_v13  ;;  %8712 = vmatprep.subr.bf16.mxu0 %v12638_v27  ;;  %v7663_v57 = vadd.f32 %v7662_v14, %v7661_v31  ;;  %v6744_v13 = vld [vmem:[%s8869_s16 + $0x1310] sm:$0xff]  ;;  %v6865_v31 = vld [vmem:[%s8874_s19 + $0x8c8] sm:$0xff] }
 0x2a1   : > { %v7664_v56 = vpop.f32.mrf.mxu1  ;;  %8695 = vmatmul.mubr.bf16.gmra.mxu1 %v4161_v34  ;;  %4242 = vmatprep.mubr.bf16.mxu0 %v4145_v5  ;;  %v4495_v5 = vpack.c.bf16 %v6737_v3, %v6734_v23  ;;  %v4499_v35 = vpack.c.bf16 %v6744_v13, %v6741_v44  ;;  %v6710_v23 = vld [vmem:[%s8869_s16 + $0x1560] sm:$0xff]  ;;  %v6746_v3 = vld [vmem:[%s8869_s16 + $0x1338] sm:$0xff] }
 0x2a2   : > { %v2869_v2 = vpop.f32.mrf.mxu0  ;;  %4560 = vmatprep.mubr.bf16.mxu1 %v4493_v62  ;;  %8713 = vmatpush3.bf16.msra.mxu0 %v12638_v27  ;;  %v11206_v27 = vpack.c.bf16 %v6865_v31, %v6864_v20  ;;  %v6753_v13 = vld [vmem:[%s8869_s16 + $0x13a0] sm:$0xff] }
 0x2a3   : > { %v7665_v58 = vpop.f32.mrf.mxu1  ;;  %v2870_v30 = vadd.f32 %v7660_v60, %v2869_v2  ;;  %2942 = vrot.lane.b32.xlu1 %v2857_v52, %s8838_s20  ;;  %8122 = vmatprep.subr.bf16.mxu0 %v11162_v32  ;;  %v6862_v52 = vld [vmem:[%s8874_s19 + $0x8b0] sm:$0xff]  ;;  %v6704_v2 = vld [vmem:[%s8869_s16 + $0x1500] sm:$0xff] }
 0x2a4   : > { %v7666_v39 = vadd.f32 %v7665_v58, %v7664_v56  ;;  %v8577_v42 = vpop.f32.mrf.mxu0  ;;  %v6863_v56 = vld [vmem:[%s8874_s19 + $0x8b8] sm:$0xff] }
 0x2a5   : > { %v7667_v43 = vpop.f32.mrf.mxu1  ;;  %2948 = vrot.lane.b32.xlu0 %v2870_v30, %s8838_s20  ;;  %v6743_v30 = vld [vmem:[%s8869_s16 + $0x1308] sm:$0xff]  ;;  %v11224_v40 = vpack.c.bf16 %v6863_v56, %v6862_v52 }
 0x2a6   : > { %v2872_v55 = vpop.f32.mrf.mxu0  ;;  %v2878_v24 = vadd.f32 %v8576_v16, %v7666_v39  ;;  %v6714_v39 = vld [vmem:[%s8869_s16 + $0x1598] sm:$0xff] }
 0x2a7   : > { %v7668_v53 = vpop.f32.mrf.mxu1  ;;  %v2873_v8 = vadd.f32 %v7663_v57, %v2872_v55 }
 0x2a8   : > { %v7669_v41 = vadd.f32 %v7668_v53, %v7667_v43  ;;  %v7706_v47 = vpop.f32.mrf.mxu0  ;;  %4243 = vmatmul.mubr.bf16.gmra.mxu0 %v4144_v63  ;;  %v4150_v43 = vpack.c.bf16 %v6707_v38, %v6704_v2  ;;  %v4498_v53 = vpack.c.bf16 %v6743_v30, %v6740_v50  ;;  %v6716_v30 = vld [vmem:[%s8869_s16 + $0x15c0] sm:$0xff] }
 0x2a9   : > { %v11183_v29 = vpop.f32.mrf.mxu1  ;;  %4561 = vmatmul.mubr.bf16.vlgmr.msra.gmra.mxu1 %v4492_v15  ;;  %2950 = vrot.lane.b32.xlu1 %v2873_v8, %s8838_s20  ;;  %v6860_v15 = vld [vmem:[%s8874_s19 + $0x8a0] sm:$0xff]  ;;  %v4154_v8 = vpack.c.bf16 %v6714_v39, %v6711_v0  ;;  %v6719_v0 = vld [vmem:[%s8869_s16 + $0x15f0] sm:$0xff]  ;;  %v6752_v39 = vld [vmem:[%s8869_s16 + $0x1398] sm:$0xff] }
 0x2aa   : > { %2952 = vrot.lane.b32.xlu0 %v2878_v24, %s8838_s20  ;;  %v7707_v17 = vpop.f32.mrf.mxu0  ;;  %8739 = vmatpush3.bf16.msra.mxu1 %v11132_v6  ;;  %v2881_v33 = vadd.f32 %v8577_v42, %v7669_v41 }
 0x2ab   : > { %v7708_v21 = vadd.f32 %v7707_v17, %v7706_v47  ;;  %v3374_v48 = vpop.f32.mrf.mxu1  ;;  %4250 = vmatprep.mubr.bf16.mxu0 %v4148_v45  ;;  %4568 = vmatprep.mubr.bf16.mxu1 %v4496_v49  ;;  %v4502_v49 = vpack.c.bf16 %v6750_v61, %v6747_v54  ;;  %v11235_v47 = vpack.c.bf16 %v6861_v25, %v6860_v15  ;;  %v6713_v17 = vld [vmem:[%s8869_s16 + $0x1590] sm:$0xff]  ;;  %v6723_v54 = vld [vmem:[%s8869_s16 + $0x1628] sm:$0xff]  ;;  %v6726_v61 = vld [vmem:[%s8869_s16 + $0x1658] sm:$0xff] }
 0x2ac   : > { %v7709_v19 = vpop.f32.mrf.mxu0  ;;  %8740 = vmatprep.subr.bf16.mxu1 %v11179_v1  ;;  %v4153_v31 = vpack.c.bf16 %v6713_v17, %v6710_v23  ;;  %v6759_v15 = vld [vmem:[%s8869_s16 + $0x1400] sm:$0xff]  ;;  %v6762_v25 = vld [vmem:[%s8869_s16 + $0x1430] sm:$0xff] }
 0x2ad   : > { %v11201_v28 = vadd.f32 %v7708_v21, %v3374_v48  ;;  %v8597_v34 = vpop.f32.mrf.mxu1  ;;  %2954 = vrot.lane.b32.xlu1 %v2881_v33, %s8838_s20  ;;  %12642 = vst [vmem:[#allocation38_spill] sm:$0xff] %v11235_v47  ;;  %v6717_v33 = vld [vmem:[%s8869_s16 + $0x15c8] sm:$0xff]  ;;  %v6720_v21 = vld [vmem:[%s8869_s16 + $0x15f8] sm:$0xff] }
 0x2ae   : > { %v7710_v62 = vpop.f32.mrf.mxu0  ;;  %8741 = vmatpush3.bf16.msra.mxu1 %v11179_v1 }
 0x2af   : > { %12639 = vst [vmem:[#allocation30_spill] sm:$0xff] %v11201_v28  ;;  %v7711_v14 = vadd.f32 %v7710_v62, %v7709_v19  ;;  %v3377_v16 = vpop.f32.mrf.mxu1  ;;  %8742 = vmatprep.subr.bf16.mxu1 %v11196_v22  ;;  %v6756_v19 = vld [vmem:[%s8869_s16 + $0x13d0] sm:$0xff] }
 0x2b0   : > { %v7712_v60 = vpop.f32.mrf.mxu0  ;;  %4251 = vmatmul.mubr.bf16.gmra.mxu0 %v4147_v51 }
 0x2b1   : > { %v11210_v7 = vadd.f32 %v7711_v14, %v3377_v16  ;;  %v11212_v9 = vpop.f32.mrf.mxu1  ;;  %4569 = vmatmul.mubr.bf16.gmra.mxu1 %v4495_v5  ;;  %4258 = vmatprep.mubr.bf16.mxu0 %v4151_v37  ;;  %v6857_v5 = vld [vmem:[%s8874_s19 + $0x888] sm:$0xff]  ;;  %v4157_v14 = vpack.c.bf16 %v6720_v21, %v6717_v33  ;;  %v6758_v33 = vld [vmem:[%s8869_s16 + $0x13f8] sm:$0xff] }
 0x2b2   : > { %v7713_v58 = vpop.f32.mrf.mxu0  ;;  %4576 = vmatprep.mubr.bf16.mxu1 %v4499_v35  ;;  %8743 = vmatpush3.bf16.msra.mxu1 %v11196_v22  ;;  %v4501_v35 = vpack.c.bf16 %v6749_v11, %v6746_v3  ;;  %v6725_v11 = vld [vmem:[%s8869_s16 + $0x1650] sm:$0xff] }
 0x2b3   : > { %12640 = vst [vmem:[#allocation32_spill] sm:$0xff] %v11210_v7  ;;  %v7714_v42 = vadd.f32 %v7713_v58, %v7712_v60  ;;  %v3390_v63 = vpop.f32.mrf.mxu1  ;;  %8744 = vmatprep.subr.bf16.mxu1 %v11206_v27  ;;  %v4505_v60 = vpack.c.bf16 %v6756_v19, %v6753_v13  ;;  %v6730_v13 = vld [vmem:[%s8869_s16 + $0x1228] sm:$0xff]  ;;  %v6733_v19 = vld [vmem:[%s8869_s16 + $0x1258] sm:$0xff] }
 0x2b4   : > { %v7715_v57 = vpop.f32.mrf.mxu0  ;;  %v6841_v7 = vld [vmem:[%s8874_s19 + $0x808] sm:$0xff] }
 0x2b5   : > { %v11229_v46 = vadd.f32 %v11183_v29, %v7714_v42  ;;  %v11231_v55 = vpop.f32.mrf.mxu1  ;;  %v6859_v29 = vld [vmem:[%s8874_s19 + $0x898] sm:$0xff] }
 0x2b6   : > { %v7716_v45 = vpop.f32.mrf.mxu0  ;;  %8745 = vmatpush3.bf16.msra.mxu1 %v11206_v27  ;;  %v11255_v51 = vpack.c.bf16 %v6859_v29, %v6858_v12  ;;  %v4508_v12 = vpack.c.bf16 %v6762_v25, %v6759_v15  ;;  %v6838_v25 = vld [vmem:[%s8874_s19 + $0x7f0] sm:$0xff] }
 0x2b7   : > { %12641 = vst [vmem:[#allocation37_spill] sm:$0xff] %v11229_v46  ;;  %v7717_v24 = vadd.f32 %v7716_v45, %v7715_v57  ;;  %v3393_v41 = vpop.f32.mrf.mxu1  ;;  %8746 = vmatprep.subr.bf16.mxu1 %v11224_v40 }
 0x2b8   : > { %v7718_v4 = vpop.f32.mrf.mxu0  ;;  %4259 = vmatmul.mubr.bf16.gmra.mxu0 %v4150_v43  ;;  %12644 = vst [vmem:[#allocation36_spill] sm:$0xff] %v11255_v51 }
 0x2b9   : > { %v11239_v36 = vadd.f32 %v8597_v34, %v7717_v24  ;;  %v11241_v10 = vpop.f32.mrf.mxu1  ;;  %4577 = vmatmul.mubr.bf16.gmra.mxu1 %v4498_v53  ;;  %4266 = vmatprep.mubr.bf16.mxu0 %v4154_v8  ;;  %v6856_v34 = vld [vmem:[%s8874_s19 + $0x880] sm:$0xff]  ;;  %v4156_v8 = vpack.c.bf16 %v6719_v0, %v6716_v30 }
 0x2ba   : > { %v7719_v26 = vpop.f32.mrf.mxu0  ;;  %4584 = vmatprep.mubr.bf16.mxu1 %v4502_v49  ;;  %8747 = vmatpush3.bf16.msra.mxu1 %v11224_v40  ;;  %v11267_v2 = vpack.c.bf16 %v6857_v5, %v6856_v34  ;;  %v6768_v34 = vld [vmem:[%s8869_s16 + $0x1490] sm:$0xff] }
 0x2bb   : > { %12643 = vst [vmem:[#allocation35_spill] sm:$0xff] %v11239_v36  ;;  %v7720_v48 = vadd.f32 %v7719_v26, %v7718_v4  ;;  %v11250_v44 = vpop.f32.mrf.mxu1  ;;  %8748 = vmatprep.subr.bf16.mxu1 %v11235_v47  ;;  %v6722_v26 = vld [vmem:[%s8869_s16 + $0x1620] sm:$0xff]  ;;  %v12659_v36 = vld [vmem:[#allocation15_spill] sm:$0xff] }
 0x2bc   : > { %v7721_v20 = vpop.f32.mrf.mxu0  ;;  %12646 = vst [vmem:[#allocation42_spill] sm:$0xff] %v11267_v2  ;;  %v4159_v5 = vpack.c.bf16 %v6725_v11, %v6722_v26  ;;  %v6742_v26 = vld [vmem:[%s8869_s16 + $0x12e8] sm:$0xff]  ;;  %v6745_v11 = vld [vmem:[%s8869_s16 + $0x1318] sm:$0xff] }
 0x2bd   : > { %v11259_v37 = vadd.f32 %v7720_v48, %v3390_v63  ;;  %v11261_v62 = vpop.f32.mrf.mxu1  ;;  %v6755_v63 = vld [vmem:[%s8869_s16 + $0x13c8] sm:$0xff] }
 0x2be   : > { %v7722_v16 = vpop.f32.mrf.mxu0  ;;  %8749 = vmatpush3.bf16.msra.mxu1 %v11235_v47  ;;  %v4504_v24 = vpack.c.bf16 %v6755_v63, %v6752_v39  ;;  %v6761_v48 = vld [vmem:[%s8869_s16 + $0x1428] sm:$0xff] }
 0x2bf   : > { %12645 = vst [vmem:[#allocation41_spill] sm:$0xff] %v11259_v37  ;;  %v7723_v52 = vadd.f32 %v7722_v16, %v7721_v20  ;;  %v11264_v56 = vpop.f32.mrf.mxu1  ;;  %8750 = vmatprep.subr.bf16.mxu1 %v11255_v51  ;;  %v4507_v16 = vpack.c.bf16 %v6761_v48, %v6758_v33  ;;  %v6827_v37 = vld [vmem:[%s8874_s19 + $0x798] sm:$0xff] }
 0x2c0   : > { %v7724_v38 = vpop.f32.mrf.mxu0  ;;  %4267 = vmatmul.mubr.bf16.gmra.mxu0 %v4153_v31  ;;  %v6765_v31 = vld [vmem:[%s8869_s16 + $0x1460] sm:$0xff] }
 0x2c1   : > { %v11269_v50 = vadd.f32 %v7723_v52, %v3393_v41  ;;  %v11271_v58 = vpop.f32.mrf.mxu1  ;;  %4585 = vmatmul.mubr.bf16.gmra.mxu1 %v4501_v35  ;;  %4274 = vmatprep.mubr.bf16.mxu0 %v4157_v14  ;;  %v4160_v41 = vpack.c.bf16 %v6726_v61, %v6723_v54  ;;  %v6767_v54 = vld [vmem:[%s8869_s16 + $0x1488] sm:$0xff] }
 0x2c2   : > { %v7725_v42 = vpop.f32.mrf.mxu0  ;;  %4592 = vmatprep.mubr.bf16.mxu1 %v4505_v60  ;;  %8751 = vmatpush3.bf16.msra.mxu1 %v11255_v51  ;;  %v4494_v60 = vpack.c.bf16 %v6733_v19, %v6730_v13  ;;  %v6736_v61 = vld [vmem:[%s8869_s16 + $0x1288] sm:$0xff] }
 0x2c3   : > { %12647 = vst [vmem:[#allocation39_spill] sm:$0xff] %v11269_v50  ;;  %v7726_v57 = vadd.f32 %v7725_v42, %v7724_v38  ;;  %v11280_v43 = vpop.f32.mrf.mxu1  ;;  %8752 = vmatprep.subr.bf16.mxu1 %v11267_v2  ;;  %v4511_v38 = vpack.c.bf16 %v6768_v34, %v6765_v31  ;;  %v6764_v42 = vld [vmem:[%s8869_s16 + $0x1458] sm:$0xff]  ;;  %v6836_v34 = vld [vmem:[%s8874_s19 + $0x7e0] sm:$0xff]  ;;  %v6826_v50 = vld [vmem:[%s8874_s19 + $0x790] sm:$0xff] }
 0x2c4   : > { %v7727_v53 = vpop.f32.mrf.mxu0  ;;  %v4510_v48 = vpack.c.bf16 %v6767_v54, %v6764_v42 }
 0x2c5   : > { %v11286_v45 = vadd.f32 %v11212_v9, %v7726_v57  ;;  %v11288_v49 = vpop.f32.mrf.mxu1  ;;  %v6739_v57 = vld [vmem:[%s8869_s16 + $0x12b8] sm:$0xff] }
 0x2c6   : > { %v7728_v4 = vpop.f32.mrf.mxu0  ;;  %8753 = vmatpush3.bf16.msra.mxu1 %v11267_v2 }
 0x2c7   : > { %12648 = vst [vmem:[#allocation40_spill] sm:$0xff] %v11286_v45  ;;  %v7729_v29 = vadd.f32 %v7728_v4, %v7727_v53  ;;  %v11291_v23 = vpop.f32.mrf.mxu1  ;;  %8230 = vmatprep.subr.bf16.mxu1 %v11162_v32  ;;  %v6839_v53 = vld [vmem:[%s8874_s19 + $0x7f8] sm:$0xff]  ;;  %v6853_v4 = vld [vmem:[%s8874_s19 + $0x868] sm:$0xff]  ;;  %v6840_v45 = vld [vmem:[%s8874_s19 + $0x800] sm:$0xff] }
 0x2c8   : > { %v7730_v9 = vpop.f32.mrf.mxu0  ;;  %4275 = vmatmul.mubr.bf16.gmra.mxu0 %v4156_v8  ;;  %v6771_v8 = vld [vmem:[%s8869_s16 + $0x14c0] sm:$0xff]  ;;  %v11340_v13 = vpack.c.bf16 %v6839_v53, %v6838_v25  ;;  %v6834_v53 = vld [vmem:[%s8874_s19 + $0x7d0] sm:$0xff] }
 0x2c9   : > { %v11295_v17 = vadd.f32 %v11231_v55, %v7729_v29  ;;  %v11297_v3 = vpop.f32.mrf.mxu1  ;;  %4593 = vmatmul.mubr.bf16.gmra.mxu1 %v4504_v24  ;;  %4282 = vmatprep.mubr.bf16.mxu0 %v4160_v41 }
 0x2ca   : > { %v7731_v21 = vpop.f32.mrf.mxu0  ;;  %4600 = vmatprep.mubr.bf16.mxu1 %v4508_v12  ;;  %v6774_v12 = vld [vmem:[%s8869_s16 + $0x14f0] sm:$0xff] }
 0x2cb   : > { %12649 = vst [vmem:[#allocation3_spill] sm:$0xff] %v11295_v17  ;;  %v7732_v32 = vadd.f32 %v7731_v21, %v7730_v9  ;;  %v11305_v20 = vpop.f32.mrf.mxu1  ;;  %v4497_v9 = vpack.c.bf16 %v6739_v57, %v6736_v61  ;;  %v4514_v31 = vpack.c.bf16 %v6774_v12, %v6771_v8  ;;  %v6773_v61 = vld [vmem:[%s8869_s16 + $0x14e8] sm:$0xff]  ;;  %v6835_v8 = vld [vmem:[%s8874_s19 + $0x7d8] sm:$0xff]  ;;  %v6780_v12 = vld [vmem:[%s8869_s16 + $0x1550] sm:$0xff] }
 0x2cc   : > { %v7733_v55 = vpop.f32.mrf.mxu0  ;;  %v6748_v57 = vld [vmem:[%s8869_s16 + $0x1348] sm:$0xff] }
 0x2cd   : > { %v11310_v35 = vadd.f32 %v7732_v32, %v11250_v44  ;;  %v11312_v14 = vpop.f32.mrf.mxu1 }
 0x2ce   : > { %v7734_v52 = vpop.f32.mrf.mxu0 }
 0x2cf   : > { %12650 = vst [vmem:[#allocation10_spill] sm:$0xff] %v11310_v35  ;;  %v7735_v30 = vadd.f32 %v7734_v52, %v7733_v55  ;;  %v11314_v0 = vpop.f32.mrf.mxu1  ;;  %v6837_v55 = vld [vmem:[%s8874_s19 + $0x7e8] sm:$0xff]  ;;  %v6851_v52 = vld [vmem:[%s8874_s19 + $0x858] sm:$0xff]  ;;  %v6844_v35 = vld [vmem:[%s8874_s19 + $0x820] sm:$0xff] }
 0x2d0   : > { %v7736_v39 = vpop.f32.mrf.mxu0  ;;  %4283 = vmatmul.mubr.bf16.gmra.mxu0 %v4159_v5  ;;  %v11357_v54 = vpack.c.bf16 %v6837_v55, %v6836_v34 }
 0x2d1   : > { %v11318_v44 = vadd.f32 %v7735_v30, %v11264_v56  ;;  %v11320_v63 = vpop.f32.mrf.mxu1  ;;  %4601 = vmatmul.mubr.bf16.gmra.mxu1 %v4507_v16  ;;  %8714 = vmatprep.mubr.bf16.mxu0 %v4494_v60  ;;  %v6852_v56 = vld [vmem:[%s8874_s19 + $0x860] sm:$0xff]  ;;  %v6850_v60 = vld [vmem:[%s8874_s19 + $0x850] sm:$0xff]  ;;  %v6770_v30 = vld [vmem:[%s8869_s16 + $0x14b8] sm:$0xff] }
 0x2d2   : > { %v7737_v15 = vpop.f32.mrf.mxu0  ;;  %4608 = vmatprep.mubr.bf16.mxu1 %v4511_v38  ;;  %v11342_v32 = vpack.c.bf16 %v6853_v4, %v6852_v56  ;;  %v4513_v55 = vpack.c.bf16 %v6773_v61, %v6770_v30  ;;  %v6847_v30 = vld [vmem:[%s8874_s19 + $0x838] sm:$0xff] }
 0x2d3   : > { %12651 = vst [vmem:[#allocation44_spill] sm:$0xff] %v11318_v44  ;;  %v7738_v24 = vadd.f32 %v7737_v15, %v7736_v39  ;;  %v11328_v41 = vpop.f32.mrf.mxu1  ;;  %v6751_v15 = vld [vmem:[%s8869_s16 + $0x1378] sm:$0xff] }
 0x2d4   : > { %v7739_v29 = vpop.f32.mrf.mxu0  ;;  %v6831_v44 = vld [vmem:[%s8874_s19 + $0x7b8] sm:$0xff] }
 0x2d5   : > { %v11336_v33 = vadd.f32 %v11241_v10, %v7738_v24  ;;  %v11338_v21 = vpop.f32.mrf.mxu1  ;;  %v4500_v10 = vpack.c.bf16 %v6745_v11, %v6742_v26  ;;  %v6777_v24 = vld [vmem:[%s8869_s16 + $0x1520] sm:$0xff]  ;;  %v4503_v11 = vpack.c.bf16 %v6751_v15, %v6748_v57  ;;  %v6833_v57 = vld [vmem:[%s8874_s19 + $0x7c8] sm:$0xff] }
 0x2d6   : > { %v7740_v19 = vpop.f32.mrf.mxu0 }
 0x2d7   : > { %12652 = vst [vmem:[#allocation2_spill] sm:$0xff] %v11336_v33  ;;  %v7741_v5 = vadd.f32 %v7740_v19, %v7739_v29  ;;  %v11346_v16 = vpop.f32.mrf.mxu1  ;;  %v6754_v29 = vld [vmem:[%s8869_s16 + $0x13a8] sm:$0xff] }
 0x2d8   : > { %v7742_v38 = vpop.f32.mrf.mxu0  ;;  %8715 = vmatmul.mubr.bf16.vlgmr.msra.gmra.mxu0 %v4497_v9  ;;  %v6757_v9 = vld [vmem:[%s8869_s16 + $0x13d8] sm:$0xff]  ;;  %v6849_v19 = vld [vmem:[%s8874_s19 + $0x848] sm:$0xff] }
 0x2d9   : > { %v11352_v39 = vadd.f32 %v11261_v62, %v7741_v5  ;;  %v11354_v42 = vpop.f32.mrf.mxu1  ;;  %4609 = vmatmul.mubr.bf16.gmra.mxu1 %v4510_v48  ;;  %8123 = vmatpush3.bf16.msra.mxu0 %v11340_v13  ;;  %v11363_v62 = vpack.c.bf16 %v6851_v52, %v6850_v60  ;;  %v6848_v48 = vld [vmem:[%s8874_s19 + $0x840] sm:$0xff]  ;;  %v11381_v5 = vpack.c.bf16 %v6835_v8, %v6834_v53  ;;  %v6776_v53 = vld [vmem:[%s8869_s16 + $0x1518] sm:$0xff] }
 0x2da   : > { %v7743_v25 = vpop.f32.mrf.mxu0  ;;  %8124 = vmatprep.subr.bf16.mxu0 %v11342_v32  ;;  %4616 = vmatprep.mubr.bf16.mxu1 %v4514_v31  ;;  %v4517_v60 = vpack.c.bf16 %v6780_v12, %v6777_v24  ;;  %v4506_v52 = vpack.c.bf16 %v6757_v9, %v6754_v29  ;;  %v6779_v12 = vld [vmem:[%s8869_s16 + $0x1548] sm:$0xff]  ;;  %v6763_v9 = vld [vmem:[%s8869_s16 + $0x1438] sm:$0xff] }
 0x2db   : > { %12653 = vst [vmem:[#allocation11_spill] sm:$0xff] %v11352_v39  ;;  %v7744_v56 = vadd.f32 %v7743_v25, %v7742_v38  ;;  %v11368_v4 = vpop.f32.mrf.mxu1  ;;  %8718 = vmatprep.mubr.bf16.mxu0 %v4500_v10  ;;  %v6832_v38 = vld [vmem:[%s8874_s19 + $0x7c0] sm:$0xff]  ;;  %v11388_v25 = vpack.c.bf16 %v6849_v19, %v6848_v48  ;;  %v6760_v29 = vld [vmem:[%s8869_s16 + $0x1408] sm:$0xff]  ;;  %v6769_v19 = vld [vmem:[%s8869_s16 + $0x1498] sm:$0xff] }
 0x2dc   : > { %v7745_v26 = vpop.f32.mrf.mxu0 }
 0x2dd   : > { %v11376_v31 = vadd.f32 %v7744_v56, %v11280_v43  ;;  %v11378_v34 = vpop.f32.mrf.mxu1  ;;  %8125 = vmatpush3.bf16.msra.mxu0 %v11357_v54  ;;  %v6846_v56 = vld [vmem:[%s8874_s19 + $0x830] sm:$0xff] }
 0x2de   : > { %v7746_v10 = vpop.f32.mrf.mxu0  ;;  %8126 = vmatprep.subr.bf16.mxu0 %v11363_v62 }
 0x2df   : > { %12654 = vst [vmem:[#allocation7_spill] sm:$0xff] %v11376_v31  ;;  %v7747_v43 = vadd.f32 %v7746_v10, %v7745_v26  ;;  %v11386_v15 = vpop.f32.mrf.mxu1  ;;  %v11402_v26 = vpack.c.bf16 %v6833_v57, %v6832_v38  ;;  %v11407_v10 = vpack.c.bf16 %v6847_v30, %v6846_v56  ;;  %v6830_v31 = vld [vmem:[%s8874_s19 + $0x7b0] sm:$0xff]  ;;  %v4509_v57 = vpack.c.bf16 %v6763_v9, %v6760_v29 }
 0x2e0   : > { %v7748_v61 = vpop.f32.mrf.mxu0  ;;  %8719 = vmatmul.mubr.bf16.gmra.mxu0 %v4503_v11  ;;  %v6766_v11 = vld [vmem:[%s8869_s16 + $0x1468] sm:$0xff]  ;;  %v4516_v30 = vpack.c.bf16 %v6779_v12, %v6776_v53  ;;  %v11424_v29 = vpack.c.bf16 %v6831_v44, %v6830_v31 }
 0x2e1   : > { %v11394_v8 = vadd.f32 %v7747_v43, %v11291_v23  ;;  %v11396_v24 = vpop.f32.mrf.mxu1  ;;  %4617 = vmatmul.mubr.bf16.gmra.mxu1 %v4513_v55  ;;  %8127 = vmatpush3.bf16.msra.mxu0 %v11381_v5  ;;  %v6783_v23 = vld [vmem:[%s8869_s16 + $0x1580] sm:$0xff]  ;;  %v6829_v53 = vld [vmem:[%s8874_s19 + $0x7a8] sm:$0xff] }
 0x2e2   : > { %v7749_v48 = vpop.f32.mrf.mxu0  ;;  %4624 = vmatprep.mubr.bf16.mxu1 %v4517_v60  ;;  %8722 = vmatprep.mubr.bf16.mxu0 %v4506_v52  ;;  %v6845_v60 = vld [vmem:[%s8874_s19 + $0x828] sm:$0xff] }
 0x2e3   : > { %12655 = vst [vmem:[#allocation29_spill] sm:$0xff] %v11394_v8  ;;  %v7750_v55 = vadd.f32 %v7749_v48, %v7748_v61  ;;  %v11409_v43 = vpop.f32.mrf.mxu1  ;;  %8128 = vmatprep.subr.bf16.mxu0 %v11388_v25  ;;  %v6786_v8 = vld [vmem:[%s8869_s16 + $0x15b0] sm:$0xff]  ;;  %v4512_v61 = vpack.c.bf16 %v6769_v19, %v6766_v11  ;;  %v6843_v11 = vld [vmem:[%s8874_s19 + $0x818] sm:$0xff]  ;;  %v6772_v19 = vld [vmem:[%s8869_s16 + $0x14c8] sm:$0xff] }
 0x2e4   : > { %v7751_v38 = vpop.f32.mrf.mxu0  ;;  %v4520_v39 = vpack.c.bf16 %v6786_v8, %v6783_v23  ;;  %v6782_v8 = vld [vmem:[%s8869_s16 + $0x1578] sm:$0xff]  ;;  %v6842_v23 = vld [vmem:[%s8874_s19 + $0x810] sm:$0xff] }
 0x2e5   : > { %v11418_v52 = vadd.f32 %v11271_v58, %v7750_v55  ;;  %v11420_v56 = vpop.f32.mrf.mxu1  ;;  %8129 = vmatpush3.bf16.msra.mxu0 %v11402_v26  ;;  %v11428_v55 = vpack.c.bf16 %v6845_v60, %v6844_v35  ;;  %v6785_v35 = vld [vmem:[%s8869_s16 + $0x15a8] sm:$0xff] }
 0x2e6   : > { %v7752_v48 = vpop.f32.mrf.mxu0  ;;  %8130 = vmatprep.subr.bf16.mxu0 %v11407_v10 }
 0x2e7   : > { %12656 = vst [vmem:[#allocation31_spill] sm:$0xff] %v11418_v52  ;;  %v7753_v9 = vadd.f32 %v7752_v48, %v7751_v38  ;;  %v11426_v58 = vpop.f32.mrf.mxu1  ;;  %v6828_v52 = vld [vmem:[%s8874_s19 + $0x7a0] sm:$0xff]  ;;  %v6775_v38 = vld [vmem:[%s8869_s16 + $0x14f8] sm:$0xff]  ;;  %v6778_v48 = vld [vmem:[%s8869_s16 + $0x1528] sm:$0xff] }
 0x2e8   : > { %v7754_v12 = vpop.f32.mrf.mxu0  ;;  %8723 = vmatmul.mubr.bf16.gmra.mxu0 %v4509_v57  ;;  %v6789_v57 = vld [vmem:[%s8869_s16 + $0x15e0] sm:$0xff]  ;;  %v4515_v17 = vpack.c.bf16 %v6775_v38, %v6772_v19  ;;  %v11467_v19 = vpack.c.bf16 %v6827_v37, %v6826_v50 }
 0x2e9   : > { %v11436_v44 = vadd.f32 %v11288_v49, %v7753_v9  ;;  %v11438_v31 = vpop.f32.mrf.mxu1  ;;  %4625 = vmatmul.mubr.bf16.gmra.mxu1 %v4516_v30  ;;  %8726 = vmatprep.mubr.bf16.mxu0 %v4512_v61  ;;  %v6781_v49 = vld [vmem:[%s8869_s16 + $0x1558] sm:$0xff]  ;;  %v11447_v9 = vpack.c.bf16 %v6829_v53, %v6828_v52  ;;  %v6792_v30 = vld [vmem:[%s8869_s16 + $0x1610] sm:$0xff]  ;;  %v11453_v61 = vpack.c.bf16 %v6843_v11, %v6842_v23 }
 0x2ea   : > { %v7755_v60 = vpop.f32.mrf.mxu0  ;;  %4632 = vmatprep.mubr.bf16.mxu1 %v4520_v39  ;;  %8131 = vmatpush3.bf16.msra.mxu0 %v11424_v29  ;;  %v4523_v46 = vpack.c.bf16 %v6792_v30, %v6789_v57  ;;  %12660 = vst [vmem:[#allocation18_spill] sm:$0xff] %v11467_v19 }
 0x2eb   : > { %12657 = vst [vmem:[#allocation12_spill] sm:$0xff] %v11436_v44  ;;  %v7756_v44 = vadd.f32 %v7755_v60, %v7754_v12  ;;  %v11449_v33 = vpop.f32.mrf.mxu1  ;;  %8132 = vmatprep.subr.bf16.mxu0 %v11428_v55  ;;  %v4519_v12 = vpack.c.bf16 %v6785_v35, %v6782_v8  ;;  %v4518_v60 = vpack.c.bf16 %v6781_v49, %v6778_v48  ;;  %v6824_v35 = vld [vmem:[%s8874_s19 + $0x780] sm:$0xff]  ;;  %v6788_v48 = vld [vmem:[%s8869_s16 + $0x15d8] sm:$0xff] }
 0x2ec   : > { %v7757_v39 = vpop.f32.mrf.mxu0  ;;  %v11473_v8 = vpack.c.bf16 %v6841_v7, %v6840_v45  ;;  %v6784_v7 = vld [vmem:[%s8869_s16 + $0x1588] sm:$0xff]  ;;  %v6787_v45 = vld [vmem:[%s8869_s16 + $0x15b8] sm:$0xff] }
 0x2ed   : > { %v11460_v28 = vadd.f32 %v7756_v44, %v11305_v20  ;;  %v11462_v52 = vpop.f32.mrf.mxu1  ;;  %v2913_v53 = vpop.permute.xlu0 %2912  ;;  %v12663_v49 = vld [vmem:[#allocation13_spill] sm:$0xff] }
 0x2ee   : > { %v2982_v23 = vsel %vm1078_vm0, %v12659_v36, %v2913_v53  ;;  %v7758_v11 = vpop.f32.mrf.mxu0  ;;  %8133 = vmatpush3.bf16.msra.mxu0 %v11447_v9  ;;  %12661 = vst [vmem:[#allocation16_spill] sm:$0xff] %v11473_v8  ;;  %v6825_v36 = vld [vmem:[%s8874_s19 + $0x788] sm:$0xff] }
 0x2ef   : > { %12658 = vst [vmem:[#allocation28_spill] sm:$0xff] %v11460_v28  ;;  %6370 = vst [vmem:[%s10229_s24 + $0x190] sm:$0xff] %v2982_v23  ;;  %v7759_v20 = vadd.f32 %v7758_v11, %v7757_v39  ;;  %v11470_v44 = vpop.f32.mrf.mxu1  ;;  %8134 = vmatprep.subr.bf16.mxu0 %v11453_v61  ;;  %v6790_v53 = vld [vmem:[%s8869_s16 + $0x15e8] sm:$0xff]  ;;  %v6793_v23 = vld [vmem:[%s8869_s16 + $0x1618] sm:$0xff] }
 0x2f0   : > { %v7760_v38 = vpop.f32.mrf.mxu0  ;;  %8727 = vmatmul.mubr.bf16.gmra.mxu0 %v4515_v17  ;;  %v6795_v28 = vld [vmem:[%s8869_s16 + $0x1640] sm:$0xff] }
 0x2f1   : > { %v11478_v37 = vadd.f32 %v7759_v20, %v11314_v0  ;;  %v11480_v50 = vpop.f32.mrf.mxu1  ;;  %4633 = vmatmul.mubr.bf16.gmra.mxu1 %v4519_v12  ;;  %v2915_v57 = vpop.permute.xlu1 %2914  ;;  %8730 = vmatprep.mubr.bf16.mxu0 %v4518_v60  ;;  %v6791_v0 = vld [vmem:[%s8869_s16 + $0x1608] sm:$0xff]  ;;  %v11491_v12 = vpack.c.bf16 %v6825_v36, %v6824_v35  ;;  %v12665_v60 = vld [vmem:[#allocation9_spill] sm:$0xff] }
 0x2f2   : > { %v2983_v30 = vsel %vm1078_vm0, %v12663_v49, %v2915_v57  ;;  %v2909_v17 = vpop.permute.xlu0 %2908  ;;  %v7761_v39 = vpop.f32.mrf.mxu0  ;;  %4640 = vmatprep.mubr.bf16.mxu1 %v4523_v46  ;;  %8135 = vmatpush3.bf16.msra.mxu0 %v11467_v19  ;;  %v6798_v57 = vld [vmem:[%s8869_s16 + $0x1670] sm:$0xff]  ;;  %v4521_v49 = vpack.c.bf16 %v6787_v45, %v6784_v7  ;;  %v12668_v7 = vld [vmem:[#allocation22_spill] sm:$0xff] }
 0x2f3   : > { %12662 = vst [vmem:[#allocation15_spill] sm:$0xff] %v11478_v37  ;;  %12664 = vst [vmem:[#allocation13_spill] sm:$0xff] %v11491_v12  ;;  %v2980_v11 = vsel %vm1078_vm0, %v12665_v60, %v2909_v17  ;;  %v7762_v20 = vadd.f32 %v7761_v39, %v7760_v38  ;;  %v11496_v37 = vpop.f32.mrf.mxu1  ;;  %8136 = vmatprep.subr.bf16.mxu0 %v11473_v8  ;;  %v4524_v17 = vpack.c.bf16 %v6793_v23, %v6790_v53  ;;  %v12667_v38 = vld [vmem:[#allocation14_spill] sm:$0xff]  ;;  %v6796_v23 = vld [vmem:[%s8869_s16 + $0x1648] sm:$0xff] }
 0x2f4   : > { %6371 = vst [vmem:[%s10229_s24 + $0x198] sm:$0xff] %v2983_v30  ;;  %6368 = vst [vmem:[%s10229_s24 + $0x180] sm:$0xff] %v2980_v11  ;;  %v7763_v46 = vpop.f32.mrf.mxu0  ;;  %v4522_v30 = vpack.c.bf16 %v6791_v0, %v6788_v48  ;;  %v4526_v47 = vpack.c.bf16 %v6798_v57, %v6795_v28  ;;  %v12670_v57 = vld [vmem:[#allocation23_spill] sm:$0xff]  ;;  %v12673_v8 = vld [vmem:[#allocation17_spill] sm:$0xff] }
 0x2f5   : > { %v11503_v2 = vadd.f32 %v11297_v3, %v7762_v20  ;;  %v11505_v35 = vpop.f32.mrf.mxu1  ;;  %v2911_v36 = vpop.permute.xlu1 %2910  ;;  %v6799_v20 = vld [vmem:[%s8869_s16 + $0x1678] sm:$0xff] }
 0x2f6   : > { %v2981_v39 = vsel %vm1078_vm0, %v12667_v38, %v2911_v36  ;;  %v2921_v60 = vpop.permute.xlu0 %2920  ;;  %v7764_v51 = vpop.f32.mrf.mxu0  ;;  %8137 = vmatpush3.bf16.msra.mxu0 %v11491_v12  ;;  %v6797_v38 = vld [vmem:[%s8869_s16 + $0x1668] sm:$0xff] }
 0x2f7   : > { %12666 = vst [vmem:[#allocation9_spill] sm:$0xff] %v11503_v2  ;;  %6369 = vst [vmem:[%s10229_s24 + $0x188] sm:$0xff] %v2981_v39  ;;  %v2986_v3 = vsel %vm1078_vm0, %v12668_v7, %v2921_v60  ;;  %v7765_v45 = vadd.f32 %v7764_v51, %v7763_v46  ;;  %v11513_v11 = vpop.f32.mrf.mxu1  ;;  %8778 = vmatprep.subr.bf16.mxu0 %v11132_v6  ;;  %v6794_v51 = vld [vmem:[%s8869_s16 + $0x1638] sm:$0xff]  ;;  %v12671_v60 = vld [vmem:[#allocation19_spill] sm:$0xff] }
 0x2f8   : > { %6374 = vst [vmem:[%s10229_s24 + $0x1b0] sm:$0xff] %v2986_v3  ;;  %v7766_v48 = vpop.f32.mrf.mxu0  ;;  %8731 = vmatmul.mubr.bf16.gmra.mxu0 %v4521_v49  ;;  %v6876_v39 = vld [vmem:[%s8869_s16 + $0x16b8] sm:$0xff]  ;;  %v6874_v3 = vld [vmem:[%s8869_s16 + $0x1690] sm:$0xff] }
 0x2f9   : > { %v11518_v28 = vadd.f32 %v11312_v14, %v7765_v45  ;;  %v11520_v0 = vpop.f32.mrf.mxu1  ;;  %4641 = vmatmul.mubr.bf16.gmra.mxu1 %v4522_v30  ;;  %v2923_v53 = vpop.permute.xlu1 %2922  ;;  %8734 = vmatprep.mubr.bf16.mxu0 %v4524_v17  ;;  %v6873_v14 = vld [vmem:[%s8869_s16 + $0x1688] sm:$0xff]  ;;  %v6877_v45 = vld [vmem:[%s8869_s16 + $0x16c0] sm:$0xff] }
 0x2fa   : > { %v2987_v46 = vsel %vm1078_vm0, %v12670_v57, %v2923_v53  ;;  %v2917_v36 = vpop.permute.xlu0 %2916  ;;  %v7767_v49 = vpop.f32.mrf.mxu0  ;;  %4648 = vmatprep.mubr.bf16.mxu1 %v4526_v47  ;;  %v4527_v53 = vpack.c.bf16 %v6799_v20, %v6796_v23  ;;  %v5078_v12 = vpack.c.bf16 %v6876_v39, %v6873_v14  ;;  %v6875_v14 = vld [vmem:[%s8869_s16 + $0x16b0] sm:$0xff]  ;;  %v12676_v39 = vld [vmem:[#allocation25_spill] sm:$0xff] }
 0x2fb   : > { %12669 = vst [vmem:[#allocation14_spill] sm:$0xff] %v11518_v28  ;;  %6375 = vst [vmem:[%s10229_s24 + $0x1b8] sm:$0xff] %v2987_v46  ;;  %v2984_v30 = vsel %vm1078_vm0, %v12671_v60, %v2917_v36  ;;  %v7768_v7 = vadd.f32 %v7767_v49, %v7766_v48  ;;  %v11533_v17 = vpop.f32.mrf.mxu1  ;;  %v4525_v46 = vpack.c.bf16 %v6797_v38, %v6794_v51 }
 0x2fc   : > { %6372 = vst [vmem:[%s10229_s24 + $0x1a0] sm:$0xff] %v2984_v30  ;;  %v7769_v28 = vpop.f32.mrf.mxu0  ;;  %v5079_v60 = vpack.c.bf16 %v6877_v45, %v6874_v3  ;;  %v12674_v30 = vld [vmem:[#allocation24_spill] sm:$0xff] }
 0x2fd   : > { %v11539_v57 = vadd.f32 %v7768_v7, %v11328_v41  ;;  %v11541_v47 = vpop.f32.mrf.mxu1  ;;  %v2919_v2 = vpop.permute.xlu1 %2918 }
 0x2fe   : > { %v2985_v48 = vsel %vm1078_vm0, %v12673_v8, %v2919_v2  ;;  %v2929_v36 = vpop.permute.xlu0 %2928  ;;  %v7770_v49 = vpop.f32.mrf.mxu0 }
 0x2ff   : > { %12672 = vst [vmem:[#allocation22_spill] sm:$0xff] %v11539_v57  ;;  %6373 = vst [vmem:[%s10229_s24 + $0x1a8] sm:$0xff] %v2985_v48  ;;  %v2990_v23 = vsel %vm1078_vm0, %v12674_v30, %v2929_v36  ;;  %v7771_v20 = vadd.f32 %v7770_v49, %v7769_v28  ;;  %v11548_v41 = vpop.f32.mrf.mxu1  ;;  %v6872_v28 = vld [vmem:[%s8869_s16 + $0x1680] sm:$0xff]  ;;  %v12677_v48 = vld [vmem:[#allocation20_spill] sm:$0xff] }
 0x300   : > { %6378 = vst [vmem:[%s10229_s24 + $0x1d0] sm:$0xff] %v2990_v23  ;;  %v7772_v51 = vpop.f32.mrf.mxu0  ;;  %8735 = vmatmul.mubr.bf16.gmra.mxu0 %v4527_v53  ;;  %v6883_v53 = vld [vmem:[%s8869_s16 + $0x1720] sm:$0xff]  ;;  %v6882_v30 = vld [vmem:[%s8869_s16 + $0x1718] sm:$0xff] }
 0x301   : > { %v11552_v2 = vadd.f32 %v7771_v20, %v11346_v16  ;;  %v11554_v8 = vpop.f32.mrf.mxu1  ;;  %4649 = vmatmul.mubr.bf16.gmra.mxu1 %v4525_v46  ;;  %v2931_v38 = vpop.permute.xlu1 %2930  ;;  %5145 = vmatprep.mubr.bf16.mxu0 %v5078_v12  ;;  %v6880_v16 = vld [vmem:[%s8869_s16 + $0x16f0] sm:$0xff]  ;;  %v6879_v12 = vld [vmem:[%s8869_s16 + $0x16e8] sm:$0xff]  ;;  %v5077_v20 = vpack.c.bf16 %v6875_v14, %v6872_v28  ;;  %v7822_v28 = vadd.f32 %v11409_v43, %v11396_v24  ;;  %v12679_v14 = vld [vmem:[#allocation45_spill] sm:$0xff] }
 0x302   : > { %v2991_v7 = vsel %vm1078_vm0, %v12676_v39, %v2931_v38  ;;  %v2925_v3 = vpop.permute.xlu0 %2924  ;;  %v7773_v45 = vpop.f32.mrf.mxu0  ;;  %8754 = vmatprep.mubr.bf16.mxu1 %v5079_v60  ;;  %v6886_v38 = vld [vmem:[%s8869_s16 + $0x1750] sm:$0xff]  ;;  %v6889_v39 = vld [vmem:[%s8869_s16 + $0x1780] sm:$0xff]  ;;  %v5082_v57 = vpack.c.bf16 %v6883_v53, %v6880_v16  ;;  %v5081_v19 = vpack.c.bf16 %v6882_v30, %v6879_v12 }
 0x303   : > { %12675 = vst [vmem:[#allocation23_spill] sm:$0xff] %v11552_v2  ;;  %6379 = vst [vmem:[%s10229_s24 + $0x1d8] sm:$0xff] %v2991_v7  ;;  %v2988_v46 = vsel %vm1078_vm0, %v12677_v48, %v2925_v3  ;;  %v7774_v36 = vadd.f32 %v7773_v45, %v7772_v51  ;;  %v11565_v49 = vpop.f32.mrf.mxu1  ;;  %v12678_v3 = vld [vmem:[#allocation21_spill] sm:$0xff]  ;;  %v5085_v16 = vpack.c.bf16 %v6889_v39, %v6886_v38  ;;  %v6892_v38 = vld [vmem:[%s8869_s16 + $0x17b0] sm:$0xff] }
 0x304   : > { %6376 = vst [vmem:[%s10229_s24 + $0x1c0] sm:$0xff] %v2988_v46  ;;  %v7775_v23 = vpop.f32.mrf.mxu0  ;;  %v12680_v39 = vld [vmem:[#allocation27_spill] sm:$0xff] }
 0x305   : > { %v11573_v60 = vadd.f32 %v11320_v63, %v7774_v36  ;;  %v11575_v2 = vpop.f32.mrf.mxu1  ;;  %v2927_v7 = vpop.permute.xlu1 %2926 }
 0x306   : > { %v2989_v51 = vsel %vm1078_vm0, %v12678_v3, %v2927_v7  ;;  %v2937_v45 = vpop.permute.xlu0 %2936  ;;  %v7776_v48 = vpop.f32.mrf.mxu0  ;;  %v6881_v7 = vld [vmem:[%s8869_s16 + $0x1710] sm:$0xff] }
 0x307   : > { %6377 = vst [vmem:[%s10229_s24 + $0x1c8] sm:$0xff] %v2989_v51  ;;  %v2994_v63 = vsel %vm1078_vm0, %v12679_v14, %v2937_v45  ;;  %v7777_v46 = vadd.f32 %v7776_v48, %v7775_v23  ;;  %v11584_v36 = vpop.f32.mrf.mxu1  ;;  %v6878_v23 = vld [vmem:[%s8869_s16 + $0x16e0] sm:$0xff]  ;;  %v6888_v45 = vld [vmem:[%s8869_s16 + $0x1778] sm:$0xff]  ;;  %v7825_v48 = vadd.f32 %v11426_v58, %v11420_v56 }
 0x308   : > { %6382 = vst [vmem:[%s10229_s24 + $0x1f0] sm:$0xff] %v2994_v63  ;;  %v8636_v53 = vpop.f32.mrf.mxu0  ;;  %5146 = vmatmul.mubr.bf16.vlgmr.msra.gmra.mxu0 %v5077_v20  ;;  %v6895_v51 = vld [vmem:[%s8869_s16 + $0x17e0] sm:$0xff] }
 0x309   : > { %v11588_v12 = vadd.f32 %v11338_v21, %v7777_v46  ;;  %v11590_v24 = vpop.f32.mrf.mxu1  ;;  %v3749_v43 = vadd.f32 %v8636_v53, %v7822_v28  ;;  %8755 = vmatmul.mubr.bf16.vlgmr.msra.gmra.mxu1 %v5082_v57  ;;  %8779 = vmatpush3.bf16.msra.mxu0 %v11132_v6  ;;  %v2939_v30 = vpop.permute.xlu1 %2938  ;;  %v6885_v57 = vld [vmem:[%s8869_s16 + $0x1748] sm:$0xff]  ;;  %v7816_v6 = vadd.f32 %v11368_v4, %v11354_v42 }
 0x30a   : > { %v2995_v20 = vsel %vm1078_vm0, %v12680_v39, %v2939_v30  ;;  %v2933_v3 = vpop.permute.xlu0 %2932  ;;  %v3740_v21 = vpop.f32.mrf.mxu0  ;;  %8231 = vmatpush3.bf16.msra.mxu1 %v11340_v13  ;;  %5153 = vmatprep.mubr.bf16.mxu0 %v5081_v19  ;;  %v12681_v28 = vld [vmem:[#allocation43_spill] sm:$0xff]  ;;  %v6898_v13 = vld [vmem:[%s8869_s16 + $0x1810] sm:$0xff]  ;;  %v6901_v19 = vld [vmem:[%s8869_s16 + $0x1840] sm:$0xff]  ;;  %v5080_v53 = vpack.c.bf16 %v6881_v7, %v6878_v23  ;;  %v5088_v30 = vpack.c.bf16 %v6895_v51, %v6892_v38 }
 0x30b   : > { %6383 = vst [vmem:[%s10229_s24 + $0x1f8] sm:$0xff] %v2995_v20  ;;  %v2992_v14 = vsel %vm1078_vm0, %v12681_v28, %v2933_v3  ;;  %v11609_v63 = vpop.f32.mrf.mxu1  ;;  %3863 = vrot.lane.b32.xlu0 %v3749_v43, %s8838_s20  ;;  %8758 = vmatprep.mubr.bf16.mxu1 %v5085_v16  ;;  %v3741_v42 = vadd.f32 %v7816_v6, %v3740_v21  ;;  %v12682_v43 = vld [vmem:[#allocation4_spill] sm:$0xff]  ;;  %v6884_v51 = vld [vmem:[%s8869_s16 + $0x1740] sm:$0xff] }
 0x30c   : > { %6380 = vst [vmem:[%s10229_s24 + $0x1e0] sm:$0xff] %v2992_v14  ;;  %v8637_v46 = vpop.f32.mrf.mxu0  ;;  %8232 = vmatprep.subr.bf16.mxu1 %v11342_v32  ;;  %8780 = vmatprep.subr.bf16.mxu0 %v11179_v1  ;;  %v5084_v16 = vpack.c.bf16 %v6888_v45, %v6885_v57  ;;  %v5091_v32 = vpack.c.bf16 %v6901_v19, %v6898_v13  ;;  %v6887_v57 = vld [vmem:[%s8869_s16 + $0x1770] sm:$0xff]  ;;  %v6907_v14 = vld [vmem:[%s8869_s16 + $0x18a0] sm:$0xff]  ;;  %v6891_v13 = vld [vmem:[%s8869_s16 + $0x17a8] sm:$0xff] }
 0x30d   : > { %v11617_v4 = vpop.f32.mrf.mxu1  ;;  %v3752_v56 = vadd.f32 %v8637_v46, %v7825_v48  ;;  %v2935_v58 = vpop.permute.xlu1 %2934  ;;  %8781 = vmatpush3.bf16.msra.mxu0 %v11179_v1  ;;  %v7819_v7 = vadd.f32 %v11386_v15, %v11378_v34  ;;  %v7834_v38 = vadd.f32 %v11496_v37, %v11480_v50  ;;  %v12683_v1 = vld [vmem:[#allocation6_spill] sm:$0xff]  ;;  %v6904_v45 = vld [vmem:[%s8869_s16 + $0x1870] sm:$0xff]  ;;  %v6894_v19 = vld [vmem:[%s8869_s16 + $0x17d8] sm:$0xff]  ;;  %v7828_v46 = vadd.f32 %v11449_v33, %v11438_v31 }
 0x30e   : > { %v2993_v39 = vsel %vm1078_vm0, %v12682_v43, %v2935_v58  ;;  %v2945_v20 = vpop.permute.xlu0 %2944  ;;  %v3743_v23 = vpop.f32.mrf.mxu0  ;;  %8233 = vmatpush3.bf16.msra.mxu1 %v11357_v54  ;;  %8782 = vmatprep.subr.bf16.mxu0 %v11196_v22  ;;  %v12684_v6 = vld [vmem:[#allocation8_spill] sm:$0xff]  ;;  %v5083_v43 = vpack.c.bf16 %v6887_v57, %v6884_v51  ;;  %v6919_v51 = vld [vmem:[%s8869_s16 + $0x1960] sm:$0xff] }
 0x30f   : > { %6381 = vst [vmem:[%s10229_s24 + $0x1e8] sm:$0xff] %v2993_v39  ;;  %v2998_v3 = vsel %vm1078_vm0, %v12683_v1, %v2945_v20  ;;  %v11631_v21 = vpop.f32.mrf.mxu1  ;;  %3865 = vrot.lane.b32.xlu1 %v3752_v56, %s8838_s20  ;;  %3859 = vrot.lane.b32.xlu0 %v3741_v42, %s8838_s20  ;;  %v3744_v34 = vadd.f32 %v7819_v7, %v3743_v23  ;;  %v12685_v42 = vld [vmem:[#allocation5_spill] sm:$0xff]  ;;  %v12686_v23 = vld [vmem:[#allocation26_spill] sm:$0xff] }
 0x310   : > { %6386 = vst [vmem:[%s10229_s24 + $0x210] sm:$0xff] %v2998_v3  ;;  %v8640_v54 = vpop.f32.mrf.mxu0  ;;  %5154 = vmatmul.mubr.bf16.gmra.mxu0 %v5080_v53  ;;  %8234 = vmatprep.subr.bf16.mxu1 %v11363_v62  ;;  %v7837_v53 = vadd.f32 %v11513_v11, %v11505_v35  ;;  %v5094_v39 = vpack.c.bf16 %v6907_v14, %v6904_v45  ;;  %v6897_v45 = vld [vmem:[%s8869_s16 + $0x1808] sm:$0xff]  ;;  %v6922_v14 = vld [vmem:[%s8869_s16 + $0x1990] sm:$0xff] }
 0x311   : > { %v11637_v15 = vpop.f32.mrf.mxu1  ;;  %v3765_v37 = vadd.f32 %v8640_v54, %v7834_v38  ;;  %8759 = vmatmul.mubr.bf16.gmra.mxu1 %v5088_v30  ;;  %v2947_v50 = vpop.permute.xlu1 %2946  ;;  %5161 = vmatprep.mubr.bf16.mxu0 %v5084_v16  ;;  %v6913_v30 = vld [vmem:[%s8869_s16 + $0x1900] sm:$0xff]  ;;  %v5087_v20 = vpack.c.bf16 %v6894_v19, %v6891_v13  ;;  %v7846_v38 = vadd.f32 %v11565_v49, %v11554_v8  ;;  %v12687_v54 = vld [vmem:[#allocation33_spill] sm:$0xff] }
 0x312   : > { %v2999_v48 = vsel %vm1078_vm0, %v12684_v6, %v2947_v50  ;;  %v2941_v28 = vpop.permute.xlu0 %2940  ;;  %v3756_v62 = vpop.f32.mrf.mxu0  ;;  %8762 = vmatprep.mubr.bf16.mxu1 %v5091_v32  ;;  %8235 = vmatpush3.bf16.msra.mxu1 %v11381_v5  ;;  %v6910_v5 = vld [vmem:[%s8869_s16 + $0x18d0] sm:$0xff]  ;;  %v6900_v6 = vld [vmem:[%s8869_s16 + $0x1838] sm:$0xff]  ;;  %v6925_v13 = vld [vmem:[%s8869_s16 + $0x19c0] sm:$0xff] }
 0x313   : > { %6387 = vst [vmem:[%s10229_s24 + $0x218] sm:$0xff] %v2999_v48  ;;  %v2996_v56 = vsel %vm1078_vm0, %v12685_v42, %v2941_v28  ;;  %v11655_v58 = vpop.f32.mrf.mxu1  ;;  %3861 = vrot.lane.b32.xlu1 %v3744_v34, %s8838_s20  ;;  %3871 = vrot.lane.b32.xlu0 %v3765_v37, %s8838_s20  ;;  %v3757_v33 = vadd.f32 %v7828_v46, %v3756_v62  ;;  %v6893_v37 = vld [vmem:[%s8869_s16 + $0x17d0] sm:$0xff] }
 0x314   : > { %6384 = vst [vmem:[%s10229_s24 + $0x200] sm:$0xff] %v2996_v56  ;;  %v8641_v16 = vpop.f32.mrf.mxu0  ;;  %8236 = vmatprep.subr.bf16.mxu1 %v11388_v25  ;;  %8783 = vmatpush3.bf16.msra.mxu0 %v11196_v22  ;;  %v5097_v25 = vpack.c.bf16 %v6913_v30, %v6910_v5  ;;  %v7831_v22 = vadd.f32 %v11470_v44, %v11462_v52  ;;  %v6890_v52 = vld [vmem:[%s8869_s16 + $0x17a0] sm:$0xff]  ;;  %v6916_v50 = vld [vmem:[%s8869_s16 + $0x1930] sm:$0xff] }
 0x315   : > { %v11664_v31 = vpop.f32.mrf.mxu1  ;;  %v3768_v35 = vadd.f32 %v8641_v16, %v7837_v53  ;;  %v2943_v11 = vpop.permute.xlu1 %2942  ;;  %8784 = vmatprep.subr.bf16.mxu0 %v11206_v27  ;;  %v7849_v48 = vadd.f32 %v11584_v36, %v11575_v2  ;;  %v5090_v5 = vpack.c.bf16 %v6900_v6, %v6897_v45  ;;  %v5103_v16 = vpack.c.bf16 %v6925_v13, %v6922_v14  ;;  %v6943_v14 = vld [vmem:[%s8869_s16 + $0x1ae0] sm:$0xff]  ;;  %v6909_v13 = vld [vmem:[%s8869_s16 + $0x18c8] sm:$0xff] }
 0x316   : > { %v2997_v32 = vsel %vm1078_vm0, %v12686_v23, %v2943_v11  ;;  %v3759_v7 = vpop.f32.mrf.mxu0  ;;  %8237 = vmatpush3.bf16.msra.mxu1 %v11402_v26  ;;  %v6928_v11 = vld [vmem:[%s8869_s16 + $0x19f0] sm:$0xff]  ;;  %v6906_v23 = vld [vmem:[%s8869_s16 + $0x1898] sm:$0xff] }
 0x317   : > { %6385 = vst [vmem:[%s10229_s24 + $0x208] sm:$0xff] %v2997_v32  ;;  %v11675_v1 = vpop.f32.mrf.mxu1  ;;  %3873 = vrot.lane.b32.xlu1 %v3768_v35, %s8838_s20  ;;  %3867 = vrot.lane.b32.xlu0 %v3757_v33, %s8838_s20  ;;  %v2949_v3 = vpop.permute.xlu0 %2948  ;;  %v3760_v44 = vadd.f32 %v7831_v22, %v3759_v7  ;;  %v6899_v35 = vld [vmem:[%s8869_s16 + $0x1830] sm:$0xff]  ;;  %v12689_v32 = vld [vmem:[#allocation18_spill] sm:$0xff] }
 0x318   : > { %v3000_v26 = vsel %vm1078_vm0, %v12687_v54, %v2949_v3  ;;  %v8644_v34 = vpop.f32.mrf.mxu0  ;;  %5162 = vmatmul.mubr.bf16.gmra.mxu0 %v5083_v43  ;;  %8238 = vmatprep.subr.bf16.mxu1 %v11407_v10  ;;  %v7840_v10 = vadd.f32 %v11533_v17, %v11520_v0  ;;  %v5086_v0 = vpack.c.bf16 %v6893_v37, %v6890_v52  ;;  %v6934_v22 = vld [vmem:[%s8869_s16 + $0x1a50] sm:$0xff]  ;;  %v12692_v37 = vld [vmem:[#allocation13_spill] sm:$0xff] }
 0x319   : > { %6388 = vst [vmem:[%s10229_s24 + $0x220] sm:$0xff] %v3000_v26  ;;  %v11684_v8 = vpop.f32.mrf.mxu1  ;;  %v3781_v49 = vadd.f32 %v8644_v34, %v7846_v38  ;;  %8763 = vmatmul.mubr.bf16.gmra.mxu1 %v5094_v39  ;;  %5169 = vmatprep.mubr.bf16.mxu0 %v5087_v20  ;;  %v5100_v17 = vpack.c.bf16 %v6919_v51, %v6916_v50  ;;  %v6903_v20 = vld [vmem:[%s8869_s16 + $0x1868] sm:$0xff]  ;;  %v6937_v38 = vld [vmem:[%s8869_s16 + $0x1a80] sm:$0xff]  ;;  %v12690_v26 = vld [vmem:[#allocation16_spill] sm:$0xff] }
 0x31a   : > { %v3772_v57 = vpop.f32.mrf.mxu0  ;;  %8766 = vmatprep.mubr.bf16.mxu1 %v5097_v25  ;;  %8239 = vmatpush3.bf16.msra.mxu1 %v11424_v29  ;;  %v12688_v29 = vld [vmem:[#allocation34_spill] sm:$0xff]  ;;  %v7861_v7 = vadd.f32 %v11675_v1, %v11664_v31  ;;  %v5109_v1 = vpack.c.bf16 %v6937_v38, %v6934_v22  ;;  %v7855_v50 = vadd.f32 %v11631_v21, %v11617_v4  ;;  %v6905_v4 = vld [vmem:[%s8869_s16 + $0x1890] sm:$0xff] }
 0x31b   : > { %v11696_v28 = vpop.f32.mrf.mxu1  ;;  %3869 = vrot.lane.b32.xlu1 %v3760_v44, %s8838_s20  ;;  %v2951_v62 = vpop.permute.xlu1 %2950  ;;  %3879 = vrot.lane.b32.xlu0 %v3781_v49, %s8838_s20  ;;  %v3773_v2 = vadd.f32 %v7840_v10, %v3772_v57  ;;  %v12691_v49 = vld [vmem:[#allocation38_spill] sm:$0xff]  ;;  %v6940_v21 = vld [vmem:[%s8869_s16 + $0x1ab0] sm:$0xff] }
 0x31c   : > { %v3001_v19 = vsel %vm1078_vm0, %v12688_v29, %v2951_v62  ;;  %v2953_v46 = vpop.permute.xlu0 %2952  ;;  %v8645_v53 = vpop.f32.mrf.mxu0  ;;  %8240 = vmatprep.subr.bf16.mxu1 %v11428_v55  ;;  %8785 = vmatpush3.bf16.msra.mxu0 %v11206_v27  ;;  %v7843_v27 = vadd.f32 %v11548_v41, %v11541_v47  ;;  %v7858_v55 = vadd.f32 %v11655_v58, %v11637_v15  ;;  %v6896_v58 = vld [vmem:[%s8869_s16 + $0x1800] sm:$0xff]  ;;  %v6912_v29 = vld [vmem:[%s8869_s16 + $0x18f8] sm:$0xff]  ;;  %v6954_v38 = vld [vmem:[%s8869_s16 + $0x1730] sm:$0xff] }
 0x31d   : > { %6389 = vst [vmem:[%s10229_s24 + $0x228] sm:$0xff] %v3001_v19  ;;  %v3002_v36 = vsel %vm1078_vm0, %v10960_v18, %v2953_v46  ;;  %v11709_v42 = vpop.f32.mrf.mxu1  ;;  %v3784_v56 = vadd.f32 %v8645_v53, %v7849_v48  ;;  %8786 = vmatprep.subr.bf16.mxu0 %v11224_v40  ;;  %v5089_v54 = vpack.c.bf16 %v6899_v35, %v6896_v58  ;;  %v6902_v48 = vld [vmem:[%s8869_s16 + $0x1860] sm:$0xff] }
 0x31e   : > { %6390 = vst [vmem:[%s10229_s24 + $0x230] sm:$0xff] %v3002_v36  ;;  %v3775_v30 = vpop.f32.mrf.mxu0  ;;  %8241 = vmatpush3.bf16.msra.mxu1 %v11447_v9  ;;  %v7864_v19 = vadd.f32 %v11696_v28, %v11684_v8  ;;  %v5092_v36 = vpack.c.bf16 %v6905_v4, %v6902_v48  ;;  %v6951_v22 = vld [vmem:[%s8869_s16 + $0x1700] sm:$0xff] }
 0x31f   : > { %v11718_v18 = vpop.f32.mrf.mxu1  ;;  %3881 = vrot.lane.b32.xlu1 %v3784_v56, %s8838_s20  ;;  %v2955_v43 = vpop.permute.xlu1 %2954  ;;  %3875 = vrot.lane.b32.xlu0 %v3773_v2, %s8838_s20  ;;  %v3776_v47 = vadd.f32 %v7843_v27, %v3775_v30  ;;  %v12693_v56 = vld [vmem:[#allocation36_spill] sm:$0xff]  ;;  %v5112_v27 = vpack.c.bf16 %v6943_v14, %v6940_v21 }
 0x320   : > { %v3003_v9 = vsel %vm1078_vm0, %v10975_v59, %v2955_v43  ;;  %v8648_v33 = vpop.f32.mrf.mxu0  ;;  %5170 = vmatmul.mubr.bf16.gmra.mxu0 %v5086_v0  ;;  %8242 = vmatprep.subr.bf16.mxu1 %v11453_v61  ;;  %v6931_v59 = vld [vmem:[%s8869_s16 + $0x1a20] sm:$0xff]  ;;  %v7852_v61 = vadd.f32 %v11609_v63, %v11590_v24  ;;  %v5093_v63 = vpack.c.bf16 %v6906_v23, %v6903_v20  ;;  %v6915_v23 = vld [vmem:[%s8869_s16 + $0x1928] sm:$0xff]  ;;  %v6960_v14 = vld [vmem:[%s8869_s16 + $0x1790] sm:$0xff] }
 0x321   : > { %6391 = vst [vmem:[%s10229_s24 + $0x238] sm:$0xff] %v3003_v9  ;;  %v7868_v41 = vpop.f32.mrf.mxu1  ;;  %v3797_v15 = vadd.f32 %v8648_v33, %v7858_v55  ;;  %8767 = vmatmul.mubr.bf16.gmra.mxu1 %v5100_v17  ;;  %5177 = vmatprep.mubr.bf16.mxu0 %v5090_v5  ;;  %v5106_v24 = vpack.c.bf16 %v6931_v59, %v6928_v11  ;;  %v6945_v0 = vld [vmem:[%s8869_s16 + $0x16a0] sm:$0xff]  ;;  %v6948_v17 = vld [vmem:[%s8869_s16 + $0x16d0] sm:$0xff]  ;;  %v6944_v11 = vld [vmem:[%s8869_s16 + $0x1698] sm:$0xff] }
 0x322   : > { %v3788_v39 = vpop.f32.mrf.mxu0  ;;  %8770 = vmatprep.mubr.bf16.mxu1 %v5103_v16  ;;  %8243 = vmatpush3.bf16.msra.mxu1 %v12689_v32  ;;  %v5096_v55 = vpack.c.bf16 %v6912_v29, %v6909_v13  ;;  %v5444_v8 = vpack.c.bf16 %v6948_v17, %v6945_v0  ;;  %v7867_v28 = vadd.f32 %v11718_v18, %v11709_v42  ;;  %v6908_v42 = vld [vmem:[%s8869_s16 + $0x18c0] sm:$0xff]  ;;  %v6911_v18 = vld [vmem:[%s8869_s16 + $0x18f0] sm:$0xff]  ;;  %v6918_v32 = vld [vmem:[%s8869_s16 + $0x1958] sm:$0xff] }
 0x323   : > { %v7869_v25 = vpop.f32.mrf.mxu1  ;;  %3877 = vrot.lane.b32.xlu1 %v3776_v47, %s8838_s20  ;;  %3887 = vrot.lane.b32.xlu0 %v3797_v15, %s8838_s20  ;;  %v3789_v34 = vadd.f32 %v7852_v61, %v3788_v39  ;;  %v12694_v47 = vld [vmem:[#allocation42_spill] sm:$0xff]  ;;  %v6947_v39 = vld [vmem:[%s8869_s16 + $0x16c8] sm:$0xff] }
 0x324   : > { %v8649_v3 = vpop.f32.mrf.mxu0  ;;  %8244 = vmatprep.subr.bf16.mxu1 %v12690_v26  ;;  %8787 = vmatpush3.bf16.msra.mxu0 %v11224_v40  ;;  %v7870_v51 = vadd.f32 %v7869_v25, %v7868_v41  ;;  %v5095_v25 = vpack.c.bf16 %v6911_v18, %v6908_v42  ;;  %v5443_v26 = vpack.c.bf16 %v6947_v39, %v6944_v11 }
 0x325   : > { %v7871_v52 = vpop.f32.mrf.mxu1  ;;  %v3800_v44 = vadd.f32 %v8649_v3, %v7861_v7  ;;  %8788 = vmatprep.subr.bf16.mxu0 %v12691_v49 }
 0x326   : > { %v3791_v31 = vpop.f32.mrf.mxu0  ;;  %8245 = vmatpush3.bf16.msra.mxu1 %v12692_v37 }
 0x327   : > { %v7872_v40 = vpop.f32.mrf.mxu1  ;;  %3889 = vrot.lane.b32.xlu1 %v3800_v44, %s8838_s20  ;;  %3883 = vrot.lane.b32.xlu0 %v3789_v34, %s8838_s20  ;;  %v3792_v45 = vadd.f32 %v7855_v50, %v3791_v31  ;;  %v6914_v50 = vld [vmem:[%s8869_s16 + $0x1920] sm:$0xff] }
 0x328   : > { %v8652_v57 = vpop.f32.mrf.mxu0  ;;  %5178 = vmatmul.mubr.bf16.gmra.mxu0 %v5089_v54  ;;  %v7873_v46 = vadd.f32 %v7872_v40, %v7871_v52  ;;  %v5099_v52 = vpack.c.bf16 %v6918_v32, %v6915_v23  ;;  %v6950_v40 = vld [vmem:[%s8869_s16 + $0x16f8] sm:$0xff] }
 0x329   : > { %v7874_v6 = vpop.f32.mrf.mxu1  ;;  %v3813_v10 = vadd.f32 %v8652_v57, %v7870_v51  ;;  %8771 = vmatmul.mubr.bf16.gmra.mxu1 %v5106_v24  ;;  %5185 = vmatprep.mubr.bf16.mxu0 %v5093_v63  ;;  %v5447_v63 = vpack.c.bf16 %v6954_v38, %v6951_v22  ;;  %v6917_v51 = vld [vmem:[%s8869_s16 + $0x1950] sm:$0xff]  ;;  %v6926_v38 = vld [vmem:[%s8869_s16 + $0x19e0] sm:$0xff] }
 0x32a   : > { %v3804_v62 = vpop.f32.mrf.mxu0  ;;  %8774 = vmatprep.mubr.bf16.mxu1 %v5109_v1  ;;  %8789 = vmatpush3.bf16.msra.mxu0 %v12691_v49  ;;  %v5098_v29 = vpack.c.bf16 %v6917_v51, %v6914_v50 }
 0x32b   : > { %v7875_v53 = vpop.f32.mrf.mxu1  ;;  %3885 = vrot.lane.b32.xlu1 %v3792_v45, %s8838_s20  ;;  %3895 = vrot.lane.b32.xlu0 %v3813_v10, %s8838_s20  ;;  %v3805_v5 = vadd.f32 %v7864_v19, %v3804_v62  ;;  %v6953_v45 = vld [vmem:[%s8869_s16 + $0x1728] sm:$0xff]  ;;  %v6924_v10 = vld [vmem:[%s8869_s16 + $0x19b8] sm:$0xff] }
 0x32c   : > { %v8653_v2 = vpop.f32.mrf.mxu0  ;;  %8790 = vmatprep.subr.bf16.mxu0 %v12693_v56  ;;  %v7876_v41 = vadd.f32 %v7875_v53, %v7874_v6  ;;  %v6921_v6 = vld [vmem:[%s8869_s16 + $0x1988] sm:$0xff]  ;;  %v6957_v62 = vld [vmem:[%s8869_s16 + $0x1760] sm:$0xff]  ;;  %v5446_v53 = vpack.c.bf16 %v6953_v45, %v6950_v40 }
 0x32d   : > { %v7877_v30 = vpop.f32.mrf.mxu1  ;;  %v3816_v16 = vadd.f32 %v8653_v2, %v7873_v46  ;;  %v5102_v0 = vpack.c.bf16 %v6924_v10, %v6921_v6  ;;  %v5450_v2 = vpack.c.bf16 %v6960_v14, %v6957_v62  ;;  %v6932_v14 = vld [vmem:[%s8869_s16 + $0x1a40] sm:$0xff] }
 0x32e   : > { %v3807_v43 = vpop.f32.mrf.mxu0  ;;  %8791 = vmatpush3.bf16.msra.mxu0 %v12693_v56 }
 0x32f   : > { %v7878_v9 = vpop.f32.mrf.mxu1  ;;  %3897 = vrot.lane.b32.xlu1 %v3816_v16, %s8838_s20  ;;  %3891 = vrot.lane.b32.xlu0 %v3805_v5, %s8838_s20  ;;  %v3808_v15 = vadd.f32 %v7867_v28, %v3807_v43  ;;  %v6956_v43 = vld [vmem:[%s8869_s16 + $0x1758] sm:$0xff]  ;;  %v6959_v28 = vld [vmem:[%s8869_s16 + $0x1788] sm:$0xff] }
 0x330   : > { %v8656_v33 = vpop.f32.mrf.mxu0  ;;  %5186 = vmatmul.mubr.bf16.gmra.mxu0 %v5092_v36  ;;  %8792 = vmatprep.subr.bf16.mxu0 %v12694_v47  ;;  %v7879_v3 = vadd.f32 %v7878_v9, %v7877_v30  ;;  %v6927_v9 = vld [vmem:[%s8869_s16 + $0x19e8] sm:$0xff]  ;;  %v5449_v39 = vpack.c.bf16 %v6959_v28, %v6956_v43 }
 0x331   : > { %v7880_v58 = vpop.f32.mrf.mxu1  ;;  %8775 = vmatmul.mubr.bf16.gmra.mxu1 %v5112_v27  ;;  %5193 = vmatprep.mubr.bf16.mxu0 %v5096_v55  ;;  %v6920_v27 = vld [vmem:[%s8869_s16 + $0x1980] sm:$0xff]  ;;  %v6923_v55 = vld [vmem:[%s8869_s16 + $0x19b0] sm:$0xff] }
 0x332   : > { %v3820_v35 = vpop.f32.mrf.mxu0  ;;  %5511 = vmatprep.mubr.bf16.mxu1 %v5444_v8  ;;  %8793 = vmatpush3.bf16.msra.mxu0 %v12694_v47  ;;  %v5101_v18 = vpack.c.bf16 %v6923_v55, %v6920_v27 }
 0x333   : > { %v7881_v59 = vpop.f32.mrf.mxu1  ;;  %v3821_v20 = vadd.f32 %v7876_v41, %v3820_v35  ;;  %3893 = vrot.lane.b32.xlu1 %v3808_v15, %s8838_s20  ;;  %v6963_v15 = vld [vmem:[%s8869_s16 + $0x17c0] sm:$0xff] }
 0x334   : > { %v7882_v61 = vadd.f32 %v7881_v59, %v7880_v58  ;;  %v8657_v7 = vpop.f32.mrf.mxu0  ;;  %v6966_v58 = vld [vmem:[%s8869_s16 + $0x17f0] sm:$0xff] }
 0x335   : > { %v7883_v54 = vpop.f32.mrf.mxu1  ;;  %3899 = vrot.lane.b32.xlu0 %v3821_v20, %s8838_s20  ;;  %v5453_v23 = vpack.c.bf16 %v6966_v58, %v6963_v15 }
 0x336   : > { %v3823_v34 = vpop.f32.mrf.mxu0  ;;  %v3829_v49 = vadd.f32 %v8656_v33, %v7882_v61  ;;  %v6930_v33 = vld [vmem:[%s8869_s16 + $0x1a18] sm:$0xff] }
 0x337   : > { %v7884_v44 = vpop.f32.mrf.mxu1  ;;  %v3824_v24 = vadd.f32 %v7879_v3, %v3823_v34  ;;  %v5105_v59 = vpack.c.bf16 %v6930_v33, %v6927_v9  ;;  %v6929_v3 = vld [vmem:[%s8869_s16 + $0x1a10] sm:$0xff]  ;;  %v6965_v34 = vld [vmem:[%s8869_s16 + $0x17e8] sm:$0xff] }
 0x338   : > { %v7885_v31 = vadd.f32 %v7884_v44, %v7883_v54  ;;  %v7922_v1 = vpop.f32.mrf.mxu0  ;;  %5194 = vmatmul.mubr.bf16.gmra.mxu0 %v5095_v25  ;;  %v6962_v54 = vld [vmem:[%s8869_s16 + $0x17b8] sm:$0xff] }
 0x339   : > { %v8676_v37 = vpop.f32.mrf.mxu1  ;;  %5512 = vmatmul.mubr.bf16.vlgmr.msra.gmra.mxu1 %v5443_v26  ;;  %3901 = vrot.lane.b32.xlu1 %v3824_v24, %s8838_s20  ;;  %v6936_v44 = vld [vmem:[%s8869_s16 + $0x1a78] sm:$0xff]  ;;  %v5452_v40 = vpack.c.bf16 %v6965_v34, %v6962_v54  ;;  %v6984_v54 = vld [vmem:[%s8869_s16 + $0x1910] sm:$0xff] }
 0x33a   : > { %3903 = vrot.lane.b32.xlu0 %v3829_v49, %s8838_s20  ;;  %v7923_v57 = vpop.f32.mrf.mxu0  ;;  %5201 = vmatprep.mubr.bf16.mxu0 %v5099_v52  ;;  %v3832_v48 = vadd.f32 %v8657_v7, %v7885_v31  ;;  %v6933_v52 = vld [vmem:[%s8869_s16 + $0x1a48] sm:$0xff]  ;;  %v6969_v49 = vld [vmem:[%s8869_s16 + $0x1820] sm:$0xff]  ;;  %v6972_v31 = vld [vmem:[%s8869_s16 + $0x1850] sm:$0xff] }
 0x33b   : > { %v7924_v4 = vadd.f32 %v7923_v57, %v7922_v1  ;;  %v4325_v21 = vpop.f32.mrf.mxu1  ;;  %5519 = vmatprep.mubr.bf16.mxu1 %v5447_v63  ;;  %v5108_v57 = vpack.c.bf16 %v6936_v44, %v6933_v52  ;;  %v5456_v6 = vpack.c.bf16 %v6972_v31, %v6969_v49 }
 0x33c   : > { %v7925_v13 = vpop.f32.mrf.mxu0 }
 0x33d   : > { %v11790_v19 = vadd.f32 %v7924_v4, %v4325_v21  ;;  %v8677_v46 = vpop.f32.mrf.mxu1  ;;  %3905 = vrot.lane.b32.xlu1 %v3832_v48, %s8838_s20 }
 0x33e   : > { %v7926_v17 = vpop.f32.mrf.mxu0 }
 0x33f   : > { %v7927_v36 = vadd.f32 %v7926_v17, %v7925_v13  ;;  %v4328_v56 = vpop.f32.mrf.mxu1  ;;  %v6935_v13 = vld [vmem:[%s8869_s16 + $0x1a70] sm:$0xff]  ;;  %v6942_v17 = vld [vmem:[%s8869_s16 + $0x1ad8] sm:$0xff] }
 0x340   : > { %v7928_v5 = vpop.f32.mrf.mxu0  ;;  %5202 = vmatmul.mubr.bf16.gmra.mxu0 %v5098_v29  ;;  %v6968_v29 = vld [vmem:[%s8869_s16 + $0x1818] sm:$0xff]  ;;  %v5107_v55 = vpack.c.bf16 %v6935_v13, %v6932_v14  ;;  %v6983_v14 = vld [vmem:[%s8869_s16 + $0x1908] sm:$0xff] }
 0x341   : > { %v11793_v30 = vadd.f32 %v7927_v36, %v4328_v56  ;;  %v11795_v16 = vpop.f32.mrf.mxu1  ;;  %5520 = vmatmul.mubr.bf16.gmra.mxu1 %v5446_v53  ;;  %5209 = vmatprep.mubr.bf16.mxu0 %v5102_v0  ;;  %v6971_v53 = vld [vmem:[%s8869_s16 + $0x1848] sm:$0xff]  ;;  %v6975_v56 = vld [vmem:[%s8869_s16 + $0x1880] sm:$0xff] }
 0x342   : > { %v7929_v8 = vpop.f32.mrf.mxu0  ;;  %5527 = vmatprep.mubr.bf16.mxu1 %v5450_v2  ;;  %v6939_v0 = vld [vmem:[%s8869_s16 + $0x1aa8] sm:$0xff]  ;;  %v5455_v28 = vpack.c.bf16 %v6971_v53, %v6968_v29  ;;  %v6961_v29 = vld [vmem:[%s8869_s16 + $0x1798] sm:$0xff] }
 0x343   : > { %v7930_v47 = vadd.f32 %v7929_v8, %v7928_v5  ;;  %v4341_v41 = vpop.f32.mrf.mxu1  ;;  %v6978_v5 = vld [vmem:[%s8869_s16 + $0x18b0] sm:$0xff]  ;;  %v5111_v9 = vpack.c.bf16 %v6942_v17, %v6939_v0  ;;  %v6958_v13 = vld [vmem:[%s8869_s16 + $0x1768] sm:$0xff]  ;;  %v6987_v0 = vld [vmem:[%s8869_s16 + $0x1940] sm:$0xff] }
 0x344   : > { %v7931_v42 = vpop.f32.mrf.mxu0  ;;  %v6990_v17 = vld [vmem:[%s8869_s16 + $0x1970] sm:$0xff] }
 0x345   : > { %v11805_v35 = vadd.f32 %v8676_v37, %v7930_v47  ;;  %v11807_v11 = vpop.f32.mrf.mxu1  ;;  %v5104_v37 = vpack.c.bf16 %v6929_v3, %v6926_v38  ;;  %v5459_v47 = vpack.c.bf16 %v6978_v5, %v6975_v56  ;;  %v6981_v3 = vld [vmem:[%s8869_s16 + $0x18e0] sm:$0xff] }
 0x346   : > { %v7932_v20 = vpop.f32.mrf.mxu0  ;;  %v5462_v31 = vpack.c.bf16 %v6984_v54, %v6981_v3  ;;  %v6993_v54 = vld [vmem:[%s8869_s16 + $0x19a0] sm:$0xff] }
 0x347   : > { %v7933_v32 = vadd.f32 %v7932_v20, %v7931_v42  ;;  %v4344_v61 = vpop.f32.mrf.mxu1 }
 0x348   : > { %v7934_v7 = vpop.f32.mrf.mxu0  ;;  %5210 = vmatmul.mubr.bf16.gmra.mxu0 %v5101_v18  ;;  %v6938_v18 = vld [vmem:[%s8869_s16 + $0x1aa0] sm:$0xff] }
 0x349   : > { %v11809_v25 = vadd.f32 %v8677_v46, %v7933_v32  ;;  %v11811_v22 = vpop.f32.mrf.mxu1  ;;  %5528 = vmatmul.mubr.bf16.gmra.mxu1 %v5449_v39  ;;  %5217 = vmatprep.mubr.bf16.mxu0 %v5105_v59  ;;  %v6941_v39 = vld [vmem:[%s8869_s16 + $0x1ad0] sm:$0xff]  ;;  %v6974_v59 = vld [vmem:[%s8869_s16 + $0x1878] sm:$0xff]  ;;  %v6946_v32 = vld [vmem:[%s8869_s16 + $0x16a8] sm:$0xff] }
 0x34a   : > { %v7935_v26 = vpop.f32.mrf.mxu0  ;;  %5535 = vmatprep.mubr.bf16.mxu1 %v5453_v23  ;;  %v6977_v23 = vld [vmem:[%s8869_s16 + $0x18a8] sm:$0xff] }
 0x34b   : > { %v7936_v24 = vadd.f32 %v7935_v26, %v7934_v7  ;;  %v4357_v63 = vpop.f32.mrf.mxu1  ;;  %v5458_v44 = vpack.c.bf16 %v6977_v23, %v6974_v59  ;;  %v6967_v59 = vld [vmem:[%s8869_s16 + $0x17f8] sm:$0xff]  ;;  %v6989_v23 = vld [vmem:[%s8869_s16 + $0x1968] sm:$0xff] }
 0x34c   : > { %v7937_v1 = vpop.f32.mrf.mxu0 }
 0x34d   : > { %v11821_v50 = vadd.f32 %v7936_v24, %v4341_v41  ;;  %v11823_v51 = vpop.f32.mrf.mxu1 }
 0x34e   : > { %v7938_v45 = vpop.f32.mrf.mxu0 }
 0x34f   : > { %v7939_v10 = vadd.f32 %v7938_v45, %v7937_v1  ;;  %v4360_v48 = vpop.f32.mrf.mxu1  ;;  %v6980_v45 = vld [vmem:[%s8869_s16 + $0x18d8] sm:$0xff] }
 0x350   : > { %v7940_v4 = vpop.f32.mrf.mxu0  ;;  %5218 = vmatmul.mubr.bf16.gmra.mxu0 %v5104_v37 }
 0x351   : > { %v11825_v21 = vadd.f32 %v7939_v10, %v4344_v61  ;;  %v11827_v62 = vpop.f32.mrf.mxu1  ;;  %5536 = vmatmul.mubr.bf16.gmra.mxu1 %v5452_v40  ;;  %5225 = vmatprep.mubr.bf16.mxu0 %v5108_v57  ;;  %v6949_v61 = vld [vmem:[%s8869_s16 + $0x16d8] sm:$0xff] }
 0x352   : > { %v7941_v46 = vpop.f32.mrf.mxu0  ;;  %5543 = vmatprep.mubr.bf16.mxu1 %v5456_v6  ;;  %v5445_v24 = vpack.c.bf16 %v6949_v61, %v6946_v32  ;;  %v6952_v6 = vld [vmem:[%s8869_s16 + $0x1708] sm:$0xff]  ;;  %v6955_v10 = vld [vmem:[%s8869_s16 + $0x1738] sm:$0xff] }
 0x353   : > { %v7942_v2 = vadd.f32 %v7941_v46, %v7940_v4  ;;  %v11835_v36 = vpop.f32.mrf.mxu1  ;;  %v6970_v32 = vld [vmem:[%s8869_s16 + $0x1828] sm:$0xff]  ;;  %v6973_v61 = vld [vmem:[%s8869_s16 + $0x1858] sm:$0xff] }
 0x354   : > { %v7943_v27 = vpop.f32.mrf.mxu0 }
 0x355   : > { %v11840_v43 = vadd.f32 %v11795_v16, %v7942_v2  ;;  %v11842_v8 = vpop.f32.mrf.mxu1 }
 0x356   : > { %v7944_v33 = vpop.f32.mrf.mxu0 }
 0x357   : > { %v7945_v41 = vadd.f32 %v7944_v33, %v7943_v27  ;;  %v11844_v15 = vpop.f32.mrf.mxu1  ;;  %v5461_v27 = vpack.c.bf16 %v6983_v14, %v6980_v45  ;;  %v6992_v14 = vld [vmem:[%s8869_s16 + $0x1998] sm:$0xff] }
 0x358   : > { %v7946_v58 = vpop.f32.mrf.mxu0  ;;  %5226 = vmatmul.mubr.bf16.gmra.mxu0 %v5107_v55  ;;  %v5451_v55 = vpack.c.bf16 %v6961_v29, %v6958_v13  ;;  %v6976_v13 = vld [vmem:[%s8869_s16 + $0x1888] sm:$0xff]  ;;  %v6979_v29 = vld [vmem:[%s8869_s16 + $0x18b8] sm:$0xff] }
 0x359   : > { %v11847_v16 = vadd.f32 %v11807_v11, %v7945_v41  ;;  %v11849_v42 = vpop.f32.mrf.mxu1  ;;  %5544 = vmatmul.mubr.bf16.gmra.mxu1 %v5455_v28  ;;  %5233 = vmatprep.mubr.bf16.mxu0 %v5111_v9  ;;  %v5110_v11 = vpack.c.bf16 %v6941_v39, %v6938_v18  ;;  %v5465_v9 = vpack.c.bf16 %v6990_v17, %v6987_v0  ;;  %v6986_v18 = vld [vmem:[%s8869_s16 + $0x1938] sm:$0xff]  ;;  %v6964_v39 = vld [vmem:[%s8869_s16 + $0x17c8] sm:$0xff] }
 0x35a   : > { %v7947_v20 = vpop.f32.mrf.mxu0  ;;  %5551 = vmatprep.mubr.bf16.mxu1 %v5459_v47  ;;  %v6995_v0 = vld [vmem:[%s8869_s16 + $0x19c8] sm:$0xff] }
 0x35b   : > { %v7948_v7 = vadd.f32 %v7947_v20, %v7946_v58  ;;  %v11857_v38 = vpop.f32.mrf.mxu1  ;;  %v6982_v17 = vld [vmem:[%s8869_s16 + $0x18e8] sm:$0xff] }
 0x35c   : > { %v7949_v26 = vpop.f32.mrf.mxu0 }
 0x35d   : > { %v11861_v34 = vadd.f32 %v7948_v7, %v4357_v63  ;;  %v11863_v52 = vpop.f32.mrf.mxu1 }
 0x35e   : > { %v7950_v49 = vpop.f32.mrf.mxu0 }
 0x35f   : > { %v7951_v1 = vadd.f32 %v7950_v49, %v7949_v26  ;;  %v11865_v37 = vpop.f32.mrf.mxu1  ;;  %v6996_v26 = vld [vmem:[%s8869_s16 + $0x19d0] sm:$0xff]  ;;  %v5464_v49 = vpack.c.bf16 %v6989_v23, %v6986_v18  ;;  %v5467_v18 = vpack.c.bf16 %v6995_v0, %v6992_v14 }
 0x360   : > { %v7952_v40 = vpop.f32.mrf.mxu0  ;;  %5234 = vmatmul.mubr.bf16.gmra.mxu0 %v5110_v11  ;;  %v7008_v14 = vld [vmem:[%s8869_s16 + $0x1a90] sm:$0xff] }
 0x361   : > { %v11867_v57 = vadd.f32 %v7951_v1, %v4360_v48  ;;  %v11869_v63 = vpop.f32.mrf.mxu1  ;;  %5552 = vmatmul.mubr.bf16.gmra.mxu1 %v5458_v44  ;;  %8794 = vmatprep.mubr.bf16.mxu0 %v5445_v24  ;;  %v5448_v48 = vpack.c.bf16 %v6955_v10, %v6952_v6 }
 0x362   : > { %v7953_v4 = vpop.f32.mrf.mxu0  ;;  %5559 = vmatprep.mubr.bf16.mxu1 %v5462_v31  ;;  %v5457_v31 = vpack.c.bf16 %v6973_v61, %v6970_v32 }
 0x363   : > { %v7954_v46 = vadd.f32 %v7953_v4, %v7952_v40  ;;  %v11877_v53 = vpop.f32.mrf.mxu1  ;;  %v5468_v40 = vpack.c.bf16 %v6996_v26, %v6993_v54  ;;  %v6998_v54 = vld [vmem:[%s8869_s16 + $0x19f8] sm:$0xff]  ;;  %v6988_v26 = vld [vmem:[%s8869_s16 + $0x1948] sm:$0xff] }
 0x364   : > { %v7955_v2 = vpop.f32.mrf.mxu0 }
 0x365   : > { %v11882_v56 = vadd.f32 %v11811_v22, %v7954_v46  ;;  %v11884_v5 = vpop.f32.mrf.mxu1 }
 0x366   : > { %v7956_v28 = vpop.f32.mrf.mxu0 }
 0x367   : > { %v7957_v33 = vadd.f32 %v7956_v28, %v7955_v2  ;;  %v11886_v47 = vpop.f32.mrf.mxu1  ;;  %v6985_v2 = vld [vmem:[%s8869_s16 + $0x1918] sm:$0xff]  ;;  %v7002_v28 = vld [vmem:[%s8869_s16 + $0x1a30] sm:$0xff] }
 0x368   : > { %v7958_v41 = vpop.f32.mrf.mxu0  ;;  %8795 = vmatmul.mubr.bf16.vlgmr.msra.gmra.mxu0 %v5448_v48 }
 0x369   : > { %v11889_v22 = vadd.f32 %v11823_v51, %v7957_v33  ;;  %v11891_v58 = vpop.f32.mrf.mxu1  ;;  %5560 = vmatmul.mubr.bf16.gmra.mxu1 %v5461_v27  ;;  %8798 = vmatprep.mubr.bf16.mxu0 %v5451_v55  ;;  %v5454_v51 = vpack.c.bf16 %v6967_v59, %v6964_v39  ;;  %v6999_v55 = vld [vmem:[%s8869_s16 + $0x1a00] sm:$0xff]  ;;  %v5463_v39 = vpack.c.bf16 %v6985_v2, %v6982_v17 }
 0x36a   : > { %v7959_v20 = vpop.f32.mrf.mxu0  ;;  %5567 = vmatprep.mubr.bf16.mxu1 %v5465_v9 }
 0x36b   : > { %v7960_v7 = vadd.f32 %v7959_v20, %v7958_v41  ;;  %v11899_v3 = vpop.f32.mrf.mxu1  ;;  %v5471_v20 = vpack.c.bf16 %v7002_v28, %v6999_v55 }
 0x36c   : > { %v7961_v11 = vpop.f32.mrf.mxu0 }
 0x36d   : > { %v11904_v44 = vadd.f32 %v7960_v7, %v11835_v36  ;;  %v11906_v24 = vpop.f32.mrf.mxu1 }
 0x36e   : > { %v7962_v1 = vpop.f32.mrf.mxu0 }
 0x36f   : > { %v7963_v45 = vadd.f32 %v7962_v1, %v7961_v11  ;;  %v11908_v6 = vpop.f32.mrf.mxu1  ;;  %v6991_v11 = vld [vmem:[%s8869_s16 + $0x1978] sm:$0xff] }
 0x370   : > { %v7964_v10 = vpop.f32.mrf.mxu0  ;;  %8799 = vmatmul.mubr.bf16.gmra.mxu0 %v5454_v51  ;;  %v6997_v1 = vld [vmem:[%s8869_s16 + $0x19d8] sm:$0xff] }
 0x371   : > { %v11911_v36 = vadd.f32 %v7963_v45, %v11844_v15  ;;  %v11913_v4 = vpop.f32.mrf.mxu1  ;;  %5568 = vmatmul.mubr.bf16.gmra.mxu1 %v5464_v49  ;;  %8802 = vmatprep.mubr.bf16.mxu0 %v5457_v31  ;;  %v5460_v15 = vpack.c.bf16 %v6979_v29, %v6976_v13  ;;  %v7001_v49 = vld [vmem:[%s8869_s16 + $0x1a28] sm:$0xff]  ;;  %v5466_v13 = vpack.c.bf16 %v6991_v11, %v6988_v26 }
 0x372   : > { %v7965_v46 = vpop.f32.mrf.mxu0  ;;  %5575 = vmatprep.mubr.bf16.mxu1 %v5468_v40  ;;  %v6994_v31 = vld [vmem:[%s8869_s16 + $0x19a8] sm:$0xff]  ;;  %v5470_v17 = vpack.c.bf16 %v7001_v49, %v6998_v54  ;;  %v7003_v54 = vld [vmem:[%s8869_s16 + $0x1a38] sm:$0xff] }
 0x373   : > { %v7966_v48 = vadd.f32 %v7965_v46, %v7964_v10  ;;  %v11921_v27 = vpop.f32.mrf.mxu1  ;;  %v7005_v10 = vld [vmem:[%s8869_s16 + $0x1a60] sm:$0xff]  ;;  %v5469_v2 = vpack.c.bf16 %v6997_v1, %v6994_v31  ;;  %v12696_v26 = vld [vmem:[#allocation35_spill] sm:$0xff]  ;;  %v7009_v1 = vld [vmem:[%s8869_s16 + $0x1a98] sm:$0xff] }
 0x374   : > { %v7967_v9 = vpop.f32.mrf.mxu0  ;;  %v7007_v31 = vld [vmem:[%s8869_s16 + $0x1a88] sm:$0xff] }
 0x375   : > { %v11926_v33 = vadd.f32 %v11827_v62, %v7966_v48  ;;  %v11928_v41 = vpop.f32.mrf.mxu1  ;;  %v12695_v48 = vld [vmem:[#allocation37_spill] sm:$0xff] }
 0x376   : > { %v7968_v59 = vpop.f32.mrf.mxu0 }
 0x377   : > { %v7969_v23 = vadd.f32 %v7968_v59, %v7967_v9  ;;  %v11930_v32 = vpop.f32.mrf.mxu1  ;;  %v5474_v9 = vpack.c.bf16 %v7008_v14, %v7005_v10 }
 0x378   : > { %v7970_v61 = vpop.f32.mrf.mxu0  ;;  %8803 = vmatmul.mubr.bf16.gmra.mxu0 %v5460_v15 }
 0x379   : > { %v11933_v62 = vadd.f32 %v11842_v8, %v7969_v23  ;;  %v11935_v7 = vpop.f32.mrf.mxu1  ;;  %5576 = vmatmul.mubr.bf16.gmra.mxu1 %v5467_v18  ;;  %8806 = vmatprep.mubr.bf16.mxu0 %v5463_v39  ;;  %v7004_v23 = vld [vmem:[%s8869_s16 + $0x1a58] sm:$0xff] }
 0x37a   : > { %v7971_v51 = vpop.f32.mrf.mxu0  ;;  %5583 = vmatprep.mubr.bf16.mxu1 %v5471_v20 }
 0x37b   : > { %v7972_v40 = vadd.f32 %v7971_v51, %v7970_v61  ;;  %v11943_v45 = vpop.f32.mrf.mxu1  ;;  %v7000_v61 = vld [vmem:[%s8869_s16 + $0x1a08] sm:$0xff] }
 0x37c   : > { %v7973_v8 = vpop.f32.mrf.mxu0 }
 0x37d   : > { %v11948_v29 = vadd.f32 %v7972_v40, %v11857_v38  ;;  %v11950_v46 = vpop.f32.mrf.mxu1  ;;  %v3864_v0 = vpop.permute.xlu0 %3863  ;;  %v12697_v40 = vld [vmem:[#allocation30_spill] sm:$0xff] }
 0x37e   : > { %v3933_v55 = vsel %vm1078_vm0, %v12695_v48, %v3864_v0  ;;  %v7974_v28 = vpop.f32.mrf.mxu0  ;;  %v7014_v0 = vld [vmem:[%s8869_s16 + $0x1af0] sm:$0xff] }
 0x37f   : > { %6586 = vst [vmem:[%s10229_s24 + $0x250] sm:$0xff] %v3933_v55  ;;  %v7975_v15 = vadd.f32 %v7974_v28, %v7973_v8  ;;  %v11955_v18 = vpop.f32.mrf.mxu1 }
 0x380   : > { %v7976_v38 = vpop.f32.mrf.mxu0  ;;  %8807 = vmatmul.mubr.bf16.gmra.mxu0 %v5466_v13  ;;  %v7011_v13 = vld [vmem:[%s8869_s16 + $0x1ac0] sm:$0xff] }
 0x381   : > { %v11958_v39 = vadd.f32 %v7975_v15, %v11865_v37  ;;  %v11960_v59 = vpop.f32.mrf.mxu1  ;;  %5584 = vmatmul.mubr.bf16.gmra.mxu1 %v5470_v17  ;;  %v3866_v20 = vpop.permute.xlu1 %3865  ;;  %8810 = vmatprep.mubr.bf16.mxu0 %v5469_v2  ;;  %v7006_v37 = vld [vmem:[%s8869_s16 + $0x1a68] sm:$0xff]  ;;  %v5472_v2 = vpack.c.bf16 %v7003_v54, %v7000_v61 }
 0x382   : > { %v3934_v11 = vsel %vm1078_vm0, %v12696_v26, %v3866_v20  ;;  %v3860_v51 = vpop.permute.xlu0 %3859  ;;  %v7977_v49 = vpop.f32.mrf.mxu0  ;;  %5591 = vmatprep.mubr.bf16.mxu1 %v5474_v9  ;;  %v5473_v9 = vpack.c.bf16 %v7007_v31, %v7004_v23  ;;  %v5475_v15 = vpack.c.bf16 %v7009_v1, %v7006_v37  ;;  %v12698_v20 = vld [vmem:[#allocation32_spill] sm:$0xff] }
 0x383   : > { %6587 = vst [vmem:[%s10229_s24 + $0x258] sm:$0xff] %v3934_v11  ;;  %v3931_v10 = vsel %vm1078_vm0, %v12697_v40, %v3860_v51  ;;  %v7978_v14 = vadd.f32 %v7977_v49, %v7976_v38  ;;  %v11973_v8 = vpop.f32.mrf.mxu1  ;;  %v5477_v51 = vpack.c.bf16 %v7014_v0, %v7011_v13  ;;  %v12699_v49 = vld [vmem:[#allocation40_spill] sm:$0xff]  ;;  %v7012_v40 = vld [vmem:[%s8869_s16 + $0x1ac8] sm:$0xff] }
 0x384   : > { %6584 = vst [vmem:[%s10229_s24 + $0x240] sm:$0xff] %v3931_v10  ;;  %v7979_v17 = vpop.f32.mrf.mxu0  ;;  %v7015_v10 = vld [vmem:[%s8869_s16 + $0x1af8] sm:$0xff] }
 0x385   : > { %v11979_v48 = vadd.f32 %v11849_v42, %v7978_v14  ;;  %v11981_v55 = vpop.f32.mrf.mxu1  ;;  %v3862_v28 = vpop.permute.xlu1 %3861  ;;  %v12700_v14 = vld [vmem:[#allocation3_spill] sm:$0xff] }
 0x386   : > { %v3932_v38 = vsel %vm1078_vm0, %v12698_v20, %v3862_v28  ;;  %v3872_v26 = vpop.permute.xlu0 %3871  ;;  %v7980_v11 = vpop.f32.mrf.mxu0  ;;  %v7010_v28 = vld [vmem:[%s8869_s16 + $0x1ab8] sm:$0xff] }
 0x387   : > { %6585 = vst [vmem:[%s10229_s24 + $0x248] sm:$0xff] %v3932_v38  ;;  %v3937_v61 = vsel %vm1078_vm0, %v12699_v49, %v3872_v26  ;;  %v7981_v54 = vadd.f32 %v7980_v11, %v7979_v17  ;;  %v11988_v42 = vpop.f32.mrf.mxu1  ;;  %v5478_v26 = vpack.c.bf16 %v7015_v10, %v7012_v40 }
 0x388   : > { %6590 = vst [vmem:[%s10229_s24 + $0x270] sm:$0xff] %v3937_v61  ;;  %v7982_v23 = vpop.f32.mrf.mxu0  ;;  %8811 = vmatmul.mubr.bf16.gmra.mxu0 %v5472_v2  ;;  %v7013_v2 = vld [vmem:[%s8869_s16 + $0x1ae8] sm:$0xff] }
 0x389   : > { %v11992_v31 = vadd.f32 %v11863_v52, %v7981_v54  ;;  %v11994_v37 = vpop.f32.mrf.mxu1  ;;  %5592 = vmatmul.mubr.bf16.gmra.mxu1 %v5473_v9  ;;  %v3874_v1 = vpop.permute.xlu1 %3873  ;;  %8814 = vmatprep.mubr.bf16.mxu0 %v5475_v15  ;;  %v12701_v52 = vld [vmem:[#allocation41_spill] sm:$0xff]  ;;  %v5476_v61 = vpack.c.bf16 %v7013_v2, %v7010_v28  ;;  %v12702_v54 = vld [vmem:[#allocation39_spill] sm:$0xff] }
 0x38a   : > { %v3938_v13 = vsel %vm1078_vm0, %v12700_v14, %v3874_v1  ;;  %v3868_v0 = vpop.permute.xlu0 %3867  ;;  %v7983_v17 = vpop.f32.mrf.mxu0  ;;  %5599 = vmatprep.mubr.bf16.mxu1 %v5477_v51 }
 0x38b   : > { %6591 = vst [vmem:[%s10229_s24 + $0x278] sm:$0xff] %v3938_v13  ;;  %v3935_v20 = vsel %vm1078_vm0, %v12701_v52, %v3868_v0  ;;  %v7984_v38 = vadd.f32 %v7983_v17, %v7982_v23  ;;  %v12005_v9 = vpop.f32.mrf.mxu1  ;;  %v12703_v23 = vld [vmem:[#allocation2_spill] sm:$0xff]  ;;  %v12704_v52 = vld [vmem:[#allocation11_spill] sm:$0xff] }
 0x38c   : > { %6588 = vst [vmem:[%s10229_s24 + $0x260] sm:$0xff] %v3935_v20  ;;  %v7985_v15 = vpop.f32.mrf.mxu0 }
 0x38d   : > { %v12009_v11 = vadd.f32 %v7984_v38, %v11877_v53  ;;  %v12011_v49 = vpop.f32.mrf.mxu1  ;;  %v3870_v51 = vpop.permute.xlu1 %3869 }
 0x38e   : > { %v3936_v1 = vsel %vm1078_vm0, %v12702_v54, %v3870_v51  ;;  %v3880_v14 = vpop.permute.xlu0 %3879  ;;  %v7986_v13 = vpop.f32.mrf.mxu0 }
 0x38f   : > { %6589 = vst [vmem:[%s10229_s24 + $0x268] sm:$0xff] %v3936_v1  ;;  %v3941_v0 = vsel %vm1078_vm0, %v12703_v23, %v3880_v14  ;;  %v7987_v17 = vadd.f32 %v7986_v13, %v7985_v15  ;;  %v12018_v40 = vpop.f32.mrf.mxu1  ;;  %v12705_v15 = vld [vmem:[#allocation10_spill] sm:$0xff]  ;;  %v12706_v23 = vld [vmem:[#allocation44_spill] sm:$0xff] }
 0x390   : > { %6594 = vst [vmem:[%s10229_s24 + $0x290] sm:$0xff] %v3941_v0  ;;  %v7988_v53 = vpop.f32.mrf.mxu0  ;;  %8815 = vmatmul.mubr.bf16.gmra.mxu0 %v5478_v26 }
 0x391   : > { %v12022_v10 = vadd.f32 %v7987_v17, %v11886_v47  ;;  %v12024_v28 = vpop.f32.mrf.mxu1  ;;  %5600 = vmatmul.mubr.bf16.gmra.mxu1 %v5476_v61  ;;  %v3882_v2 = vpop.permute.xlu1 %3881 }
 0x392   : > { %v3942_v20 = vsel %vm1078_vm0, %v12704_v52, %v3882_v2  ;;  %v3876_v38 = vpop.permute.xlu0 %3875  ;;  %v7989_v51 = vpop.f32.mrf.mxu0  ;;  %v8038_v52 = vadd.f32 %v11921_v27, %v11913_v4 }
 0x393   : > { %6595 = vst [vmem:[%s10229_s24 + $0x298] sm:$0xff] %v3942_v20  ;;  %v3939_v54 = vsel %vm1078_vm0, %v12705_v15, %v3876_v38  ;;  %v7990_v1 = vadd.f32 %v7989_v51, %v7988_v53  ;;  %v12031_v26 = vpop.f32.mrf.mxu1  ;;  %v12707_v53 = vld [vmem:[#allocation31_spill] sm:$0xff] }
 0x394   : > { %6592 = vst [vmem:[%s10229_s24 + $0x280] sm:$0xff] %v3939_v54  ;;  %v7991_v47 = vpop.f32.mrf.mxu0 }
 0x395   : > { %v12035_v14 = vadd.f32 %v11869_v63, %v7990_v1  ;;  %v12037_v61 = vpop.f32.mrf.mxu1  ;;  %v3878_v13 = vpop.permute.xlu1 %3877 }
 0x396   : > { %v3940_v0 = vsel %vm1078_vm0, %v12706_v23, %v3878_v13  ;;  %v3888_v17 = vpop.permute.xlu0 %3887  ;;  %v7992_v2 = vpop.f32.mrf.mxu0  ;;  %v12708_v23 = vld [vmem:[#allocation12_spill] sm:$0xff] }
 0x397   : > { %6593 = vst [vmem:[%s10229_s24 + $0x288] sm:$0xff] %v3940_v0  ;;  %v3945_v20 = vsel %vm1078_vm0, %v12707_v53, %v3888_v17  ;;  %v7993_v38 = vadd.f32 %v7992_v2, %v7991_v47  ;;  %v12046_v51 = vpop.f32.mrf.mxu1  ;;  %v8032_v47 = vadd.f32 %v11899_v3, %v11891_v58  ;;  %v8041_v17 = vadd.f32 %v11930_v32, %v11928_v41  ;;  %v12709_v2 = vld [vmem:[#allocation7_spill] sm:$0xff]  ;;  %v12710_v3 = vld [vmem:[#allocation29_spill] sm:$0xff] }
 0x398   : > { %6598 = vst [vmem:[%s10229_s24 + $0x2b0] sm:$0xff] %v3945_v20  ;;  %v8716_v63 = vpop.f32.mrf.mxu0 }
 0x399   : > { %v12050_v15 = vadd.f32 %v11884_v5, %v7993_v38  ;;  %v12052_v54 = vpop.f32.mrf.mxu1  ;;  %v4700_v1 = vadd.f32 %v8716_v63, %v8038_v52  ;;  %v3890_v13 = vpop.permute.xlu1 %3889 }
 0x39a   : > { %v3946_v4 = vsel %vm1078_vm0, %v12708_v23, %v3890_v13  ;;  %v3884_v27 = vpop.permute.xlu0 %3883  ;;  %v4691_v0 = vpop.f32.mrf.mxu0  ;;  %v8035_v23 = vadd.f32 %v11908_v6, %v11906_v24 }
 0x39b   : > { %6599 = vst [vmem:[%s10229_s24 + $0x2b8] sm:$0xff] %v3946_v4  ;;  %v3943_v5 = vsel %vm1078_vm0, %v12709_v2, %v3884_v27  ;;  %v12063_v53 = vpop.f32.mrf.mxu1  ;;  %4814 = vrot.lane.b32.xlu0 %v4700_v1, %s8838_s20  ;;  %v4692_v20 = vadd.f32 %v8032_v47, %v4691_v0  ;;  %v8050_v4 = vadd.f32 %v11973_v8, %v11960_v59  ;;  %v12711_v1 = vld [vmem:[#allocation9_spill] sm:$0xff] }
 0x39c   : > { %6596 = vst [vmem:[%s10229_s24 + $0x2a0] sm:$0xff] %v3943_v5  ;;  %v8717_v52 = vpop.f32.mrf.mxu0  ;;  %v12712_v5 = vld [vmem:[#allocation14_spill] sm:$0xff] }
 0x39d   : > { %v12067_v38 = vpop.f32.mrf.mxu1  ;;  %v4703_v63 = vadd.f32 %v8717_v52, %v8041_v17  ;;  %v3886_v58 = vpop.permute.xlu1 %3885 }
 0x39e   : > { %v3944_v41 = vsel %vm1078_vm0, %v12710_v3, %v3886_v58  ;;  %v3896_v32 = vpop.permute.xlu0 %3895  ;;  %v4694_v13 = vpop.f32.mrf.mxu0  ;;  %v8044_v58 = vadd.f32 %v11943_v45, %v11935_v7  ;;  %v12714_v45 = vld [vmem:[#allocation15_spill] sm:$0xff] }
 0x39f   : > { %6597 = vst [vmem:[%s10229_s24 + $0x2a8] sm:$0xff] %v3944_v41  ;;  %v3949_v27 = vsel %vm1078_vm0, %v12711_v1, %v3896_v32  ;;  %v12078_v0 = vpop.f32.mrf.mxu1  ;;  %4816 = vrot.lane.b32.xlu1 %v4703_v63, %s8838_s20  ;;  %4810 = vrot.lane.b32.xlu0 %v4692_v20, %s8838_s20  ;;  %v4695_v17 = vadd.f32 %v8035_v23, %v4694_v13  ;;  %v12713_v20 = vld [vmem:[#allocation28_spill] sm:$0xff] }
 0x3a0   : > { %6602 = vst [vmem:[%s10229_s24 + $0x2d0] sm:$0xff] %v3949_v27  ;;  %v8720_v47 = vpop.f32.mrf.mxu0  ;;  %v8053_v63 = vadd.f32 %v11988_v42, %v11981_v55  ;;  %v8047_v1 = vadd.f32 %v11955_v18, %v11950_v46  ;;  %v8062_v27 = vadd.f32 %v12031_v26, %v12024_v28  ;;  %v8056_v18 = vadd.f32 %v12005_v9, %v11994_v37 }
 0x3a1   : > { %v8072_v2 = vpop.f32.mrf.mxu1  ;;  %v4716_v24 = vadd.f32 %v8720_v47, %v8050_v4  ;;  %v3898_v6 = vpop.permute.xlu1 %3897  ;;  %v8065_v28 = vadd.f32 %v12046_v51, %v12037_v61  ;;  %v8059_v51 = vadd.f32 %v12018_v40, %v12011_v49 }
 0x3a2   : > { %v3950_v59 = vsel %vm1078_vm0, %v12712_v5, %v3898_v6  ;;  %v3892_v8 = vpop.permute.xlu0 %3891  ;;  %v4707_v52 = vpop.f32.mrf.mxu0 }
 0x3a3   : > { %6603 = vst [vmem:[%s10229_s24 + $0x2d8] sm:$0xff] %v3950_v59  ;;  %v3947_v3 = vsel %vm1078_vm0, %v12713_v20, %v3892_v8  ;;  %v8073_v41 = vpop.f32.mrf.mxu1  ;;  %4812 = vrot.lane.b32.xlu1 %v4695_v17, %s8838_s20  ;;  %4822 = vrot.lane.b32.xlu0 %v4716_v24, %s8838_s20  ;;  %v4708_v13 = vadd.f32 %v8044_v58, %v4707_v52  ;;  %v12715_v24 = vld [vmem:[#allocation22_spill] sm:$0xff] }
 0x3a4   : > { %6600 = vst [vmem:[%s10229_s24 + $0x2c0] sm:$0xff] %v3947_v3  ;;  %v8721_v32 = vpop.f32.mrf.mxu0 }
 0x3a5   : > { %v8075_v23 = vpop.f32.mrf.mxu1  ;;  %v4719_v4 = vadd.f32 %v8721_v32, %v8053_v63  ;;  %v3894_v7 = vpop.permute.xlu1 %3893  ;;  %v12716_v63 = vld [vmem:[#allocation23_spill] sm:$0xff] }
 0x3a6   : > { %v3948_v55 = vsel %vm1078_vm0, %v12714_v45, %v3894_v7  ;;  %v4710_v42 = vpop.f32.mrf.mxu0  ;;  %v8074_v7 = vadd.f32 %v8073_v41, %v8072_v2 }
 0x3a7   : > { %6601 = vst [vmem:[%s10229_s24 + $0x2c8] sm:$0xff] %v3948_v55  ;;  %v8076_v47 = vpop.f32.mrf.mxu1  ;;  %4824 = vrot.lane.b32.xlu1 %v4719_v4, %s8838_s20  ;;  %4818 = vrot.lane.b32.xlu0 %v4708_v13, %s8838_s20  ;;  %v3900_v17 = vpop.permute.xlu0 %3899  ;;  %v4711_v59 = vadd.f32 %v8047_v1, %v4710_v42 }
 0x3a8   : > { %v3951_v6 = vsel %vm1078_vm0, %v12715_v24, %v3900_v17  ;;  %v8724_v5 = vpop.f32.mrf.mxu0  ;;  %v8077_v49 = vadd.f32 %v8076_v47, %v8075_v23 }
 0x3a9   : > { %6604 = vst [vmem:[%s10229_s24 + $0x2e0] sm:$0xff] %v3951_v6  ;;  %v8078_v8 = vpop.f32.mrf.mxu1  ;;  %v4732_v52 = vadd.f32 %v8724_v5, %v8062_v27  ;;  %v8068_v6 = vadd.f32 %v12063_v53, %v12052_v54 }
 0x3aa   : > { %v4723_v46 = vpop.f32.mrf.mxu0 }
 0x3ab   : > { %v8079_v26 = vpop.f32.mrf.mxu1  ;;  %4820 = vrot.lane.b32.xlu1 %v4711_v59, %s8838_s20  ;;  %v3902_v58 = vpop.permute.xlu1 %3901  ;;  %4830 = vrot.lane.b32.xlu0 %v4732_v52, %s8838_s20  ;;  %v4724_v13 = vadd.f32 %v8056_v18, %v4723_v46  ;;  %v8071_v52 = vadd.f32 %v12078_v0, %v12067_v38 }
 0x3ac   : > { %v3952_v20 = vsel %vm1078_vm0, %v12716_v63, %v3902_v58  ;;  %v3904_v3 = vpop.permute.xlu0 %3903  ;;  %v8725_v32 = vpop.f32.mrf.mxu0  ;;  %v8080_v58 = vadd.f32 %v8079_v26, %v8078_v8 }
 0x3ad   : > { %6605 = vst [vmem:[%s10229_s24 + $0x2e8] sm:$0xff] %v3952_v20  ;;  %v3953_v37 = vsel %vm1078_vm0, %v11573_v60, %v3904_v3  ;;  %v8081_v9 = vpop.f32.mrf.mxu1  ;;  %v4735_v4 = vadd.f32 %v8725_v32, %v8065_v28 }
 0x3ae   : > { %6606 = vst [vmem:[%s10229_s24 + $0x2f0] sm:$0xff] %v3953_v37  ;;  %v4726_v61 = vpop.f32.mrf.mxu0 }
 0x3af   : > { %v8082_v45 = vpop.f32.mrf.mxu1  ;;  %4832 = vrot.lane.b32.xlu1 %v4735_v4, %s8838_s20  ;;  %v3906_v55 = vpop.permute.xlu1 %3905  ;;  %4826 = vrot.lane.b32.xlu0 %v4724_v13, %s8838_s20  ;;  %v4727_v27 = vadd.f32 %v8059_v51, %v4726_v61 }
 0x3b0   : > { %v3954_v42 = vsel %vm1078_vm0, %v11588_v12, %v3906_v55  ;;  %v8728_v1 = vpop.f32.mrf.mxu0  ;;  %v8083_v37 = vadd.f32 %v8082_v45, %v8081_v9 }
 0x3b1   : > { %6607 = vst [vmem:[%s10229_s24 + $0x2f8] sm:$0xff] %v3954_v42  ;;  %v8084_v60 = vpop.f32.mrf.mxu1  ;;  %v4748_v17 = vadd.f32 %v8728_v1, %v8074_v7 }
 0x3b2   : > { %v4739_v24 = vpop.f32.mrf.mxu0 }
 0x3b3   : > { %v8085_v40 = vpop.f32.mrf.mxu1  ;;  %4828 = vrot.lane.b32.xlu1 %v4727_v27, %s8838_s20  ;;  %4838 = vrot.lane.b32.xlu0 %v4748_v17, %s8838_s20  ;;  %v4740_v41 = vadd.f32 %v8068_v6, %v4739_v24 }
 0x3b4   : > { %v8729_v2 = vpop.f32.mrf.mxu0  ;;  %v8086_v46 = vadd.f32 %v8085_v40, %v8084_v60 }
 0x3b5   : > { %v8087_v5 = vpop.f32.mrf.mxu1  ;;  %v4751_v59 = vadd.f32 %v8729_v2, %v8077_v49 }
 0x3b6   : > { %v4742_v12 = vpop.f32.mrf.mxu0 }
 0x3b7   : > { %v8088_v18 = vpop.f32.mrf.mxu1  ;;  %4840 = vrot.lane.b32.xlu1 %v4751_v59, %s8838_s20  ;;  %4834 = vrot.lane.b32.xlu0 %v4740_v41, %s8838_s20  ;;  %v4743_v53 = vadd.f32 %v8071_v52, %v4742_v12 }
 0x3b8   : > { %v8732_v54 = vpop.f32.mrf.mxu0  ;;  %v8089_v63 = vadd.f32 %v8088_v18, %v8087_v5 }
 0x3b9   : > { %v8090_v23 = vpop.f32.mrf.mxu1  ;;  %v4764_v47 = vadd.f32 %v8732_v54, %v8086_v46 }
 0x3ba   : > { %v4755_v28 = vpop.f32.mrf.mxu0 }
 0x3bb   : > { %v8091_v20 = vpop.f32.mrf.mxu1  ;;  %4836 = vrot.lane.b32.xlu1 %v4743_v53, %s8838_s20  ;;  %4846 = vrot.lane.b32.xlu0 %v4764_v47, %s8838_s20  ;;  %v4756_v38 = vadd.f32 %v8080_v58, %v4755_v28 }
 0x3bc   : > { %v8733_v3 = vpop.f32.mrf.mxu0  ;;  %v8092_v51 = vadd.f32 %v8091_v20, %v8090_v23 }
 0x3bd   : > { %v8093_v0 = vpop.f32.mrf.mxu1  ;;  %v4767_v32 = vadd.f32 %v8733_v3, %v8089_v63 }
 0x3be   : > { %v4758_v13 = vpop.f32.mrf.mxu0 }
 0x3bf   : > { %v8094_v4 = vpop.f32.mrf.mxu1  ;;  %4848 = vrot.lane.b32.xlu1 %v4767_v32, %s8838_s20  ;;  %4842 = vrot.lane.b32.xlu0 %v4756_v38, %s8838_s20  ;;  %v4759_v8 = vadd.f32 %v8083_v37, %v4758_v13 }
 0x3c0   : > { %v8736_v61 = vpop.f32.mrf.mxu0  ;;  %v8095_v60 = vadd.f32 %v8094_v4, %v8093_v0 }
 0x3c1   : > { %v8096_v26 = vpop.f32.mrf.mxu1 }
 0x3c2   : > { %v4771_v7 = vpop.f32.mrf.mxu0 }
 0x3c3   : > { %v8097_v55 = vpop.f32.mrf.mxu1  ;;  %v4772_v42 = vadd.f32 %v8092_v51, %v4771_v7  ;;  %4844 = vrot.lane.b32.xlu1 %v4759_v8, %s8838_s20 }
 0x3c4   : > { %v8098_v1 = vadd.f32 %v8097_v55, %v8096_v26  ;;  %v8737_v27 = vpop.f32.mrf.mxu0 }
 0x3c5   : > { %v8099_v17 = vpop.f32.mrf.mxu1  ;;  %4850 = vrot.lane.b32.xlu0 %v4772_v42, %s8838_s20 }
 0x3c6   : > { %v4774_v9 = vpop.f32.mrf.mxu0  ;;  %v4780_v45 = vadd.f32 %v8736_v61, %v8098_v1 }
 0x3c7   : > { %v8100_v24 = vpop.f32.mrf.mxu1  ;;  %v4775_v6 = vadd.f32 %v8095_v60, %v4774_v9 }
 0x3c8   : > { %v8101_v49 = vadd.f32 %v8100_v24, %v8099_v17  ;;  %v8138_v40 = vpop.f32.mrf.mxu0 }
 0x3c9   : > { %v8756_v2 = vpop.f32.mrf.mxu1  ;;  %4852 = vrot.lane.b32.xlu1 %v4775_v6, %s8838_s20  ;;  %4854 = vrot.lane.b32.xlu0 %v4780_v45, %s8838_s20 }
 0x3ca   : > { %v8139_v41 = vpop.f32.mrf.mxu0  ;;  %v4783_v5 = vadd.f32 %v8737_v27, %v8101_v49 }
 0x3cb   : > { %v8140_v59 = vadd.f32 %v8139_v41, %v8138_v40  ;;  %v5276_v12 = vpop.f32.mrf.mxu1 }
 0x3cc   : > { %v8141_v52 = vpop.f32.mrf.mxu0 }
 0x3cd   : > { %v12142_v46 = vadd.f32 %v8140_v59, %v5276_v12  ;;  %v8757_v18 = vpop.f32.mrf.mxu1  ;;  %4856 = vrot.lane.b32.xlu1 %v4783_v5, %s8838_s20 }
 0x3ce   : > { %v8142_v54 = vpop.f32.mrf.mxu0 }
 0x3cf   : > { %v8143_v53 = vadd.f32 %v8142_v54, %v8141_v52  ;;  %v5279_v23 = vpop.f32.mrf.mxu1 }
 0x3d0   : > { %v8144_v47 = vpop.f32.mrf.mxu0 }
 0x3d1   : > { %v12145_v28 = vadd.f32 %v8143_v53, %v5279_v23  ;;  %v8760_v58 = vpop.f32.mrf.mxu1 }
 0x3d2   : > { %v8145_v63 = vpop.f32.mrf.mxu0 }
 0x3d3   : > { %v8146_v20 = vadd.f32 %v8145_v63, %v8144_v47  ;;  %v5292_v3 = vpop.f32.mrf.mxu1 }
 0x3d4   : > { %v8147_v38 = vpop.f32.mrf.mxu0 }
 0x3d5   : > { %v12147_v0 = vadd.f32 %v8756_v2, %v8146_v20  ;;  %v8761_v32 = vpop.f32.mrf.mxu1 }
 0x3d6   : > { %v8148_v13 = vpop.f32.mrf.mxu0 }
 0x3d7   : > { %v8149_v37 = vadd.f32 %v8148_v13, %v8147_v38  ;;  %v5295_v4 = vpop.f32.mrf.mxu1 }
 0x3d8   : > { %v8150_v61 = vpop.f32.mrf.mxu0 }
 0x3d9   : > { %v12149_v51 = vadd.f32 %v8757_v18, %v8149_v37  ;;  %v8764_v8 = vpop.f32.mrf.mxu1 }
 0x3da   : > { %v8151_v26 = vpop.f32.mrf.mxu0 }
 0x3db   : > { %v8152_v7 = vadd.f32 %v8151_v26, %v8150_v61  ;;  %v5308_v55 = vpop.f32.mrf.mxu1 }
 0x3dc   : > { %v8153_v42 = vpop.f32.mrf.mxu0 }
 0x3dd   : > { %v12151_v1 = vadd.f32 %v8152_v7, %v5292_v3  ;;  %v8765_v27 = vpop.f32.mrf.mxu1 }
 0x3de   : > { %v8154_v60 = vpop.f32.mrf.mxu0 }
 0x3df   : > { %v8155_v17 = vadd.f32 %v8154_v60, %v8153_v42  ;;  %v5311_v9 = vpop.f32.mrf.mxu1 }
 0x3e0   : > { %v8156_v45 = vpop.f32.mrf.mxu0 }
 0x3e1   : > { %v12153_v24 = vadd.f32 %v8155_v17, %v5295_v4  ;;  %v8768_v6 = vpop.f32.mrf.mxu1 }
 0x3e2   : > { %v8157_v49 = vpop.f32.mrf.mxu0 }
 0x3e3   : > { %v8158_v40 = vadd.f32 %v8157_v49, %v8156_v45  ;;  %v5324_v2 = vpop.f32.mrf.mxu1 }
 0x3e4   : > { %v8159_v41 = vpop.f32.mrf.mxu0 }
 0x3e5   : > { %v12155_v5 = vadd.f32 %v8760_v58, %v8158_v40  ;;  %v8769_v59 = vpop.f32.mrf.mxu1 }
 0x3e6   : > { %v8160_v12 = vpop.f32.mrf.mxu0 }
 0x3e7   : > { %v8161_v52 = vadd.f32 %v8160_v12, %v8159_v41  ;;  %v5327_v18 = vpop.f32.mrf.mxu1 }
 0x3e8   : > { %v8162_v54 = vpop.f32.mrf.mxu0 }
 0x3e9   : > { %v12157_v53 = vadd.f32 %v8761_v32, %v8161_v52  ;;  %v12159_v23 = vpop.f32.mrf.mxu1 }
 0x3ea   : > { %v8163_v47 = vpop.f32.mrf.mxu0 }
 0x3eb   : > { %v8164_v63 = vadd.f32 %v8163_v47, %v8162_v54  ;;  %v5340_v20 = vpop.f32.mrf.mxu1 }
 0x3ec   : > { %v8165_v3 = vpop.f32.mrf.mxu0 }
 0x3ed   : > { %v12161_v38 = vadd.f32 %v8164_v63, %v5308_v55  ;;  %v12163_v13 = vpop.f32.mrf.mxu1 }
 0x3ee   : > { %v8166_v37 = vpop.f32.mrf.mxu0 }
 0x3ef   : > { %12717 = vst [vmem:[#allocation19_spill] sm:$0xff] %v12161_v38  ;;  %v8167_v58 = vadd.f32 %v8166_v37, %v8165_v3  ;;  %v5343_v4 = vpop.f32.mrf.mxu1 }
 0x3f0   : > { %v8168_v61 = vpop.f32.mrf.mxu0 }
 0x3f1   : > { %v12165_v26 = vadd.f32 %v8167_v58, %v5311_v9  ;;  %v12167_v7 = vpop.f32.mrf.mxu1 }
 0x3f2   : > { %v8169_v32 = vpop.f32.mrf.mxu0 }
 0x3f3   : > { %12718 = vst [vmem:[#allocation17_spill] sm:$0xff] %v12165_v26  ;;  %v8170_v42 = vadd.f32 %v8169_v32, %v8168_v61  ;;  %v12169_v60 = vpop.f32.mrf.mxu1 }
 0x3f4   : > { %v8171_v17 = vpop.f32.mrf.mxu0 }
 0x3f5   : > { %v12171_v45 = vadd.f32 %v8764_v8, %v8170_v42  ;;  %v12173_v49 = vpop.f32.mrf.mxu1 }
 0x3f6   : > { %v8172_v55 = vpop.f32.mrf.mxu0 }
 0x3f7   : > { %v8173_v40 = vadd.f32 %v8172_v55, %v8171_v17  ;;  %v12175_v41 = vpop.f32.mrf.mxu1 }
 0x3f8   : > { %v8174_v12 = vpop.f32.mrf.mxu0 }
 0x3f9   : > { %v12177_v52 = vadd.f32 %v8765_v27, %v8173_v40  ;;  %v12179_v9 = vpop.f32.mrf.mxu1 }
 0x3fa   : > { %v8175_v54 = vpop.f32.mrf.mxu0 }
 0x3fb   : > { %12719 = vst [vmem:[#allocation24_spill] sm:$0xff] %v12177_v52  ;;  %v8176_v47 = vadd.f32 %v8175_v54, %v8174_v12  ;;  %v12181_v63 = vpop.f32.mrf.mxu1 }
 0x3fc   : > { %v8177_v3 = vpop.f32.mrf.mxu0 }
 0x3fd   : > { %v12183_v37 = vadd.f32 %v8176_v47, %v5324_v2  ;;  %v12185_v8 = vpop.f32.mrf.mxu1 }
 0x3fe   : > { %v8178_v58 = vpop.f32.mrf.mxu0 }
 0x3ff   : > { %12720 = vst [vmem:[#allocation25_spill] sm:$0xff] %v12183_v37  ;;  %v8179_v61 = vadd.f32 %v8178_v58, %v8177_v3  ;;  %v12187_v32 = vpop.f32.mrf.mxu1 }
 0x400   : > { %v8180_v42 = vpop.f32.mrf.mxu0 }
 0x401   : > { %v12189_v17 = vadd.f32 %v8179_v61, %v5327_v18  ;;  %v12191_v27 = vpop.f32.mrf.mxu1 }
 0x402   : > { %v8181_v55 = vpop.f32.mrf.mxu0 }
 0x403   : > { %12721 = vst [vmem:[#allocation20_spill] sm:$0xff] %v12189_v17  ;;  %v8182_v40 = vadd.f32 %v8181_v55, %v8180_v42  ;;  %v12193_v26 = vpop.f32.mrf.mxu1 }
 0x404   : > { %v8183_v12 = vpop.f32.mrf.mxu0 }
 0x405   : > { %v12195_v54 = vadd.f32 %v8768_v6, %v8182_v40  ;;  %v12197_v2 = vpop.f32.mrf.mxu1 }
 0x406   : > { %v8184_v47 = vpop.f32.mrf.mxu0 }
 0x407   : > { %12722 = vst [vmem:[#allocation21_spill] sm:$0xff] %v12195_v54  ;;  %v8185_v37 = vadd.f32 %v8184_v47, %v8183_v12  ;;  %v12199_v3 = vpop.f32.mrf.mxu1 }
 0x408   : > { %v8186_v58 = vpop.f32.mrf.mxu0 }
 0x409   : > { %v12201_v38 = vadd.f32 %v8769_v59, %v8185_v37  ;;  %v12203_v18 = vpop.f32.mrf.mxu1 }
 0x40a   : > { %v8187_v61 = vpop.f32.mrf.mxu0 }
 0x40b   : > { %12723 = vst [vmem:[#allocation45_spill] sm:$0xff] %v12201_v38  ;;  %v8188_v17 = vadd.f32 %v8187_v61, %v8186_v58  ;;  %v12205_v42 = vpop.f32.mrf.mxu1 }
 0x40c   : > { %v8189_v55 = vpop.f32.mrf.mxu0 }
 0x40d   : > { %v12207_v6 = vadd.f32 %v8188_v17, %v5340_v20  ;;  %v12209_v40 = vpop.f32.mrf.mxu1  ;;  %v4815_v54 = vpop.permute.xlu0 %4814 }
 0x40e   : > { %v4884_v12 = vsel %vm1078_vm0, %v11805_v35, %v4815_v54  ;;  %v8190_v47 = vpop.f32.mrf.mxu0 }
 0x40f   : > { %12724 = vst [vmem:[#allocation27_spill] sm:$0xff] %v12207_v6  ;;  %6802 = vst [vmem:[%s10229_s24 + $0x310] sm:$0xff] %v4884_v12  ;;  %v8191_v59 = vadd.f32 %v8190_v47, %v8189_v55  ;;  %v12214_v37 = vpop.f32.mrf.mxu1 }
 0x410   : > { %v8192_v38 = vpop.f32.mrf.mxu0 }
 0x411   : > { %v12216_v58 = vadd.f32 %v8191_v59, %v5343_v4  ;;  %v12218_v61 = vpop.f32.mrf.mxu1  ;;  %v4817_v52 = vpop.permute.xlu1 %4816 }
 0x412   : > { %v4885_v20 = vsel %vm1078_vm0, %v11809_v25, %v4817_v52  ;;  %v4811_v17 = vpop.permute.xlu0 %4810  ;;  %v8193_v6 = vpop.f32.mrf.mxu0 }
 0x413   : > { %6803 = vst [vmem:[%s10229_s24 + $0x318] sm:$0xff] %v4885_v20  ;;  %v4882_v35 = vsel %vm1078_vm0, %v11790_v19, %v4811_v17  ;;  %v8194_v54 = vadd.f32 %v8193_v6, %v8192_v38  ;;  %v12225_v55 = vpop.f32.mrf.mxu1 }
 0x414   : > { %6800 = vst [vmem:[%s10229_s24 + $0x300] sm:$0xff] %v4882_v35  ;;  %v8195_v4 = vpop.f32.mrf.mxu0 }
 0x415   : > { %v12229_v12 = vadd.f32 %v12159_v23, %v8194_v54  ;;  %v12231_v47 = vpop.f32.mrf.mxu1  ;;  %v4813_v59 = vpop.permute.xlu1 %4812 }
 0x416   : > { %v4883_v25 = vsel %vm1078_vm0, %v11793_v30, %v4813_v59  ;;  %v4823_v52 = vpop.permute.xlu0 %4822  ;;  %v8196_v20 = vpop.f32.mrf.mxu0 }
 0x417   : > { %6801 = vst [vmem:[%s10229_s24 + $0x308] sm:$0xff] %v4883_v25  ;;  %v4888_v19 = vsel %vm1078_vm0, %v11840_v43, %v4823_v52  ;;  %v8197_v38 = vadd.f32 %v8196_v20, %v8195_v4  ;;  %v12238_v6 = vpop.f32.mrf.mxu1 }
 0x418   : > { %6806 = vst [vmem:[%s10229_s24 + $0x330] sm:$0xff] %v4888_v19  ;;  %v8198_v23 = vpop.f32.mrf.mxu0 }
 0x419   : > { %v12242_v17 = vadd.f32 %v12163_v13, %v8197_v38  ;;  %v12244_v35 = vpop.f32.mrf.mxu1  ;;  %v4825_v54 = vpop.permute.xlu1 %4824 }
 0x41a   : > { %v4889_v30 = vsel %vm1078_vm0, %v11847_v16, %v4825_v54  ;;  %v4819_v59 = vpop.permute.xlu0 %4818  ;;  %v8199_v25 = vpop.f32.mrf.mxu0 }
 0x41b   : > { %6807 = vst [vmem:[%s10229_s24 + $0x338] sm:$0xff] %v4889_v30  ;;  %v4886_v43 = vsel %vm1078_vm0, %v11821_v50, %v4819_v59  ;;  %v8200_v4 = vadd.f32 %v8199_v25, %v8198_v23  ;;  %v12251_v52 = vpop.f32.mrf.mxu1 }
 0x41c   : > { %6804 = vst [vmem:[%s10229_s24 + $0x320] sm:$0xff] %v4886_v43  ;;  %v8201_v13 = vpop.f32.mrf.mxu0 }
 0x41d   : > { %v12255_v20 = vadd.f32 %v8200_v4, %v12169_v60  ;;  %v12257_v19 = vpop.f32.mrf.mxu1  ;;  %v4821_v38 = vpop.permute.xlu1 %4820 }
 0x41e   : > { %v4887_v16 = vsel %vm1078_vm0, %v11825_v21, %v4821_v38  ;;  %v4831_v54 = vpop.permute.xlu0 %4830  ;;  %v8202_v30 = vpop.f32.mrf.mxu0 }
 0x41f   : > { %6805 = vst [vmem:[%s10229_s24 + $0x328] sm:$0xff] %v4887_v16  ;;  %v4892_v50 = vsel %vm1078_vm0, %v11882_v56, %v4831_v54  ;;  %v8203_v23 = vadd.f32 %v8202_v30, %v8201_v13  ;;  %v12264_v59 = vpop.f32.mrf.mxu1 }
 0x420   : > { %6810 = vst [vmem:[%s10229_s24 + $0x350] sm:$0xff] %v4892_v50  ;;  %v8204_v60 = vpop.f32.mrf.mxu0 }
 0x421   : > { %v12268_v25 = vadd.f32 %v8203_v23, %v12175_v41  ;;  %v12270_v43 = vpop.f32.mrf.mxu1  ;;  %v4833_v4 = vpop.permute.xlu1 %4832 }
 0x422   : > { %v4893_v21 = vsel %vm1078_vm0, %v11889_v22, %v4833_v4  ;;  %v4827_v38 = vpop.permute.xlu0 %4826  ;;  %v8205_v16 = vpop.f32.mrf.mxu0 }
 0x423   : > { %6811 = vst [vmem:[%s10229_s24 + $0x358] sm:$0xff] %v4893_v21  ;;  %v4890_v56 = vsel %vm1078_vm0, %v11861_v34, %v4827_v38  ;;  %v8206_v13 = vadd.f32 %v8205_v16, %v8204_v60  ;;  %v12277_v54 = vpop.f32.mrf.mxu1  ;;  %v8254_v34 = vadd.f32 %v12193_v26, %v12191_v27 }
 0x424   : > { %6808 = vst [vmem:[%s10229_s24 + $0x340] sm:$0xff] %v4890_v56  ;;  %v8207_v41 = vpop.f32.mrf.mxu0 }
 0x425   : > { %v12281_v30 = vadd.f32 %v12167_v7, %v8206_v13  ;;  %v12283_v50 = vpop.f32.mrf.mxu1  ;;  %v4829_v23 = vpop.permute.xlu1 %4828 }
 0x426   : > { %v4891_v22 = vsel %vm1078_vm0, %v11867_v57, %v4829_v23  ;;  %v4839_v4 = vpop.permute.xlu0 %4838  ;;  %v8208_v21 = vpop.f32.mrf.mxu0 }
 0x427   : > { %6809 = vst [vmem:[%s10229_s24 + $0x348] sm:$0xff] %v4891_v22  ;;  %v4896_v60 = vsel %vm1078_vm0, %v11926_v33, %v4839_v4  ;;  %v8209_v38 = vadd.f32 %v8208_v21, %v8207_v41  ;;  %v12292_v16 = vpop.f32.mrf.mxu1  ;;  %v8248_v33 = vadd.f32 %v12181_v63, %v12179_v9  ;;  %v8257_v41 = vadd.f32 %v12199_v3, %v12197_v2 }
 0x428   : > { %6814 = vst [vmem:[%s10229_s24 + $0x370] sm:$0xff] %v4896_v60  ;;  %v8796_v7 = vpop.f32.mrf.mxu0 }
 0x429   : > { %v12296_v56 = vadd.f32 %v12173_v49, %v8209_v38  ;;  %v12298_v57 = vpop.f32.mrf.mxu1  ;;  %v5651_v13 = vadd.f32 %v8796_v7, %v8254_v34  ;;  %v4841_v23 = vpop.permute.xlu1 %4840  ;;  %v8266_v38 = vadd.f32 %v12225_v55, %v12218_v61 }
 0x42a   : > { %v4897_v26 = vsel %vm1078_vm0, %v11933_v62, %v4841_v23  ;;  %v4835_v27 = vpop.permute.xlu0 %4834  ;;  %v5642_v22 = vpop.f32.mrf.mxu0 }
 0x42b   : > { %6815 = vst [vmem:[%s10229_s24 + $0x378] sm:$0xff] %v4897_v26  ;;  %v4894_v49 = vsel %vm1078_vm0, %v11904_v44, %v4835_v27  ;;  %v12309_v4 = vpop.f32.mrf.mxu1  ;;  %5765 = vrot.lane.b32.xlu0 %v5651_v13, %s8838_s20  ;;  %v5643_v21 = vadd.f32 %v8248_v33, %v5642_v22  ;;  %v8251_v44 = vadd.f32 %v12187_v32, %v12185_v8 }
 0x42c   : > { %6812 = vst [vmem:[%s10229_s24 + $0x360] sm:$0xff] %v4894_v49  ;;  %v8797_v62 = vpop.f32.mrf.mxu0  ;;  %v8269_v22 = vadd.f32 %v12238_v6, %v12231_v47  ;;  %v8263_v6 = vadd.f32 %v12214_v37, %v12209_v40  ;;  %v8272_v37 = vadd.f32 %v12251_v52, %v12244_v35 }
 0x42d   : > { %v12313_v34 = vpop.f32.mrf.mxu1  ;;  %v5654_v60 = vadd.f32 %v8797_v62, %v8257_v41  ;;  %v4837_v9 = vpop.permute.xlu1 %4836 }
 0x42e   : > { %v4895_v63 = vsel %vm1078_vm0, %v11911_v36, %v4837_v9  ;;  %v4847_v2 = vpop.permute.xlu0 %4846  ;;  %v5645_v3 = vpop.f32.mrf.mxu0 }
 0x42f   : > { %6813 = vst [vmem:[%s10229_s24 + $0x368] sm:$0xff] %v4895_v63  ;;  %v4900_v7 = vsel %vm1078_vm0, %v11979_v48, %v4847_v2  ;;  %v12324_v13 = vpop.f32.mrf.mxu1  ;;  %5767 = vrot.lane.b32.xlu1 %v5654_v60, %s8838_s20  ;;  %5761 = vrot.lane.b32.xlu0 %v5643_v21, %s8838_s20  ;;  %v5646_v23 = vadd.f32 %v8251_v44, %v5645_v3 }
 0x430   : > { %6818 = vst [vmem:[%s10229_s24 + $0x390] sm:$0xff] %v4900_v7  ;;  %v8800_v36 = vpop.f32.mrf.mxu0  ;;  %v8260_v48 = vadd.f32 %v12205_v42, %v12203_v18 }
 0x431   : > { %v8288_v26 = vpop.f32.mrf.mxu1  ;;  %v5667_v8 = vadd.f32 %v8800_v36, %v8266_v38  ;;  %v4849_v32 = vpop.permute.xlu1 %4848 }
 0x432   : > { %v4901_v61 = vsel %vm1078_vm0, %v11992_v31, %v4849_v32  ;;  %v4843_v55 = vpop.permute.xlu0 %4842  ;;  %v5658_v27 = vpop.f32.mrf.mxu0 }
 0x433   : > { %6819 = vst [vmem:[%s10229_s24 + $0x398] sm:$0xff] %v4901_v61  ;;  %v4898_v33 = vsel %vm1078_vm0, %v11948_v29, %v4843_v55  ;;  %v8289_v41 = vpop.f32.mrf.mxu1  ;;  %5763 = vrot.lane.b32.xlu1 %v5646_v23, %s8838_s20  ;;  %5773 = vrot.lane.b32.xlu0 %v5667_v8, %s8838_s20  ;;  %v5659_v49 = vadd.f32 %v8260_v48, %v5658_v27 }
 0x434   : > { %6816 = vst [vmem:[%s10229_s24 + $0x380] sm:$0xff] %v4898_v33  ;;  %v8801_v31 = vpop.f32.mrf.mxu0  ;;  %v8278_v29 = vadd.f32 %v12277_v54, %v12270_v43  ;;  %v8281_v43 = vadd.f32 %v12292_v16, %v12283_v50  ;;  %v8275_v16 = vadd.f32 %v12264_v59, %v12257_v19  ;;  %v8290_v32 = vadd.f32 %v8289_v41, %v8288_v26 }
 0x435   : > { %v8291_v62 = vpop.f32.mrf.mxu1  ;;  %v5670_v21 = vadd.f32 %v8801_v31, %v8269_v22  ;;  %v4845_v18 = vpop.permute.xlu1 %4844  ;;  %v8284_v31 = vadd.f32 %v12309_v4, %v12298_v57 }
 0x436   : > { %v4899_v42 = vsel %vm1078_vm0, %v11958_v39, %v4845_v18  ;;  %v5661_v47 = vpop.f32.mrf.mxu0  ;;  %v8287_v18 = vadd.f32 %v12324_v13, %v12313_v34 }
 0x437   : > { %6817 = vst [vmem:[%s10229_s24 + $0x388] sm:$0xff] %v4899_v42  ;;  %v8292_v60 = vpop.f32.mrf.mxu1  ;;  %5775 = vrot.lane.b32.xlu1 %v5670_v21, %s8838_s20  ;;  %5769 = vrot.lane.b32.xlu0 %v5659_v49, %s8838_s20  ;;  %v4851_v9 = vpop.permute.xlu0 %4850  ;;  %v5662_v39 = vadd.f32 %v8263_v6, %v5661_v47 }
 0x438   : > { %v4902_v63 = vsel %vm1078_vm0, %v12009_v11, %v4851_v9  ;;  %v8804_v2 = vpop.f32.mrf.mxu0  ;;  %v8293_v19 = vadd.f32 %v8292_v60, %v8291_v62 }
 0x439   : > { %6820 = vst [vmem:[%s10229_s24 + $0x3a0] sm:$0xff] %v4902_v63  ;;  %v8294_v3 = vpop.f32.mrf.mxu1  ;;  %v5683_v44 = vadd.f32 %v8804_v2, %v8278_v29 }
 0x43a   : > { %v5674_v40 = vpop.f32.mrf.mxu0 }
 0x43b   : > { %v8295_v54 = vpop.f32.mrf.mxu1  ;;  %5771 = vrot.lane.b32.xlu1 %v5662_v39, %s8838_s20  ;;  %v4853_v38 = vpop.permute.xlu1 %4852  ;;  %5781 = vrot.lane.b32.xlu0 %v5683_v44, %s8838_s20  ;;  %v5675_v23 = vadd.f32 %v8272_v37, %v5674_v40 }
 0x43c   : > { %v4903_v11 = vsel %vm1078_vm0, %v12022_v10, %v4853_v38  ;;  %v4855_v7 = vpop.permute.xlu0 %4854  ;;  %v8805_v36 = vpop.f32.mrf.mxu0  ;;  %v8296_v60 = vadd.f32 %v8295_v54, %v8294_v3 }
 0x43d   : > { %6821 = vst [vmem:[%s10229_s24 + $0x3a8] sm:$0xff] %v4903_v11  ;;  %v4904_v35 = vsel %vm1078_vm0, %v12035_v14, %v4855_v7  ;;  %v8297_v52 = vpop.f32.mrf.mxu1  ;;  %v5686_v8 = vadd.f32 %v8805_v36, %v8281_v43 }
 0x43e   : > { %6822 = vst [vmem:[%s10229_s24 + $0x3b0] sm:$0xff] %v4904_v35  ;;  %v5677_v50 = vpop.f32.mrf.mxu0 }
 0x43f   : > { %v8298_v61 = vpop.f32.mrf.mxu1  ;;  %5783 = vrot.lane.b32.xlu1 %v5686_v8, %s8838_s20  ;;  %v4857_v10 = vpop.permute.xlu1 %4856  ;;  %5777 = vrot.lane.b32.xlu0 %v5675_v23, %s8838_s20  ;;  %v5678_v48 = vadd.f32 %v8275_v16, %v5677_v50 }
 0x440   : > { %v4905_v55 = vsel %vm1078_vm0, %v12050_v15, %v4857_v10  ;;  %v8808_v27 = vpop.f32.mrf.mxu0  ;;  %v8299_v40 = vadd.f32 %v8298_v61, %v8297_v52 }
 0x441   : > { %6823 = vst [vmem:[%s10229_s24 + $0x3b8] sm:$0xff] %v4905_v55  ;;  %v8300_v14 = vpop.f32.mrf.mxu1  ;;  %v5699_v22 = vadd.f32 %v8808_v27, %v8290_v32 }
 0x442   : > { %v5690_v33 = vpop.f32.mrf.mxu0 }
 0x443   : > { %v8301_v59 = vpop.f32.mrf.mxu1  ;;  %5779 = vrot.lane.b32.xlu1 %v5678_v48, %s8838_s20  ;;  %5789 = vrot.lane.b32.xlu0 %v5699_v22, %s8838_s20  ;;  %v5691_v41 = vadd.f32 %v8284_v31, %v5690_v33 }
 0x444   : > { %v8809_v26 = vpop.f32.mrf.mxu0  ;;  %v8302_v42 = vadd.f32 %v8301_v59, %v8300_v14 }
 0x445   : > { %v8303_v49 = vpop.f32.mrf.mxu1  ;;  %v5702_v21 = vadd.f32 %v8809_v26, %v8293_v19 }
 0x446   : > { %v5693_v15 = vpop.f32.mrf.mxu0 }
 0x447   : > { %v8304_v47 = vpop.f32.mrf.mxu1  ;;  %5791 = vrot.lane.b32.xlu1 %v5702_v21, %s8838_s20  ;;  %5785 = vrot.lane.b32.xlu0 %v5691_v41, %s8838_s20  ;;  %v5694_v4 = vadd.f32 %v8287_v18, %v5693_v15 }
 0x448   : > { %v8812_v57 = vpop.f32.mrf.mxu0  ;;  %v8305_v9 = vadd.f32 %v8304_v47, %v8303_v49  ;;  %v12726_v47 = vld [vmem:[#allocation19_spill] sm:$0xff] }
 0x449   : > { %v8306_v62 = vpop.f32.mrf.mxu1  ;;  %v5715_v6 = vadd.f32 %v8812_v57, %v8302_v42  ;;  %v12725_v42 = vld [vmem:[#allocation24_spill] sm:$0xff] }
 0x44a   : > { %v5706_v29 = vpop.f32.mrf.mxu0 }
 0x44b   : > { %v8307_v63 = vpop.f32.mrf.mxu1  ;;  %5787 = vrot.lane.b32.xlu1 %v5694_v4, %s8838_s20  ;;  %5797 = vrot.lane.b32.xlu0 %v5715_v6, %s8838_s20  ;;  %v5707_v34 = vadd.f32 %v8296_v60, %v5706_v29  ;;  %v12728_v6 = vld [vmem:[#allocation21_spill] sm:$0xff] }
 0x44c   : > { %v8813_v2 = vpop.f32.mrf.mxu0  ;;  %v8308_v38 = vadd.f32 %v8307_v63, %v8306_v62  ;;  %v12727_v62 = vld [vmem:[#allocation17_spill] sm:$0xff] }
 0x44d   : > { %v8309_v13 = vpop.f32.mrf.mxu1  ;;  %v5718_v39 = vadd.f32 %v8813_v2, %v8305_v9  ;;  %v12729_v63 = vld [vmem:[#allocation45_spill] sm:$0xff] }
 0x44e   : > { %v5709_v44 = vpop.f32.mrf.mxu0 }
 0x44f   : > { %v8310_v37 = vpop.f32.mrf.mxu1  ;;  %5799 = vrot.lane.b32.xlu1 %v5718_v39, %s8838_s20  ;;  %5793 = vrot.lane.b32.xlu0 %v5707_v34, %s8838_s20  ;;  %v5710_v3 = vadd.f32 %v8299_v40, %v5709_v44  ;;  %v12730_v34 = vld [vmem:[#allocation25_spill] sm:$0xff]  ;;  %v12731_v40 = vld [vmem:[#allocation20_spill] sm:$0xff] }
 0x450   : > { %v8816_v43 = vpop.f32.mrf.mxu0  ;;  %v8311_v8 = vadd.f32 %v8310_v37, %v8309_v13 }
 0x451   : > { %v8312_v54 = vpop.f32.mrf.mxu1 }
 0x452   : > { %v5722_v11 = vpop.f32.mrf.mxu0 }
 0x453   : > { %v8313_v7 = vpop.f32.mrf.mxu1  ;;  %v5723_v36 = vadd.f32 %v8308_v38, %v5722_v11  ;;  %5795 = vrot.lane.b32.xlu1 %v5710_v3, %s8838_s20  ;;  %v12732_v11 = vld [vmem:[#allocation27_spill] sm:$0xff] }
 0x454   : > { %v8314_v23 = vadd.f32 %v8313_v7, %v8312_v54  ;;  %v8817_v35 = vpop.f32.mrf.mxu0 }
 0x455   : > { %v8315_v50 = vpop.f32.mrf.mxu1  ;;  %5801 = vrot.lane.b32.xlu0 %v5723_v36, %s8838_s20 }
 0x456   : > { %v5725_v52 = vpop.f32.mrf.mxu0  ;;  %v5731_v16 = vadd.f32 %v8816_v43, %v8314_v23 }
 0x457   : > { %v8316_v32 = vpop.f32.mrf.mxu1  ;;  %v5726_v61 = vadd.f32 %v8311_v8, %v5725_v52 }
 0x458   : > { %v8317_v10 = vadd.f32 %v8316_v32, %v8315_v50 }
 0x459   : > { %5803 = vrot.lane.b32.xlu1 %v5726_v61, %s8838_s20  ;;  %5805 = vrot.lane.b32.xlu0 %v5731_v16, %s8838_s20 }
 0x45a   : > { %v5734_v55 = vadd.f32 %v8817_v35, %v8317_v10 }
 0x45d   : > { %5807 = vrot.lane.b32.xlu1 %v5734_v55, %s8838_s20 }
 0x49d   : > { %v5766_v27 = vpop.permute.xlu0 %5765 }
 0x49e   : > { %v5835_v48 = vsel %vm1078_vm0, %v12147_v0, %v5766_v27 }
 0x49f   : > { %7018 = vst [vmem:[%s10229_s24 + $0x3d0] sm:$0xff] %v5835_v48 }
 0x4a1   : > { %v5768_v14 = vpop.permute.xlu1 %5767  ;;  %v5762_v22 = vpop.permute.xlu0 %5761 }
 0x4a2   : > { %v5836_v33 = vsel %vm1078_vm0, %v12149_v51, %v5768_v14  ;;  %v5833_v31 = vsel %vm1078_vm0, %v12142_v46, %v5762_v22 }
 0x4a3   : > { %7019 = vst [vmem:[%s10229_s24 + $0x3d8] sm:$0xff] %v5836_v33  ;;  %7016 = vst [vmem:[%s10229_s24 + $0x3c0] sm:$0xff] %v5833_v31 }
 0x4a5   : > { %v5764_v19 = vpop.permute.xlu1 %5763  ;;  %v5774_v59 = vpop.permute.xlu0 %5773 }
 0x4a6   : > { %v5834_v0 = vsel %vm1078_vm0, %v12145_v28, %v5764_v19  ;;  %v5839_v26 = vsel %vm1078_vm0, %v12155_v5, %v5774_v59 }
 0x4a7   : > { %7017 = vst [vmem:[%s10229_s24 + $0x3c8] sm:$0xff] %v5834_v0  ;;  %7022 = vst [vmem:[%s10229_s24 + $0x3f0] sm:$0xff] %v5839_v26 }
 0x4a9   : > { %v5776_v41 = vpop.permute.xlu1 %5775  ;;  %v5770_v51 = vpop.permute.xlu0 %5769 }
 0x4aa   : > { %v5840_v46 = vsel %vm1078_vm0, %v12157_v53, %v5776_v41  ;;  %v5837_v49 = vsel %vm1078_vm0, %v12151_v1, %v5770_v51 }
 0x4ab   : > { %7023 = vst [vmem:[%s10229_s24 + $0x3f8] sm:$0xff] %v5840_v46  ;;  %7020 = vst [vmem:[%s10229_s24 + $0x3e0] sm:$0xff] %v5837_v49 }
 0x4ad   : > { %v5772_v21 = vpop.permute.xlu1 %5771  ;;  %v5782_v28 = vpop.permute.xlu0 %5781 }
 0x4ae   : > { %v5838_v5 = vsel %vm1078_vm0, %v12153_v24, %v5772_v21  ;;  %v5843_v15 = vsel %vm1078_vm0, %v12171_v45, %v5782_v28 }
 0x4af   : > { %7021 = vst [vmem:[%s10229_s24 + $0x3e8] sm:$0xff] %v5838_v5  ;;  %7026 = vst [vmem:[%s10229_s24 + $0x410] sm:$0xff] %v5843_v15 }
 0x4b1   : > { %v5784_v18 = vpop.permute.xlu1 %5783  ;;  %v5778_v53 = vpop.permute.xlu0 %5777 }
 0x4b2   : > { %v5844_v1 = vsel %vm1078_vm0, %v12725_v42, %v5784_v18  ;;  %v5841_v57 = vsel %vm1078_vm0, %v12726_v47, %v5778_v53 }
 0x4b3   : > { %7027 = vst [vmem:[%s10229_s24 + $0x418] sm:$0xff] %v5844_v1  ;;  %7024 = vst [vmem:[%s10229_s24 + $0x400] sm:$0xff] %v5841_v57 }
 0x4b5   : > { %v5780_v4 = vpop.permute.xlu1 %5779  ;;  %v5790_v24 = vpop.permute.xlu0 %5789 }
 0x4b6   : > { %v5842_v45 = vsel %vm1078_vm0, %v12727_v62, %v5780_v4  ;;  %v5847_v29 = vsel %vm1078_vm0, %v12728_v6, %v5790_v24 }
 0x4b7   : > { %7025 = vst [vmem:[%s10229_s24 + $0x408] sm:$0xff] %v5842_v45  ;;  %7030 = vst [vmem:[%s10229_s24 + $0x430] sm:$0xff] %v5847_v29 }
 0x4b9   : > { %v5792_v60 = vpop.permute.xlu1 %5791  ;;  %v5786_v9 = vpop.permute.xlu0 %5785 }
 0x4ba   : > { %v5848_v2 = vsel %vm1078_vm0, %v12729_v63, %v5792_v60  ;;  %v5845_v13 = vsel %vm1078_vm0, %v12730_v34, %v5786_v9 }
 0x4bb   : > { %7031 = vst [vmem:[%s10229_s24 + $0x438] sm:$0xff] %v5848_v2  ;;  %7028 = vst [vmem:[%s10229_s24 + $0x420] sm:$0xff] %v5845_v13 }
 0x4bd   : > { %v5788_v39 = vpop.permute.xlu1 %5787  ;;  %v5798_v44 = vpop.permute.xlu0 %5797 }
 0x4be   : > { %v5846_v37 = vsel %vm1078_vm0, %v12731_v40, %v5788_v39  ;;  %v5851_v43 = vsel %vm1078_vm0, %v12229_v12, %v5798_v44 }
 0x4bf   : > { %7029 = vst [vmem:[%s10229_s24 + $0x428] sm:$0xff] %v5846_v37  ;;  %7034 = vst [vmem:[%s10229_s24 + $0x450] sm:$0xff] %v5851_v43 }
 0x4c1   : > { %v5800_v38 = vpop.permute.xlu1 %5799  ;;  %v5794_v3 = vpop.permute.xlu0 %5793 }
 0x4c2   : > { %v5852_v54 = vsel %vm1078_vm0, %v12242_v17, %v5800_v38  ;;  %v5849_v7 = vsel %vm1078_vm0, %v12732_v11, %v5794_v3 }
 0x4c3   : > { %7035 = vst [vmem:[%s10229_s24 + $0x458] sm:$0xff] %v5852_v54  ;;  %7032 = vst [vmem:[%s10229_s24 + $0x440] sm:$0xff] %v5849_v7 }
 0x4c5   : > { %v5796_v36 = vpop.permute.xlu1 %5795 }
 0x4c6   : > { %v5850_v23 = vsel %vm1078_vm0, %v12216_v58, %v5796_v36 }
 0x4c7   : > { %7033 = vst [vmem:[%s10229_s24 + $0x448] sm:$0xff] %v5850_v23  ;;  %v5802_v12 = vpop.permute.xlu0 %5801 }
 0x4c8   : > { %v5853_v35 = vsel %vm1078_vm0, %v12255_v20, %v5802_v12 }
 0x4c9   : > { %7036 = vst [vmem:[%s10229_s24 + $0x460] sm:$0xff] %v5853_v35 }
 0x4cb   : > { %v5804_v8 = vpop.permute.xlu1 %5803  ;;  %v5806_v50 = vpop.permute.xlu0 %5805 }
 0x4cc   : > { %v5854_v17 = vsel %vm1078_vm0, %v12268_v25, %v5804_v8  ;;  %v5855_v52 = vsel %vm1078_vm0, %v12281_v30, %v5806_v50 }
 0x4cd   : > { %7037 = vst [vmem:[%s10229_s24 + $0x468] sm:$0xff] %v5854_v17  ;;  %7038 = vst [vmem:[%s10229_s24 + $0x470] sm:$0xff] %v5855_v52 }
 0x4cf   : > { %v5808_v16 = vpop.permute.xlu1 %5807 }
 0x4d0   : > { %v5856_v58 = vsel %vm1078_vm0, %v12296_v56, %v5808_v16 }
 0x4d1   : > { %7039 = vst [vmem:[%s10229_s24 + $0x478] sm:$0xff] %v5856_v58 }
 0x4d2 PF: > { %s12_s9 = sadd.s32 1, %s8836_s9  }
 0x4d3   : > { %p9_p4 = scmp.ge.s32.totalorder %s12_s9, 4  }
 0x4d5   :  { %11 = sbr.rel (!%p9_p4) target bundleno = 1 (0x1), region = 76 }

</bundles_post_ra>
